<compile_context>
chip_gen: v6e
topology: v6e:2x2x1
jax: 0.10.0
libtpu: 0.0.40
codegen_flags: <defaults>
</compile_context>

<pallas_src>
import jax
import jax.numpy as jnp
from jax.experimental import pallas as pl
from jax.experimental.pallas import tpu as pltpu

N, CIN, H, W = 1, 192, 7, 7
COUT, KH, KW = 48, 3, 3

M_PAD = 64                   # 49 -> 64   (sublane multiple of 8)
K = KH * KW * CIN            # 1728
K_PAD = 1792                 # 1728 -> 1792 (lane multiple of 128)
COUT_PAD = 128               # 48 -> 128  (lane-dense output slab)


def relu_conv_kernel(p_ref, w_ref, o_ref):
    # p_ref: (M_PAD, K_PAD)    im2col patches of the (un-ReLU'd) zero-padded input
    # w_ref: (K_PAD, COUT_PAD) reshaped + zero-padded conv weights
    # o_ref: (M_PAD, COUT_PAD) lane-dense output block
    p = jnp.maximum(p_ref[...], 0.0)          # ReLU on VPU (zero padding stays zero)
    o_ref[...] = jnp.dot(p, w_ref[...],
                         preferred_element_type=jnp.float32,
                         precision=jax.lax.Precision.HIGHEST)


def prepare_weights(w_oihw):
    """One-time preprocessing (outside the hot path): (COUT,CIN,KH,KW) -> (K_PAD, COUT_PAD)."""
    w = jnp.transpose(w_oihw, (2, 3, 1, 0)).reshape(K, COUT)      # (1728, 48), (kh,kw,cin)-major
    return jnp.pad(w, ((0, K_PAD - K), (0, COUT_PAD - COUT)))     # (1792, 128)


@jax.jit
def relu_conv2d(x_nchw, w_packed):
    """x_nchw: (1,192,7,7) f32, w_packed: (1792,128) f32 -> (1,48,7,7) f32."""
    x_hwc = jnp.transpose(x_nchw[0], (1, 2, 0))                   # (7, 7, 192)
    x_pad = jnp.pad(x_hwc, ((1, 1), (1, 1), (0, 0)))              # (9, 9, 192)
    # im2col, tap-major / channel-minor — matches prepare_weights' row ordering.
    patches = jnp.concatenate(
        [x_pad[kh:kh + H, kw:kw + W, :] for kh in range(KH) for kw in range(KW)],
        axis=-1).reshape(H * W, K)                                # (49, 1728)
    patches = jnp.pad(patches, ((0, M_PAD - H * W), (0, K_PAD - K)))  # (64, 1792)

    flops = 2 * M_PAD * K_PAD * COUT_PAD
    bytes_accessed = 4 * (M_PAD * K_PAD + K_PAD * COUT_PAD + M_PAD * COUT_PAD)

    out = pl.pallas_call(
        relu_conv_kernel,
        out_shape=jax.ShapeDtypeStruct((M_PAD, COUT_PAD), jnp.float32),
        grid=(1,),
        in_specs=[
            pl.BlockSpec((M_PAD, K_PAD), lambda i: (0, 0)),
            pl.BlockSpec((K_PAD, COUT_PAD), lambda i: (0, 0)),
        ],
        out_specs=pl.BlockSpec((M_PAD, COUT_PAD), lambda i: (0, 0)),
        compiler_params=pltpu.CompilerParams(
            dimension_semantics=("arbitrary",)),
        cost_estimate=pl.CostEstimate(
            flops=flops, transcendentals=0, bytes_accessed=bytes_accessed),
    )(patches, w_packed)

    y = out[:H * W, :COUT].reshape(H, W, COUT)                    # (7, 7, 48)
    return jnp.transpose(y, (2, 0, 1))[None]                      # (1, 48, 7, 7)


if __name__ == "__main__":
    key = jax.random.PRNGKey(0)
    kx, kw = jax.random.split(key)
    x = jax.random.normal(kx, (N, CIN, H, W), dtype=jnp.float32)
    # Shape matches PyTorch Conv2d(192, 48, kernel_size=3, bias=False) weights (OIHW).
    weight = jax.random.normal(kw, (COUT, CIN, KH, KW), dtype=jnp.float32) * 0.05

    w_packed = prepare_weights(weight)        # one-time weight packing
    y = relu_conv2d(x, w_packed)
    y = jax.block_until_ready(y)

    # Reference: XLA conv on the ReLU'd input.
    y_ref = jax.lax.conv_general_dilated(
        jnp.maximum(x, 0.0), weight, window_strides=(1, 1),
        padding=((1, 1), (1, 1)),
        dimension_numbers=("NCHW", "OIHW", "NCHW"),
        precision=jax.lax.Precision.HIGHEST)
    assert y.shape == (N, COUT, H, W)
    assert jnp.allclose(y, y_ref, atol=1e-3, rtol=1e-3), float(jnp.max(jnp.abs(y - y_ref)))

    print("KERNEL_OK")
</pallas_src>

<mosaic_0001>
module attributes {stable_mosaic.version = 11 : i64} {
  func.func @relu_conv_kernel(%arg0: i32, %arg1: memref<64x1792xf32, #tpu.memory_space<vmem>>, %arg2: memref<1792x128xf32, #tpu.memory_space<vmem>>, %arg3: memref<64x128xf32, #tpu.memory_space<vmem>>) attributes {dimension_semantics = [#tpu.dimension_semantics<arbitrary>], iteration_bounds = array<i64: 1>, scalar_prefetch = 0 : i64, scratch_operands = 0 : i64, tpu.core_type = #tpu.core_type<tc>, window_params = [{pipeline_mode = #tpu.pipeline_mode<synchronous>, transform_indices = @transform_0, window_bounds = array<i64: 64, 1792>}, {pipeline_mode = #tpu.pipeline_mode<synchronous>, transform_indices = @transform_1, window_bounds = array<i64: 1792, 128>}, {pipeline_mode = #tpu.pipeline_mode<synchronous>, transform_indices = @transform_2, window_bounds = array<i64: 64, 128>}]} {
    %c0 = arith.constant 0 : index
    %c0_0 = arith.constant 0 : index
    %0 = vector.load %arg1[%c0, %c0_0] : memref<64x1792xf32, #tpu.memory_space<vmem>>, vector<64x1792xf32>
    %cst = arith.constant 0.000000e+00 : f32
    %1 = vector.broadcast %cst : f32 to vector<64x1792xf32>
    %2 = arith.maximumf %0, %1 : vector<64x1792xf32>
    %c0_1 = arith.constant 0 : index
    %c0_2 = arith.constant 0 : index
    %3 = vector.load %arg2[%c0_1, %c0_2] : memref<1792x128xf32, #tpu.memory_space<vmem>>, vector<1792x128xf32>
    %cst_3 = arith.constant dense<0.000000e+00> : vector<64x128xf32>
    %4 = tpu.matmul %2, %3, %cst_3 {dimension_numbers = #tpu.dot_dimension_numbers<[1], [0], [0], [1], [0, 0, 1, 1], [], []>, precision = #tpu.contract_precision<fp32>} : vector<64x1792xf32>, vector<1792x128xf32>, vector<64x128xf32> -> vector<64x128xf32>
    %c0_4 = arith.constant 0 : index
    %c0_5 = arith.constant 0 : index
    %5 = vector.load %arg3[%c0_4, %c0_5] : memref<64x128xf32, #tpu.memory_space<vmem>>, vector<64x128xf32>
    tpu.vector_store %arg3[%c0_4, %c0_5], %4 {strides = array<i32>} : memref<64x128xf32, #tpu.memory_space<vmem>>, vector<64x128xf32>,
    return
  }
  func.func @transform_0(%arg0: i32) -> (i32, i32) {
    %c0_i32 = arith.constant 0 : i32
    %c0_i32_0 = arith.constant 0 : i32
    %c0_i32_1 = arith.constant 0 : i32
    return %c0_i32, %c0_i32_0 : i32, i32
  }
  func.func @transform_1(%arg0: i32) -> (i32, i32) {
    %c0_i32 = arith.constant 0 : i32
    %c0_i32_0 = arith.constant 0 : i32
    %c0_i32_1 = arith.constant 0 : i32
    return %c0_i32, %c0_i32_0 : i32, i32
  }
  func.func @transform_2(%arg0: i32) -> (i32, i32) {
    %c0_i32 = arith.constant 0 : i32
    %c0_i32_0 = arith.constant 0 : i32
    %c0_i32_1 = arith.constant 0 : i32
    return %c0_i32, %c0_i32_0 : i32, i32
  }
}

</mosaic_0001>

<bundles_post_ra>
// kernel: relu_conv2d.1
= control target key start
LH: loop header
LB: loop body
LE: loop exit
PB: predicated region body
PF: predicated region fallthrough
CT: control target
= control target key end

     0   :  { %s19569_s1 = inlined_call_operand.vmem [shape: f32[1792,128], index: 1, kind: input, shape index: {}]   ;;  %s19570_s0 = inlined_call_operand.vmem [shape: f32[64,1792], index: 0, kind: input, shape index: {}]   ;;  %s19571_s2 = inlined_call_operand.vmem [shape: f32[64,128], index: 2, kind: output, shape index: {}]  }
   0x1   :  { %v266_v0 = vld [vmem:[%s19569_s1 + $0xf8] sm:$0xff]  ;;  %v265_v2 = vld [vmem:[%s19569_s1 + $0xf0] sm:$0xff]  ;;  %v264_v7 = vld [vmem:[%s19569_s1 + $0xe8] sm:$0xff] }
   0x2   :  { %v250_v1 = vld [vmem:[%s19569_s1 + $0x78] sm:$0xff]  ;;  %v11625_v3 = vand.u32 4294901760, %v266_v0  ;;  %v11629_v5 = vand.u32 4294901760, %v265_v2  ;;  %v249_v6 = vld [vmem:[%s19569_s1 + $0x70] sm:$0xff]  ;;  %v248_v8 = vld [vmem:[%s19569_s1 + $0x68] sm:$0xff]  ;;  %v11642_v10 = vand.u32 4294901760, %v264_v7 }
   0x3   :  { %v11627_v4 = vand.u32 4294901760, %v250_v1  ;;  %v11640_v9 = vand.u32 4294901760, %v249_v6  ;;  %v11644_v11 = vand.u32 4294901760, %v248_v8  ;;  %v263_v12 = vld [vmem:[%s19569_s1 + $0xe0] sm:$0xff]  ;;  %v262_v14 = vld [vmem:[%s19569_s1 + $0xd8] sm:$0xff]  ;;  %v11673_v20 = vld [vmem:[%s19569_s1 + $0xd0] sm:$0xff] }
   0x4   :  { %20674 = vst [vmem:[#allocation2_spill] sm:$0xff] %v11625_v3  ;;  %v247_v13 = vld [vmem:[%s19569_s1 + $0x60] sm:$0xff]  ;;  %9249 = vmatprep.subr.mxu0 %v11625_v3  ;;  %v11656_v15 = vand.u32 4294901760, %v263_v12  ;;  %v11660_v17 = vand.u32 4294901760, %v262_v14  ;;  %v11663_v18 = vsub.f32 %v266_v0, %v11625_v3  ;;  %v11668_v19 = vld [vmem:[%s19569_s1 + $0x58] sm:$0xff]  ;;  %v11678_v21 = vld [vmem:[%s19569_s1 + $0x50] sm:$0xff]  ;;  %v11691_v25 = vsub.f32 %v265_v2, %v11629_v5 }
   0x5   :  { %20675 = vst [vmem:[#allocation3_spill] sm:$0xff] %v11627_v4  ;;  %v11658_v16 = vand.u32 4294901760, %v247_v13  ;;  %9250 = vmatpush3.msra.mxu0 %v11627_v4  ;;  %v11682_v22 = vand.u32 4294901760, %v11668_v19  ;;  %v11685_v23 = vsub.f32 %v250_v1, %v11627_v4  ;;  %v11688_v24 = vand.u32 4294901760, %v11673_v20  ;;  %v11696_v26 = vld [vmem:[%s19569_s1 + $0xc8] sm:$0xff]  ;;  %v11706_v28 = vld [vmem:[%s19569_s1 + $0xc0] sm:$0xff] }
   0x6   :  { %20676 = vst [vmem:[#allocation4_spill] sm:$0xff] %v11663_v18  ;;  %v11701_v27 = vld [vmem:[%s19569_s1 + $0x48] sm:$0xff]  ;;  %9251 = vmatprep.subr.mxu0 %v11629_v5  ;;  %v19585_v29 = vand.u32 4294901760, %v11663_v18  ;;  %v11711_v30 = vand.u32 4294901760, %v11678_v21  ;;  %v11714_v31 = vsub.f32 %v249_v6, %v11640_v9  ;;  %v11717_v32 = vand.u32 4294901760, %v11696_v26  ;;  %v11731_v37 = vld [vmem:[%s19569_s1 + $0x40] sm:$0xff] }
   0x7   :  { %9252 = vmatpush3.msra.mxu0 %v11640_v9  ;;  %v19584_v33 = vand.u32 4294901760, %v11685_v23  ;;  %v19582_v34 = vand.u32 4294901760, %v11691_v25  ;;  %v11723_v35 = vsub.f32 %v264_v7, %v11642_v10  ;;  %v11726_v36 = vand.u32 4294901760, %v11701_v27  ;;  %v11758_v46 = vld [vmem:[%s19569_s1 + $0xb8] sm:$0xff]  ;;  %v11781_v56 = vld [vmem:[%s19569_s1 + $0xb0] sm:$0xff]  ;;  %v11811_v2 = vld [vmem:[%s19569_s1 + $0xa8] sm:$0xff] }
   0x8   :  { %20677 = vst [vmem:[#allocation5_spill] sm:$0xff] %v11711_v30  ;;  %20678 = vst [vmem:[#allocation6_spill] sm:$0xff] %v11714_v31  ;;  %9253 = vmatprep.subr.mxu0 %v11642_v10  ;;  %v792_v38 = vsub.f32 %v11663_v18, %v19585_v29  ;;  %v19581_v39 = vand.u32 4294901760, %v11714_v31  ;;  %v11739_v40 = vsub.f32 %v248_v8, %v11644_v11  ;;  %v11742_v41 = vand.u32 4294901760, %v11706_v28  ;;  %v11771_v51 = vld [vmem:[%s19569_s1 + $0x38] sm:$0xff]  ;;  %v11796_v61 = vld [vmem:[%s19569_s1 + $0x30] sm:$0xff] }
   0x9   :  { %20679 = vst [vmem:[#allocation7_spill] sm:$0xff] %v11717_v32  ;;  %20680 = vst [vmem:[#allocation8_spill] sm:$0xff] %v11723_v35  ;;  %9254 = vmatpush3.msra.mxu0 %v11644_v11  ;;  %v680_v42 = vsub.f32 %v11685_v23, %v19584_v33  ;;  %v799_v43 = vsub.f32 %v11691_v25, %v19582_v34  ;;  %v19579_v44 = vand.u32 4294901760, %v11723_v35  ;;  %v11766_v50 = vand.u32 4294901760, %v11731_v37  ;;  %v11947_v33 = vld [vmem:[%s19569_s1 + $0x88] sm:$0xff] }
   0xa   :  { %20681 = vst [vmem:[#allocation9_spill] sm:$0xff] %v11726_v36  ;;  %20682 = vst [vmem:[#allocation10_spill] sm:$0xff] %v11739_v40  ;;  %v11753_v45 = vsub.f32 %v263_v12, %v11656_v15  ;;  %9255 = vmatprep.subr.mxu0 %v11656_v15  ;;  %v793_v47 = vand.u32 4294901760, %v792_v38  ;;  %v687_v48 = vsub.f32 %v11714_v31, %v19581_v39  ;;  %v19577_v49 = vand.u32 4294901760, %v11739_v40 }
   0xb   :  { %20683 = vst [vmem:[#allocation11_spill] sm:$0xff] %v11742_v41  ;;  %20685 = vst [vmem:[#allocation13_spill] sm:$0xff] %v11766_v50  ;;  %9256 = vmatpush3.msra.mxu0 %v11658_v16  ;;  %v681_v52 = vand.u32 4294901760, %v680_v42  ;;  %v800_v53 = vand.u32 4294901760, %v799_v43  ;;  %v806_v54 = vsub.f32 %v11723_v35, %v19579_v44  ;;  %v11788_v59 = vsub.f32 %v247_v13, %v11658_v16  ;;  %v11825_v13 = vld [vmem:[%s19569_s1 + $0x28] sm:$0xff]  ;;  %v11920_v44 = vld [vmem:[%s19569_s1 + $0x90] sm:$0xff] }
   0xc   :  { %20684 = vst [vmem:[#allocation12_spill] sm:$0xff] %v11753_v45  ;;  %v19576_v55 = vand.u32 4294901760, %v11753_v45  ;;  %9257 = vmatprep.subr.mxu0 %v11660_v17  ;;  %9305 = vmatprep.subr.mxu1 %v793_v47  ;;  %v688_v57 = vand.u32 4294901760, %v687_v48  ;;  %v694_v58 = vsub.f32 %v11739_v40, %v19577_v49  ;;  %v11791_v60 = vand.u32 4294901760, %v11758_v46  ;;  %v11904_v49 = vld [vmem:[%s19569_s1 + $0x18] sm:$0xff] }
   0xd   :  { %9258 = vmatpush3.msra.mxu0 %v11682_v22  ;;  %9306 = vmatpush3.msra.mxu1 %v681_v52  ;;  %v807_v62 = vand.u32 4294901760, %v806_v54  ;;  %v11803_v0 = vsub.f32 %v262_v14, %v11660_v17  ;;  %v11806_v1 = vand.u32 4294901760, %v11771_v51  ;;  %v19574_v7 = vand.u32 4294901760, %v11788_v59 }
   0xe   :  { %20686 = vst [vmem:[#allocation14_spill] sm:$0xff] %v11791_v60  ;;  %v813_v63 = vsub.f32 %v11753_v45, %v19576_v55  ;;  %9259 = vmatprep.subr.mxu0 %v11688_v24  ;;  %9307 = vmatprep.subr.mxu1 %v800_v53  ;;  %v695_v6 = vand.u32 4294901760, %v694_v58  ;;  %v11817_v8 = vsub.f32 %v11668_v19, %v11682_v22  ;;  %v11820_v12 = vand.u32 4294901760, %v11781_v56 }
   0xf   :  { %20687 = vst [vmem:[#allocation15_spill] sm:$0xff] %v11806_v1  ;;  %9260 = vmatpush3.msra.mxu0 %v11711_v30  ;;  %9308 = vmatpush3.msra.mxu1 %v688_v57  ;;  %v19572_v38 = vand.u32 4294901760, %v11803_v0  ;;  %v11831_v42 = vsub.f32 %v11673_v20, %v11688_v24  ;;  %v11834_v19 = vand.u32 4294901760, %v11796_v61  ;;  %v701_v43 = vsub.f32 %v11788_v59, %v19574_v7  ;;  %v11851_v20 = vld [vmem:[%s19569_s1 + $0xa0] sm:$0xff] }
  0x10   :  { %20688 = vst [vmem:[#allocation16_spill] sm:$0xff] %v11817_v8  ;;  %20689 = vst [vmem:[#allocation17_spill] sm:$0xff] %v11820_v12  ;;  %v814_v14 = vand.u32 4294901760, %v813_v63  ;;  %9261 = vmatprep.subr.mxu0 %v11717_v32  ;;  %9309 = vmatprep.subr.mxu1 %v807_v62  ;;  %v19573_v47 = vand.u32 4294901760, %v11817_v8  ;;  %v11843_v48 = vsub.f32 %v11678_v21, %v11711_v30  ;;  %v11846_v52 = vand.u32 4294901760, %v11811_v2 }
  0x11   :  { %20690 = vst [vmem:[#allocation18_spill] sm:$0xff] %v11834_v19  ;;  %9262 = vmatpush3.msra.mxu0 %v11726_v36  ;;  %9310 = vmatpush3.msra.mxu1 %v695_v6  ;;  %v820_v53 = vsub.f32 %v11803_v0, %v19572_v38  ;;  %v19575_v54 = vand.u32 4294901760, %v11831_v42  ;;  %v11860_v21 = vsub.f32 %v11696_v26, %v11717_v32  ;;  %v11863_v57 = vand.u32 4294901760, %v11825_v13  ;;  %v11877_v26 = vld [vmem:[%s19569_s1 + $0x20] sm:$0xff] }
  0x12   :  { %20691 = vst [vmem:[#allocation19_spill] sm:$0xff] %v11846_v52  ;;  %9263 = vmatprep.subr.mxu0 %v11742_v41  ;;  %9311 = vmatprep.subr.mxu1 %v814_v14  ;;  %v702_v58 = vand.u32 4294901760, %v701_v43  ;;  %v708_v62 = vsub.f32 %v11817_v8, %v19573_v47  ;;  %v19578_v63 = vand.u32 4294901760, %v11843_v48  ;;  %v11872_v6 = vsub.f32 %v11701_v27, %v11726_v36  ;;  %v11890_v27 = vld [vmem:[%s19569_s1 + $0x98] sm:$0xff] }
  0x13   :  { %20692 = vst [vmem:[#allocation20_spill] sm:$0xff] %v11863_v57  ;;  %9264 = vmatpush3.msra.mxu0 %v11766_v50  ;;  %v821_v38 = vand.u32 4294901760, %v820_v53  ;;  %v827_v14 = vsub.f32 %v11831_v42, %v19575_v54  ;;  %v19580_v43 = vand.u32 4294901760, %v11860_v21  ;;  %v11885_v47 = vand.u32 4294901760, %v11851_v20 }
  0x14   :  { %9312 = vmatpush3.msra.mxu1 %v702_v58  ;;  %9265 = vmatprep.subr.mxu0 %v11791_v60  ;;  %v709_v7 = vand.u32 4294901760, %v708_v62  ;;  %v715_v53 = vsub.f32 %v11843_v48, %v19578_v63  ;;  %v19583_v54 = vand.u32 4294901760, %v11872_v6  ;;  %v11899_v55 = vsub.f32 %v11706_v28, %v11742_v41 }
  0x15   :  { %20693 = vst [vmem:[#allocation21_spill] sm:$0xff] %v11885_v47  ;;  %9313 = vmatprep.subr.mxu1 %v821_v38  ;;  %9266 = vmatpush3.msra.mxu0 %v11806_v1  ;;  %v828_v58 = vand.u32 4294901760, %v827_v14  ;;  %v834_v62 = vsub.f32 %v11860_v21, %v19580_v43  ;;  %v11911_v63 = vand.u32 4294901760, %v11877_v26  ;;  %v11915_v28 = vsub.f32 %v11731_v37, %v11766_v50  ;;  %v11933_v37 = vld [vmem:[%s19569_s1 + $0x10] sm:$0xff] }
  0x16   :  { %9314 = vmatpush3.msra.mxu1 %v709_v7  ;;  %9267 = vmatprep.subr.mxu0 %v11820_v12  ;;  %v716_v38 = vand.u32 4294901760, %v715_v53  ;;  %v722_v14 = vsub.f32 %v11872_v6, %v19583_v54  ;;  %v19588_v43 = vand.u32 4294901760, %v11899_v55  ;;  %v11928_v39 = vand.u32 4294901760, %v11890_v27 }
  0x17   :  { %20694 = vst [vmem:[#allocation22_spill] sm:$0xff] %v11911_v63  ;;  %9315 = vmatprep.subr.mxu1 %v828_v58  ;;  %9268 = vmatpush3.msra.mxu0 %v11834_v19  ;;  %v835_v7 = vand.u32 4294901760, %v834_v62  ;;  %v19589_v53 = vand.u32 4294901760, %v11915_v28  ;;  %v11939_v34 = vsub.f32 %v11758_v46, %v11791_v60  ;;  %v11942_v54 = vand.u32 4294901760, %v11904_v49 }
  0x18   :  { %20695 = vst [vmem:[#allocation23_spill] sm:$0xff] %v11928_v39  ;;  %9316 = vmatpush3.msra.mxu1 %v716_v38  ;;  %9269 = vmatprep.subr.mxu0 %v11846_v52  ;;  %v723_v58 = vand.u32 4294901760, %v722_v14  ;;  %v841_v62 = vsub.f32 %v11899_v55, %v19588_v43  ;;  %v11955_v46 = vsub.f32 %v11771_v51, %v11806_v1  ;;  %v11958_v29 = vand.u32 4294901760, %v11920_v44  ;;  %v11975_v51 = vld [vmem:[%s19569_s1 + $0x8] sm:$0xff] }
  0x19   :  { %20696 = vst [vmem:[#allocation24_spill] sm:$0xff] %v11942_v54  ;;  %9317 = vmatprep.subr.mxu1 %v835_v7  ;;  %9270 = vmatpush3.msra.mxu0 %v11863_v57  ;;  %v729_v38 = vsub.f32 %v11915_v28, %v19589_v53  ;;  %v11967_v60 = vsub.f32 %v11781_v56, %v11820_v12  ;;  %v11970_v43 = vand.u32 4294901760, %v11933_v37  ;;  %v11984_v56 = vand.u32 4294901760, %v11947_v33  ;;  %v11989_v12 = vld [vmem:[%s19569_s1 + $0x80] sm:$0xff] }
  0x1a   :  { %20697 = vst [vmem:[#allocation25_spill] sm:$0xff] %v11958_v29  ;;  %9318 = vmatpush3.msra.mxu1 %v723_v58  ;;  %9271 = vmatprep.subr.mxu0 %v11885_v47  ;;  %v842_v7 = vand.u32 4294901760, %v841_v62  ;;  %v11981_v14 = vsub.f32 %v11796_v61, %v11834_v19  ;;  %v20701_v1 = vand.u32 4294901760, %v11939_v34  ;;  %v11998_v61 = vsub.f32 %v11811_v2, %v11846_v52  ;;  %v12015_v2 = vld [vmem:[%s19569_s1] sm:$0xff] }
  0x1b   :  { %20698 = vst [vmem:[#allocation26_spill] sm:$0xff] %v11970_v43  ;;  %20700 = vst [vmem:[#allocation28_spill] sm:$0xff] %v11984_v56  ;;  %9272 = vmatpush3.msra.mxu0 %v11911_v63  ;;  %v730_v58 = vand.u32 4294901760, %v729_v38  ;;  %v19608_v53 = vand.u32 4294901760, %v11967_v60  ;;  %v20703_v19 = vand.u32 4294901760, %v11955_v46  ;;  %v12006_v38 = vand.u32 4294901760, %v11975_v51 }
  0x1c   :  { %20699 = vst [vmem:[#allocation27_spill] sm:$0xff] %v11981_v14  ;;  %v848_v62 = vsub.f32 %v11939_v34, %v20701_v1  ;;  %20702 = vst [vmem:[#allocation29_spill] sm:$0xff] %v11998_v61  ;;  %9319 = vmatprep.subr.mxu1 %v842_v7  ;;  %9273 = vmatprep.subr.mxu0 %v11928_v39  ;;  %v12010_v1 = vsub.f32 %v11825_v13, %v11863_v57  ;;  %v12_v7 = vld [vmem:[%s19570_s0 + $0x8] sm:$0xff]  ;;  %v12026_v57 = vand.u32 4294901760, %v11989_v12 }
  0x1d   :  { %v736_v50 = vsub.f32 %v11955_v46, %v20703_v19  ;;  %20704 = vst [vmem:[#allocation30_spill] sm:$0xff] %v12006_v38  ;;  %9320 = vmatpush3.msra.mxu1 %v730_v58  ;;  %9274 = vmatpush3.msra.mxu0 %v11942_v54  ;;  %v855_v41 = vsub.f32 %v11967_v60, %v19608_v53  ;;  %v20706_v36 = vand.u32 4294901760, %v11981_v14  ;;  %v11_v53 = vld [vmem:[%s19570_s0] sm:$0xff]  ;;  %v124_v58 = vmax.f32 %v12_v7, 0.0  ;;  %v26_v7 = vld [vmem:[%s19570_s0 + $0x78] sm:$0xff] }
  0x1e   :  { %v849_v19 = vand.u32 4294901760, %v848_v62  ;;  %20705 = vst [vmem:[#allocation31_spill] sm:$0xff] %v12026_v57  ;;  %9275 = vmatprep.subr.mxu0 %v11958_v29  ;;  %v12035_v62 = vsub.f32 %v11851_v20, %v11885_v47  ;;  %v20709_v20 = vand.u32 4294901760, %v12010_v1 }
  0x1f   :  { %v737_v52 = vand.u32 4294901760, %v736_v50  ;;  %v743_v32 = vsub.f32 %v11981_v14, %v20706_v36  ;;  %v856_v13 = vand.u32 4294901760, %v855_v41  ;;  %9276 = vmatpush3.msra.mxu0 %v11970_v43  ;;  %v20707_v50 = vand.u32 4294901760, %v11998_v61 }
  0x20   :  { %9321 = vmatprep.subr.mxu1 %v849_v19  ;;  %v12045_v36 = vand.u32 4294901760, %v12015_v2  ;;  %9277 = vmatprep.subr.mxu0 %v11984_v56  ;;  %v750_v47 = vsub.f32 %v12010_v1, %v20709_v20  ;;  %v19617_v41 = vand.u32 4294901760, %v12035_v62  ;;  %v12054_v19 = vsub.f32 %v11877_v26, %v11911_v63 }
  0x21   :  { %v862_v30 = vsub.f32 %v11998_v61, %v20707_v50  ;;  %9322 = vmatpush3.msra.mxu1 %v737_v52  ;;  %v744_v14 = vand.u32 4294901760, %v743_v32  ;;  %9278 = vmatpush3.msra.mxu0 %v12006_v38  ;;  %v12057_v61 = vand.u32 4294901760, %v124_v58  ;;  %v123_v52 = vmax.f32 %v11_v53, 0.0 }
  0x22   :  { %20708 = vst [vmem:[#allocation32_spill] sm:$0xff] %v12045_v36  ;;  %9323 = vmatprep.subr.mxu1 %v856_v13  ;;  %v12061_v32 = vsub.f32 %v11890_v27, %v11928_v39  ;;  %v751_v20 = vand.u32 4294901760, %v750_v47  ;;  %9279 = vmatprep.subr.mxu0 %v12026_v57  ;;  %v19622_v26 = vand.u32 4294901760, %v12054_v19  ;;  %v12073_v53 = vsub.f32 %v11904_v49, %v11942_v54 }
  0x23   :  { %v863_v50 = vand.u32 4294901760, %v862_v30  ;;  %20710 = vst [vmem:[#allocation33_spill] sm:$0xff] %v12057_v61  ;;  %9324 = vmatpush3.msra.mxu1 %v744_v14  ;;  %v869_v30 = vsub.f32 %v12035_v62, %v19617_v41  ;;  %9280 = vmatpush3.msra.mxu0 %v12045_v36  ;;  %v12077_v27 = vsub.f32 %v124_v58, %v12057_v61  ;;  %v12079_v14 = vand.u32 4294901760, %v123_v52 }
  0x24   :  { %v19623_v47 = vand.u32 4294901760, %v12061_v32  ;;  %v12084_v13 = vsub.f32 %v11920_v44, %v11958_v29  ;;  %v757_v49 = vsub.f32 %v12054_v19, %v19622_v26  ;;  %9361 = vmatprep.subr.mxu0 %v11663_v18  ;;  %v138_v58 = vmax.f32 %v26_v7, 0.0  ;;  %901 = vmatprep.mubr.f32.mxu1 %v12057_v61 }
  0x25   :  { %9325 = vmatprep.subr.mxu1 %v863_v50  ;;  %20711 = vst [vmem:[#allocation34_spill] sm:$0xff] %v12077_v27  ;;  %20712 = vst [vmem:[#allocation35_spill] sm:$0xff] %v12079_v14  ;;  %v870_v41 = vand.u32 4294901760, %v869_v30  ;;  %v19629_v50 = vand.u32 4294901760, %v12073_v53  ;;  %v12093_v39 = vsub.f32 %v123_v52, %v12079_v14  ;;  %v25_v30 = vld [vmem:[%s19570_s0 + $0x70] sm:$0xff]  ;;  %v12110_v54 = vsub.f32 %v11933_v37, %v11970_v43  ;;  %v40_v43 = vld [vmem:[%s19570_s0 + $0xe8] sm:$0xff] }
  0x26   :  { %9326 = vmatpush3.msra.mxu1 %v751_v20  ;;  %v876_v44 = vsub.f32 %v12061_v32, %v19623_v47  ;;  %v758_v26 = vand.u32 4294901760, %v757_v49  ;;  %v12106_v52 = vand.u32 4294901760, %v138_v58  ;;  %v20714_v47 = vand.u32 4294901760, %v12077_v27 }
  0x27   :  { %9327 = vmatprep.subr.mxu1 %v870_v41  ;;  %v764_v7 = vsub.f32 %v12073_v53, %v19629_v50  ;;  %v19637_v29 = vand.u32 4294901760, %v12093_v39  ;;  %v20715_v41 = vand.u32 4294901760, %v12084_v13  ;;  %v19636_v63 = vand.u32 4294901760, %v12110_v54 }
  0x28   :  { %20713 = vst [vmem:[#allocation36_spill] sm:$0xff] %v12106_v52  ;;  %v558_v20 = vsub.f32 %v12077_v27, %v20714_v47  ;;  %v877_v18 = vand.u32 4294901760, %v876_v44  ;;  %9328 = vmatpush3.msra.mxu1 %v758_v26  ;;  %v12120_v50 = vsub.f32 %v138_v58, %v12106_v52  ;;  %v137_v37 = vmax.f32 %v25_v30, 0.0 }
  0x29   :  { %v883_v49 = vsub.f32 %v12084_v13, %v20715_v41  ;;  %v765_v61 = vand.u32 4294901760, %v764_v7  ;;  %v564_v44 = vsub.f32 %v12093_v39, %v19637_v29  ;;  %v12131_v26 = vsub.f32 %v11947_v33, %v11984_v56 }
  0x2a   :  { %20716 = vst [vmem:[#allocation37_spill] sm:$0xff] %v12120_v50  ;;  %v559_v47 = vand.u32 4294901760, %v558_v20  ;;  %9329 = vmatprep.subr.mxu1 %v877_v18  ;;  %v19639_v58 = vand.u32 4294901760, %v12120_v50  ;;  %v771_v30 = vsub.f32 %v12110_v54, %v19636_v63  ;;  %v12137_v7 = vand.u32 4294901760, %v137_v37 }
  0x2b   :  { %v884_v27 = vand.u32 4294901760, %v883_v49  ;;  %9330 = vmatpush3.msra.mxu1 %v765_v61  ;;  %v12141_v20 = vsub.f32 %v11975_v51, %v12006_v38  ;;  %v565_v18 = vand.u32 4294901760, %v564_v44  ;;  %v19638_v41 = vand.u32 4294901760, %v12131_v26  ;;  %v39_v49 = vld [vmem:[%s19570_s0 + $0xe0] sm:$0xff] }
  0x2c   :  { %20717 = vst [vmem:[#allocation38_spill] sm:$0xff] %v12137_v7  ;;  %560 = vmatprep.mubr.f32.mxu0 %v559_v47  ;;  %v12146_v33 = vsub.f32 %v11989_v12, %v12026_v57  ;;  %v152_v61 = vmax.f32 %v40_v43, 0.0  ;;  %v573_v63 = vsub.f32 %v12120_v50, %v19639_v58  ;;  %v772_v51 = vand.u32 4294901760, %v771_v30 }
  0x2d   :  { %9331 = vmatprep.subr.mxu1 %v884_v27  ;;  %v12155_v47 = vsub.f32 %v137_v37, %v12137_v7  ;;  %v19644_v27 = vand.u32 4294901760, %v12141_v20  ;;  %566 = vmatmul.mubr.f32.vlgmr.msra.gmra.mxu0 %v565_v18  ;;  %v890_v12 = vsub.f32 %v12131_v26, %v19638_v41  ;;  %v12166_v29 = vsub.f32 %v12015_v2, %v12045_v36  ;;  %v54_v37 = vld [vmem:[%s19570_s0 + $0x158] sm:$0xff]  ;;  %v53_v2 = vld [vmem:[%s19570_s0 + $0x150] sm:$0xff] }
  0x2e   :  { %20718 = vst [vmem:[#allocation39_spill] sm:$0xff] %v12146_v33  ;;  %v12162_v44 = vand.u32 4294901760, %v152_v61  ;;  %9362 = vmatpush3.msra.mxu0 %v11685_v23  ;;  %v574_v30 = vand.u32 4294901760, %v573_v63  ;;  %9332 = vmatpush3.msra.mxu1 %v772_v51  ;;  %v151_v58 = vmax.f32 %v39_v49, 0.0  ;;  %v20722_v36 = vand.u32 4294901760, %v12146_v33  ;;  %v68_v49 = vld [vmem:[%s19570_s0 + $0x1c8] sm:$0xff] }
  0x2f   :  { %20719 = vst [vmem:[#allocation40_spill] sm:$0xff] %v12155_v47  ;;  %20721 = vst [vmem:[#allocation42_spill] sm:$0xff] %v12166_v29  ;;  %v19652_v18 = vand.u32 4294901760, %v12155_v47  ;;  %v778_v41 = vsub.f32 %v12141_v20, %v19644_v27  ;;  %9363 = vmatprep.subr.mxu0 %v11691_v25  ;;  %v891_v43 = vand.u32 4294901760, %v890_v12  ;;  %v20724_v56 = vand.u32 4294901760, %v12166_v29 }
  0x30   :  { %20720 = vst [vmem:[#allocation41_spill] sm:$0xff] %v12162_v44  ;;  %v897_v57 = vsub.f32 %v12146_v33, %v20722_v36  ;;  %v12184_v63 = vsub.f32 %v152_v61, %v12162_v44  ;;  %575 = vmatprep.mubr.f32.mxu0 %v574_v30  ;;  %9364 = vmatpush3.msra.mxu0 %v11714_v31  ;;  %v12194_v38 = vand.u32 4294901760, %v151_v58  ;;  %v166_v36 = vmax.f32 %v54_v37, 0.0  ;;  %v67_v61 = vld [vmem:[%s19570_s0 + $0x1c0] sm:$0xff]  ;;  %v81_v30 = vld [vmem:[%s19570_s0 + $0x230] sm:$0xff] }
  0x31   :  { %v579_v12 = vsub.f32 %v12155_v47, %v19652_v18  ;;  %v779_v27 = vand.u32 4294901760, %v778_v41  ;;  %9333 = vmatprep.subr.mxu1 %v891_v43  ;;  %9365 = vmatprep.subr.mxu0 %v11723_v35  ;;  %v785_v31 = vsub.f32 %v12166_v29, %v20724_v56  ;;  %v165_v50 = vmax.f32 %v53_v2, 0.0  ;;  %v82_v41 = vld [vmem:[%s19570_s0 + $0x238] sm:$0xff] }
  0x32   :  { %20723 = vst [vmem:[#allocation43_spill] sm:$0xff] %v12194_v38  ;;  %v898_v51 = vand.u32 4294901760, %v897_v57  ;;  %9366 = vmatpush3.msra.mxu0 %v11739_v40  ;;  %v12209_v43 = vsub.f32 %v151_v58, %v12194_v38  ;;  %v12211_v18 = vand.u32 4294901760, %v166_v36  ;;  %v180_v57 = vmax.f32 %v68_v49, 0.0 }
  0x33   :  { %v580_v37 = vand.u32 4294901760, %v579_v12  ;;  %9334 = vmatpush3.msra.mxu1 %v779_v27  ;;  %9367 = vmatprep.subr.mxu0 %v11753_v45  ;;  %v20726_v56 = vand.u32 4294901760, %v12184_v63  ;;  %v786_v27 = vand.u32 4294901760, %v785_v31  ;;  %v12220_v12 = vand.u32 4294901760, %v165_v50 }
  0x34   :  { %20725 = vst [vmem:[#allocation44_spill] sm:$0xff] %v12211_v18  ;;  %9335 = vmatprep.subr.mxu1 %v898_v51  ;;  %v179_v40 = vmax.f32 %v67_v61, 0.0  ;;  %v19658_v58 = vand.u32 4294901760, %v12209_v43  ;;  %v12224_v49 = vsub.f32 %v166_v36, %v12211_v18  ;;  %v12226_v35 = vand.u32 4294901760, %v180_v57  ;;  %v96_v51 = vld [vmem:[%s19570_s0 + $0x2a8] sm:$0xff]  ;;  %9368 = vmatpush3.msra.mxu0 %v11788_v59 }
  0x35   :  { %v588_v2 = vsub.f32 %v12184_v63, %v20726_v56  ;;  %20727 = vst [vmem:[#allocation45_spill] sm:$0xff] %v12220_v12  ;;  %581 = vmatmul.mubr.f32.gmra.mxu0 %v580_v37  ;;  %v194_v47 = vmax.f32 %v82_v41, 0.0  ;;  %9336 = vmatpush3.msra.mxu1 %v786_v27  ;;  %v12233_v31 = vsub.f32 %v165_v50, %v12220_v12  ;;  %v193_v37 = vmax.f32 %v81_v30, 0.0  ;;  %v95_v41 = vld [vmem:[%s19570_s0 + $0x2a0] sm:$0xff] }
  0x36   :  { %20728 = vst [vmem:[#allocation46_spill] sm:$0xff] %v12224_v49  ;;  %20729 = vst [vmem:[#allocation47_spill] sm:$0xff] %v12226_v35  ;;  %v12235_v61 = vand.u32 4294901760, %v179_v40  ;;  %v594_v36 = vsub.f32 %v12209_v43, %v19658_v58  ;;  %903 = vmatmul.mubr.f32.vlgmr.msra.gmra.mxu1 %v12079_v14  ;;  %9369 = vmatprep.subr.mxu0 %v11803_v0  ;;  %v12244_v56 = vsub.f32 %v180_v57, %v12226_v35 }
  0x37   :  { %v589_v45 = vand.u32 4294901760, %v588_v2  ;;  %20730 = vst [vmem:[#allocation48_spill] sm:$0xff] %v12233_v31  ;;  %v12246_v2 = vand.u32 4294901760, %v194_v47  ;;  %9417 = vmatprep.subr.mxu1 %v11625_v3  ;;  %v12253_v27 = vand.u32 4294901760, %v193_v37  ;;  %v208_v58 = vmax.f32 %v96_v51, 0.0  ;;  %9370 = vmatpush3.msra.mxu0 %v11817_v8 }
  0x38   :  { %20731 = vst [vmem:[#allocation49_spill] sm:$0xff] %v12235_v61  ;;  %20732 = vst [vmem:[#allocation50_spill] sm:$0xff] %v12244_v56  ;;  %v12251_v30 = vsub.f32 %v179_v40, %v12235_v61  ;;  %v595_v14 = vand.u32 4294901760, %v594_v36  ;;  %9418 = vmatpush3.msra.mxu1 %v11627_v4  ;;  %v19670_v50 = vand.u32 4294901760, %v12244_v56  ;;  %9371 = vmatprep.subr.mxu0 %v11831_v42  ;;  %v20736_v51 = vand.u32 4294901760, %v12233_v31 }
  0x39   :  { %20733 = vst [vmem:[#allocation51_spill] sm:$0xff] %v12246_v2  ;;  %590 = vmatprep.mubr.f32.mxu0 %v589_v45  ;;  %20734 = vst [vmem:[#allocation52_spill] sm:$0xff] %v12253_v27  ;;  %v20735_v45 = vand.u32 4294901760, %v12224_v49  ;;  %v12265_v40 = vsub.f32 %v194_v47, %v12246_v2  ;;  %9419 = vmatprep.subr.mxu1 %v11629_v5  ;;  %v12274_v4 = vsub.f32 %v193_v37, %v12253_v27  ;;  %v110_v47 = vld [vmem:[%s19570_s0 + $0x318] sm:$0xff]  ;;  %v109_v37 = vld [vmem:[%s19570_s0 + $0x310] sm:$0xff] }
  0x3a   :  { %v609_v36 = vsub.f32 %v12233_v31, %v20736_v51  ;;  %v12276_v3 = vand.u32 4294901760, %v208_v58  ;;  %596 = vmatmul.mubr.f32.gmra.mxu0 %v595_v14  ;;  %908 = vmatprep.mubr.f32.mxu1 %v12106_v52  ;;  %v207_v8 = vmax.f32 %v95_v41, 0.0  ;;  %v20738_v14 = vand.u32 4294901760, %v12251_v30 }
  0x3b   :  { %v603_v57 = vsub.f32 %v12224_v49, %v20735_v45  ;;  %v618_v49 = vsub.f32 %v12244_v56, %v19670_v50  ;;  %9372 = vmatpush3.msra.mxu0 %v11843_v48  ;;  %9420 = vmatpush3.msra.mxu1 %v11640_v9  ;;  %v222_v56 = vmax.f32 %v110_v47, 0.0 }
  0x3c   :  { %20737 = vst [vmem:[#allocation53_spill] sm:$0xff] %v12276_v3  ;;  %v610_v31 = vand.u32 4294901760, %v609_v36  ;;  %910 = vmatmul.mubr.f32.gmra.mxu1 %v12137_v7  ;;  %v12297_v41 = vsub.f32 %v208_v58, %v12276_v3  ;;  %v12299_v51 = vand.u32 4294901760, %v207_v8  ;;  %9373 = vmatprep.subr.mxu0 %v11860_v21  ;;  %v221_v36 = vmax.f32 %v109_v37, 0.0  ;;  %v20748_v7 = vld [vmem:[#allocation29_spill] sm:$0xff] }
  0x3d   :  { %v604_v45 = vand.u32 4294901760, %v603_v57  ;;  %v624_v57 = vsub.f32 %v12251_v30, %v20738_v14  ;;  %v619_v50 = vand.u32 4294901760, %v618_v49  ;;  %9421 = vmatprep.subr.mxu1 %v11642_v10  ;;  %v12310_v58 = vand.u32 4294901760, %v222_v56  ;;  %9374 = vmatpush3.msra.mxu0 %v11872_v6 }
  0x3e   :  { %20739 = vst [vmem:[#allocation54_spill] sm:$0xff] %v12299_v51  ;;  %9422 = vmatpush3.msra.mxu1 %v11644_v11  ;;  %v12308_v49 = vsub.f32 %v207_v8, %v12299_v51  ;;  %9375 = vmatprep.subr.mxu0 %v11899_v55  ;;  %v19675_v37 = vand.u32 4294901760, %v12297_v41 }
  0x3f   :  { %605 = vmatprep.mubr.f32.mxu0 %v604_v45  ;;  %v625_v14 = vand.u32 4294901760, %v624_v57  ;;  %v20740_v45 = vand.u32 4294901760, %v12265_v40  ;;  %20742 = vst [vmem:[#allocation56_spill] sm:$0xff] %v12310_v58  ;;  %9423 = vmatprep.subr.mxu1 %v11656_v15  ;;  %v12319_v57 = vand.u32 4294901760, %v221_v36 }
  0x40   :  { %611 = vmatmul.mubr.f32.gmra.mxu0 %v610_v31  ;;  %20741 = vst [vmem:[#allocation55_spill] sm:$0xff] %v12308_v49  ;;  %v20743_v31 = vand.u32 4294901760, %v12274_v4  ;;  %915 = vmatprep.mubr.f32.mxu1 %v12162_v44  ;;  %v648_v44 = vsub.f32 %v12297_v41, %v19675_v37  ;;  %v20747_v37 = vld [vmem:[#allocation5_spill] sm:$0xff] }
  0x41   :  { %v633_v52 = vsub.f32 %v12265_v40, %v20740_v45  ;;  %620 = vmatprep.mubr.f32.mxu0 %v619_v50  ;;  %20744 = vst [vmem:[#allocation57_spill] sm:$0xff] %v12319_v57  ;;  %9376 = vmatpush3.msra.mxu0 %v11915_v28  ;;  %v19680_v45 = vand.u32 4294901760, %v12308_v49  ;;  %v12326_v50 = vsub.f32 %v222_v56, %v12310_v58 }
  0x42   :  { %v639_v47 = vsub.f32 %v12274_v4, %v20743_v31  ;;  %9424 = vmatpush3.msra.mxu1 %v11658_v16  ;;  %9377 = vmatprep.subr.mxu0 %v11939_v34 }
  0x43   :  { %v634_v8 = vand.u32 4294901760, %v633_v52  ;;  %20745 = vst [vmem:[#allocation58_spill] sm:$0xff] %v12326_v50  ;;  %917 = vmatmul.mubr.f32.gmra.mxu1 %v12194_v38  ;;  %9425 = vmatprep.subr.mxu1 %v11660_v17  ;;  %v12336_v52 = vsub.f32 %v221_v36, %v12319_v57  ;;  %v654_v56 = vsub.f32 %v12308_v49, %v19680_v45  ;;  %v649_v36 = vand.u32 4294901760, %v648_v44  ;;  %v20750_v49 = vld [vmem:[#allocation9_spill] sm:$0xff]  ;;  %v20751_v44 = vld [vmem:[#allocation11_spill] sm:$0xff] }
  0x44   :  { %626 = vmatmul.mubr.f32.gmra.mxu0 %v625_v14  ;;  %v640_v31 = vand.u32 4294901760, %v639_v47  ;;  %9426 = vmatpush3.msra.mxu1 %v11682_v22  ;;  %v19687_v14 = vand.u32 4294901760, %v12326_v50  ;;  %v20746_v47 = vld [vmem:[#allocation27_spill] sm:$0xff] }
  0x45   :  { %9378 = vmatpush3.msra.mxu0 %v11955_v46  ;;  %9427 = vmatprep.subr.mxu1 %v11688_v24  ;;  %v19690_v38 = vand.u32 4294901760, %v12336_v52  ;;  %v655_v45 = vand.u32 4294901760, %v654_v56  ;;  %v20752_v56 = vld [vmem:[#allocation13_spill] sm:$0xff] }
  0x46   :  { %9379 = vmatprep.subr.mxu0 %v11967_v60  ;;  %635 = vmatprep.mubr.f32.mxu0 %v634_v8  ;;  %v20749_v8 = vld [vmem:[#allocation7_spill] sm:$0xff] }
  0x47   :  { %922 = vmatprep.mubr.f32.mxu1 %v12211_v18  ;;  %9380 = vmatpush3.msra.mxu0 %v20746_v47  ;;  %v663_v18 = vsub.f32 %v12326_v50, %v19687_v14  ;;  %v20753_v14 = vld [vmem:[#allocation14_spill] sm:$0xff]  ;;  %v20754_v50 = vld [vmem:[#allocation15_spill] sm:$0xff] }
  0x48   :  { %9428 = vmatpush3.msra.mxu1 %v20747_v37  ;;  %641 = vmatmul.mubr.f32.gmra.mxu0 %v640_v31  ;;  %v669_v31 = vsub.f32 %v12336_v52, %v19690_v38  ;;  %v20755_v38 = vld [vmem:[#allocation17_spill] sm:$0xff] }
  0x49   :  { %924 = vmatmul.mubr.f32.gmra.mxu1 %v12220_v12  ;;  %9381 = vmatprep.subr.mxu0 %v20748_v7  ;;  %v664_v12 = vand.u32 4294901760, %v663_v18  ;;  %v20756_v18 = vld [vmem:[#allocation18_spill] sm:$0xff] }
  0x4a   :  { %9429 = vmatprep.subr.mxu1 %v20749_v8  ;;  %9382 = vmatpush3.msra.mxu0 %v12010_v1 }
  0x4b   :  { %9430 = vmatpush3.msra.mxu1 %v20750_v49  ;;  %9383 = vmatprep.subr.mxu0 %v12035_v62 }
  0x4c   :  { %9431 = vmatprep.subr.mxu1 %v20751_v44  ;;  %650 = vmatprep.mubr.f32.mxu0 %v649_v36  ;;  %v670_v36 = vand.u32 4294901760, %v669_v31  ;;  %v20758_v31 = vld [vmem:[#allocation20_spill] sm:$0xff] }
  0x4d   :  { %929 = vmatprep.mubr.f32.mxu1 %v12226_v35  ;;  %9384 = vmatpush3.msra.mxu0 %v12054_v19 }
  0x4e   :  { %9432 = vmatpush3.msra.mxu1 %v20752_v56  ;;  %656 = vmatmul.mubr.f32.gmra.mxu0 %v655_v45  ;;  %v20757_v45 = vld [vmem:[#allocation19_spill] sm:$0xff] }
  0x4f   :  { %931 = vmatmul.mubr.f32.gmra.mxu1 %v12235_v61  ;;  %9385 = vmatprep.subr.mxu0 %v12061_v32  ;;  %v20763_v61 = vld [vmem:[#allocation4_spill] sm:$0xff] }
  0x50   :  { %9433 = vmatprep.subr.mxu1 %v20753_v14  ;;  %9386 = vmatpush3.msra.mxu0 %v12073_v53  ;;  %v20764_v35 = vand.u32 4294901760, %v20763_v61  ;;  %v20775_v61 = vld [vmem:[#allocation8_spill] sm:$0xff] }
  0x51   :  { %9434 = vmatpush3.msra.mxu1 %v20754_v50  ;;  %9387 = vmatprep.subr.mxu0 %v12084_v13 }
  0x52   :  { %9435 = vmatprep.subr.mxu1 %v20755_v38  ;;  %665 = vmatprep.mubr.f32.mxu0 %v664_v12  ;;  %v20759_v12 = vld [vmem:[#allocation21_spill] sm:$0xff] }
  0x53   :  { %936 = vmatprep.mubr.f32.mxu1 %v12246_v2  ;;  %9388 = vmatpush3.msra.mxu0 %v12110_v54  ;;  %v20760_v2 = vld [vmem:[#allocation34_spill] sm:$0xff] }
  0x54   :  { %9436 = vmatpush3.msra.mxu1 %v20756_v18  ;;  %671 = vmatmul.mubr.f32.gmra.mxu0 %v670_v36  ;;  %v20761_v36 = vld [vmem:[#allocation22_spill] sm:$0xff] }
  0x55   :  { %938 = vmatmul.mubr.f32.gmra.mxu1 %v12253_v27  ;;  %9389 = vmatprep.subr.mxu0 %v12131_v26  ;;  %v20762_v27 = vld [vmem:[#allocation23_spill] sm:$0xff] }
  0x56   :  { %9437 = vmatprep.subr.mxu1 %v20757_v45  ;;  %9390 = vmatpush3.msra.mxu0 %v12141_v20 }
  0x57   :  { %9438 = vmatpush3.msra.mxu1 %v20758_v31  ;;  %9391 = vmatprep.subr.mxu0 %v12146_v33  ;;  %v20765_v33 = vld [vmem:[#allocation24_spill] sm:$0xff] }
  0x58   :  { %9439 = vmatprep.subr.mxu1 %v20759_v12  ;;  %943 = vmatprep.mubr.f32.mxu1 %v12276_v3  ;;  %v20766_v12 = vand.u32 4294901760, %v11685_v23  ;;  %v20767_v3 = vld [vmem:[#allocation25_spill] sm:$0xff]  ;;  %v20774_v23 = vld [vmem:[#allocation28_spill] sm:$0xff] }
  0x59   :  { %9392 = vmatpush3.msra.mxu0 %v12166_v29  ;;  %1087 = vmatprep.mubr.f32.mxu0 %v20760_v2  ;;  %v20768_v29 = vand.u32 4294901760, %v11691_v25  ;;  %v20777_v25 = vld [vmem:[#allocation30_spill] sm:$0xff] }
  0x5a   :  { %9440 = vmatpush3.msra.mxu1 %v20761_v36  ;;  %1090 = vmatmul.mubr.f32.vlgmr.msra.gmra.mxu0 %v12093_v39  ;;  %v20769_v36 = vld [vmem:[#allocation37_spill] sm:$0xff] }
  0x5b   :  { %945 = vmatmul.mubr.f32.gmra.mxu1 %v12299_v51  ;;  %9441 = vmatprep.subr.mxu1 %v20762_v27  ;;  %v20770_v51 = vld [vmem:[#allocation26_spill] sm:$0xff] }
  0x5c   :  { %9473 = vmatprep.subr.mxu0 %v20764_v35  ;;  %9442 = vmatpush3.msra.mxu1 %v20765_v33  ;;  %v20771_v27 = vld [vmem:[#allocation6_spill] sm:$0xff]  ;;  %v20773_v35 = vld [vmem:[#allocation40_spill] sm:$0xff] }
  0x5d   :  { %9474 = vmatpush3.msra.mxu0 %v20766_v12  ;;  %9443 = vmatprep.subr.mxu1 %v20767_v3  ;;  %v20772_v31 = vand.u32 4294901760, %v20771_v27  ;;  %v20776_v12 = vand.u32 4294901760, %v20775_v61  ;;  %v20780_v3 = vld [vmem:[#allocation31_spill] sm:$0xff]  ;;  %v20783_v27 = vld [vmem:[#allocation32_spill] sm:$0xff]  ;;  %v20785_v61 = vand.u32 4294901760, %v11788_v59  ;;  %v20793_v59 = vld [vmem:[#allocation46_spill] sm:$0xff] }
  0x5e   :  { %9475 = vmatprep.subr.mxu0 %v20768_v29  ;;  %950 = vmatprep.mubr.f32.mxu1 %v12310_v58  ;;  %v20778_v29 = vld [vmem:[#allocation10_spill] sm:$0xff] }
  0x5f   :  { %1096 = vmatprep.mubr.f32.mxu0 %v20769_v36  ;;  %9444 = vmatpush3.msra.mxu1 %v20770_v51  ;;  %v20779_v58 = vand.u32 4294901760, %v20778_v29  ;;  %v20781_v51 = vld [vmem:[#allocation12_spill] sm:$0xff] }
  0x60   :  { %9476 = vmatpush3.msra.mxu0 %v20772_v31  ;;  %952 = vmatmul.mubr.f32.gmra.mxu1 %v12319_v57  ;;  %v20782_v33 = vand.u32 4294901760, %v20781_v51  ;;  %v20784_v31 = vand.u32 4294901760, %v20760_v2  ;;  %v20788_v51 = vld [vmem:[#allocation2_spill] sm:$0xff]  ;;  %v20791_v57 = vld [vmem:[#allocation3_spill] sm:$0xff]  ;;  %v20792_v2 = vand.u32 4294901760, %v11831_v42  ;;  %v20798_v42 = vand.u32 4294901760, %v11860_v21 }
  0x61   :  { %1099 = vmatmul.mubr.f32.gmra.mxu0 %v20773_v35  ;;  %9445 = vmatprep.subr.mxu1 %v20774_v23  ;;  %v20803_v21 = vand.u32 4294901760, %v11915_v28  ;;  %v20815_v28 = vand.u32 4294901760, %v12054_v19  ;;  %v282_v19 = vld [vmem:[%s19569_s1 + $0x178] sm:$0xff] }
  0x62   :  { %9477 = vmatprep.subr.mxu0 %v20776_v12  ;;  %9446 = vmatpush3.msra.mxu1 %v20777_v25  ;;  %v20786_v12 = vand.u32 4294901760, %v12093_v39  ;;  %v20794_v39 = vand.u32 4294901760, %v20769_v36 }
  0x63   :  { %9478 = vmatpush3.msra.mxu0 %v20779_v58  ;;  %9447 = vmatprep.subr.mxu1 %v20780_v3  ;;  %v20787_v58 = vand.u32 4294901760, %v11803_v0  ;;  %v20795_v0 = vand.u32 4294901760, %v11843_v48  ;;  %v20800_v48 = vand.u32 4294901760, %v11899_v55  ;;  %v20807_v55 = vand.u32 4294901760, %v11967_v60 }
  0x64   :  { %9479 = vmatprep.subr.mxu0 %v20782_v33  ;;  %1105 = vmatprep.mubr.f32.mxu0 %v12184_v63  ;;  %v20789_v33 = vld [vmem:[#allocation16_spill] sm:$0xff]  ;;  %v20813_v60 = vand.u32 4294901760, %v12035_v62  ;;  %v20818_v62 = vand.u32 4294901760, %v12061_v32  ;;  %v20821_v32 = vld [vmem:[#allocation58_spill] sm:$0xff] }
  0x65   :  { %9448 = vmatpush3.msra.mxu1 %v20783_v27  ;;  %1257 = vmatprep.mubr.f32.mxu1 %v20784_v31  ;;  %v20790_v29 = vand.u32 4294901760, %v20789_v33  ;;  %v20796_v31 = vld [vmem:[#allocation48_spill] sm:$0xff] }
  0x66   :  { %9480 = vmatpush3.msra.mxu0 %v20785_v61  ;;  %1261 = vmatmul.mubr.f32.vlgmr.msra.gmra.mxu1 %v20786_v12  ;;  %v20797_v61 = vand.u32 4294901760, %v20773_v35  ;;  %v20832_v35 = vld [vmem:[#allocation42_spill] sm:$0xff] }
  0x67   :  { %1108 = vmatmul.mubr.f32.gmra.mxu0 %v12209_v43  ;;  %9481 = vmatprep.subr.mxu0 %v20787_v58  ;;  %v20833_v12 = vand.u32 4294901760, %v20832_v35  ;;  %v20834_v58 = vld [vmem:[#allocation33_spill] sm:$0xff] }
  0x68   :  { %9529 = vmatprep.subr.mxu1 %v20788_v51  ;;  %9482 = vmatpush3.msra.mxu0 %v20790_v29  ;;  %v295_v29 = vld [vmem:[%s19569_s1 + $0x1e0] sm:$0xff]  ;;  %v274_v35 = vld [vmem:[%s19569_s1 + $0x138] sm:$0xff] }
  0x69   :  { %9530 = vmatpush3.msra.mxu1 %v20791_v57  ;;  %9483 = vmatprep.subr.mxu0 %v20792_v2  ;;  %v20802_v57 = vand.u32 4294901760, %v12184_v63  ;;  %v20820_v63 = vand.u32 4294901760, %v12084_v13  ;;  %v297_v13 = vld [vmem:[%s19569_s1 + $0x1f0] sm:$0xff]  ;;  %v20837_v2 = vld [vmem:[#allocation22_spill] sm:$0xff] }
  0x6a   :  { %9531 = vmatprep.subr.mxu1 %v11629_v5  ;;  %1114 = vmatprep.mubr.f32.mxu0 %v20793_v59  ;;  %v20799_v5 = vand.u32 4294901760, %v11872_v6 }
  0x6b   :  { %1268 = vmatprep.mubr.f32.mxu1 %v20794_v39  ;;  %9484 = vmatpush3.msra.mxu0 %v20795_v0  ;;  %v278_v39 = vld [vmem:[%s19569_s1 + $0x158] sm:$0xff] }
  0x6c   :  { %9532 = vmatpush3.msra.mxu1 %v11640_v9  ;;  %1117 = vmatmul.mubr.f32.gmra.mxu0 %v20796_v31  ;;  %v20801_v9 = vld [vmem:[#allocation50_spill] sm:$0xff] }
  0x6d   :  { %1272 = vmatmul.mubr.f32.gmra.mxu1 %v20797_v61  ;;  %9485 = vmatprep.subr.mxu0 %v20798_v42  ;;  %v20814_v6 = vand.u32 4294901760, %v20801_v9  ;;  %v20840_v61 = vld [vmem:[#allocation23_spill] sm:$0xff]  ;;  %v294_v42 = vld [vmem:[%s19569_s1 + $0x1d8] sm:$0xff] }
  0x6e   :  { %9533 = vmatprep.subr.mxu1 %v11642_v10  ;;  %9486 = vmatpush3.msra.mxu0 %v20799_v5  ;;  %v20804_v10 = vand.u32 4294901760, %v12209_v43  ;;  %v298_v43 = vld [vmem:[%s19569_s1 + $0x1f8] sm:$0xff] }
  0x6f   :  { %9534 = vmatpush3.msra.mxu1 %v11644_v11  ;;  %9487 = vmatprep.subr.mxu0 %v20800_v48  ;;  %v20805_v11 = vand.u32 4294901760, %v11939_v34  ;;  %v20809_v34 = vand.u32 4294901760, %v20746_v47  ;;  %v296_v47 = vld [vmem:[%s19569_s1 + $0x1e8] sm:$0xff]  ;;  %v20841_v48 = vld [vmem:[#allocation24_spill] sm:$0xff] }
  0x70   :  { %9535 = vmatprep.subr.mxu1 %v11656_v15  ;;  %1123 = vmatprep.mubr.f32.mxu0 %v20801_v9  ;;  %v20806_v15 = vand.u32 4294901760, %v11955_v46  ;;  %v20816_v46 = vld [vmem:[#allocation55_spill] sm:$0xff]  ;;  %v12558_v51 = vand.u32 4294901760, %v296_v47 }
  0x71   :  { %1279 = vmatprep.mubr.f32.mxu1 %v20802_v57  ;;  %9488 = vmatpush3.msra.mxu0 %v20803_v21  ;;  %v12588_v57 = vand.u32 4294901760, %v295_v29 }
  0x72   :  { %9536 = vmatpush3.msra.mxu1 %v11658_v16  ;;  %1126 = vmatmul.mubr.f32.gmra.mxu0 %v12251_v30  ;;  %v20808_v16 = vand.u32 4294901760, %v20793_v59  ;;  %20835 = vst [vmem:[#allocation27_spill] sm:$0xff] %v12558_v51  ;;  %v20838_v59 = vld [vmem:[#allocation35_spill] sm:$0xff] }
  0x73   :  { %1283 = vmatmul.mubr.f32.gmra.mxu1 %v20804_v10  ;;  %9489 = vmatprep.subr.mxu0 %v20805_v11  ;;  %20842 = vst [vmem:[#allocation29_spill] sm:$0xff] %v12588_v57  ;;  %v20844_v11 = vld [vmem:[#allocation25_spill] sm:$0xff] }
  0x74   :  { %9537 = vmatprep.subr.mxu1 %v11660_v17  ;;  %9490 = vmatpush3.msra.mxu0 %v20806_v15  ;;  %v20810_v17 = vand.u32 4294901760, %v20796_v31  ;;  %v20839_v31 = vand.u32 4294901760, %v20816_v46 }
  0x75   :  { %9538 = vmatpush3.msra.mxu1 %v11682_v22  ;;  %9491 = vmatprep.subr.mxu0 %v20807_v55  ;;  %v20811_v22 = vand.u32 4294901760, %v20748_v7  ;;  %v20819_v7 = vand.u32 4294901760, %v12073_v53  ;;  %v20822_v53 = vand.u32 4294901760, %v12265_v40  ;;  %v12598_v55 = vand.u32 4294901760, %v278_v39 }
  0x76   :  { %9539 = vmatprep.subr.mxu1 %v11688_v24  ;;  %1132 = vmatprep.mubr.f32.mxu0 %v12265_v40  ;;  %v20812_v24 = vand.u32 4294901760, %v12010_v1  ;;  %v20817_v1 = vand.u32 4294901760, %v12251_v30  ;;  %v20823_v30 = vand.u32 4294901760, %v12110_v54  ;;  %v20825_v40 = vand.u32 4294901760, %v12131_v26  ;;  %v281_v54 = vld [vmem:[%s19569_s1 + $0x170] sm:$0xff] }
  0x77   :  { %1290 = vmatprep.mubr.f32.mxu1 %v20808_v16  ;;  %9492 = vmatpush3.msra.mxu0 %v20809_v34  ;;  %v20827_v26 = vld [vmem:[#allocation20_spill] sm:$0xff]  ;;  %20845 = vst [vmem:[#allocation9_spill] sm:$0xff] %v12598_v55  ;;  %v12601_v16 = vsub.f32 %v296_v47, %v12558_v51  ;;  %v20846_v34 = vand.u32 4294901760, %v20821_v32 }
  0x78   :  { %9540 = vmatpush3.msra.mxu1 %v20747_v37  ;;  %1135 = vmatmul.mubr.f32.gmra.mxu0 %v12274_v4  ;;  %v12521_v37 = vand.u32 4294901760, %v298_v43 }
  0x79   :  { %1294 = vmatmul.mubr.f32.gmra.mxu1 %v20810_v17  ;;  %9493 = vmatprep.subr.mxu0 %v20811_v22  ;;  %v12606_v17 = vand.u32 4294901760, %v294_v42  ;;  %v293_v22 = vld [vmem:[%s19569_s1 + $0x1d0] sm:$0xff] }
  0x7a   :  { %9541 = vmatprep.subr.mxu1 %v20749_v8  ;;  %9494 = vmatpush3.msra.mxu0 %v20812_v24  ;;  %v20828_v8 = vld [vmem:[#allocation39_spill] sm:$0xff]  ;;  %v12553_v36 = vsub.f32 %v298_v43, %v12521_v37 }
  0x7b   :  { %9542 = vmatpush3.msra.mxu1 %v20750_v49  ;;  %9495 = vmatprep.subr.mxu0 %v20813_v60  ;;  %v12514_v49 = vand.u32 4294901760, %v282_v19  ;;  %20847 = vst [vmem:[#allocation11_spill] sm:$0xff] %v12606_v17  ;;  %v20848_v60 = vld [vmem:[#allocation36_spill] sm:$0xff]  ;;  %v276_v43 = vld [vmem:[%s19569_s1 + $0x148] sm:$0xff] }
  0x7c   :  { %9543 = vmatprep.subr.mxu1 %v20751_v44  ;;  %1141 = vmatprep.mubr.f32.mxu0 %v12297_v41  ;;  %v20829_v44 = vand.u32 4294901760, %v20828_v8  ;;  %v19718_v10 = vand.u32 4294901760, %v12553_v36 }
  0x7d   :  { %1301 = vmatprep.mubr.f32.mxu1 %v20814_v6  ;;  %9496 = vmatpush3.msra.mxu0 %v20815_v28  ;;  %v20849_v6 = vld [vmem:[#allocation26_spill] sm:$0xff] }
  0x7e   :  { %9544 = vmatpush3.msra.mxu1 %v20752_v56  ;;  %1144 = vmatmul.mubr.f32.gmra.mxu0 %v20816_v46  ;;  %v12545_v56 = vsub.f32 %v282_v19, %v12514_v49  ;;  %v277_v46 = vld [vmem:[%s19569_s1 + $0x150] sm:$0xff] }
  0x7f   :  { %1305 = vmatmul.mubr.f32.gmra.mxu1 %v20817_v1  ;;  %9497 = vmatprep.subr.mxu0 %v20818_v62  ;;  %v20850_v1 = vand.u32 4294901760, %v12336_v52 }
  0x80   :  { %9545 = vmatprep.subr.mxu1 %v20753_v14  ;;  %9498 = vmatpush3.msra.mxu0 %v20819_v7  ;;  %v12533_v14 = vand.u32 4294901760, %v297_v13  ;;  %v19717_v5 = vand.u32 4294901760, %v12545_v56  ;;  %v2046_v7 = vsub.f32 %v12553_v36, %v19718_v10 }
  0x81   :  { %9546 = vmatpush3.msra.mxu1 %v20754_v50  ;;  %9499 = vmatprep.subr.mxu0 %v20820_v63  ;;  %v20826_v50 = vand.u32 4294901760, %v12141_v20  ;;  %v20830_v20 = vld [vmem:[#allocation21_spill] sm:$0xff]  ;;  %v292_v63 = vld [vmem:[%s19569_s1 + $0x1c8] sm:$0xff] }
  0x82   :  { %9547 = vmatprep.subr.mxu1 %v20755_v38  ;;  %1150 = vmatprep.mubr.f32.mxu0 %v20821_v32  ;;  %v20824_v38 = vand.u32 4294901760, %v12274_v4  ;;  %v280_v4 = vld [vmem:[%s19569_s1 + $0x168] sm:$0xff]  ;;  %v12574_v0 = vsub.f32 %v297_v13, %v12533_v14  ;;  %v1934_v28 = vsub.f32 %v12545_v56, %v19717_v5  ;;  %v20851_v32 = vld [vmem:[#allocation38_spill] sm:$0xff]  ;;  %v19714_v13 = vand.u32 4294901760, %v12601_v16 }
  0x83   :  { %1312 = vmatprep.mubr.f32.mxu1 %v20822_v53  ;;  %9500 = vmatpush3.msra.mxu0 %v20823_v30  ;;  %v12560_v33 = vand.u32 4294901760, %v280_v4  ;;  %v12642_v53 = vsub.f32 %v278_v39, %v12598_v55  ;;  %v12644_v30 = vand.u32 4294901760, %v293_v22  ;;  %v12660_v47 = vand.u32 4294901760, %v292_v63 }
  0x84   :  { %9548 = vmatpush3.msra.mxu1 %v20756_v18  ;;  %1153 = vmatmul.mubr.f32.gmra.mxu0 %v12336_v52  ;;  %v20831_v18 = vand.u32 4294901760, %v12297_v41  ;;  %v279_v41 = vld [vmem:[%s19569_s1 + $0x160] sm:$0xff]  ;;  %v19716_v24 = vand.u32 4294901760, %v12574_v0  ;;  %v12637_v52 = vsub.f32 %v295_v29, %v12588_v57  ;;  %v2047_v8 = vand.u32 4294901760, %v2046_v7 }
  0x85   :  { %1316 = vmatmul.mubr.f32.gmra.mxu1 %v20824_v38  ;;  %9501 = vmatprep.subr.mxu0 %v20825_v40  ;;  %20836 = vst [vmem:[#allocation5_spill] sm:$0xff] %v12560_v33  ;;  %v12590_v21 = vand.u32 4294901760, %v279_v41  ;;  %v12596_v15 = vsub.f32 %v280_v4, %v12560_v33  ;;  %20852 = vst [vmem:[#allocation13_spill] sm:$0xff] %v12644_v30  ;;  %v12662_v4 = vand.u32 4294901760, %v276_v43 }
  0x86   :  { %9549 = vmatprep.subr.mxu1 %v20757_v45  ;;  %9502 = vmatpush3.msra.mxu0 %v20826_v50  ;;  %v12550_v45 = vand.u32 4294901760, %v281_v54  ;;  %v2053_v40 = vsub.f32 %v12574_v0, %v19716_v24  ;;  %v1935_v50 = vand.u32 4294901760, %v1934_v28  ;;  %20854 = vst [vmem:[#allocation15_spill] sm:$0xff] %v12660_v47  ;;  %v12695_v39 = vsub.f32 %v293_v22, %v12644_v30 }
  0x87   :  { %9550 = vmatpush3.msra.mxu1 %v20827_v26  ;;  %9503 = vmatprep.subr.mxu0 %v20829_v44  ;;  %20843 = vst [vmem:[#allocation7_spill] sm:$0xff] %v12590_v21  ;;  %v12624_v62 = vsub.f32 %v279_v41, %v12590_v21  ;;  %v19713_v38 = vand.u32 4294901760, %v12596_v15  ;;  %20855 = vst [vmem:[#allocation17_spill] sm:$0xff] %v12662_v4  ;;  %v20856_v26 = vld [vmem:[#allocation41_spill] sm:$0xff]  ;;  %v12718_v22 = vsub.f32 %v292_v63, %v12660_v47 }
  0x88   :  { %9551 = vmatprep.subr.mxu1 %v20830_v20  ;;  %1323 = vmatprep.mubr.f32.mxu1 %v20831_v18  ;;  %v12586_v9 = vsub.f32 %v281_v54, %v12550_v45  ;;  %v12653_v54 = vand.u32 4294901760, %v277_v46  ;;  %v275_v20 = vld [vmem:[%s19569_s1 + $0x140] sm:$0xff]  ;;  %v290_v41 = vld [vmem:[%s19569_s1 + $0x1b8] sm:$0xff] }
  0x89   :  { %9504 = vmatpush3.msra.mxu0 %v20833_v12  ;;  %1504 = vmatprep.mubr.f32.mxu0 %v20834_v58  ;;  %v19710_v18 = vand.u32 4294901760, %v12624_v62  ;;  %v2060_v12 = vsub.f32 %v12601_v16, %v19714_v13  ;;  %v12688_v29 = vsub.f32 %v12596_v15, %v19713_v38  ;;  %20862 = vst [vmem:[#allocation37_spill] sm:$0xff] %v12718_v22  ;;  %v12815_v38 = vld [vmem:[%s19570_s0 + $0x18] sm:$0xff] }
  0x8a   :  { %9552 = vmatpush3.msra.mxu1 %v20837_v2  ;;  %1506 = vmatmul.mubr.f32.vlgmr.msra.gmra.mxu0 %v20838_v59  ;;  %v19715_v19 = vand.u32 4294901760, %v12586_v9  ;;  %20853 = vst [vmem:[#allocation14_spill] sm:$0xff] %v12653_v54  ;;  %v19709_v2 = vand.u32 4294901760, %v12642_v53 }
  0x8b   :  { %1327 = vmatmul.mubr.f32.gmra.mxu1 %v20839_v31  ;;  %9553 = vmatprep.subr.mxu1 %v20840_v61  ;;  %v2061_v7 = vand.u32 4294901760, %v2060_v12  ;;  %v1949_v63 = vand.u32 4294901760, %v12688_v29 }
  0x8c   :  { %9585 = vmatprep.subr.mxu0 %v12521_v37  ;;  %9554 = vmatpush3.msra.mxu1 %v20841_v48  ;;  %v1941_v44 = vsub.f32 %v12586_v9, %v19715_v19  ;;  %v12708_v48 = vsub.f32 %v276_v43, %v12662_v4  ;;  %v12736_v43 = vsub.f32 %v12642_v53, %v19709_v2  ;;  %v20869_v19 = vld [vmem:[#allocation45_spill] sm:$0xff] }
  0x8d   :  { %9586 = vmatpush3.msra.mxu0 %v12514_v49  ;;  %9555 = vmatprep.subr.mxu1 %v20844_v11  ;;  %v12710_v11 = vand.u32 4294901760, %v275_v20 }
  0x8e   :  { %9587 = vmatprep.subr.mxu0 %v12533_v14  ;;  %1334 = vmatprep.mubr.f32.mxu1 %v20846_v34  ;;  %20859 = vst [vmem:[#allocation19_spill] sm:$0xff] %v12708_v48  ;;  %v12712_v34 = vand.u32 4294901760, %v274_v35 }
  0x8f   :  { %1511 = vmatprep.mubr.f32.mxu0 %v20848_v60  ;;  %9556 = vmatpush3.msra.mxu1 %v20849_v6  ;;  %20860 = vst [vmem:[#allocation34_spill] sm:$0xff] %v12710_v11  ;;  %v1942_v6 = vand.u32 4294901760, %v1941_v44  ;;  %v20864_v44 = vld [vmem:[#allocation44_spill] sm:$0xff] }
  0x90   :  { %9588 = vmatpush3.msra.mxu0 %v12550_v45  ;;  %1338 = vmatmul.mubr.f32.gmra.mxu1 %v20850_v1  ;;  %20861 = vst [vmem:[#allocation4_spill] sm:$0xff] %v12712_v34  ;;  %v12729_v1 = vand.u32 4294901760, %v290_v41 }
  0x91   :  { %1513 = vmatmul.mubr.f32.gmra.mxu0 %v20851_v32  ;;  %9557 = vmatprep.subr.mxu1 %v20774_v23  ;;  %v12656_v23 = vsub.f32 %v294_v42, %v12606_v17  ;;  %v20858_v42 = vld [vmem:[#allocation43_spill] sm:$0xff] }
  0x92   :  { %9589 = vmatprep.subr.mxu0 %v12558_v51  ;;  %9558 = vmatpush3.msra.mxu1 %v20777_v25  ;;  %v291_v25 = vld [vmem:[%s19569_s1 + $0x1c0] sm:$0xff]  ;;  %20863 = vst [vmem:[#allocation6_spill] sm:$0xff] %v12729_v1  ;;  %v12796_v10 = vsub.f32 %v290_v41, %v12729_v1 }
  0x93   :  { %9590 = vmatpush3.msra.mxu0 %v12560_v33  ;;  %9559 = vmatprep.subr.mxu1 %v20780_v3  ;;  %v19711_v3 = vand.u32 4294901760, %v12637_v52  ;;  %v12702_v31 = vand.u32 4294901760, %v291_v25  ;;  %v19712_v61 = vand.u32 4294901760, %v12656_v23 }
  0x94   :  { %9591 = vmatprep.subr.mxu0 %v12588_v57  ;;  %1518 = vmatprep.mubr.f32.mxu0 %v20856_v26  ;;  %20873 = vst [vmem:[#allocation32_spill] sm:$0xff] %v12796_v10 }
  0x95   :  { %9560 = vmatpush3.msra.mxu1 %v20783_v27  ;;  %1657 = vmatprep.mubr.f32.mxu1 %v20834_v58  ;;  %v2054_v27 = vand.u32 4294901760, %v2053_v40  ;;  %v12700_v58 = vsub.f32 %v277_v46, %v12653_v54  ;;  %20857 = vst [vmem:[#allocation18_spill] sm:$0xff] %v12702_v31  ;;  %v2067_v28 = vsub.f32 %v12637_v52, %v19711_v3  ;;  %v289_v40 = vld [vmem:[%s19569_s1 + $0x1b0] sm:$0xff] }
  0x96   :  { %9592 = vmatpush3.msra.mxu0 %v12590_v21  ;;  %1659 = vmatmul.mubr.f32.vlgmr.msra.gmra.mxu1 %v20838_v59  ;;  %v273_v59 = vld [vmem:[%s19569_s1 + $0x130] sm:$0xff]  ;;  %v12727_v46 = vsub.f32 %v12624_v62, %v19710_v18  ;;  %v12749_v12 = vsub.f32 %v12656_v23, %v19712_v61  ;;  %v12757_v18 = vld [vmem:[%s19569_s1 + $0x1a8] sm:$0xff]  ;;  %v12760_v3 = vsub.f32 %v291_v25, %v12702_v31  ;;  %v12774_v5 = vand.u32 4294901760, %v289_v40  ;;  %v20883_v21 = vld [vmem:[#allocation49_spill] sm:$0xff] }
  0x97   :  { %1520 = vmatmul.mubr.f32.gmra.mxu0 %v20858_v42  ;;  %9593 = vmatprep.subr.mxu0 %v12606_v17  ;;  %v12751_v29 = vand.u32 4294901760, %v273_v59  ;;  %v19720_v2 = vand.u32 4294901760, %v12700_v58  ;;  %v12768_v61 = vsub.f32 %v274_v35, %v12712_v34  ;;  %v2068_v24 = vand.u32 4294901760, %v2067_v28 }
  0x98   :  { %9641 = vmatprep.subr.mxu1 %v2047_v8  ;;  %9594 = vmatpush3.msra.mxu0 %v12598_v55  ;;  %v19719_v8 = vand.u32 4294901760, %v12695_v39  ;;  %20866 = vst [vmem:[#allocation28_spill] sm:$0xff] %v12760_v3  ;;  %v1956_v25 = vand.u32 4294901760, %v12727_v46  ;;  %20870 = vst [vmem:[#allocation10_spill] sm:$0xff] %v12774_v5  ;;  %v1963_v35 = vand.u32 4294901760, %v12736_v43  ;;  %v12788_v28 = vand.u32 4294901760, %v12757_v18 }
  0x99   :  { %9642 = vmatpush3.msra.mxu1 %v1935_v50  ;;  %9595 = vmatprep.subr.mxu0 %v12644_v30  ;;  %v272_v50 = vld [vmem:[%s19569_s1 + $0x128] sm:$0xff]  ;;  %20865 = vst [vmem:[#allocation40_spill] sm:$0xff] %v12751_v29  ;;  %20868 = vst [vmem:[#allocation30_spill] sm:$0xff] %v12768_v61  ;;  %v12793_v46 = vld [vmem:[%s19569_s1 + $0x1a0] sm:$0xff]  ;;  %v2075_v43 = vand.u32 4294901760, %v12749_v12  ;;  %v12809_v13 = vsub.f32 %v12700_v58, %v19720_v2  ;;  %v20876_v12 = vand.u32 4294901760, %v12708_v48 }
  0x9a   :  { %9643 = vmatprep.subr.mxu1 %v2054_v27  ;;  %1525 = vmatprep.mubr.f32.mxu0 %v20864_v44  ;;  %v12765_v27 = vsub.f32 %v275_v20, %v12710_v11  ;;  %v271_v20 = vld [vmem:[%s19569_s1 + $0x120] sm:$0xff]  ;;  %20872 = vst [vmem:[#allocation12_spill] sm:$0xff] %v12788_v28  ;;  %v126_v17 = vmax.f32 %v12815_v38, 0.0 }
  0x9b   :  { %1664 = vmatprep.mubr.f32.mxu1 %v20848_v60  ;;  %9596 = vmatpush3.msra.mxu0 %v12653_v54  ;;  %v12776_v60 = vand.u32 4294901760, %v272_v50  ;;  %v12826_v2 = vsub.f32 %v12708_v48, %v20876_v12  ;;  %v1970_v54 = vand.u32 4294901760, %v12809_v13 }
  0x9c   :  { %20867 = vst [vmem:[#allocation8_spill] sm:$0xff] %v12765_v27  ;;  %9644 = vmatpush3.msra.mxu1 %v1942_v6  ;;  %1527 = vmatmul.mubr.f32.gmra.mxu0 %v20869_v19  ;;  %v2081_v6 = vsub.f32 %v12695_v39, %v19719_v8  ;;  %v12804_v8 = vsub.f32 %v273_v59, %v12751_v29 }
  0x9d   :  { %20871 = vst [vmem:[#allocation31_spill] sm:$0xff] %v12776_v60  ;;  %1666 = vmatmul.mubr.f32.gmra.mxu1 %v20851_v32  ;;  %9597 = vmatprep.subr.mxu0 %v12660_v47  ;;  %v270_v32 = vld [vmem:[%s19569_s1 + $0x118] sm:$0xff]  ;;  %v12843_v12 = vsub.f32 %v272_v50, %v12776_v60  ;;  %v12846_v47 = vand.u32 4294901760, %v12793_v46  ;;  %v269_v50 = vld [vmem:[%s19569_s1 + $0x110] sm:$0xff] }
  0x9e   :  { %9645 = vmatprep.subr.mxu1 %v2061_v7  ;;  %9598 = vmatpush3.msra.mxu0 %v12662_v4  ;;  %20874 = vst [vmem:[#allocation2_spill] sm:$0xff] %v12804_v8  ;;  %v20875_v7 = vand.u32 4294901760, %v12718_v22  ;;  %v12828_v4 = vand.u32 4294901760, %v271_v20  ;;  %v12848_v41 = vand.u32 4294901760, %v270_v32  ;;  %v2082_v30 = vand.u32 4294901760, %v2081_v6 }
  0x9f   :  { %9646 = vmatpush3.msra.mxu1 %v1949_v63  ;;  %9599 = vmatprep.subr.mxu0 %v12702_v31  ;;  %v12834_v63 = vld [vmem:[%s19569_s1 + $0x198] sm:$0xff]  ;;  %v12839_v31 = vld [vmem:[%s19570_s0 + $0x10] sm:$0xff]  ;;  %20879 = vst [vmem:[#allocation3_spill] sm:$0xff] %v12843_v12  ;;  %20880 = vst [vmem:[#allocation46_spill] sm:$0xff] %v12846_v47 }
  0xa0   :  { %v12821_v59 = vsub.f32 %v12718_v22, %v20875_v7  ;;  %20877 = vst [vmem:[#allocation16_spill] sm:$0xff] %v12828_v4  ;;  %9647 = vmatprep.subr.mxu1 %v2068_v24  ;;  %v20878_v7 = vld [vmem:[#allocation47_spill] sm:$0xff]  ;;  %20881 = vst [vmem:[#allocation48_spill] sm:$0xff] %v12848_v41  ;;  %1671 = vmatprep.mubr.f32.mxu1 %v20856_v26  ;;  %v12855_v24 = vsub.f32 %v289_v40, %v12774_v5  ;;  %v20884_v26 = vand.u32 4294901760, %v12760_v3  ;;  %v12874_v40 = vld [vmem:[%s19569_s1 + $0x190] sm:$0xff] }
  0xa1   :  { %1532 = vmatprep.mubr.f32.mxu0 %v20878_v7  ;;  %9600 = vmatpush3.msra.mxu0 %v12710_v11  ;;  %v12869_v55 = vand.u32 4294901760, %v12834_v63  ;;  %v125_v38 = vmax.f32 %v12839_v31, 0.0  ;;  %v20886_v11 = vand.u32 4294901760, %v12765_v27  ;;  %v12891_v31 = vsub.f32 %v270_v32, %v12848_v41  ;;  %v12910_v32 = vld [vmem:[%s19570_s0 + $0x88] sm:$0xff] }
  0xa2   :  { %20882 = vst [vmem:[#allocation50_spill] sm:$0xff] %v12855_v24  ;;  %9648 = vmatpush3.msra.mxu1 %v1956_v25  ;;  %1534 = vmatmul.mubr.f32.gmra.mxu0 %v20883_v21  ;;  %v12866_v6 = vsub.f32 %v12760_v3, %v20884_v26  ;;  %v2089_v13 = vand.u32 4294901760, %v12821_v59  ;;  %v1977_v25 = vand.u32 4294901760, %v12826_v2  ;;  %v12882_v26 = vsub.f32 %v271_v20, %v12828_v4  ;;  %v20896_v3 = vld [vmem:[#allocation52_spill] sm:$0xff] }
  0xa3   :  { %20885 = vst [vmem:[#allocation55_spill] sm:$0xff] %v12869_v55  ;;  %1673 = vmatmul.mubr.f32.gmra.mxu1 %v20858_v42  ;;  %9601 = vmatprep.subr.mxu0 %v12729_v1  ;;  %v12887_v57 = vsub.f32 %v12765_v27, %v20886_v11  ;;  %v20887_v42 = vand.u32 4294901760, %v12768_v61  ;;  %v12898_v2 = vand.u32 4294901760, %v269_v50  ;;  %v12902_v20 = vsub.f32 %v12757_v18, %v12788_v28  ;;  %v268_v11 = vld [vmem:[%s19569_s1 + $0x108] sm:$0xff] }
  0xa4   :  { %9649 = vmatprep.subr.mxu1 %v2075_v43  ;;  %9602 = vmatpush3.msra.mxu0 %v12712_v34  ;;  %v20890_v43 = vand.u32 4294901760, %v12796_v10  ;;  %v12919_v18 = vand.u32 4294901760, %v12874_v40  ;;  %v12925_v1 = vld [vmem:[%s19569_s1 + $0x188] sm:$0xff]  ;;  %v12936_v27 = vand.u32 4294901760, %v125_v38  ;;  %v12941_v34 = vld [vmem:[%s19570_s0 + $0x80] sm:$0xff] }
  0xa5   :  { %v12896_v59 = vsub.f32 %v12768_v61, %v20887_v42  ;;  %20888 = vst [vmem:[#allocation58_spill] sm:$0xff] %v12898_v2  ;;  %20889 = vst [vmem:[#allocation20_spill] sm:$0xff] %v12902_v20  ;;  %9650 = vmatpush3.msra.mxu1 %v1963_v35  ;;  %9603 = vmatprep.subr.mxu0 %v12774_v5  ;;  %v12927_v61 = vand.u32 4294901760, %v126_v17  ;;  %v20893_v35 = vld [vmem:[#allocation51_spill] sm:$0xff]  ;;  %v2096_v5 = vand.u32 4294901760, %v12866_v6  ;;  %v12946_v6 = vand.u32 4294901760, %v268_v11 }
  0xa6   :  { %v12916_v42 = vsub.f32 %v12796_v10, %v20890_v43  ;;  %20891 = vst [vmem:[#allocation39_spill] sm:$0xff] %v12919_v18  ;;  %9651 = vmatprep.subr.mxu1 %v2082_v30  ;;  %1539 = vmatprep.mubr.f32.mxu0 %v20893_v35  ;;  %v12934_v10 = vsub.f32 %v12793_v46, %v12846_v47  ;;  %20894 = vst [vmem:[#allocation42_spill] sm:$0xff] %v12936_v27  ;;  %v1984_v30 = vand.u32 4294901760, %v12887_v57  ;;  %v267_v57 = vld [vmem:[%s19569_s1 + $0x100] sm:$0xff] }
  0xa7   :  { %20892 = vst [vmem:[#allocation21_spill] sm:$0xff] %v12927_v61  ;;  %1678 = vmatprep.mubr.f32.mxu1 %v20864_v44  ;;  %9604 = vmatpush3.msra.mxu0 %v12751_v29  ;;  %20895 = vst [vmem:[#allocation33_spill] sm:$0xff] %v12946_v6  ;;  %v140_v46 = vmax.f32 %v12910_v32, 0.0  ;;  %v1991_v33 = vand.u32 4294901760, %v12896_v59  ;;  %v12953_v48 = vsub.f32 %v269_v50, %v12898_v2  ;;  %v12956_v44 = vand.u32 4294901760, %v12925_v1  ;;  %v12971_v32 = vld [vmem:[%s19569_s1 + $0x180] sm:$0xff] }
  0xa8   :  { %9652 = vmatpush3.msra.mxu1 %v1970_v54  ;;  %1541 = vmatmul.mubr.f32.gmra.mxu0 %v20896_v3  ;;  %v2103_v54 = vand.u32 4294901760, %v12916_v42  ;;  %v20898_v59 = vand.u32 4294901760, %v12855_v24  ;;  %v12974_v29 = vsub.f32 %v126_v17, %v12927_v61  ;;  %v139_v43 = vmax.f32 %v12941_v34, 0.0 }
  0xa9   :  { %20897 = vst [vmem:[#allocation22_spill] sm:$0xff] %v12956_v44  ;;  %1680 = vmatmul.mubr.f32.gmra.mxu1 %v20869_v19  ;;  %9605 = vmatprep.subr.mxu0 %v12788_v28  ;;  %v12980_v19 = vld [vmem:[%s19570_s0 + $0xf8] sm:$0xff]  ;;  %v20899_v42 = vand.u32 4294901760, %v12804_v8  ;;  %v12992_v17 = vsub.f32 %v12834_v63, %v12869_v55  ;;  %v12996_v34 = vsub.f32 %v268_v11, %v12946_v6  ;;  %v13005_v28 = vand.u32 4294901760, %v140_v46 }
  0xaa   :  { %v2109_v50 = vsub.f32 %v12855_v24, %v20898_v59  ;;  %9653 = vmatprep.subr.mxu1 %v2089_v13  ;;  %9606 = vmatpush3.msra.mxu0 %v12776_v60  ;;  %v12988_v24 = vsub.f32 %v125_v38, %v12936_v27  ;;  %v20901_v13 = vand.u32 4294901760, %v12843_v12  ;;  %v20904_v38 = vld [vmem:[#allocation53_spill] sm:$0xff]  ;;  %v20905_v63 = vand.u32 4294901760, %v12902_v20 }
  0xab   :  { %v1997_v59 = vsub.f32 %v12804_v8, %v20899_v42  ;;  %9654 = vmatpush3.msra.mxu1 %v1977_v25  ;;  %9607 = vmatprep.subr.mxu0 %v12846_v47  ;;  %v13003_v42 = vand.u32 4294901760, %v267_v57  ;;  %20903 = vst [vmem:[#allocation24_spill] sm:$0xff] %v13005_v28  ;;  %v13012_v47 = vand.u32 4294901760, %v12971_v32  ;;  %v154_v8 = vmax.f32 %v12980_v19, 0.0  ;;  %v20908_v19 = vld [vmem:[#allocation54_spill] sm:$0xff] }
  0xac   :  { %20900 = vst [vmem:[#allocation35_spill] sm:$0xff] %v12988_v24  ;;  %v13001_v60 = vsub.f32 %v12843_v12, %v20901_v13  ;;  %9655 = vmatprep.subr.mxu1 %v2096_v5  ;;  %1546 = vmatprep.mubr.f32.mxu0 %v20904_v38  ;;  %v2116_v25 = vsub.f32 %v12902_v20, %v20905_v63  ;;  %v13019_v13 = vld [vmem:[%s19570_s0 + $0xf0] sm:$0xff]  ;;  %v2110_v5 = vand.u32 4294901760, %v2109_v50  ;;  %v13028_v20 = vand.u32 4294901760, %v139_v43 }
  0xad   :  { %20902 = vst [vmem:[#allocation23_spill] sm:$0xff] %v13003_v42  ;;  %20906 = vst [vmem:[#allocation25_spill] sm:$0xff] %v13012_v47  ;;  %1685 = vmatprep.mubr.f32.mxu1 %v20878_v7  ;;  %9608 = vmatpush3.msra.mxu0 %v12828_v4  ;;  %v13026_v63 = vsub.f32 %v12874_v40, %v12919_v18  ;;  %v1998_v11 = vand.u32 4294901760, %v1997_v59  ;;  %v20909_v51 = vand.u32 4294901760, %v12934_v10  ;;  %v153_v59 = vmax.f32 %v13019_v13, 0.0 }
  0xae   :  { %20907 = vst [vmem:[#allocation36_spill] sm:$0xff] %v13028_v20  ;;  %9656 = vmatpush3.msra.mxu1 %v1984_v30  ;;  %1548 = vmatmul.mubr.f32.gmra.mxu0 %v20908_v19  ;;  %v2005_v40 = vand.u32 4294901760, %v13001_v60  ;;  %v13040_v12 = vsub.f32 %v267_v57, %v13003_v42  ;;  %v13043_v30 = vsub.f32 %v140_v46, %v13005_v28  ;;  %v20911_v50 = vand.u32 4294901760, %v12882_v26 }
  0xaf   :  { %v2123_v22 = vsub.f32 %v12934_v10, %v20909_v51  ;;  %1687 = vmatmul.mubr.f32.gmra.mxu1 %v20883_v21  ;;  %9609 = vmatprep.subr.mxu0 %v12869_v55  ;;  %v13049_v51 = vld [vmem:[%s19570_s0 + $0x168] sm:$0xff]  ;;  %v2117_v21 = vand.u32 4294901760, %v2116_v25  ;;  %v13056_v7 = vand.u32 4294901760, %v154_v8  ;;  %v20913_v46 = vand.u32 4294901760, %v12974_v29 }
  0xb0   :  { %20910 = vst [vmem:[#allocation26_spill] sm:$0xff] %v13040_v12  ;;  %9657 = vmatprep.subr.mxu1 %v2103_v54  ;;  %9610 = vmatpush3.msra.mxu0 %v12848_v41  ;;  %v2011_v60 = vsub.f32 %v12882_v26, %v20911_v50  ;;  %v13064_v41 = vsub.f32 %v139_v43, %v13028_v20  ;;  %v13073_v50 = vld [vmem:[%s19570_s0 + $0x160] sm:$0xff]  ;;  %v20916_v43 = vand.u32 4294901760, %v12992_v17  ;;  %v13091_v4 = vand.u32 4294901760, %v153_v59 }
  0xb1   :  { %20912 = vst [vmem:[#allocation38_spill] sm:$0xff] %v13056_v7  ;;  %9658 = vmatpush3.msra.mxu1 %v1991_v33  ;;  %9611 = vmatprep.subr.mxu0 %v12919_v18  ;;  %v1812_v13 = vsub.f32 %v12974_v29, %v20913_v46  ;;  %v13068_v25 = vsub.f32 %v12925_v1, %v12956_v44  ;;  %v20914_v33 = vld [vmem:[#allocation56_spill] sm:$0xff]  ;;  %v2124_v57 = vand.u32 4294901760, %v2123_v22  ;;  %v20915_v46 = vand.u32 4294901760, %v12988_v24 }
  0xb2   :  { %9659 = vmatprep.subr.mxu1 %v2110_v5  ;;  %1553 = vmatprep.mubr.f32.mxu0 %v20914_v33  ;;  %v2130_v18 = vsub.f32 %v12992_v17, %v20916_v43  ;;  %v168_v1 = vmax.f32 %v13049_v51, 0.0  ;;  %v13089_v22 = vsub.f32 %v12971_v32, %v13012_v47  ;;  %20918 = vst [vmem:[#allocation43_spill] sm:$0xff] %v13091_v4  ;;  %v2012_v43 = vand.u32 4294901760, %v2011_v60 }
  0xb3   :  { %v1818_v54 = vsub.f32 %v12988_v24, %v20915_v46  ;;  %1692 = vmatprep.mubr.f32.mxu1 %v20893_v35  ;;  %9612 = vmatpush3.msra.mxu0 %v12898_v2  ;;  %v20919_v46 = vld [vmem:[#allocation57_spill] sm:$0xff]  ;;  %v20920_v51 = vand.u32 4294901760, %v12891_v31  ;;  %v13098_v2 = vsub.f32 %v154_v8, %v13056_v7  ;;  %v167_v55 = vmax.f32 %v13073_v50, 0.0 }
  0xb4   :  { %20917 = vst [vmem:[#allocation41_spill] sm:$0xff] %v13089_v22  ;;  %9660 = vmatpush3.msra.mxu1 %v1998_v11  ;;  %1555 = vmatmul.mubr.f32.gmra.mxu0 %v20919_v46  ;;  %v1813_v32 = vand.u32 4294901760, %v1812_v13  ;;  %v20921_v5 = vand.u32 4294901760, %v13026_v63  ;;  %v13111_v8 = vld [vmem:[%s19570_s0 + $0x1d8] sm:$0xff]  ;;  %v2131_v50 = vand.u32 4294901760, %v2130_v18  ;;  %v20924_v60 = vand.u32 4294901760, %v12953_v48 }
  0xb5   :  { %v2018_v35 = vsub.f32 %v12891_v31, %v20920_v51  ;;  %1694 = vmatmul.mubr.f32.gmra.mxu1 %v20896_v3  ;;  %9613 = vmatprep.subr.mxu0 %v12956_v44  ;;  %v1819_v3 = vand.u32 4294901760, %v1818_v54  ;;  %v13115_v51 = vand.u32 4294901760, %v168_v1  ;;  %v13126_v54 = vsub.f32 %v153_v59, %v13091_v4  ;;  %v69_v18 = vld [vmem:[%s19570_s0 + $0x1d0] sm:$0xff] }
  0xb6   :  { %v2137_v11 = vsub.f32 %v13026_v63, %v20921_v5  ;;  %9661 = vmatprep.subr.mxu1 %v2117_v21  ;;  %9614 = vmatpush3.msra.mxu0 %v12946_v6  ;;  %v20923_v5 = vand.u32 4294901760, %v13043_v30  ;;  %v2025_v44 = vsub.f32 %v12953_v48, %v20924_v60  ;;  %v20926_v59 = vand.u32 4294901760, %v13064_v41 }
  0xb7   :  { %20922 = vst [vmem:[#allocation44_spill] sm:$0xff] %v13115_v51  ;;  %9662 = vmatpush3.msra.mxu1 %v2005_v40  ;;  %9615 = vmatprep.subr.mxu0 %v13012_v47  ;;  %v2019_v40 = vand.u32 4294901760, %v2018_v35  ;;  %v182_v47 = vmax.f32 %v13111_v8, 0.0  ;;  %v20927_v6 = vand.u32 4294901760, %v13068_v25  ;;  %v20928_v35 = vand.u32 4294901760, %v12996_v34 }
  0xb8   :  { %v1827_v24 = vsub.f32 %v13043_v30, %v20923_v5  ;;  %9663 = vmatprep.subr.mxu1 %v2124_v57  ;;  %1699 = vmatprep.mubr.f32.mxu1 %v20904_v38  ;;  %v13133_v5 = vand.u32 4294901760, %v167_v55  ;;  %v2138_v60 = vand.u32 4294901760, %v2137_v11  ;;  %v1833_v21 = vsub.f32 %v13064_v41, %v20926_v59 }
  0xb9   :  { %9616 = vmatpush3.msra.mxu0 %v13003_v42  ;;  %1814 = vmatprep.mubr.f32.mxu0 %v1813_v32  ;;  %v2144_v57 = vsub.f32 %v13068_v25, %v20927_v6  ;;  %v19799_v38 = vand.u32 4294901760, %v13040_v12  ;;  %v2032_v8 = vsub.f32 %v12996_v34, %v20928_v35  ;;  %v13148_v13 = vsub.f32 %v168_v1, %v13115_v51 }
  0xba   :  { %20925 = vst [vmem:[#allocation45_spill] sm:$0xff] %v13133_v5  ;;  %9664 = vmatpush3.msra.mxu1 %v2012_v43  ;;  %1820 = vmatmul.mubr.f32.vlgmr.msra.gmra.mxu0 %v1819_v3  ;;  %v181_v32 = vmax.f32 %v69_v18, 0.0  ;;  %v1828_v11 = vand.u32 4294901760, %v1827_v24  ;;  %v2026_v59 = vand.u32 4294901760, %v2025_v44  ;;  %v20929_v42 = vand.u32 4294901760, %v13089_v22  ;;  %v84_v3 = vld [vmem:[%s19570_s0 + $0x248] sm:$0xff] }
  0xbb   :  { %1701 = vmatmul.mubr.f32.gmra.mxu1 %v20908_v19  ;;  %9665 = vmatprep.subr.mxu1 %v2131_v50  ;;  %v19802_v43 = vand.u32 4294901760, %v13126_v54  ;;  %v20930_v1 = vand.u32 4294901760, %v13098_v2  ;;  %v13163_v24 = vsub.f32 %v167_v55, %v13133_v5  ;;  %v13165_v44 = vand.u32 4294901760, %v182_v47 }
  0xbc   :  { %v2151_v6 = vsub.f32 %v13089_v22, %v20929_v42  ;;  %9697 = vmatprep.subr.mxu0 %v12553_v36  ;;  %9666 = vmatpush3.msra.mxu1 %v2019_v40  ;;  %v1834_v42 = vand.u32 4294901760, %v1833_v21  ;;  %v2145_v50 = vand.u32 4294901760, %v2144_v57  ;;  %v2039_v18 = vsub.f32 %v13040_v12, %v19799_v38  ;;  %v83_v40 = vld [vmem:[%s19570_s0 + $0x240] sm:$0xff] }
  0xbd   :  { %v1842_v19 = vsub.f32 %v13098_v2, %v20930_v1  ;;  %20931 = vst [vmem:[#allocation47_spill] sm:$0xff] %v13165_v44  ;;  %9698 = vmatpush3.msra.mxu0 %v12545_v56  ;;  %9667 = vmatprep.subr.mxu1 %v2138_v60  ;;  %v2033_v55 = vand.u32 4294901760, %v2032_v8  ;;  %v13177_v1 = vand.u32 4294901760, %v181_v32  ;;  %v196_v60 = vmax.f32 %v84_v3, 0.0 }
  0xbe   :  { %9699 = vmatprep.subr.mxu0 %v12574_v0  ;;  %1706 = vmatprep.mubr.f32.mxu1 %v20914_v33  ;;  %v2152_v21 = vand.u32 4294901760, %v2151_v6  ;;  %v1848_v57 = vsub.f32 %v13126_v54, %v19802_v43  ;;  %v19801_v33 = vand.u32 4294901760, %v13163_v24  ;;  %v13186_v8 = vsub.f32 %v182_v47, %v13165_v44 }
  0xbf   :  { %20932 = vst [vmem:[#allocation49_spill] sm:$0xff] %v13177_v1  ;;  %1829 = vmatprep.mubr.f32.mxu0 %v1828_v11  ;;  %9668 = vmatpush3.msra.mxu1 %v2026_v59  ;;  %v1843_v38 = vand.u32 4294901760, %v1842_v19  ;;  %v195_v35 = vmax.f32 %v83_v40, 0.0  ;;  %v2040_v11 = vand.u32 4294901760, %v2039_v18  ;;  %v98_v59 = vld [vmem:[%s19570_s0 + $0x2b8] sm:$0xff]  ;;  %v20934_v6 = vand.u32 4294901760, %v13148_v13 }
  0xc0   :  { %9700 = vmatpush3.msra.mxu0 %v12586_v9  ;;  %1708 = vmatmul.mubr.f32.gmra.mxu1 %v20919_v46  ;;  %20933 = vst [vmem:[#allocation51_spill] sm:$0xff] %v13186_v8  ;;  %v13196_v3 = vsub.f32 %v181_v32, %v13177_v1  ;;  %v13198_v47 = vand.u32 4294901760, %v196_v60  ;;  %v1849_v19 = vand.u32 4294901760, %v1848_v57  ;;  %v19800_v32 = vand.u32 4294901760, %v13186_v8 }
  0xc1   :  { %1835 = vmatmul.mubr.f32.gmra.mxu0 %v1834_v42  ;;  %9669 = vmatprep.subr.mxu1 %v2145_v50  ;;  %v1857_v46 = vsub.f32 %v13148_v13, %v20934_v6  ;;  %v97_v42 = vld [vmem:[%s19570_s0 + $0x2b0] sm:$0xff]  ;;  %v1863_v50 = vsub.f32 %v13163_v24, %v19801_v33  ;;  %v13209_v18 = vand.u32 4294901760, %v195_v35  ;;  %v210_v40 = vmax.f32 %v98_v59, 0.0 }
  0xc2   :  { %9701 = vmatprep.subr.mxu0 %v12601_v16  ;;  %9670 = vmatpush3.msra.mxu1 %v2033_v55  ;;  %20935 = vst [vmem:[#allocation52_spill] sm:$0xff] %v13196_v3  ;;  %20936 = vst [vmem:[#allocation53_spill] sm:$0xff] %v13198_v47  ;;  %v209_v57 = vmax.f32 %v97_v42, 0.0  ;;  %v1872_v6 = vsub.f32 %v13186_v8, %v19800_v32  ;;  %v20958_v8 = vld [vmem:[#allocation11_spill] sm:$0xff] }
  0xc3   :  { %9702 = vmatpush3.msra.mxu0 %v12596_v15  ;;  %9671 = vmatprep.subr.mxu1 %v2152_v21  ;;  %20937 = vst [vmem:[#allocation54_spill] sm:$0xff] %v13209_v18  ;;  %v1858_v55 = vand.u32 4294901760, %v1857_v46  ;;  %v19805_v21 = vand.u32 4294901760, %v13196_v3  ;;  %v1864_v59 = vand.u32 4294901760, %v1863_v50  ;;  %v13230_v46 = vand.u32 4294901760, %v210_v40 }
  0xc4   :  { %9703 = vmatprep.subr.mxu0 %v12637_v52  ;;  %1844 = vmatprep.mubr.f32.mxu0 %v1843_v38  ;;  %v13216_v38 = vsub.f32 %v196_v60, %v13198_v47  ;;  %v13228_v60 = vsub.f32 %v195_v35, %v13209_v18  ;;  %v13242_v50 = vand.u32 4294901760, %v209_v57  ;;  %v1873_v33 = vand.u32 4294901760, %v1872_v6  ;;  %v20944_v35 = vld [vmem:[#allocation27_spill] sm:$0xff] }
  0xc5   :  { %9672 = vmatpush3.msra.mxu1 %v2040_v11  ;;  %2155 = vmatprep.mubr.f32.mxu1 %v12927_v61  ;;  %v112_v11 = vld [vmem:[%s19570_s0 + $0x328] sm:$0xff]  ;;  %20940 = vst [vmem:[#allocation59_spill] sm:$0xff] %v13230_v46  ;;  %v1878_v42 = vsub.f32 %v13196_v3, %v19805_v21  ;;  %v20943_v21 = vld [vmem:[#allocation37_spill] sm:$0xff] }
  0xc6   :  { %9704 = vmatpush3.msra.mxu0 %v12624_v62  ;;  %2157 = vmatmul.mubr.f32.vlgmr.msra.gmra.mxu1 %v12936_v27  ;;  %20938 = vst [vmem:[#allocation56_spill] sm:$0xff] %v13216_v38  ;;  %20939 = vst [vmem:[#allocation57_spill] sm:$0xff] %v13228_v60  ;;  %v224_v32 = vmax.f32 %v112_v11, 0.0  ;;  %v20945_v11 = vld [vmem:[#allocation19_spill] sm:$0xff]  ;;  %v20946_v61 = vand.u32 4294901760, %v13216_v38  ;;  %v13259_v6 = vsub.f32 %v209_v57, %v13242_v50  ;;  %v20952_v3 = vand.u32 4294901760, %v13228_v60 }
  0xc7   :  { %1850 = vmatmul.mubr.f32.gmra.mxu0 %v1849_v19  ;;  %9705 = vmatprep.subr.mxu0 %v12656_v23  ;;  %v111_v19 = vld [vmem:[%s19570_s0 + $0x320] sm:$0xff]  ;;  %20941 = vst [vmem:[#allocation60_spill] sm:$0xff] %v13242_v50  ;;  %v20955_v57 = vld [vmem:[#allocation7_spill] sm:$0xff] }
  0xc8   :  { %9753 = vmatprep.subr.mxu1 %v12521_v37  ;;  %9706 = vmatpush3.msra.mxu0 %v12642_v53  ;;  %v223_v27 = vmax.f32 %v111_v19, 0.0  ;;  %20947 = vst [vmem:[#allocation37_spill] sm:$0xff] %v13259_v6  ;;  %v13261_v43 = vand.u32 4294901760, %v224_v32  ;;  %v20950_v19 = vld [vmem:[#allocation28_spill] sm:$0xff] }
  0xc9   :  { %9754 = vmatpush3.msra.mxu1 %v12514_v49  ;;  %9707 = vmatprep.subr.mxu0 %v12695_v39 }
  0xca   :  { %9755 = vmatprep.subr.mxu1 %v12533_v14  ;;  %1859 = vmatprep.mubr.f32.mxu0 %v1858_v55  ;;  %v13249_v55 = vsub.f32 %v210_v40, %v13230_v46  ;;  %20948 = vst [vmem:[#allocation27_spill] sm:$0xff] %v13261_v43  ;;  %v20949_v40 = vld [vmem:[#allocation5_spill] sm:$0xff] }
  0xcb   :  { %2162 = vmatprep.mubr.f32.mxu1 %v13005_v28  ;;  %9708 = vmatpush3.msra.mxu0 %v12700_v58  ;;  %v1879_v28 = vand.u32 4294901760, %v1878_v42  ;;  %v1893_v42 = vsub.f32 %v13228_v60, %v20952_v3  ;;  %v20957_v3 = vld [vmem:[#allocation32_spill] sm:$0xff]  ;;  %v20959_v60 = vld [vmem:[#allocation30_spill] sm:$0xff] }
  0xcc   :  { %9756 = vmatpush3.msra.mxu1 %v12550_v45  ;;  %1865 = vmatmul.mubr.f32.gmra.mxu0 %v1864_v59  ;;  %20942 = vst [vmem:[#allocation61_spill] sm:$0xff] %v13249_v55  ;;  %v1887_v59 = vsub.f32 %v13216_v38, %v20946_v61  ;;  %v20954_v61 = vld [vmem:[#allocation8_spill] sm:$0xff] }
  0xcd   :  { %2164 = vmatmul.mubr.f32.gmra.mxu1 %v13028_v20  ;;  %9709 = vmatprep.subr.mxu0 %v20943_v21  ;;  %v20951_v20 = vld [vmem:[#allocation29_spill] sm:$0xff] }
  0xce   :  { %9757 = vmatprep.subr.mxu1 %v20944_v35  ;;  %9710 = vmatpush3.msra.mxu0 %v20945_v11  ;;  %v13270_v11 = vand.u32 4294901760, %v223_v27  ;;  %v1888_v38 = vand.u32 4294901760, %v1887_v59  ;;  %v20961_v59 = vld [vmem:[#allocation9_spill] sm:$0xff] }
  0xcf   :  { %9758 = vmatpush3.msra.mxu1 %v20949_v40  ;;  %9711 = vmatprep.subr.mxu0 %v20950_v19  ;;  %v20963_v19 = vld [vmem:[#allocation13_spill] sm:$0xff] }
  0xd0   :  { %9759 = vmatprep.subr.mxu1 %v20951_v20  ;;  %1874 = vmatprep.mubr.f32.mxu0 %v1873_v33  ;;  %20953 = vst [vmem:[#allocation5_spill] sm:$0xff] %v13270_v11  ;;  %v13277_v33 = vsub.f32 %v224_v32, %v13261_v43  ;;  %v20962_v32 = vld [vmem:[#allocation50_spill] sm:$0xff] }
  0xd1   :  { %2169 = vmatprep.mubr.f32.mxu1 %v13056_v7  ;;  %9712 = vmatpush3.msra.mxu0 %v20954_v61  ;;  %v1894_v7 = vand.u32 4294901760, %v1893_v42  ;;  %v20960_v61 = vand.u32 4294901760, %v13249_v55 }
  0xd2   :  { %9760 = vmatpush3.msra.mxu1 %v20955_v57  ;;  %1880 = vmatmul.mubr.f32.gmra.mxu0 %v1879_v28  ;;  %20956 = vst [vmem:[#allocation29_spill] sm:$0xff] %v13277_v33  ;;  %v13287_v28 = vsub.f32 %v223_v27, %v13270_v11  ;;  %v19832_v42 = vand.u32 4294901760, %v13277_v33 }
  0xd3   :  { %2171 = vmatmul.mubr.f32.gmra.mxu1 %v13091_v4  ;;  %9713 = vmatprep.subr.mxu0 %v20957_v3  ;;  %v1902_v57 = vsub.f32 %v13249_v55, %v20960_v61  ;;  %v20964_v4 = vand.u32 4294901760, %v13259_v6  ;;  %v20966_v61 = vld [vmem:[#allocation14_spill] sm:$0xff] }
  0xd4   :  { %9761 = vmatprep.subr.mxu1 %v20958_v8  ;;  %9714 = vmatpush3.msra.mxu0 %v20959_v60  ;;  %v20965_v60 = vld [vmem:[#allocation2_spill] sm:$0xff]  ;;  %v19835_v55 = vand.u32 4294901760, %v13287_v28 }
  0xd5   :  { %9762 = vmatpush3.msra.mxu1 %v20961_v59  ;;  %9715 = vmatprep.subr.mxu0 %v20962_v32  ;;  %v1908_v8 = vsub.f32 %v13259_v6, %v20964_v4  ;;  %v1903_v27 = vand.u32 4294901760, %v1902_v57  ;;  %v20969_v32 = vld [vmem:[#allocation3_spill] sm:$0xff]  ;;  %v20970_v6 = vld [vmem:[#allocation17_spill] sm:$0xff] }
  0xd6   :  { %9763 = vmatprep.subr.mxu1 %v20963_v19  ;;  %1889 = vmatprep.mubr.f32.mxu0 %v1888_v38  ;;  %v20967_v19 = vld [vmem:[#allocation20_spill] sm:$0xff]  ;;  %v20968_v38 = vld [vmem:[#allocation15_spill] sm:$0xff]  ;;  %v1923_v57 = vsub.f32 %v13287_v28, %v19835_v55  ;;  %v20975_v55 = vld [vmem:[#allocation10_spill] sm:$0xff] }
  0xd7   :  { %2176 = vmatprep.mubr.f32.mxu1 %v13115_v51  ;;  %9716 = vmatpush3.msra.mxu0 %v20965_v60  ;;  %v1909_v4 = vand.u32 4294901760, %v1908_v8  ;;  %v1917_v51 = vsub.f32 %v13277_v33, %v19832_v42  ;;  %v20972_v8 = vld [vmem:[#allocation34_spill] sm:$0xff]  ;;  %v20974_v33 = vld [vmem:[#allocation4_spill] sm:$0xff] }
  0xd8   :  { %9764 = vmatpush3.msra.mxu1 %v20966_v61  ;;  %1895 = vmatmul.mubr.f32.gmra.mxu0 %v1894_v7  ;;  %v20971_v7 = vld [vmem:[#allocation18_spill] sm:$0xff] }
  0xd9   :  { %2178 = vmatmul.mubr.f32.gmra.mxu1 %v13133_v5  ;;  %9717 = vmatprep.subr.mxu0 %v20967_v19  ;;  %v1918_v5 = vand.u32 4294901760, %v1917_v51  ;;  %v20973_v42 = vld [vmem:[#allocation6_spill] sm:$0xff]  ;;  %v20976_v51 = vld [vmem:[#allocation40_spill] sm:$0xff] }
  0xda   :  { %9765 = vmatprep.subr.mxu1 %v20968_v38  ;;  %9718 = vmatpush3.msra.mxu0 %v20969_v32 }
  0xdb   :  { %9766 = vmatpush3.msra.mxu1 %v20970_v6  ;;  %9719 = vmatprep.subr.mxu0 %v12934_v10 }
  0xdc   :  { %9767 = vmatprep.subr.mxu1 %v20971_v7  ;;  %1904 = vmatprep.mubr.f32.mxu0 %v1903_v27  ;;  %v1924_v27 = vand.u32 4294901760, %v1923_v57  ;;  %v20978_v57 = vld [vmem:[#allocation31_spill] sm:$0xff] }
  0xdd   :  { %2183 = vmatprep.mubr.f32.mxu1 %v13165_v44  ;;  %9720 = vmatpush3.msra.mxu0 %v12882_v26  ;;  %v20984_v44 = vld [vmem:[#allocation48_spill] sm:$0xff] }
  0xde   :  { %9768 = vmatpush3.msra.mxu1 %v20972_v8  ;;  %1910 = vmatmul.mubr.f32.gmra.mxu0 %v1909_v4  ;;  %v20977_v4 = vld [vmem:[#allocation12_spill] sm:$0xff] }
  0xdf   :  { %2185 = vmatmul.mubr.f32.gmra.mxu1 %v13177_v1  ;;  %9721 = vmatprep.subr.mxu0 %v12992_v17  ;;  %v20983_v1 = vand.u32 4294901760, %v12553_v36  ;;  %v20989_v36 = vand.u32 4294901760, %v12586_v9  ;;  %v20995_v9 = vand.u32 4294901760, %v12637_v52  ;;  %v21000_v52 = vand.u32 4294901760, %v12656_v23 }
  0xe0   :  { %9769 = vmatprep.subr.mxu1 %v20973_v42  ;;  %9722 = vmatpush3.msra.mxu0 %v12891_v31  ;;  %v21003_v23 = vand.u32 4294901760, %v13043_v30 }
  0xe1   :  { %9770 = vmatpush3.msra.mxu1 %v20974_v33  ;;  %9723 = vmatprep.subr.mxu0 %v13026_v63 }
  0xe2   :  { %9771 = vmatprep.subr.mxu1 %v20975_v55  ;;  %1919 = vmatprep.mubr.f32.mxu0 %v1918_v5  ;;  %v20979_v5 = vld [vmem:[#allocation46_spill] sm:$0xff] }
  0xe3   :  { %2190 = vmatprep.mubr.f32.mxu1 %v13198_v47  ;;  %9724 = vmatpush3.msra.mxu0 %v12953_v48  ;;  %v20982_v47 = vld [vmem:[#allocation55_spill] sm:$0xff] }
  0xe4   :  { %9772 = vmatpush3.msra.mxu1 %v20976_v51  ;;  %1925 = vmatmul.mubr.f32.gmra.mxu0 %v1924_v27  ;;  %v20980_v27 = vld [vmem:[#allocation16_spill] sm:$0xff] }
  0xe5   :  { %2192 = vmatmul.mubr.f32.gmra.mxu1 %v13209_v18  ;;  %9725 = vmatprep.subr.mxu0 %v13068_v25  ;;  %v20981_v18 = vld [vmem:[#allocation35_spill] sm:$0xff] }
  0xe6   :  { %9773 = vmatprep.subr.mxu1 %v20977_v4  ;;  %9726 = vmatpush3.msra.mxu0 %v12996_v34 }
  0xe7   :  { %9774 = vmatpush3.msra.mxu1 %v20978_v57  ;;  %9727 = vmatprep.subr.mxu0 %v13089_v22  ;;  %v20987_v22 = vand.u32 4294901760, %v12574_v0  ;;  %v20992_v0 = vld [vmem:[#allocation33_spill] sm:$0xff] }
  0xe8   :  { %9775 = vmatprep.subr.mxu1 %v20979_v5  ;;  %2197 = vmatprep.mubr.f32.mxu1 %v13230_v46  ;;  %v20985_v5 = vand.u32 4294901760, %v12545_v56  ;;  %v20986_v46 = vld [vmem:[#allocation39_spill] sm:$0xff]  ;;  %v20990_v56 = vld [vmem:[#allocation22_spill] sm:$0xff] }
  0xe9   :  { %9728 = vmatpush3.msra.mxu0 %v13040_v12  ;;  %2341 = vmatprep.mubr.f32.mxu0 %v12974_v29 }
  0xea   :  { %9776 = vmatpush3.msra.mxu1 %v20980_v27  ;;  %2344 = vmatmul.mubr.f32.vlgmr.msra.gmra.mxu0 %v20981_v18 }
  0xeb   :  { %2199 = vmatmul.mubr.f32.gmra.mxu1 %v13242_v50  ;;  %9777 = vmatprep.subr.mxu1 %v20982_v47  ;;  %v20988_v50 = vld [vmem:[#allocation58_spill] sm:$0xff] }
  0xec   :  { %9809 = vmatprep.subr.mxu0 %v20983_v1  ;;  %9778 = vmatpush3.msra.mxu1 %v20984_v44 }
  0xed   :  { %9810 = vmatpush3.msra.mxu0 %v20985_v5  ;;  %9779 = vmatprep.subr.mxu1 %v20986_v46  ;;  %v9281_v12 = vpop.f32.mrf.mxu0  ;;  %v20991_v5 = vand.u32 4294901760, %v12601_v16  ;;  %v20998_v16 = vand.u32 4294901760, %v12624_v62  ;;  %v21002_v62 = vand.u32 4294901760, %v12695_v39 }
  0xee   :  { %9811 = vmatprep.subr.mxu0 %v20987_v22  ;;  %2204 = vmatprep.mubr.f32.mxu1 %v13261_v43  ;;  %v20993_v22 = vand.u32 4294901760, %v12596_v15  ;;  %v20994_v43 = vld [vmem:[#allocation25_spill] sm:$0xff] }
  0xef   :  { %2350 = vmatprep.mubr.f32.mxu0 %v13043_v30  ;;  %9780 = vmatpush3.msra.mxu1 %v20988_v50  ;;  %v9282_v1 = vpop.f32.mrf.mxu0  ;;  %v21007_v30 = vld [vmem:[#allocation19_spill] sm:$0xff] }
  0xf0   :  { %9812 = vmatpush3.msra.mxu0 %v20989_v36  ;;  %2206 = vmatmul.mubr.f32.gmra.mxu1 %v13270_v11  ;;  %v20996_v11 = vld [vmem:[#allocation23_spill] sm:$0xff] }
  0xf1   :  { %2353 = vmatmul.mubr.f32.gmra.mxu0 %v13064_v41  ;;  %9781 = vmatprep.subr.mxu1 %v20990_v56  ;;  %v20997_v56 = vand.u32 4294901760, %v12974_v29 }
  0xf2   :  { %9813 = vmatprep.subr.mxu0 %v20991_v5  ;;  %9782 = vmatpush3.msra.mxu1 %v20992_v0  ;;  %v20999_v5 = vand.u32 4294901760, %v20981_v18  ;;  %v9283_v18 = vadd.f32 %v9282_v1, %v9281_v12  ;;  %v21005_v12 = vand.u32 4294901760, %v13064_v41  ;;  %v21008_v1 = vand.u32 4294901760, %v21007_v30  ;;  %v21011_v41 = vld [vmem:[#allocation51_spill] sm:$0xff] }
  0xf3   :  { %9814 = vmatpush3.msra.mxu0 %v20993_v22  ;;  %9783 = vmatprep.subr.mxu1 %v20994_v43 }
  0xf4   :  { %9815 = vmatprep.subr.mxu0 %v20995_v9  ;;  %2359 = vmatprep.mubr.f32.mxu0 %v13098_v2  ;;  %v21001_v9 = vand.u32 4294901760, %v12642_v53 }
  0xf5   :  { %v9284_v36 = vpop.f32.mrf.mxu0  ;;  %9784 = vmatpush3.msra.mxu1 %v20996_v11  ;;  %2511 = vmatprep.mubr.f32.mxu1 %v20997_v56 }
  0xf6   :  { %9816 = vmatpush3.msra.mxu0 %v20998_v16  ;;  %2515 = vmatmul.mubr.f32.vlgmr.msra.gmra.mxu1 %v20999_v5  ;;  %v9337_v22 = vpop.f32.mrf.mxu1 }
  0xf7   :  { %v9285_v15 = vpop.f32.mrf.mxu0  ;;  %2362 = vmatmul.mubr.f32.gmra.mxu0 %v13126_v54  ;;  %9817 = vmatprep.subr.mxu0 %v21000_v52 }
  0xf8   :  { %9865 = vmatprep.subr.mxu1 %v12521_v37  ;;  %9818 = vmatpush3.msra.mxu0 %v21001_v9  ;;  %v9338_v29 = vpop.f32.mrf.mxu1  ;;  %v21004_v37 = vand.u32 4294901760, %v12700_v58  ;;  %v9286_v52 = vadd.f32 %v9285_v15, %v9284_v36  ;;  %v21017_v36 = vand.u32 4294901760, %v13126_v54  ;;  %v21025_v54 = vld [vmem:[#allocation56_spill] sm:$0xff] }
  0xf9   :  { %9866 = vmatpush3.msra.mxu1 %v12514_v49  ;;  %9819 = vmatprep.subr.mxu0 %v21002_v62  ;;  %v9339_v56 = vadd.f32 %v9338_v29, %v9337_v22  ;;  %v21012_v29 = vand.u32 4294901760, %v13098_v2  ;;  %v21019_v2 = vld [vmem:[#allocation11_spill] sm:$0xff] }
  0xfa   :  { %9867 = vmatprep.subr.mxu1 %v12533_v14  ;;  %2368 = vmatprep.mubr.f32.mxu0 %v13148_v13  ;;  %v9287_v16 = vpop.f32.mrf.mxu0  ;;  %v21006_v14 = vand.u32 4294901760, %v20943_v21 }
  0xfb   :  { %2522 = vmatprep.mubr.f32.mxu1 %v21003_v23  ;;  %9820 = vmatpush3.msra.mxu0 %v21004_v37  ;;  %v13387_v53 = vadd.f32 %v9339_v56, %v9283_v18  ;;  %v21015_v56 = vld [vmem:[#allocation7_spill] sm:$0xff]  ;;  %v21020_v37 = vld [vmem:[#allocation30_spill] sm:$0xff] }
  0xfc   :  { %9868 = vmatpush3.msra.mxu1 %v12550_v45  ;;  %2371 = vmatmul.mubr.f32.gmra.mxu0 %v13163_v24  ;;  %v9288_v49 = vpop.f32.mrf.mxu0  ;;  %v9340_v39 = vpop.f32.mrf.mxu1  ;;  %v21009_v45 = vld [vmem:[#allocation28_spill] sm:$0xff] }
  0xfd   :  { %2526 = vmatmul.mubr.f32.gmra.mxu1 %v21005_v12  ;;  %9821 = vmatprep.subr.mxu0 %v21006_v14  ;;  %v21010_v22 = vand.u32 4294901760, %v21009_v45  ;;  %v21022_v14 = vld [vmem:[#allocation50_spill] sm:$0xff]  ;;  %v9289_v45 = vadd.f32 %v9288_v49, %v9287_v16  ;;  %v21029_v16 = vand.u32 4294901760, %v13163_v24  ;;  %v21034_v24 = vand.u32 4294901760, %v12934_v10 }
  0xfe   :  { %9869 = vmatprep.subr.mxu1 %v20944_v35  ;;  %9822 = vmatpush3.msra.mxu0 %v21008_v1  ;;  %v9341_v5 = vpop.f32.mrf.mxu1  ;;  %v21013_v35 = vld [vmem:[#allocation8_spill] sm:$0xff]  ;;  %v21023_v30 = vand.u32 4294901760, %v21022_v14 }
  0xff   :  { %9870 = vmatpush3.msra.mxu1 %v20949_v40  ;;  %9823 = vmatprep.subr.mxu0 %v21010_v22  ;;  %v9342_v9 = vadd.f32 %v9341_v5, %v9340_v39  ;;  %v21014_v62 = vand.u32 4294901760, %v21013_v35  ;;  %v21016_v40 = vld [vmem:[#allocation52_spill] sm:$0xff]  ;;  %v21021_v39 = vand.u32 4294901760, %v21020_v37  ;;  %v21024_v5 = vld [vmem:[#allocation13_spill] sm:$0xff]  ;;  %v21037_v37 = vand.u32 4294901760, %v12882_v26 }
 0x100   :  { %v9290_v58 = vpop.f32.mrf.mxu0  ;;  %9871 = vmatprep.subr.mxu1 %v20951_v20  ;;  %2377 = vmatprep.mubr.f32.mxu0 %v21011_v41  ;;  %v21018_v20 = vand.u32 4294901760, %v20957_v3  ;;  %v330_v3 = vld [vmem:[%s19569_s1 + $0x2f8] sm:$0xff] }
 0x101   :  { %2533 = vmatprep.mubr.f32.mxu1 %v21012_v29  ;;  %9824 = vmatpush3.msra.mxu0 %v21014_v62  ;;  %v13407_v18 = vadd.f32 %v9342_v9, %v9286_v52  ;;  %v21026_v52 = vand.u32 4294901760, %v13148_v13  ;;  %v21027_v9 = vand.u32 4294901760, %v20965_v60  ;;  %v21028_v29 = vld [vmem:[#allocation57_spill] sm:$0xff]  ;;  %v21030_v13 = vand.u32 4294901760, %v20967_v19  ;;  %v329_v19 = vld [vmem:[%s19569_s1 + $0x2f0] sm:$0xff] }
 0x102   :  { %v9291_v21 = vpop.f32.mrf.mxu0  ;;  %9872 = vmatpush3.msra.mxu1 %v21015_v56  ;;  %2380 = vmatmul.mubr.f32.gmra.mxu0 %v21016_v40  ;;  %v13447_v60 = vand.u32 4294901760, %v330_v3  ;;  %v21032_v56 = vand.u32 4294901760, %v20969_v32  ;;  %v313_v32 = vld [vmem:[%s19569_s1 + $0x270] sm:$0xff]  ;;  %v13488_v26 = vand.u32 4294901760, %v329_v19 }
 0x103   :  { %2537 = vmatmul.mubr.f32.gmra.mxu1 %v21017_v36  ;;  %9825 = vmatprep.subr.mxu0 %v21018_v20  ;;  %v9343_v15 = vpop.f32.mrf.mxu1 }
 0x104   :  { %v13411_v23 = vpop.f32.mrf.mxu0  ;;  %9873 = vmatprep.subr.mxu1 %v21019_v2  ;;  %9826 = vmatpush3.msra.mxu0 %v21021_v39  ;;  %21031 = vst [vmem:[#allocation32_spill] sm:$0xff] %v13447_v60  ;;  %v21036_v2 = vand.u32 4294901760, %v21011_v41  ;;  %v327_v39 = vld [vmem:[%s19569_s1 + $0x2e0] sm:$0xff]  ;;  %v13481_v14 = vsub.f32 %v330_v3, %v13447_v60  ;;  %21039 = vst [vmem:[#allocation2_spill] sm:$0xff] %v13488_v26  ;;  %v13498_v3 = vand.u32 4294901760, %v313_v32 }
 0x105   :  { %9874 = vmatpush3.msra.mxu1 %v20961_v59  ;;  %9827 = vmatprep.subr.mxu0 %v21023_v30  ;;  %v9344_v1 = vpop.f32.mrf.mxu1  ;;  %v314_v59 = vld [vmem:[%s19569_s1 + $0x278] sm:$0xff] }
 0x106   :  { %v13420_v12 = vpop.f32.mrf.mxu0  ;;  %9875 = vmatprep.subr.mxu1 %v21024_v5  ;;  %2386 = vmatprep.mubr.f32.mxu0 %v21025_v54  ;;  %v9345_v22 = vadd.f32 %v9344_v1, %v9343_v15  ;;  %v9292_v15 = vadd.f32 %v9291_v21, %v9290_v58  ;;  %v21038_v58 = vld [vmem:[#allocation37_spill] sm:$0xff]  ;;  %v21040_v1 = vand.u32 4294901760, %v21016_v40  ;;  %v21041_v5 = vand.u32 4294901760, %v12992_v17  ;;  %21042 = vst [vmem:[#allocation14_spill] sm:$0xff] %v13498_v3  ;;  %v311_v40 = vld [vmem:[%s19569_s1 + $0x260] sm:$0xff] }
 0x107   :  { %2544 = vmatprep.mubr.f32.mxu1 %v21026_v52  ;;  %9828 = vmatpush3.msra.mxu0 %v21027_v9  ;;  %v13507_v9 = vand.u32 4294901760, %v327_v39 }
 0x108   :  { %9876 = vmatpush3.msra.mxu1 %v20966_v61  ;;  %2389 = vmatmul.mubr.f32.gmra.mxu0 %v21028_v29  ;;  %v13439_v35 = vadd.f32 %v9345_v22, %v9289_v45  ;;  %v13441_v62 = vpop.f32.mrf.mxu0  ;;  %v13452_v61 = vand.u32 4294901760, %v314_v59  ;;  %v21044_v22 = vand.u32 4294901760, %v12891_v31  ;;  %v21048_v31 = vld [vmem:[#allocation29_spill] sm:$0xff] }
 0x109   :  { %2548 = vmatmul.mubr.f32.gmra.mxu1 %v21029_v16  ;;  %9829 = vmatprep.subr.mxu0 %v21030_v13  ;;  %v9346_v49 = vpop.f32.mrf.mxu1  ;;  %21046 = vst [vmem:[#allocation3_spill] sm:$0xff] %v13507_v9 }
 0x10a   :  { %9877 = vmatprep.subr.mxu1 %v20968_v38  ;;  %9830 = vmatpush3.msra.mxu0 %v21032_v56  ;;  %21033 = vst [vmem:[#allocation9_spill] sm:$0xff] %v13452_v61  ;;  %v13454_v36 = vpop.f32.mrf.mxu0  ;;  %v21035_v38 = vld [vmem:[#allocation61_spill] sm:$0xff]  ;;  %v13486_v41 = vsub.f32 %v314_v59, %v13452_v61  ;;  %v21047_v59 = vand.u32 4294901760, %v13026_v63  ;;  %v9295_v56 = vadd.f32 %v13420_v12, %v13411_v23  ;;  %v21050_v63 = vand.u32 4294901760, %v12953_v48 }
 0x10b   :  { %9878 = vmatpush3.msra.mxu1 %v20970_v6  ;;  %9831 = vmatprep.subr.mxu0 %v21034_v24  ;;  %v9347_v20 = vpop.f32.mrf.mxu1  ;;  %v328_v6 = vld [vmem:[%s19569_s1 + $0x2e8] sm:$0xff]  ;;  %v310_v48 = vld [vmem:[%s19569_s1 + $0x258] sm:$0xff]  ;;  %v13550_v12 = vsub.f32 %v327_v39, %v13507_v9 }
 0x10c   :  { %9879 = vmatprep.subr.mxu1 %v20971_v7  ;;  %2395 = vmatprep.mubr.f32.mxu0 %v21035_v38  ;;  %v9348_v10 = vadd.f32 %v9347_v20, %v9346_v49  ;;  %v312_v7 = vld [vmem:[%s19569_s1 + $0x268] sm:$0xff]  ;;  %v19854_v13 = vand.u32 4294901760, %v13486_v41  ;;  %v13522_v49 = vsub.f32 %v329_v19, %v13488_v26  ;;  %v13531_v20 = vsub.f32 %v313_v32, %v13498_v3  ;;  %v326_v19 = vld [vmem:[%s19569_s1 + $0x2d8] sm:$0xff] }
 0x10d   :  { %2555 = vmatprep.mubr.f32.mxu1 %v21036_v2  ;;  %9832 = vmatpush3.msra.mxu0 %v21037_v37  ;;  %v13505_v52 = vand.u32 4294901760, %v312_v7  ;;  %21053 = vst [vmem:[#allocation34_spill] sm:$0xff] %v13550_v12  ;;  %v21056_v37 = vand.u32 4294901760, %v12996_v34 }
 0x10e   :  { %9880 = vmatpush3.msra.mxu1 %v20972_v8  ;;  %2398 = vmatmul.mubr.f32.gmra.mxu0 %v21038_v58  ;;  %v13490_v21 = vadd.f32 %v9348_v10, %v9292_v15  ;;  %v13492_v30 = vpop.f32.mrf.mxu0  ;;  %v13500_v8 = vand.u32 4294901760, %v328_v6  ;;  %v19855_v39 = vand.u32 4294901760, %v13522_v49 }
 0x10f   :  { %2559 = vmatmul.mubr.f32.gmra.mxu1 %v21040_v1  ;;  %9833 = vmatprep.subr.mxu0 %v21041_v5  ;;  %v9349_v45 = vpop.f32.mrf.mxu1  ;;  %21045 = vst [vmem:[#allocation15_spill] sm:$0xff] %v13505_v52  ;;  %v13544_v23 = vsub.f32 %v312_v7, %v13505_v52  ;;  %v13568_v7 = vand.u32 4294901760, %v326_v19 }
 0x110   :  { %21043 = vst [vmem:[#allocation20_spill] sm:$0xff] %v13500_v8  ;;  %9881 = vmatprep.subr.mxu1 %v20973_v42  ;;  %9834 = vmatpush3.msra.mxu0 %v21044_v22  ;;  %v13512_v17 = vpop.f32.mrf.mxu0  ;;  %v19856_v42 = vand.u32 4294901760, %v13481_v14  ;;  %v13539_v15 = vsub.f32 %v328_v6, %v13500_v8  ;;  %v21054_v6 = vand.u32 4294901760, %v21028_v29  ;;  %v13573_v29 = vsub.f32 %v13486_v41, %v19854_v13 }
 0x111   :  { %9882 = vmatpush3.msra.mxu1 %v20974_v33  ;;  %9835 = vmatprep.subr.mxu0 %v21047_v59  ;;  %v9350_v16 = vpop.f32.mrf.mxu1  ;;  %v21049_v33 = vand.u32 4294901760, %v21025_v54  ;;  %21052 = vst [vmem:[#allocation18_spill] sm:$0xff] %v13544_v23  ;;  %21057 = vst [vmem:[#allocation6_spill] sm:$0xff] %v13568_v7  ;;  %v19858_v22 = vand.u32 4294901760, %v13531_v20  ;;  %v21069_v13 = vand.u32 4294901760, %v21038_v58  ;;  %v307_v58 = vld [vmem:[%s19569_s1 + $0x240] sm:$0xff] }
 0x112   :  { %9883 = vmatprep.subr.mxu1 %v20975_v55  ;;  %2404 = vmatprep.mubr.f32.mxu0 %v21048_v31  ;;  %v9351_v24 = vadd.f32 %v9350_v16, %v9349_v45  ;;  %v13533_v55 = vand.u32 4294901760, %v311_v40  ;;  %v13563_v10 = vsub.f32 %v13481_v14, %v19856_v42  ;;  %v13587_v45 = vand.u32 4294901760, %v310_v48 }
 0x113   :  { %2566 = vmatprep.mubr.f32.mxu1 %v21049_v33  ;;  %9836 = vmatpush3.msra.mxu0 %v21050_v63  ;;  %v19857_v59 = vand.u32 4294901760, %v13539_v15  ;;  %v19859_v33 = vand.u32 4294901760, %v13544_v23  ;;  %v9298_v63 = vadd.f32 %v13454_v36, %v13441_v62  ;;  %v13616_v36 = vsub.f32 %v13522_v49, %v19855_v39 }
 0x114   :  { %21051 = vst [vmem:[#allocation17_spill] sm:$0xff] %v13533_v55  ;;  %9884 = vmatpush3.msra.mxu1 %v20976_v51  ;;  %2407 = vmatmul.mubr.f32.gmra.mxu0 %v13287_v28  ;;  %v13552_v54 = vadd.f32 %v9351_v24, %v9295_v56  ;;  %v13554_v32 = vpop.f32.mrf.mxu0  ;;  %v21055_v51 = vand.u32 4294901760, %v13068_v25  ;;  %v325_v25 = vld [vmem:[%s19569_s1 + $0x2d0] sm:$0xff]  ;;  %v13585_v5 = vsub.f32 %v311_v40, %v13533_v55  ;;  %21060 = vst [vmem:[#allocation4_spill] sm:$0xff] %v13587_v45  ;;  %v21061_v56 = vld [vmem:[#allocation46_spill] sm:$0xff] }
 0x115   :  { %2570 = vmatmul.mubr.f32.gmra.mxu1 %v21054_v6  ;;  %v9352_v2 = vpop.f32.mrf.mxu1  ;;  %9885 = vmatprep.subr.mxu1 %v20977_v4  ;;  %v21058_v4 = vld [vmem:[#allocation41_spill] sm:$0xff]  ;;  %v21062_v24 = vand.u32 4294901760, %v21035_v38  ;;  %v19862_v40 = vand.u32 4294901760, %v13550_v12  ;;  %v13633_v39 = vsub.f32 %v310_v48, %v13587_v45  ;;  %v13640_v62 = vsub.f32 %v13531_v20, %v19858_v22 }
 0x116   :  { %9837 = vmatprep.subr.mxu0 %v21055_v51  ;;  %v13579_v1 = vpop.f32.mrf.mxu0  ;;  %9886 = vmatpush3.msra.mxu1 %v20978_v57  ;;  %v21059_v34 = vand.u32 4294901760, %v21058_v4  ;;  %v309_v57 = vld [vmem:[%s19569_s1 + $0x250] sm:$0xff]  ;;  %v21063_v51 = vld [vmem:[#allocation26_spill] sm:$0xff]  ;;  %v21065_v4 = vld [vmem:[#allocation21_spill] sm:$0xff]  ;;  %v13657_v48 = vsub.f32 %v13544_v23, %v19859_v33 }
 0x117   :  { %9838 = vmatpush3.msra.mxu0 %v21056_v37  ;;  %v9353_v16 = vpop.f32.mrf.mxu1  ;;  %9887 = vmatprep.subr.mxu1 %v21061_v56  ;;  %v21064_v37 = vand.u32 4294901760, %v21063_v51  ;;  %v324_v56 = vld [vmem:[%s19569_s1 + $0x2c8] sm:$0xff]  ;;  %v13625_v51 = vsub.f32 %v326_v19, %v13568_v7  ;;  %21070 = vst [vmem:[#allocation12_spill] sm:$0xff] %v13633_v39  ;;  %v13635_v42 = vand.u32 4294901760, %v309_v57  ;;  %v13645_v19 = vsub.f32 %v13539_v15, %v19857_v59  ;;  %v21078_v23 = vld [vmem:[#allocation24_spill] sm:$0xff] }
 0x118   :  { %9839 = vmatprep.subr.mxu0 %v21059_v34  ;;  %2577 = vmatprep.mubr.f32.mxu1 %v21062_v24  ;;  %v9354_v6 = vadd.f32 %v9353_v16, %v9352_v2  ;;  %v13605_v34 = vand.u32 4294901760, %v325_v25  ;;  %v21067_v24 = vld [vmem:[#allocation42_spill] sm:$0xff]  ;;  %v308_v2 = vld [vmem:[%s19569_s1 + $0x248] sm:$0xff] }
 0x119   :  { %9840 = vmatpush3.msra.mxu0 %v21064_v37  ;;  %2758 = vmatprep.mubr.f32.mxu0 %v21065_v4  ;;  %v323_v16 = vld [vmem:[%s19569_s1 + $0x2c0] sm:$0xff]  ;;  %21068 = vst [vmem:[#allocation40_spill] sm:$0xff] %v13625_v51  ;;  %21071 = vst [vmem:[#allocation31_spill] sm:$0xff] %v13635_v42 }
 0x11a   :  { %21066 = vst [vmem:[#allocation10_spill] sm:$0xff] %v13605_v34  ;;  %9888 = vmatpush3.msra.mxu1 %v20980_v27  ;;  %2760 = vmatmul.mubr.f32.vlgmr.msra.gmra.mxu0 %v21067_v24  ;;  %v13627_v27 = vadd.f32 %v9354_v6, %v9298_v63  ;;  %v9393_v37 = vpop.f32.mrf.mxu0  ;;  %v13662_v63 = vsub.f32 %v13550_v12, %v19862_v40  ;;  %v13669_v22 = vand.u32 4294901760, %v323_v16  ;;  %v21076_v40 = vand.u32 4294901760, %v21048_v31 }
 0x11b   :  { %2581 = vmatmul.mubr.f32.gmra.mxu1 %v21069_v13  ;;  %9889 = vmatprep.subr.mxu1 %v20982_v47  ;;  %v9355_v47 = vpop.f32.mrf.mxu1  ;;  %v13652_v13 = vand.u32 4294901760, %v324_v56  ;;  %v13672_v38 = vsub.f32 %v325_v25, %v13605_v34  ;;  %v13677_v6 = vand.u32 4294901760, %v307_v58 }
 0x11c   :  { %9921 = vmatprep.subr.mxu0 %v13447_v60  ;;  %9890 = vmatpush3.msra.mxu1 %v20984_v44  ;;  %v9394_v59 = vpop.f32.mrf.mxu0  ;;  %v13667_v44 = vand.u32 4294901760, %v308_v2  ;;  %21074 = vst [vmem:[#allocation55_spill] sm:$0xff] %v13669_v22 }
 0x11d   :  { %21072 = vst [vmem:[#allocation16_spill] sm:$0xff] %v13652_v13  ;;  %9922 = vmatpush3.msra.mxu0 %v13452_v61  ;;  %9891 = vmatprep.subr.mxu1 %v20986_v46  ;;  %21075 = vst [vmem:[#allocation48_spill] sm:$0xff] %v13672_v38  ;;  %v9356_v33 = vpop.f32.mrf.mxu1  ;;  %v9395_v60 = vadd.f32 %v9394_v59, %v9393_v37  ;;  %v19869_v61 = vand.u32 4294901760, %v13625_v51  ;;  %v9301_v46 = vadd.f32 %v13512_v17, %v13492_v30  ;;  %v306_v30 = vld [vmem:[%s19569_s1 + $0x238] sm:$0xff] }
 0x11e   :  { %21073 = vst [vmem:[#allocation35_spill] sm:$0xff] %v13667_v44  ;;  %9923 = vmatprep.subr.mxu0 %v13488_v26  ;;  %2588 = vmatprep.mubr.f32.mxu1 %v21076_v40  ;;  %21077 = vst [vmem:[#allocation39_spill] sm:$0xff] %v13677_v6  ;;  %v9357_v12 = vadd.f32 %v9356_v33, %v9355_v47  ;;  %v13686_v59 = vsub.f32 %v309_v57, %v13635_v42  ;;  %v21080_v37 = vand.u32 4294901760, %v13287_v28 }
 0x11f   :  { %2765 = vmatprep.mubr.f32.mxu0 %v21078_v23  ;;  %9892 = vmatpush3.msra.mxu1 %v20988_v50  ;;  %v13690_v40 = vadd.f32 %v9395_v60, %v13387_v53  ;;  %v322_v50 = vld [vmem:[%s19569_s1 + $0x2b8] sm:$0xff]  ;;  %v21081_v53 = vld [vmem:[#allocation36_spill] sm:$0xff]  ;;  %v21082_v60 = vld [vmem:[#allocation22_spill] sm:$0xff]  ;;  %v13706_v28 = vsub.f32 %v308_v2, %v13667_v44  ;;  %v13727_v31 = vsub.f32 %v307_v58, %v13677_v6 }
 0x120   :  { %21079 = vst [vmem:[#allocation58_spill] sm:$0xff] %v13686_v59  ;;  %9924 = vmatpush3.msra.mxu0 %v13498_v3  ;;  %2592 = vmatmul.mubr.f32.gmra.mxu1 %v21080_v37  ;;  %v13701_v33 = vadd.f32 %v9357_v12, %v9301_v46  ;;  %v9358_v47 = vpop.f32.mrf.mxu1  ;;  %v21084_v37 = vand.u32 4294901760, %v13585_v5  ;;  %v321_v12 = vld [vmem:[%s19569_s1 + $0x2b0] sm:$0xff]  ;;  %v13732_v25 = vsub.f32 %v13625_v51, %v19869_v61  ;;  %v13739_v57 = vand.u32 4294901760, %v322_v50 }
 0x121   :  { %2767 = vmatmul.mubr.f32.gmra.mxu0 %v21081_v53  ;;  %9893 = vmatprep.subr.mxu1 %v21082_v60  ;;  %21083 = vst [vmem:[#allocation33_spill] sm:$0xff] %v13706_v28  ;;  %v13721_v60 = vsub.f32 %v324_v56, %v13652_v13  ;;  %v9396_v2 = vpop.f32.mrf.mxu0  ;;  %21086 = vst [vmem:[#allocation23_spill] sm:$0xff] %v13727_v31  ;;  %v13735_v46 = vsub.f32 %v323_v16, %v13669_v22  ;;  %v21089_v16 = vld [vmem:[#allocation38_spill] sm:$0xff]  ;;  %v13756_v26 = vand.u32 4294901760, %v321_v12 }
 0x122   :  { %v13711_v17 = vsub.f32 %v13585_v5, %v21084_v37  ;;  %9925 = vmatprep.subr.mxu0 %v13500_v8  ;;  %9894 = vmatpush3.msra.mxu1 %v20992_v0  ;;  %v9359_v56 = vpop.f32.mrf.mxu1  ;;  %21088 = vst [vmem:[#allocation28_spill] sm:$0xff] %v13739_v57  ;;  %v305_v0 = vld [vmem:[%s19569_s1 + $0x230] sm:$0xff]  ;;  %v9304_v61 = vadd.f32 %v13579_v1, %v13554_v32  ;;  %v21093_v32 = vand.u32 4294901760, %v13672_v38 }
 0x123   :  { %21085 = vst [vmem:[#allocation25_spill] sm:$0xff] %v13721_v60  ;;  %21087 = vst [vmem:[#allocation19_spill] sm:$0xff] %v13735_v46  ;;  %9926 = vmatpush3.msra.mxu0 %v13505_v52  ;;  %9895 = vmatprep.subr.mxu1 %v20994_v43  ;;  %v9360_v37 = vadd.f32 %v9359_v56, %v9358_v47  ;;  %v9397_v8 = vpop.f32.mrf.mxu0  ;;  %v13749_v52 = vand.u32 4294901760, %v306_v30  ;;  %v21091_v43 = vand.u32 4294901760, %v13633_v39  ;;  %v320_v47 = vld [vmem:[%s19569_s1 + $0x2a8] sm:$0xff] }
 0x124   :  { %9927 = vmatprep.subr.mxu0 %v13507_v9  ;;  %2772 = vmatprep.mubr.f32.mxu0 %v21089_v16  ;;  %21092 = vst [vmem:[#allocation8_spill] sm:$0xff] %v13756_v26  ;;  %v9398_v51 = vadd.f32 %v9397_v8, %v9396_v2  ;;  %v13763_v1 = vsub.f32 %v13672_v38, %v21093_v32  ;;  %v13775_v8 = vand.u32 4294901760, %v305_v0  ;;  %v21095_v9 = vld [vmem:[#allocation43_spill] sm:$0xff]  ;;  %v13803_v56 = vand.u32 4294901760, %v320_v47 }
 0x125   :  { %21090 = vst [vmem:[#allocation51_spill] sm:$0xff] %v13749_v52  ;;  %v13754_v3 = vsub.f32 %v13633_v39, %v21091_v43  ;;  %9896 = vmatpush3.msra.mxu1 %v20996_v11  ;;  %2911 = vmatprep.mubr.f32.mxu1 %v21065_v4  ;;  %v13770_v58 = vadd.f32 %v9360_v37, %v9304_v61  ;;  %v21096_v37 = vand.u32 4294901760, %v13686_v59  ;;  %v304_v11 = vld [vmem:[%s19569_s1 + $0x228] sm:$0xff]  ;;  %v21098_v43 = vand.u32 4294901760, %v13563_v10 }
 0x126   :  { %9928 = vmatpush3.msra.mxu0 %v13533_v55  ;;  %2913 = vmatmul.mubr.f32.vlgmr.msra.gmra.mxu1 %v21067_v24  ;;  %21094 = vst [vmem:[#allocation7_spill] sm:$0xff] %v13775_v8  ;;  %v13779_v2 = vadd.f32 %v9398_v51, %v13407_v18  ;;  %v9449_v32 = vpop.f32.mrf.mxu1  ;;  %v13794_v18 = vsub.f32 %v322_v50, %v13739_v57  ;;  %21100 = vst [vmem:[#allocation30_spill] sm:$0xff] %v13803_v56  ;;  %v21102_v50 = vand.u32 4294901760, %v13573_v29  ;;  %v21106_v29 = vld [vmem:[#allocation44_spill] sm:$0xff] }
 0x127   :  { %2774 = vmatmul.mubr.f32.gmra.mxu0 %v21095_v9  ;;  %9929 = vmatprep.subr.mxu0 %v13568_v7  ;;  %v13787_v24 = vsub.f32 %v13686_v59, %v21096_v37  ;;  %v9399_v51 = vpop.f32.mrf.mxu0  ;;  %v13800_v61 = vsub.f32 %v306_v30, %v13749_v52  ;;  %v13806_v7 = vsub.f32 %v321_v12, %v13756_v26  ;;  %v21104_v37 = vand.u32 4294901760, %v13706_v28 }
 0x128   :  { %21097 = vst [vmem:[#allocation52_spill] sm:$0xff] %v13794_v18  ;;  %9977 = vmatprep.subr.mxu1 %v21098_v43  ;;  %9930 = vmatpush3.msra.mxu0 %v13587_v45  ;;  %v9450_v4 = vpop.f32.mrf.mxu1  ;;  %v21103_v43 = vand.u32 4294901760, %v13721_v60  ;;  %v21105_v59 = vand.u32 4294901760, %v13616_v36  ;;  %v13828_v10 = vand.u32 4294901760, %v304_v11  ;;  %v13841_v36 = vld [vmem:[%s19570_s0 + $0x28] sm:$0xff] }
 0x129   :  { %21099 = vst [vmem:[#allocation11_spill] sm:$0xff] %v13800_v61  ;;  %21101 = vst [vmem:[#allocation50_spill] sm:$0xff] %v13806_v7  ;;  %9978 = vmatpush3.msra.mxu1 %v21102_v50  ;;  %9931 = vmatprep.subr.mxu0 %v13605_v34  ;;  %v13820_v45 = vsub.f32 %v13706_v28, %v21104_v37  ;;  %v9400_v12 = vpop.f32.mrf.mxu0  ;;  %v9451_v55 = vadd.f32 %v9450_v4, %v9449_v32  ;;  %v21109_v34 = vand.u32 4294901760, %v13735_v46  ;;  %v303_v4 = vld [vmem:[%s19569_s1 + $0x220] sm:$0xff] }
 0x12a   :  { %v13815_v30 = vsub.f32 %v13721_v60, %v21103_v43  ;;  %9979 = vmatprep.subr.mxu1 %v21105_v59  ;;  %2779 = vmatprep.mubr.f32.mxu0 %v21106_v29  ;;  %v13826_v50 = vsub.f32 %v305_v0, %v13775_v8  ;;  %21108 = vst [vmem:[#allocation56_spill] sm:$0xff] %v13828_v10  ;;  %v319_v43 = vld [vmem:[%s19569_s1 + $0x2a0] sm:$0xff]  ;;  %v21110_v32 = vand.u32 4294901760, %v13727_v31  ;;  %v21120_v60 = vand.u32 4294901760, %v13662_v63  ;;  %v301_v63 = vld [vmem:[%s19569_s1 + $0x210] sm:$0xff] }
 0x12b   :  { %v13836_v37 = vsub.f32 %v13735_v46, %v21109_v34  ;;  %v9401_v59 = vadd.f32 %v9400_v12, %v9399_v51  ;;  %2918 = vmatprep.mubr.f32.mxu1 %v21078_v23  ;;  %9932 = vmatpush3.msra.mxu0 %v13635_v42  ;;  %v13856_v28 = vadd.f32 %v9451_v55, %v13690_v40  ;;  %v21111_v23 = vand.u32 4294901760, %v13640_v62  ;;  %v21112_v51 = vld [vmem:[#allocation45_spill] sm:$0xff]  ;;  %v21121_v62 = vld [vmem:[#allocation47_spill] sm:$0xff] }
 0x12c   :  { %21107 = vst [vmem:[#allocation13_spill] sm:$0xff] %v13826_v50  ;;  %v13852_v34 = vsub.f32 %v13727_v31, %v21110_v32  ;;  %2781 = vmatmul.mubr.f32.gmra.mxu0 %v21112_v51  ;;  %v13864_v42 = vsub.f32 %v320_v47, %v13803_v56  ;;  %v13869_v32 = vld [vmem:[%s19570_s0 + $0x20] sm:$0xff]  ;;  %v9402_v40 = vpop.f32.mrf.mxu0  ;;  %2920 = vmatmul.mubr.f32.gmra.mxu1 %v21081_v53  ;;  %v13878_v0 = vand.u32 4294901760, %v319_v43  ;;  %v128_v47 = vmax.f32 %v13841_v36, 0.0 }
 0x12d   :  { %9980 = vmatpush3.msra.mxu1 %v21111_v23  ;;  %v13872_v55 = vadd.f32 %v9401_v59, %v13439_v35  ;;  %9933 = vmatprep.subr.mxu0 %v13652_v13  ;;  %v9452_v12 = vpop.f32.mrf.mxu1  ;;  %v21115_v46 = vand.u32 4294901760, %v13645_v19  ;;  %v13885_v35 = vsub.f32 %v304_v11, %v13828_v10  ;;  %v13888_v59 = vand.u32 4294901760, %v303_v4  ;;  %v302_v23 = vld [vmem:[%s19569_s1 + $0x218] sm:$0xff] }
 0x12e   :  { %21113 = vst [vmem:[#allocation57_spill] sm:$0xff] %v13864_v42  ;;  %21114 = vst [vmem:[#allocation61_spill] sm:$0xff] %v13878_v0  ;;  %9934 = vmatpush3.msra.mxu0 %v13667_v44  ;;  %v9403_v36 = vpop.f32.mrf.mxu0  ;;  %v21118_v13 = vand.u32 4294901760, %v13657_v48  ;;  %v127_v53 = vmax.f32 %v13869_v32, 0.0  ;;  %2786 = vmatprep.mubr.f32.mxu0 %v21121_v62  ;;  %v21122_v48 = vand.u32 4294901760, %v13800_v61 }
 0x12f   :  { %9981 = vmatprep.subr.mxu1 %v21115_v46  ;;  %21116 = vst [vmem:[#allocation37_spill] sm:$0xff] %v13885_v35  ;;  %21117 = vst [vmem:[#allocation29_spill] sm:$0xff] %v13888_v59  ;;  %9935 = vmatprep.subr.mxu0 %v13669_v22  ;;  %v21119_v46 = vand.u32 4294901760, %v13794_v18  ;;  %v9404_v44 = vadd.f32 %v9403_v36, %v9402_v40  ;;  %v9453_v31 = vpop.f32.mrf.mxu1  ;;  %v13928_v36 = vand.u32 4294901760, %v302_v23  ;;  %v13938_v22 = vand.u32 4294901760, %v128_v47 }
 0x130   :  { %9982 = vmatpush3.msra.mxu1 %v21118_v13  ;;  %v13910_v13 = vld [vmem:[%s19569_s1 + $0x298] sm:$0xff]  ;;  %v13915_v19 = vsub.f32 %v13800_v61, %v21122_v48  ;;  %v9454_v40 = vadd.f32 %v9453_v31, %v9452_v12  ;;  %2925 = vmatprep.mubr.f32.mxu1 %v21089_v16  ;;  %v13933_v48 = vld [vmem:[%s19569_s1 + $0x290] sm:$0xff]  ;;  %v21127_v31 = vand.u32 4294901760, %v13711_v17  ;;  %v13947_v12 = vsub.f32 %v303_v4, %v13888_v59 }
 0x131   :  { %v13901_v11 = vsub.f32 %v13794_v18, %v21119_v46  ;;  %9983 = vmatprep.subr.mxu1 %v21120_v60  ;;  %v21123_v46 = vand.u32 4294901760, %v13806_v7  ;;  %9936 = vmatpush3.msra.mxu0 %v13677_v6  ;;  %21124 = vst [vmem:[#allocation41_spill] sm:$0xff] %v13928_v36  ;;  %21126 = vst [vmem:[#allocation26_spill] sm:$0xff] %v13938_v22  ;;  %v21128_v16 = vld [vmem:[#allocation49_spill] sm:$0xff]  ;;  %v21130_v60 = vand.u32 4294901760, %v13826_v50  ;;  %v13964_v4 = vand.u32 4294901760, %v301_v63 }
 0x132   :  { %9984 = vmatpush3.msra.mxu1 %v21127_v31  ;;  %2788 = vmatmul.mubr.f32.gmra.mxu0 %v21128_v16  ;;  %21129 = vst [vmem:[#allocation21_spill] sm:$0xff] %v13947_v12  ;;  %v13956_v61 = vadd.f32 %v9454_v40, %v13779_v2  ;;  %v13966_v31 = vand.u32 4294901760, %v127_v53  ;;  %v13990_v2 = vsub.f32 %v302_v23, %v13928_v36  ;;  %v13995_v40 = vld [vmem:[%s19569_s1 + $0x288] sm:$0xff]  ;;  %v21140_v38 = vand.u32 4294901760, %v13885_v35 }
 0x133   :  { %v13920_v32 = vsub.f32 %v13806_v7, %v21123_v46  ;;  %v13936_v46 = vsub.f32 %v319_v43, %v13878_v0  ;;  %v13941_v7 = vadd.f32 %v9404_v44, %v13490_v21  ;;  %v13952_v6 = vsub.f32 %v13826_v50, %v21130_v60  ;;  %v9405_v21 = vpop.f32.mrf.mxu0  ;;  %2927 = vmatmul.mubr.f32.gmra.mxu1 %v21095_v9  ;;  %v9455_v60 = vpop.f32.mrf.mxu1  ;;  %v13984_v50 = vld [vmem:[%s19570_s0 + $0x98] sm:$0xff] }
 0x134   :  { %9937 = vmatprep.subr.mxu0 %v13739_v57  ;;  %v13961_v44 = vand.u32 4294901760, %v13910_v13  ;;  %21132 = vst [vmem:[#allocation24_spill] sm:$0xff] %v13964_v4  ;;  %21133 = vst [vmem:[#allocation36_spill] sm:$0xff] %v13966_v31  ;;  %v21134_v43 = vand.u32 4294901760, %v13732_v25  ;;  %v13973_v9 = vand.u32 4294901760, %v13933_v48  ;;  %v21136_v57 = vand.u32 4294901760, %v13864_v42  ;;  %2932 = vmatprep.mubr.f32.mxu1 %v21106_v29 }
 0x135   :  { %21125 = vst [vmem:[#allocation46_spill] sm:$0xff] %v13936_v46  ;;  %9938 = vmatpush3.msra.mxu0 %v13749_v52  ;;  %v9406_v25 = vpop.f32.mrf.mxu0  ;;  %v13999_v52 = vsub.f32 %v128_v47, %v13938_v22  ;;  %v9456_v18 = vpop.f32.mrf.mxu1  ;;  %v142_v23 = vmax.f32 %v13984_v50, 0.0  ;;  %v21143_v29 = vld [vmem:[#allocation54_spill] sm:$0xff] }
 0x136   :  { %21131 = vst [vmem:[#allocation42_spill] sm:$0xff] %v13961_v44  ;;  %9985 = vmatprep.subr.mxu1 %v21134_v43  ;;  %21135 = vst [vmem:[#allocation22_spill] sm:$0xff] %v13973_v9  ;;  %v13979_v17 = vsub.f32 %v13864_v42, %v21136_v57  ;;  %v21137_v43 = vand.u32 4294901760, %v13754_v3  ;;  %9939 = vmatprep.subr.mxu0 %v13756_v26  ;;  %v9407_v42 = vadd.f32 %v9406_v25, %v9405_v21  ;;  %v300_v26 = vld [vmem:[%s19569_s1 + $0x208] sm:$0xff] }
 0x137   :  { %v21138_v3 = vand.u32 4294901760, %v13763_v1  ;;  %v14011_v57 = vsub.f32 %v13885_v35, %v21140_v38  ;;  %v14017_v1 = vld [vmem:[%s19570_s0 + $0x90] sm:$0xff]  ;;  %v9457_v21 = vadd.f32 %v9456_v18, %v9455_v60  ;;  %9940 = vmatpush3.msra.mxu0 %v13775_v8  ;;  %v14022_v25 = vsub.f32 %v301_v63, %v13964_v4  ;;  %v14027_v38 = vld [vmem:[%s19569_s1 + $0x280] sm:$0xff]  ;;  %2934 = vmatmul.mubr.f32.gmra.mxu1 %v21112_v51 }
 0x138   :  { %9986 = vmatpush3.msra.mxu1 %v21137_v43  ;;  %v21139_v43 = vld [vmem:[#allocation53_spill] sm:$0xff]  ;;  %v14034_v47 = vadd.f32 %v9407_v42, %v13552_v54  ;;  %v21142_v18 = vand.u32 4294901760, %v13787_v24  ;;  %v14040_v63 = vand.u32 4294901760, %v13995_v40  ;;  %v14048_v50 = vsub.f32 %v13910_v13, %v13961_v44  ;;  %v9408_v54 = vpop.f32.mrf.mxu0  ;;  %9941 = vmatprep.subr.mxu0 %v13803_v56 }
 0x139   :  { %9987 = vmatprep.subr.mxu1 %v21138_v3  ;;  %2793 = vmatprep.mubr.f32.mxu0 %v21139_v43  ;;  %v14030_v3 = vsub.f32 %v127_v53, %v13966_v31  ;;  %v299_v53 = vld [vmem:[%s19569_s1 + $0x200] sm:$0xff]  ;;  %v14051_v42 = vadd.f32 %v9457_v21, %v13872_v55  ;;  %v14055_v24 = vand.u32 4294901760, %v300_v26  ;;  %v141_v13 = vmax.f32 %v14017_v1, 0.0  ;;  %v14067_v55 = vld [vmem:[%s19570_s0 + $0x108] sm:$0xff]  ;;  %v9458_v21 = vpop.f32.mrf.mxu1 }
 0x13a   :  { %9988 = vmatpush3.msra.mxu1 %v21142_v18  ;;  %2795 = vmatmul.mubr.f32.gmra.mxu0 %v21143_v29  ;;  %21144 = vst [vmem:[#allocation43_spill] sm:$0xff] %v14040_v63  ;;  %v21147_v18 = vand.u32 4294901760, %v13936_v46  ;;  %v21148_v51 = vand.u32 4294901760, %v13815_v30  ;;  %v21150_v8 = vand.u32 4294901760, %v13947_v12  ;;  %v9409_v35 = vpop.f32.mrf.mxu0  ;;  %v21151_v30 = vand.u32 4294901760, %v13820_v45 }
 0x13b   :  { %21141 = vst [vmem:[#allocation38_spill] sm:$0xff] %v14030_v3  ;;  %21145 = vst [vmem:[#allocation44_spill] sm:$0xff] %v14051_v42  ;;  %9942 = vmatpush3.msra.mxu0 %v13828_v10  ;;  %v14091_v10 = vand.u32 4294901760, %v142_v23  ;;  %v9410_v42 = vadd.f32 %v9409_v35, %v9408_v54  ;;  %v9459_v39 = vpop.f32.mrf.mxu1  ;;  %2939 = vmatprep.mubr.f32.mxu1 %v21121_v62  ;;  %v21156_v35 = vand.u32 4294901760, %v13999_v52  ;;  %v21158_v45 = vand.u32 4294901760, %v13852_v34 }
 0x13c   :  { %21146 = vst [vmem:[#allocation45_spill] sm:$0xff] %v14055_v24  ;;  %v14060_v60 = vsub.f32 %v13936_v46, %v21147_v18  ;;  %9989 = vmatprep.subr.mxu1 %v21148_v51  ;;  %v14074_v18 = vand.u32 4294901760, %v14027_v38  ;;  %v14079_v1 = vsub.f32 %v13947_v12, %v21150_v8  ;;  %v14083_v46 = vsub.f32 %v13933_v48, %v13973_v9  ;;  %v21155_v12 = vld [vmem:[#allocation59_spill] sm:$0xff] }
 0x13d   :  { %9990 = vmatpush3.msra.mxu1 %v21151_v30  ;;  %9943 = vmatprep.subr.mxu0 %v13878_v0  ;;  %v14088_v51 = vand.u32 4294901760, %v299_v53  ;;  %21153 = vst [vmem:[#allocation53_spill] sm:$0xff] %v14091_v10  ;;  %v21154_v8 = vand.u32 4294901760, %v13836_v37  ;;  %v156_v30 = vmax.f32 %v14067_v55, 0.0  ;;  %v14102_v0 = vld [vmem:[%s19570_s0 + $0x100] sm:$0xff]  ;;  %v9460_v56 = vadd.f32 %v9459_v39, %v9458_v21  ;;  %v21159_v39 = vld [vmem:[#allocation60_spill] sm:$0xff] }
 0x13e   :  { %21149 = vst [vmem:[#allocation47_spill] sm:$0xff] %v14074_v18  ;;  %2800 = vmatprep.mubr.f32.mxu0 %v21155_v12  ;;  %9944 = vmatpush3.msra.mxu0 %v13888_v59  ;;  %v14110_v54 = vsub.f32 %v13999_v52, %v21156_v35  ;;  %v14115_v55 = vadd.f32 %v9410_v42, %v13627_v27  ;;  %v9411_v48 = vpop.f32.mrf.mxu0  ;;  %v21160_v34 = vand.u32 4294901760, %v14030_v3 }
 0x13f   :  { %21152 = vst [vmem:[#allocation49_spill] sm:$0xff] %v14088_v51  ;;  %9991 = vmatprep.subr.mxu1 %v21154_v8  ;;  %v14112_v8 = vand.u32 4294901760, %v141_v13  ;;  %2802 = vmatmul.mubr.f32.gmra.mxu0 %v21159_v39  ;;  %v14121_v62 = vsub.f32 %v300_v26, %v14055_v24  ;;  %v14126_v35 = vadd.f32 %v9460_v56, %v13941_v7  ;;  %v14145_v7 = vld [vmem:[%s19570_s0 + $0x178] sm:$0xff]  ;;  %v9461_v56 = vpop.f32.mrf.mxu1  ;;  %v14161_v37 = vand.u32 4294901760, %v156_v30 }
 0x140   :  { %9992 = vmatpush3.msra.mxu1 %v21158_v45  ;;  %9945 = vmatprep.subr.mxu0 %v13961_v44  ;;  %v14131_v27 = vsub.f32 %v299_v53, %v14088_v51  ;;  %v14136_v26 = vsub.f32 %v14030_v3, %v21160_v34  ;;  %v14139_v42 = vsub.f32 %v142_v23, %v14091_v10  ;;  %v155_v45 = vmax.f32 %v14102_v0, 0.0  ;;  %v9412_v44 = vpop.f32.mrf.mxu0 }
 0x141   :  { %21157 = vst [vmem:[#allocation54_spill] sm:$0xff] %v14112_v8  ;;  %2941 = vmatmul.mubr.f32.gmra.mxu1 %v21128_v16  ;;  %v21161_v16 = vand.u32 4294901760, %v13901_v11  ;;  %9946 = vmatpush3.msra.mxu0 %v13928_v36  ;;  %v21162_v53 = vand.u32 4294901760, %v14048_v50  ;;  %v21163_v23 = vand.u32 4294901760, %v13990_v2  ;;  %21164 = vst [vmem:[#allocation59_spill] sm:$0xff] %v14161_v37  ;;  %v21165_v11 = vand.u32 4294901760, %v13915_v19  ;;  %v9462_v3 = vpop.f32.mrf.mxu1 }
 0x142   :  { %9947 = vmatprep.subr.mxu0 %v13973_v9  ;;  %v14172_v36 = vsub.f32 %v13995_v40, %v14040_v63  ;;  %v9413_v21 = vadd.f32 %v9412_v44, %v9411_v48  ;;  %v21166_v19 = vand.u32 4294901760, %v13920_v32  ;;  %v14189_v40 = vsub.f32 %v14027_v38, %v14074_v18  ;;  %2946 = vmatprep.mubr.f32.mxu1 %v21139_v43  ;;  %v21172_v38 = vld [vmem:[#allocation5_spill] sm:$0xff] }
 0x143   :  { %9993 = vmatprep.subr.mxu1 %v21161_v16  ;;  %v14153_v34 = vsub.f32 %v14048_v50, %v21162_v53  ;;  %v14158_v0 = vsub.f32 %v13990_v2, %v21163_v23  ;;  %v3067_v16 = vand.u32 4294901760, %v14110_v54  ;;  %v14168_v53 = vsub.f32 %v141_v13, %v14112_v8  ;;  %v14177_v23 = vld [vmem:[%s19570_s0 + $0x170] sm:$0xff]  ;;  %9948 = vmatpush3.msra.mxu0 %v13964_v4 }
 0x144   :  { %9994 = vmatpush3.msra.mxu1 %v21165_v11  ;;  %v21167_v11 = vld [vmem:[#allocation27_spill] sm:$0xff]  ;;  %v21168_v54 = vand.u32 4294901760, %v14083_v46  ;;  %21169 = vst [vmem:[#allocation60_spill] sm:$0xff] %v14189_v40  ;;  %v170_v9 = vmax.f32 %v14145_v7, 0.0  ;;  %v9463_v59 = vadd.f32 %v9462_v3, %v9461_v56  ;;  %v3073_v32 = vand.u32 4294901760, %v14136_v26  ;;  %9949 = vmatprep.subr.mxu0 %v14040_v63 }
 0x145   :  { %9995 = vmatprep.subr.mxu1 %v21166_v19  ;;  %2807 = vmatprep.mubr.f32.mxu0 %v21167_v11  ;;  %v14196_v48 = vand.u32 4294901760, %v155_v45  ;;  %v14199_v19 = vadd.f32 %v9413_v21, %v13701_v33  ;;  %v3385_v3 = vand.u32 4294901760, %v14153_v34  ;;  %v14206_v43 = vsub.f32 %v156_v30, %v14161_v37  ;;  %v14212_v26 = vld [vmem:[%s19570_s0 + $0x1e8] sm:$0xff]  ;;  %v9414_v21 = vpop.f32.mrf.mxu0 }
 0x146   :  { %v14185_v13 = vsub.f32 %v14083_v46, %v21168_v54  ;;  %v21171_v54 = vand.u32 4294901760, %v13952_v6  ;;  %2809 = vmatmul.mubr.f32.gmra.mxu0 %v21172_v38  ;;  %v169_v7 = vmax.f32 %v14177_v23, 0.0  ;;  %v14215_v33 = vadd.f32 %v9463_v59, %v14034_v47  ;;  %2948 = vmatmul.mubr.f32.gmra.mxu1 %v21143_v29 }
 0x147   :  { %21170 = vst [vmem:[#allocation27_spill] sm:$0xff] %v14196_v48  ;;  %21173 = vst [vmem:[#allocation5_spill] sm:$0xff] %v14206_v43  ;;  %v3273_v6 = vand.u32 4294901760, %v14158_v0  ;;  %v21174_v30 = vand.u32 4294901760, %v14022_v25  ;;  %v21175_v59 = vand.u32 4294901760, %v13979_v17  ;;  %9950 = vmatpush3.msra.mxu0 %v14055_v24  ;;  %v14233_v44 = vand.u32 4294901760, %v170_v9  ;;  %v9415_v23 = vpop.f32.mrf.mxu0  ;;  %2953 = vmatprep.mubr.f32.mxu1 %v21155_v12 }
 0x148   :  { %9996 = vmatpush3.msra.mxu1 %v21171_v54  ;;  %v9464_v54 = vpop.f32.mrf.mxu1  ;;  %v3392_v47 = vand.u32 4294901760, %v14185_v13  ;;  %v21177_v34 = vand.u32 4294901760, %v14011_v57  ;;  %9951 = vmatprep.subr.mxu0 %v14074_v18  ;;  %v21178_v17 = vand.u32 4294901760, %v14139_v42  ;;  %v184_v0 = vmax.f32 %v14212_v26, 0.0 }
 0x149   :  { %v14223_v56 = vsub.f32 %v14022_v25, %v21174_v30  ;;  %9997 = vmatprep.subr.mxu1 %v21175_v59  ;;  %21176 = vst [vmem:[#allocation62_spill] sm:$0xff] %v14233_v44  ;;  %v14238_v30 = vld [vmem:[%s19570_s0 + $0x1e0] sm:$0xff]  ;;  %v14247_v59 = vsub.f32 %v155_v45, %v14196_v48  ;;  %v9416_v29 = vadd.f32 %v9415_v23, %v9414_v21  ;;  %v21179_v63 = vand.u32 4294901760, %v14060_v60 }
 0x14a   :  { %9998 = vmatpush3.msra.mxu1 %v21177_v34  ;;  %v3081_v13 = vsub.f32 %v14139_v42, %v21178_v17  ;;  %v9465_v24 = vpop.f32.mrf.mxu1  ;;  %v19962_v57 = vand.u32 4294901760, %v14206_v43  ;;  %v19963_v34 = vand.u32 4294901760, %v14131_v27  ;;  %v14255_v18 = vand.u32 4294901760, %v169_v7  ;;  %9952 = vmatpush3.msra.mxu0 %v14088_v51 }
 0x14b   :  { %9999 = vmatprep.subr.mxu1 %v21179_v63  ;;  %v9466_v4 = vadd.f32 %v9465_v24, %v9464_v54  ;;  %3068 = vmatprep.mubr.f32.mxu0 %v3067_v16  ;;  %v21181_v45 = vand.u32 4294901760, %v14168_v53  ;;  %v21182_v21 = vand.u32 4294901760, %v14172_v36  ;;  %v183_v12 = vmax.f32 %v14238_v30, 0.0  ;;  %v9505_v30 = vpop.f32.mrf.mxu0 }
 0x14c   :  { %21180 = vst [vmem:[#allocation63_spill] sm:$0xff] %v14255_v18  ;;  %v14266_v60 = vadd.f32 %v9416_v29, %v13770_v58  ;;  %v21183_v23 = vand.u32 4294901760, %v14079_v1  ;;  %3074 = vmatmul.mubr.f32.vlgmr.msra.gmra.mxu0 %v3073_v32  ;;  %v3280_v24 = vand.u32 4294901760, %v14223_v56  ;;  %v21184_v16 = vand.u32 4294901760, %v14121_v62  ;;  %2955 = vmatmul.mubr.f32.gmra.mxu1 %v21159_v39 }
 0x14d   :  { %v3087_v26 = vsub.f32 %v14168_v53, %v21181_v45  ;;  %v3398_v63 = vsub.f32 %v14172_v36, %v21182_v21  ;;  %v14275_v17 = vsub.f32 %v170_v9, %v14233_v44  ;;  %v14278_v45 = vadd.f32 %v9466_v4, %v14115_v55  ;;  %v14290_v9 = vld [vmem:[%s19570_s0 + $0x258] sm:$0xff]  ;;  %v9467_v4 = vpop.f32.mrf.mxu1  ;;  %10033 = vmatprep.subr.mxu0 %v13481_v14 }
 0x14e   :  { %10000 = vmatpush3.msra.mxu1 %v21183_v23  ;;  %v3286_v54 = vsub.f32 %v14121_v62, %v21184_v16  ;;  %v3082_v58 = vand.u32 4294901760, %v3081_v13  ;;  %v21186_v1 = vand.u32 4294901760, %v14189_v40  ;;  %v19970_v56 = vand.u32 4294901760, %v14247_v59  ;;  %v9506_v13 = vpop.f32.mrf.mxu0  ;;  %10034 = vmatpush3.msra.mxu0 %v13486_v41 }
 0x14f   :  { %21185 = vst [vmem:[#allocation64_spill] sm:$0xff] %v14275_v17  ;;  %10001 = vmatprep.subr.mxu1 %v3385_v3  ;;  %v14285_v29 = vand.u32 4294901760, %v184_v0  ;;  %v3096_v55 = vsub.f32 %v14206_v43, %v19962_v57  ;;  %v3293_v39 = vsub.f32 %v14131_v27, %v19963_v34  ;;  %v14300_v3 = vsub.f32 %v169_v7, %v14255_v18 }
 0x150   :  { %v3405_v32 = vsub.f32 %v14189_v40, %v21186_v1  ;;  %10002 = vmatpush3.msra.mxu1 %v3273_v6  ;;  %v3088_v21 = vand.u32 4294901760, %v3087_v26  ;;  %v3399_v23 = vand.u32 4294901760, %v3398_v63  ;;  %v14303_v16 = vand.u32 4294901760, %v183_v12  ;;  %v14308_v6 = vld [vmem:[%s19570_s0 + $0x250] sm:$0xff]  ;;  %v9468_v1 = vpop.f32.mrf.mxu1  ;;  %10035 = vmatprep.subr.mxu0 %v13522_v49 }
 0x151   :  { %21187 = vst [vmem:[#allocation65_spill] sm:$0xff] %v14285_v29  ;;  %21188 = vst [vmem:[#allocation66_spill] sm:$0xff] %v14300_v3  ;;  %10003 = vmatprep.subr.mxu1 %v3392_v47  ;;  %v9507_v57 = vadd.f32 %v9506_v13, %v9505_v30  ;;  %2960 = vmatprep.mubr.f32.mxu1 %v21167_v11  ;;  %v3287_v7 = vand.u32 4294901760, %v3286_v54  ;;  %v19968_v34 = vand.u32 4294901760, %v14275_v17  ;;  %v198_v47 = vmax.f32 %v14290_v9, 0.0  ;;  %v99_v13 = vld [vmem:[%s19570_s0 + $0x2c0] sm:$0xff] }
 0x152   :  { %21189 = vst [vmem:[#allocation67_spill] sm:$0xff] %v14303_v16  ;;  %v9469_v26 = vadd.f32 %v9468_v1, %v9467_v4  ;;  %3083 = vmatprep.mubr.f32.mxu0 %v3082_v58  ;;  %10004 = vmatpush3.msra.mxu1 %v3280_v24  ;;  %v3406_v63 = vand.u32 4294901760, %v3405_v32  ;;  %v3102_v51 = vsub.f32 %v14247_v59, %v19970_v56  ;;  %v3097_v11 = vand.u32 4294901760, %v3096_v55  ;;  %v9470_v32 = vpop.f32.mrf.mxu1  ;;  %v21193_v55 = vld [vmem:[#allocation18_spill] sm:$0xff]  ;;  %v21203_v56 = vld [vmem:[#allocation48_spill] sm:$0xff] }
 0x153   :  { %v14318_v43 = vsub.f32 %v184_v0, %v14285_v29  ;;  %v14321_v30 = vadd.f32 %v9507_v57, %v13856_v28  ;;  %10036 = vmatpush3.msra.mxu0 %v13531_v20  ;;  %2962 = vmatmul.mubr.f32.gmra.mxu1 %v21172_v38  ;;  %v19969_v54 = vand.u32 4294901760, %v14300_v3  ;;  %v197_v24 = vmax.f32 %v14308_v6, 0.0  ;;  %v100_v28 = vld [vmem:[%s19570_s0 + $0x2c8] sm:$0xff]  ;;  %v9508_v38 = vpop.f32.mrf.mxu0  ;;  %v21194_v6 = vld [vmem:[#allocation34_spill] sm:$0xff] }
 0x154   :  { %v14328_v58 = vadd.f32 %v9469_v26, %v14199_v19  ;;  %3089 = vmatmul.mubr.f32.gmra.mxu0 %v3088_v21  ;;  %10005 = vmatprep.subr.mxu1 %v3399_v23  ;;  %v3294_v0 = vand.u32 4294901760, %v3293_v39  ;;  %v14331_v9 = vsub.f32 %v183_v12, %v14303_v16  ;;  %v3111_v19 = vsub.f32 %v14275_v17, %v19968_v34  ;;  %v9471_v4 = vpop.f32.mrf.mxu1 }
 0x155   :  { %21190 = vst [vmem:[#allocation68_spill] sm:$0xff] %v14318_v43  ;;  %10037 = vmatprep.subr.mxu0 %v13539_v15  ;;  %10006 = vmatpush3.msra.mxu1 %v3287_v7  ;;  %v14340_v57 = vand.u32 4294901760, %v198_v47  ;;  %v3103_v12 = vand.u32 4294901760, %v3102_v51  ;;  %v19971_v39 = vand.u32 4294901760, %v14318_v43  ;;  %v9472_v21 = vadd.f32 %v9471_v4, %v9470_v32  ;;  %v9509_v23 = vpop.f32.mrf.mxu0 }
 0x156   :  { %21191 = vst [vmem:[#allocation69_spill] sm:$0xff] %v14331_v9  ;;  %10038 = vmatpush3.msra.mxu0 %v21193_v55  ;;  %10007 = vmatprep.subr.mxu1 %v3406_v63  ;;  %v3117_v1 = vsub.f32 %v14300_v3, %v19969_v54  ;;  %v14351_v7 = vand.u32 4294901760, %v197_v24  ;;  %v212_v26 = vmax.f32 %v100_v28, 0.0  ;;  %v9510_v63 = vadd.f32 %v9509_v23, %v9508_v38  ;;  %v21197_v38 = vld [vmem:[#allocation40_spill] sm:$0xff]  ;;  %v21202_v54 = vld [vmem:[#allocation9_spill] sm:$0xff] }
 0x157   :  { %21192 = vst [vmem:[#allocation70_spill] sm:$0xff] %v14340_v57  ;;  %10039 = vmatprep.subr.mxu0 %v21194_v6  ;;  %3098 = vmatprep.mubr.f32.mxu0 %v3097_v11  ;;  %v19982_v51 = vand.u32 4294901760, %v14331_v9  ;;  %v14356_v34 = vadd.f32 %v9472_v21, %v14266_v60  ;;  %v3112_v11 = vand.u32 4294901760, %v3111_v19  ;;  %v14361_v32 = vsub.f32 %v198_v47, %v14340_v57  ;;  %v114_v21 = vld [vmem:[%s19570_s0 + $0x338] sm:$0xff]  ;;  %v9511_v19 = vpop.f32.mrf.mxu0  ;;  %v21198_v23 = vld [vmem:[#allocation32_spill] sm:$0xff] }
 0x158   :  { %21195 = vst [vmem:[#allocation18_spill] sm:$0xff] %v14351_v7  ;;  %10008 = vmatpush3.msra.mxu1 %v3294_v0  ;;  %3409 = vmatprep.mubr.f32.mxu1 %v13938_v22  ;;  %v211_v4 = vmax.f32 %v99_v13, 0.0  ;;  %v14364_v28 = vadd.f32 %v9510_v63, %v13956_v61  ;;  %v9561_v0 = vpop.f32.mrf.mxu1  ;;  %v3126_v60 = vsub.f32 %v14318_v43, %v19971_v39  ;;  %v21199_v47 = vld [vmem:[#allocation12_spill] sm:$0xff]  ;;  %v3118_v13 = vand.u32 4294901760, %v3117_v1  ;;  %v21204_v43 = vld [vmem:[#allocation2_spill] sm:$0xff] }
 0x159   :  { %10040 = vmatpush3.msra.mxu0 %v13585_v5  ;;  %3411 = vmatmul.mubr.f32.vlgmr.msra.gmra.mxu1 %v13966_v31  ;;  %21196 = vst [vmem:[#allocation34_spill] sm:$0xff] %v14361_v32  ;;  %v14376_v61 = vsub.f32 %v197_v24, %v14351_v7  ;;  %v3132_v39 = vsub.f32 %v14331_v9, %v19982_v51  ;;  %v113_v31 = vld [vmem:[%s19570_s0 + $0x330] sm:$0xff]  ;;  %v9512_v22 = vpop.f32.mrf.mxu0  ;;  %v226_v17 = vmax.f32 %v114_v21, 0.0 }
 0x15a   :  { %3104 = vmatmul.mubr.f32.gmra.mxu0 %v3103_v12  ;;  %10041 = vmatprep.subr.mxu0 %v21197_v38  ;;  %v14378_v12 = vand.u32 4294901760, %v212_v26  ;;  %v9562_v63 = vpop.f32.mrf.mxu1  ;;  %v14390_v3 = vand.u32 4294901760, %v211_v4  ;;  %v3127_v51 = vand.u32 4294901760, %v3126_v60  ;;  %v21209_v24 = vld [vmem:[#allocation44_spill] sm:$0xff] }
 0x15b   :  { %10089 = vmatprep.subr.mxu1 %v21198_v23  ;;  %10042 = vmatpush3.msra.mxu0 %v21199_v47  ;;  %21200 = vst [vmem:[#allocation40_spill] sm:$0xff] %v14376_v61  ;;  %v9563_v1 = vadd.f32 %v9562_v63, %v9561_v0  ;;  %v21207_v47 = vld [vmem:[#allocation14_spill] sm:$0xff]  ;;  %v225_v63 = vmax.f32 %v113_v31, 0.0  ;;  %v14413_v31 = vand.u32 4294901760, %v226_v17 }
 0x15c   :  { %21201 = vst [vmem:[#allocation32_spill] sm:$0xff] %v14378_v12  ;;  %10090 = vmatpush3.msra.mxu1 %v21202_v54  ;;  %10043 = vmatprep.subr.mxu0 %v21203_v56  ;;  %21205 = vst [vmem:[#allocation2_spill] sm:$0xff] %v14390_v3  ;;  %v9513_v54 = vadd.f32 %v9512_v22, %v9511_v19  ;;  %v21206_v56 = vld [vmem:[#allocation58_spill] sm:$0xff]  ;;  %v9514_v22 = vpop.f32.mrf.mxu0  ;;  %v21210_v19 = vld [vmem:[#allocation25_spill] sm:$0xff] }
 0x15d   :  { %10091 = vmatprep.subr.mxu1 %v21204_v43  ;;  %3113 = vmatprep.mubr.f32.mxu0 %v3112_v11  ;;  %v14395_v9 = vadd.f32 %v9563_v1, %v14321_v30  ;;  %v14400_v11 = vsub.f32 %v212_v26, %v14378_v12  ;;  %v9564_v60 = vpop.f32.mrf.mxu1  ;;  %v21212_v30 = vld [vmem:[#allocation33_spill] sm:$0xff]  ;;  %v3133_v1 = vand.u32 4294901760, %v3132_v39  ;;  %v14411_v26 = vsub.f32 %v211_v4, %v14390_v3 }
 0x15e   :  { %3416 = vmatprep.mubr.f32.mxu1 %v14091_v10  ;;  %10044 = vmatpush3.msra.mxu0 %v21206_v56  ;;  %v1522_v21 = vadd.f32 %v9513_v54, %v21209_v24  ;;  %v21211_v10 = vld [vmem:[#allocation20_spill] sm:$0xff]  ;;  %v9515_v54 = vpop.f32.mrf.mxu0  ;;  %v21215_v24 = vld [vmem:[#allocation15_spill] sm:$0xff]  ;;  %v21218_v39 = vand.u32 4294901760, %v14376_v61  ;;  %v14422_v4 = vand.u32 4294901760, %v225_v63 }
 0x15f   :  { %10092 = vmatpush3.msra.mxu1 %v21207_v47  ;;  %3119 = vmatmul.mubr.f32.gmra.mxu0 %v3118_v13  ;;  %21208 = vst [vmem:[#allocation71_spill] sm:$0xff] %v14400_v11  ;;  %v21213_v13 = vand.u32 4294901760, %v14361_v32  ;;  %21214 = vst [vmem:[#allocation44_spill] sm:$0xff] %v14411_v26  ;;  %v9565_v47 = vpop.f32.mrf.mxu1  ;;  %v21220_v56 = vld [vmem:[#allocation23_spill] sm:$0xff] }
 0x160   :  { %3418 = vmatmul.mubr.f32.gmra.mxu1 %v14112_v8  ;;  %10045 = vmatprep.subr.mxu0 %v21210_v19  ;;  %v21216_v8 = vld [vmem:[#allocation19_spill] sm:$0xff]  ;;  %v9516_v19 = vadd.f32 %v9515_v54, %v9514_v22  ;;  %21219 = vst [vmem:[#allocation15_spill] sm:$0xff] %v14422_v4  ;;  %v21221_v22 = vld [vmem:[#allocation17_spill] sm:$0xff] }
 0x161   :  { %10093 = vmatprep.subr.mxu1 %v21211_v10  ;;  %10046 = vmatpush3.msra.mxu0 %v21212_v30  ;;  %v3141_v0 = vsub.f32 %v14361_v32, %v21213_v13  ;;  %v21217_v10 = vld [vmem:[#allocation3_spill] sm:$0xff]  ;;  %v3147_v30 = vsub.f32 %v14376_v61, %v21218_v39  ;;  %v9566_v32 = vadd.f32 %v9565_v47, %v9564_v60  ;;  %v21223_v47 = vld [vmem:[#allocation52_spill] sm:$0xff] }
 0x162   :  { %10094 = vmatpush3.msra.mxu1 %v21215_v24  ;;  %10047 = vmatprep.subr.mxu0 %v21216_v8  ;;  %v1529_v8 = vadd.f32 %v9516_v19, %v14126_v35  ;;  %v9517_v13 = vpop.f32.mrf.mxu0  ;;  %v21225_v35 = vld [vmem:[#allocation11_spill] sm:$0xff] }
 0x163   :  { %10095 = vmatprep.subr.mxu1 %v21217_v10  ;;  %3128 = vmatprep.mubr.f32.mxu0 %v3127_v51  ;;  %v3142_v54 = vand.u32 4294901760, %v3141_v0  ;;  %v14430_v10 = vsub.f32 %v226_v17, %v14413_v31  ;;  %v14433_v39 = vadd.f32 %v9566_v32, %v14364_v28  ;;  %v9567_v60 = vpop.f32.mrf.mxu1  ;;  %v3148_v19 = vand.u32 4294901760, %v3147_v30  ;;  %v21227_v28 = vld [vmem:[#allocation4_spill] sm:$0xff]  ;;  %v21228_v51 = vld [vmem:[#allocation50_spill] sm:$0xff] }
 0x164   :  { %3423 = vmatprep.mubr.f32.mxu1 %v14161_v37  ;;  %10048 = vmatpush3.msra.mxu0 %v21220_v56  ;;  %v21224_v37 = vld [vmem:[#allocation6_spill] sm:$0xff]  ;;  %v21226_v0 = vand.u32 4294901760, %v14400_v11  ;;  %v14443_v17 = vsub.f32 %v225_v63, %v14422_v4  ;;  %v9518_v32 = vpop.f32.mrf.mxu0  ;;  %v21231_v63 = vld [vmem:[#allocation13_spill] sm:$0xff] }
 0x165   :  { %10096 = vmatpush3.msra.mxu1 %v21221_v22  ;;  %3134 = vmatmul.mubr.f32.gmra.mxu0 %v3133_v1  ;;  %21222 = vst [vmem:[#allocation23_spill] sm:$0xff] %v14430_v10  ;;  %v9568_v61 = vpop.f32.mrf.mxu1 }
 0x166   :  { %3425 = vmatmul.mubr.f32.gmra.mxu1 %v14196_v48  ;;  %10049 = vmatprep.subr.mxu0 %v21223_v47  ;;  %v3156_v1 = vsub.f32 %v14400_v11, %v21226_v0  ;;  %v9519_v48 = vadd.f32 %v9518_v32, %v9517_v13  ;;  %v21229_v47 = vld [vmem:[#allocation10_spill] sm:$0xff]  ;;  %v9569_v0 = vadd.f32 %v9568_v61, %v9567_v60  ;;  %v21234_v60 = vld [vmem:[#allocation16_spill] sm:$0xff] }
 0x167   :  { %10097 = vmatprep.subr.mxu1 %v21224_v37  ;;  %10050 = vmatpush3.msra.mxu0 %v21225_v35  ;;  %v21230_v35 = vand.u32 4294901760, %v14411_v26  ;;  %v21235_v37 = vld [vmem:[#allocation37_spill] sm:$0xff] }
 0x168   :  { %10098 = vmatpush3.msra.mxu1 %v21227_v28  ;;  %10051 = vmatprep.subr.mxu0 %v21228_v51  ;;  %v1536_v11 = vadd.f32 %v9519_v48, %v14215_v33  ;;  %v21232_v28 = vld [vmem:[#allocation31_spill] sm:$0xff]  ;;  %v3157_v13 = vand.u32 4294901760, %v3156_v1  ;;  %v21236_v48 = vand.u32 4294901760, %v14430_v10 }
 0x169   :  { %10099 = vmatprep.subr.mxu1 %v21229_v47  ;;  %3143 = vmatprep.mubr.f32.mxu0 %v3142_v54  ;;  %v3162_v30 = vsub.f32 %v14411_v26, %v21230_v35  ;;  %v14457_v54 = vadd.f32 %v9569_v0, %v1522_v21  ;;  %v9520_v47 = vpop.f32.mrf.mxu0  ;;  %v21233_v35 = vld [vmem:[#allocation57_spill] sm:$0xff]  ;;  %v9570_v61 = vpop.f32.mrf.mxu1  ;;  %v21237_v1 = vld [vmem:[#allocation35_spill] sm:$0xff]  ;;  %v21238_v21 = vld [vmem:[#allocation46_spill] sm:$0xff]  ;;  %v21240_v26 = vand.u32 4294901760, %v14443_v17 }
 0x16a   :  { %3430 = vmatprep.mubr.f32.mxu1 %v14233_v44  ;;  %10052 = vmatpush3.msra.mxu0 %v21231_v63  ;;  %v3171_v33 = vsub.f32 %v14430_v10, %v21236_v48  ;;  %v21242_v10 = vld [vmem:[#allocation39_spill] sm:$0xff] }
 0x16b   :  { %10100 = vmatpush3.msra.mxu1 %v21232_v28  ;;  %3149 = vmatmul.mubr.f32.gmra.mxu0 %v3148_v19  ;;  %v3163_v44 = vand.u32 4294901760, %v3162_v30  ;;  %v9521_v19 = vpop.f32.mrf.mxu0  ;;  %v9571_v32 = vpop.f32.mrf.mxu1  ;;  %v21241_v30 = vld [vmem:[#allocation21_spill] sm:$0xff] }
 0x16c   :  { %3432 = vmatmul.mubr.f32.gmra.mxu1 %v14255_v18  ;;  %10053 = vmatprep.subr.mxu0 %v21233_v35  ;;  %v9522_v0 = vadd.f32 %v9521_v19, %v9520_v47  ;;  %v21239_v18 = vld [vmem:[#allocation55_spill] sm:$0xff] }
 0x16d   :  { %10101 = vmatprep.subr.mxu1 %v21234_v60  ;;  %10054 = vmatpush3.msra.mxu0 %v21235_v37  ;;  %v3177_v60 = vsub.f32 %v14443_v17, %v21240_v26  ;;  %v9572_v37 = vadd.f32 %v9571_v32, %v9570_v61  ;;  %v21243_v26 = vld [vmem:[#allocation28_spill] sm:$0xff] }
 0x16e   :  { %10102 = vmatpush3.msra.mxu1 %v21237_v1  ;;  %10055 = vmatprep.subr.mxu0 %v21238_v21  ;;  %v1543_v48 = vadd.f32 %v9522_v0, %v14278_v45  ;;  %v3172_v21 = vand.u32 4294901760, %v3171_v33  ;;  %v9523_v19 = vpop.f32.mrf.mxu0  ;;  %v21246_v0 = vld [vmem:[#allocation7_spill] sm:$0xff] }
 0x16f   :  { %10103 = vmatprep.subr.mxu1 %v21239_v18  ;;  %3158 = vmatprep.mubr.f32.mxu0 %v3157_v13  ;;  %v14476_v47 = vadd.f32 %v9572_v37, %v1529_v8  ;;  %v9573_v13 = vpop.f32.mrf.mxu1  ;;  %v3178_v32 = vand.u32 4294901760, %v3177_v60  ;;  %v21245_v37 = vld [vmem:[#allocation8_spill] sm:$0xff] }
 0x170   :  { %3437 = vmatprep.mubr.f32.mxu1 %v14285_v29  ;;  %10056 = vmatpush3.msra.mxu0 %v21241_v30  ;;  %v9524_v61 = vpop.f32.mrf.mxu0  ;;  %v21244_v29 = vld [vmem:[#allocation51_spill] sm:$0xff] }
 0x171   :  { %10104 = vmatpush3.msra.mxu1 %v21242_v10  ;;  %3164 = vmatmul.mubr.f32.gmra.mxu0 %v3163_v44  ;;  %v9525_v44 = vadd.f32 %v9524_v61, %v9523_v19  ;;  %v9574_v45 = vpop.f32.mrf.mxu1  ;;  %v21247_v61 = vld [vmem:[#allocation30_spill] sm:$0xff] }
 0x172   :  { %3439 = vmatmul.mubr.f32.gmra.mxu1 %v14303_v16  ;;  %10057 = vmatprep.subr.mxu0 %v14048_v50  ;;  %v9575_v8 = vadd.f32 %v9574_v45, %v9573_v13  ;;  %v21248_v13 = vld [vmem:[#allocation56_spill] sm:$0xff] }
 0x173   :  { %10105 = vmatprep.subr.mxu1 %v21243_v26  ;;  %10058 = vmatpush3.msra.mxu0 %v13990_v2  ;;  %v1550_v33 = vadd.f32 %v9525_v44, %v14328_v58 }
 0x174   :  { %10106 = vmatpush3.msra.mxu1 %v21244_v29  ;;  %10059 = vmatprep.subr.mxu0 %v14083_v46  ;;  %v14489_v60 = vadd.f32 %v9575_v8, %v1536_v11  ;;  %v9526_v16 = vpop.f32.mrf.mxu0  ;;  %v21250_v8 = vld [vmem:[#allocation29_spill] sm:$0xff] }
 0x175   :  { %10107 = vmatprep.subr.mxu1 %v21245_v37  ;;  %3173 = vmatprep.mubr.f32.mxu0 %v3172_v21  ;;  %v9576_v19 = vpop.f32.mrf.mxu1 }
 0x176   :  { %3444 = vmatprep.mubr.f32.mxu1 %v14340_v57  ;;  %10060 = vmatpush3.msra.mxu0 %v14022_v25  ;;  %v9527_v21 = vpop.f32.mrf.mxu0 }
 0x177   :  { %10108 = vmatpush3.msra.mxu1 %v21246_v0  ;;  %3179 = vmatmul.mubr.f32.gmra.mxu0 %v3178_v32  ;;  %v9528_v58 = vadd.f32 %v9527_v21, %v9526_v16  ;;  %v9577_v44 = vpop.f32.mrf.mxu1  ;;  %v21249_v32 = vld [vmem:[#allocation61_spill] sm:$0xff]  ;;  %v21252_v16 = vld [vmem:[#allocation42_spill] sm:$0xff] }
 0x178   :  { %3446 = vmatmul.mubr.f32.gmra.mxu1 %v14351_v7  ;;  %10061 = vmatprep.subr.mxu0 %v14172_v36  ;;  %v9578_v11 = vadd.f32 %v9577_v44, %v9576_v19  ;;  %v21251_v7 = vld [vmem:[#allocation38_spill] sm:$0xff]  ;;  %v21253_v19 = vand.u32 4294901760, %v13481_v14  ;;  %v21254_v44 = vld [vmem:[#allocation41_spill] sm:$0xff]  ;;  %v21258_v14 = vld [vmem:[#allocation24_spill] sm:$0xff] }
 0x179   :  { %10109 = vmatprep.subr.mxu1 %v21247_v61  ;;  %10062 = vmatpush3.msra.mxu0 %v14121_v62  ;;  %v1557_v45 = vadd.f32 %v9528_v58, %v14356_v34  ;;  %v21255_v34 = vand.u32 4294901760, %v13486_v41  ;;  %v21256_v58 = vld [vmem:[#allocation22_spill] sm:$0xff] }
 0x17a   :  { %10110 = vmatpush3.msra.mxu1 %v21248_v13  ;;  %10063 = vmatprep.subr.mxu0 %v14189_v40  ;;  %v14504_v57 = vadd.f32 %v9578_v11, %v1543_v48  ;;  %v9617_v40 = vpop.f32.mrf.mxu0  ;;  %v21257_v11 = vand.u32 4294901760, %v13522_v49  ;;  %v21260_v49 = vld [vmem:[#allocation43_spill] sm:$0xff] }
 0x17b   :  { %10111 = vmatprep.subr.mxu1 %v21249_v32  ;;  %3451 = vmatprep.mubr.f32.mxu1 %v14378_v12  ;;  %v9579_v21 = vpop.f32.mrf.mxu1 }
 0x17c   :  { %10064 = vmatpush3.msra.mxu0 %v14131_v27  ;;  %3595 = vmatprep.mubr.f32.mxu0 %v13999_v52  ;;  %v9618_v12 = vpop.f32.mrf.mxu0 }
 0x17d   :  { %10112 = vmatpush3.msra.mxu1 %v21250_v8  ;;  %3598 = vmatmul.mubr.f32.vlgmr.msra.gmra.mxu0 %v21251_v7  ;;  %v9580_v8 = vpop.f32.mrf.mxu1  ;;  %v9619_v48 = vadd.f32 %v9618_v12, %v9617_v40 }
 0x17e   :  { %3453 = vmatmul.mubr.f32.gmra.mxu1 %v14390_v3  ;;  %10113 = vmatprep.subr.mxu1 %v21252_v16  ;;  %v9581_v3 = vadd.f32 %v9580_v8, %v9579_v21  ;;  %v21261_v8 = vand.u32 4294901760, %v13539_v15  ;;  %v21262_v21 = vld [vmem:[#allocation45_spill] sm:$0xff]  ;;  %v21268_v15 = vand.u32 4294901760, %v13999_v52  ;;  %v21272_v52 = vld [vmem:[#allocation12_spill] sm:$0xff] }
 0x17f   :  { %10145 = vmatprep.subr.mxu0 %v21253_v19  ;;  %10114 = vmatpush3.msra.mxu1 %v21254_v44  ;;  %v1822_v19 = vadd.f32 %v9619_v48, %v14395_v9  ;;  %v21259_v44 = vand.u32 4294901760, %v13531_v20  ;;  %v21263_v9 = vand.u32 4294901760, %v21193_v55  ;;  %v21264_v20 = vld [vmem:[#allocation47_spill] sm:$0xff]  ;;  %v21266_v48 = vld [vmem:[#allocation5_spill] sm:$0xff]  ;;  %v21269_v55 = vand.u32 4294901760, %v13585_v5 }
 0x180   :  { %10146 = vmatpush3.msra.mxu0 %v21255_v34  ;;  %10115 = vmatprep.subr.mxu1 %v21256_v58  ;;  %v14523_v41 = vadd.f32 %v9581_v3, %v1550_v33  ;;  %v9582_v40 = vpop.f32.mrf.mxu1  ;;  %v21265_v33 = vand.u32 4294901760, %v21194_v6  ;;  %v21274_v5 = vld [vmem:[#allocation9_spill] sm:$0xff] }
 0x181   :  { %10147 = vmatprep.subr.mxu0 %v21257_v11  ;;  %3458 = vmatprep.mubr.f32.mxu1 %v14413_v31  ;;  %v9620_v12 = vpop.f32.mrf.mxu0 }
 0x182   :  { %3604 = vmatprep.mubr.f32.mxu0 %v14139_v42  ;;  %10116 = vmatpush3.msra.mxu1 %v21258_v14  ;;  %v9583_v34 = vpop.f32.mrf.mxu1 }
 0x183   :  { %10148 = vmatpush3.msra.mxu0 %v21259_v44  ;;  %3460 = vmatmul.mubr.f32.gmra.mxu1 %v14422_v4  ;;  %v9584_v44 = vadd.f32 %v9583_v34, %v9582_v40  ;;  %v9621_v3 = vpop.f32.mrf.mxu0  ;;  %v21267_v4 = vld [vmem:[#allocation49_spill] sm:$0xff] }
 0x184   :  { %3607 = vmatmul.mubr.f32.gmra.mxu0 %v14168_v53  ;;  %10117 = vmatprep.subr.mxu1 %v21260_v49  ;;  %v9622_v11 = vadd.f32 %v9621_v3, %v9620_v12  ;;  %v21271_v12 = vand.u32 4294901760, %v21197_v38  ;;  %v21275_v3 = vld [vmem:[#allocation48_spill] sm:$0xff] }
 0x185   :  { %10149 = vmatprep.subr.mxu0 %v21261_v8  ;;  %10118 = vmatpush3.msra.mxu1 %v21262_v21  ;;  %v14539_v8 = vadd.f32 %v9584_v44, %v1557_v45  ;;  %v21273_v45 = vand.u32 4294901760, %v21272_v52  ;;  %v21282_v52 = vld [vmem:[#allocation66_spill] sm:$0xff] }
 0x186   :  { %10150 = vmatpush3.msra.mxu0 %v21263_v9  ;;  %10119 = vmatprep.subr.mxu1 %v21264_v20  ;;  %v21270_v9 = vand.u32 4294901760, %v21251_v7  ;;  %v1837_v40 = vadd.f32 %v9622_v11, %v14433_v39  ;;  %v9673_v6 = vpop.f32.mrf.mxu1  ;;  %v21276_v7 = vand.u32 4294901760, %v21275_v3  ;;  %v21277_v11 = vld [vmem:[#allocation64_spill] sm:$0xff]  ;;  %v21287_v3 = vld [vmem:[#allocation33_spill] sm:$0xff] }
 0x187   :  { %10151 = vmatprep.subr.mxu0 %v21265_v33  ;;  %3613 = vmatprep.mubr.f32.mxu0 %v21266_v48  ;;  %v9623_v34 = vpop.f32.mrf.mxu0 }
 0x188   :  { %10120 = vmatpush3.msra.mxu1 %v21267_v4  ;;  %3765 = vmatprep.mubr.f32.mxu1 %v21268_v15  ;;  %v9674_v44 = vpop.f32.mrf.mxu1  ;;  %v21278_v15 = vand.u32 4294901760, %v14139_v42 }
 0x189   :  { %10152 = vmatpush3.msra.mxu0 %v21269_v55  ;;  %3769 = vmatmul.mubr.f32.vlgmr.msra.gmra.mxu1 %v21270_v9  ;;  %v9624_v33 = vpop.f32.mrf.mxu0  ;;  %v9675_v39 = vadd.f32 %v9674_v44, %v9673_v6  ;;  %v21284_v44 = vld [vmem:[#allocation25_spill] sm:$0xff] }
 0x18a   :  { %3616 = vmatmul.mubr.f32.gmra.mxu0 %v14247_v59  ;;  %10153 = vmatprep.subr.mxu0 %v21271_v12  ;;  %v9625_v38 = vadd.f32 %v9624_v33, %v9623_v34  ;;  %v21281_v12 = vld [vmem:[#allocation14_spill] sm:$0xff]  ;;  %v21285_v34 = vand.u32 4294901760, %v21284_v44  ;;  %v21289_v33 = vld [vmem:[#allocation19_spill] sm:$0xff] }
 0x18b   :  { %10201 = vmatprep.subr.mxu1 %v21198_v23  ;;  %10154 = vmatpush3.msra.mxu0 %v21273_v45  ;;  %v21279_v23 = vld [vmem:[#allocation58_spill] sm:$0xff]  ;;  %v14561_v9 = vadd.f32 %v9675_v39, %v1822_v19  ;;  %v21290_v39 = vand.u32 4294901760, %v21289_v33 }
 0x18c   :  { %10202 = vmatpush3.msra.mxu1 %v21274_v5  ;;  %10155 = vmatprep.subr.mxu0 %v21276_v7  ;;  %v21280_v55 = vand.u32 4294901760, %v21279_v23  ;;  %v1852_v45 = vadd.f32 %v9625_v38, %v14457_v54  ;;  %v9626_v6 = vpop.f32.mrf.mxu0  ;;  %v21286_v5 = vld [vmem:[#allocation20_spill] sm:$0xff]  ;;  %v21288_v7 = vand.u32 4294901760, %v21287_v3  ;;  %v21299_v3 = vld [vmem:[#allocation6_spill] sm:$0xff] }
 0x18d   :  { %10203 = vmatprep.subr.mxu1 %v21204_v43  ;;  %3622 = vmatprep.mubr.f32.mxu0 %v21277_v11  ;;  %v21283_v43 = vand.u32 4294901760, %v14168_v53  ;;  %v9676_v42 = vpop.f32.mrf.mxu1  ;;  %v21292_v53 = vld [vmem:[#allocation68_spill] sm:$0xff] }
 0x18e   :  { %3776 = vmatprep.mubr.f32.mxu1 %v21278_v15  ;;  %10156 = vmatpush3.msra.mxu0 %v21280_v55  ;;  %v9627_v19 = vpop.f32.mrf.mxu0  ;;  %v21291_v15 = vld [vmem:[#allocation3_spill] sm:$0xff]  ;;  %v21293_v55 = vand.u32 4294901760, %v21266_v48 }
 0x18f   :  { %10204 = vmatpush3.msra.mxu1 %v21281_v12  ;;  %3625 = vmatmul.mubr.f32.gmra.mxu0 %v21282_v52  ;;  %v9628_v54 = vadd.f32 %v9627_v19, %v9626_v6  ;;  %v9677_v38 = vpop.f32.mrf.mxu1  ;;  %v21294_v12 = vand.u32 4294901760, %v21220_v56  ;;  %v21300_v56 = vld [vmem:[#allocation11_spill] sm:$0xff]  ;;  %v21302_v19 = vld [vmem:[#allocation4_spill] sm:$0xff] }
 0x190   :  { %3780 = vmatmul.mubr.f32.gmra.mxu1 %v21283_v43  ;;  %10157 = vmatprep.subr.mxu0 %v21285_v34  ;;  %v9678_v23 = vadd.f32 %v9677_v38, %v9676_v42  ;;  %v21296_v34 = vand.u32 4294901760, %v14247_v59  ;;  %v21305_v59 = vld [vmem:[#allocation34_spill] sm:$0xff]  ;;  %v21306_v38 = vand.u32 4294901760, %v21277_v11 }
 0x191   :  { %10205 = vmatprep.subr.mxu1 %v21286_v5  ;;  %10158 = vmatpush3.msra.mxu0 %v21288_v7  ;;  %v1867_v43 = vadd.f32 %v9628_v54, %v14476_v47  ;;  %v21297_v5 = vld [vmem:[#allocation52_spill] sm:$0xff]  ;;  %v21301_v7 = vand.u32 4294901760, %v21300_v56 }
 0x192   :  { %10206 = vmatpush3.msra.mxu1 %v21215_v24  ;;  %10159 = vmatprep.subr.mxu0 %v21290_v39  ;;  %v21295_v24 = vld [vmem:[#allocation69_spill] sm:$0xff]  ;;  %v14585_v44 = vadd.f32 %v9678_v23, %v1837_v40  ;;  %v9629_v6 = vpop.f32.mrf.mxu0  ;;  %v21298_v42 = vand.u32 4294901760, %v21297_v5  ;;  %v21304_v39 = vld [vmem:[#allocation10_spill] sm:$0xff]  ;;  %v21311_v5 = vld [vmem:[#allocation16_spill] sm:$0xff] }
 0x193   :  { %10207 = vmatprep.subr.mxu1 %v21291_v15  ;;  %3631 = vmatprep.mubr.f32.mxu0 %v21292_v53  ;;  %v9679_v48 = vpop.f32.mrf.mxu1  ;;  %v21307_v15 = vand.u32 4294901760, %v21231_v63  ;;  %v362_v23 = vld [vmem:[%s19569_s1 + $0x3f8] sm:$0xff]  ;;  %v21309_v63 = vand.u32 4294901760, %v21282_v52  ;;  %v21315_v52 = vld [vmem:[#allocation46_spill] sm:$0xff] }
 0x194   :  { %3787 = vmatprep.mubr.f32.mxu1 %v21293_v55  ;;  %10160 = vmatpush3.msra.mxu0 %v21294_v12  ;;  %v9630_v47 = vpop.f32.mrf.mxu0  ;;  %v21308_v55 = vld [vmem:[#allocation40_spill] sm:$0xff]  ;;  %v346_v12 = vld [vmem:[%s19569_s1 + $0x378] sm:$0xff]  ;;  %v21316_v56 = vand.u32 4294901760, %v21315_v52  ;;  %v21332_v52 = vand.u32 4294901760, %v14022_v25 }
 0x195   :  { %10208 = vmatpush3.msra.mxu1 %v21221_v22  ;;  %3634 = vmatmul.mubr.f32.gmra.mxu0 %v21295_v24  ;;  %v21303_v22 = vand.u32 4294901760, %v21228_v51  ;;  %v9631_v40 = vadd.f32 %v9630_v47, %v9629_v6  ;;  %v9680_v33 = vpop.f32.mrf.mxu1  ;;  %v342_v25 = vld [vmem:[%s19569_s1 + $0x358] sm:$0xff] }
 0x196   :  { %3791 = vmatmul.mubr.f32.gmra.mxu1 %v21296_v34  ;;  %10161 = vmatprep.subr.mxu0 %v21298_v42  ;;  %v9681_v54 = vadd.f32 %v9680_v33, %v9679_v48  ;;  %v21310_v34 = vand.u32 4294901760, %v21233_v35  ;;  %v21312_v42 = vld [vmem:[#allocation37_spill] sm:$0xff]  ;;  %v14631_v35 = vand.u32 4294901760, %v346_v12 }
 0x197   :  { %10209 = vmatprep.subr.mxu1 %v21299_v3  ;;  %10162 = vmatpush3.msra.mxu0 %v21301_v7  ;;  %v14607_v51 = vadd.f32 %v9631_v40, %v14489_v60  ;;  %v361_v60 = vld [vmem:[%s19569_s1 + $0x3f0] sm:$0xff]  ;;  %v21313_v48 = vand.u32 4294901760, %v21312_v42  ;;  %v14626_v3 = vand.u32 4294901760, %v362_v23 }
 0x198   :  { %10210 = vmatpush3.msra.mxu1 %v21302_v19  ;;  %10163 = vmatprep.subr.mxu0 %v21303_v22  ;;  %v14614_v11 = vadd.f32 %v9681_v54, %v1852_v45  ;;  %v9632_v6 = vpop.f32.mrf.mxu0  ;;  %21317 = vst [vmem:[#allocation50_spill] sm:$0xff] %v14631_v35  ;;  %v345_v7 = vld [vmem:[%s19569_s1 + $0x370] sm:$0xff]  ;;  %v21318_v22 = vld [vmem:[#allocation71_spill] sm:$0xff]  ;;  %v14638_v40 = vand.u32 4294901760, %v361_v60 }
 0x199   :  { %10211 = vmatprep.subr.mxu1 %v21304_v39  ;;  %3640 = vmatprep.mubr.f32.mxu0 %v21305_v59  ;;  %21314 = vst [vmem:[#allocation17_spill] sm:$0xff] %v14626_v3  ;;  %v21321_v39 = vand.u32 4294901760, %v21241_v30  ;;  %v360_v54 = vld [vmem:[%s19569_s1 + $0x3e8] sm:$0xff]  ;;  %v14658_v30 = vsub.f32 %v362_v23, %v14626_v3 }
 0x19a   :  { %3798 = vmatprep.mubr.f32.mxu1 %v21306_v38  ;;  %10164 = vmatpush3.msra.mxu0 %v21307_v15  ;;  %v9633_v45 = vpop.f32.mrf.mxu0  ;;  %21319 = vst [vmem:[#allocation13_spill] sm:$0xff] %v14638_v40  ;;  %v14652_v15 = vand.u32 4294901760, %v345_v7  ;;  %v14672_v23 = vand.u32 4294901760, %v360_v54 }
 0x19b   :  { %10212 = vmatpush3.msra.mxu1 %v21232_v28  ;;  %3643 = vmatmul.mubr.f32.gmra.mxu0 %v21308_v55  ;;  %v9682_v28 = vpop.f32.mrf.mxu1  ;;  %v9634_v47 = vadd.f32 %v9633_v45, %v9632_v6 }
 0x19c   :  { %3802 = vmatmul.mubr.f32.gmra.mxu1 %v21309_v63  ;;  %10165 = vmatprep.subr.mxu0 %v21310_v34  ;;  %21323 = vst [vmem:[#allocation31_spill] sm:$0xff] %v14652_v15  ;;  %v21324_v34 = vand.u32 4294901760, %v21295_v24  ;;  %21327 = vst [vmem:[#allocation57_spill] sm:$0xff] %v14672_v23 }
 0x19d   :  { %10213 = vmatprep.subr.mxu1 %v21311_v5  ;;  %10166 = vmatpush3.msra.mxu0 %v21313_v48  ;;  %v9683_v19 = vpop.f32.mrf.mxu1  ;;  %v14648_v38 = vadd.f32 %v9634_v47, %v14504_v57  ;;  %v21325_v57 = vand.u32 4294901760, %v14048_v50  ;;  %v21326_v5 = vand.u32 4294901760, %v13990_v2  ;;  %v21328_v50 = vand.u32 4294901760, %v14083_v46 }
 0x19e   :  { %10214 = vmatpush3.msra.mxu1 %v21237_v1  ;;  %10167 = vmatprep.subr.mxu0 %v21316_v56  ;;  %v9684_v33 = vadd.f32 %v9683_v19, %v9682_v28  ;;  %v21320_v1 = vand.u32 4294901760, %v21292_v53  ;;  %v344_v53 = vld [vmem:[%s19569_s1 + $0x368] sm:$0xff]  ;;  %v9635_v63 = vpop.f32.mrf.mxu0  ;;  %v14685_v2 = vsub.f32 %v345_v7, %v14652_v15  ;;  %v21331_v46 = vand.u32 4294901760, %v21305_v59  ;;  %v358_v59 = vld [vmem:[%s19569_s1 + $0x3d8] sm:$0xff] }
 0x19f   :  { %10215 = vmatprep.subr.mxu1 %v21239_v18  ;;  %3649 = vmatprep.mubr.f32.mxu0 %v21318_v22  ;;  %v21322_v18 = vld [vmem:[#allocation44_spill] sm:$0xff]  ;;  %v9685_v28 = vpop.f32.mrf.mxu1  ;;  %v14680_v24 = vand.u32 4294901760, %v344_v53  ;;  %v14712_v19 = vsub.f32 %v360_v54, %v14672_v23 }
 0x1a0   :  { %3809 = vmatprep.mubr.f32.mxu1 %v21320_v1  ;;  %10168 = vmatpush3.msra.mxu0 %v21321_v39  ;;  %v14660_v6 = vadd.f32 %v9684_v33, %v1867_v43  ;;  %v14675_v43 = vsub.f32 %v361_v60, %v14638_v40  ;;  %v9636_v42 = vpop.f32.mrf.mxu0  ;;  %v359_v60 = vld [vmem:[%s19569_s1 + $0x3e0] sm:$0xff]  ;;  %v21334_v1 = vand.u32 4294901760, %v14172_v36  ;;  %v357_v54 = vld [vmem:[%s19569_s1 + $0x3d0] sm:$0xff] }
 0x1a1   :  { %10216 = vmatpush3.msra.mxu1 %v21242_v10  ;;  %3652 = vmatmul.mubr.f32.gmra.mxu0 %v21322_v18  ;;  %v14667_v10 = vsub.f32 %v346_v12, %v14631_v35  ;;  %21329 = vst [vmem:[#allocation35_spill] sm:$0xff] %v14680_v24  ;;  %v9637_v12 = vadd.f32 %v9636_v42, %v9635_v63  ;;  %v9686_v48 = vpop.f32.mrf.mxu1  ;;  %v14724_v63 = vand.u32 4294901760, %v359_v60  ;;  %v14743_v42 = vand.u32 4294901760, %v358_v59 }
 0x1a2   :  { %3813 = vmatmul.mubr.f32.gmra.mxu1 %v21324_v34  ;;  %10169 = vmatprep.subr.mxu0 %v21325_v57  ;;  %v9687_v45 = vadd.f32 %v9686_v48, %v9685_v28  ;;  %v20023_v47 = vand.u32 4294901760, %v14675_v43  ;;  %v14722_v39 = vsub.f32 %v344_v53, %v14680_v24  ;;  %v20022_v53 = vand.u32 4294901760, %v14685_v2  ;;  %v21339_v28 = vld [vmem:[#allocation60_spill] sm:$0xff] }
 0x1a3   :  { %10217 = vmatprep.subr.mxu1 %v21243_v26  ;;  %10170 = vmatpush3.msra.mxu0 %v21326_v5  ;;  %v21330_v26 = vld [vmem:[#allocation23_spill] sm:$0xff]  ;;  %v20024_v56 = vand.u32 4294901760, %v14667_v10  ;;  %v14700_v7 = vadd.f32 %v9637_v12, %v14523_v41  ;;  %21336 = vst [vmem:[#allocation21_spill] sm:$0xff] %v14724_v63  ;;  %v21340_v5 = vand.u32 4294901760, %v21339_v28  ;;  %21341 = vst [vmem:[#allocation28_spill] sm:$0xff] %v14743_v42  ;;  %v21343_v48 = vand.u32 4294901760, %v21318_v22 }
 0x1a4   :  { %10218 = vmatpush3.msra.mxu1 %v21244_v29  ;;  %10171 = vmatprep.subr.mxu0 %v21328_v50  ;;  %v20025_v29 = vand.u32 4294901760, %v14658_v30  ;;  %v14715_v41 = vadd.f32 %v9687_v45, %v14607_v51  ;;  %v9638_v33 = vpop.f32.mrf.mxu0  ;;  %21335 = vst [vmem:[#allocation55_spill] sm:$0xff] %v14722_v39  ;;  %v21337_v51 = vand.u32 4294901760, %v14121_v62  ;;  %v14760_v45 = vsub.f32 %v14675_v43, %v20023_v47  ;;  %v356_v22 = vld [vmem:[%s19569_s1 + $0x3c8] sm:$0xff]  ;;  %v21348_v28 = vld [vmem:[#allocation29_spill] sm:$0xff] }
 0x1a5   :  { %10219 = vmatprep.subr.mxu1 %v21245_v37  ;;  %3658 = vmatprep.mubr.f32.mxu0 %v21330_v26  ;;  %v343_v37 = vld [vmem:[%s19569_s1 + $0x360] sm:$0xff]  ;;  %v9688_v34 = vpop.f32.mrf.mxu1  ;;  %v14750_v62 = vsub.f32 %v14667_v10, %v20024_v56 }
 0x1a6   :  { %3820 = vmatprep.mubr.f32.mxu1 %v21331_v46  ;;  %10172 = vmatpush3.msra.mxu0 %v21332_v52  ;;  %v14737_v36 = vsub.f32 %v14658_v30, %v20025_v29  ;;  %v9639_v57 = vpop.f32.mrf.mxu0  ;;  %v341_v46 = vld [vmem:[%s19569_s1 + $0x350] sm:$0xff]  ;;  %v20026_v52 = vand.u32 4294901760, %v14712_v19 }
 0x1a7   :  { %10220 = vmatpush3.msra.mxu1 %v21246_v0  ;;  %3661 = vmatmul.mubr.f32.gmra.mxu0 %v14443_v17  ;;  %v21333_v0 = vand.u32 4294901760, %v21308_v55  ;;  %v14732_v55 = vand.u32 4294901760, %v343_v37  ;;  %v9640_v50 = vadd.f32 %v9639_v57, %v9638_v33  ;;  %v9689_v12 = vpop.f32.mrf.mxu1 }
 0x1a8   :  { %10173 = vmatprep.subr.mxu0 %v21334_v1  ;;  %10221 = vmatprep.subr.mxu1 %v21247_v61  ;;  %v14745_v61 = vand.u32 4294901760, %v342_v25  ;;  %v9690_v33 = vadd.f32 %v9689_v12, %v9688_v34  ;;  %v20027_v1 = vand.u32 4294901760, %v14722_v39  ;;  %v21349_v34 = vld [vmem:[#allocation36_spill] sm:$0xff]  ;;  %v14788_v12 = vsub.f32 %v14685_v2, %v20022_v53  ;;  %v355_v53 = vld [vmem:[%s19569_s1 + $0x3c0] sm:$0xff] }
 0x1a9   :  { %3824 = vmatmul.mubr.f32.gmra.mxu1 %v21333_v0  ;;  %10174 = vmatpush3.msra.mxu0 %v21337_v51  ;;  %21338 = vst [vmem:[#allocation39_spill] sm:$0xff] %v14732_v55  ;;  %v21345_v0 = vand.u32 4294901760, %v14131_v27  ;;  %v14774_v51 = vsub.f32 %v359_v60, %v14724_v63  ;;  %v14777_v57 = vadd.f32 %v9640_v50, %v14539_v8  ;;  %v340_v60 = vld [vmem:[%s19569_s1 + $0x348] sm:$0xff] }
 0x1aa   :  { %10222 = vmatpush3.msra.mxu1 %v21248_v13  ;;  %10175 = vmatprep.subr.mxu0 %v21340_v5  ;;  %21342 = vst [vmem:[#allocation51_spill] sm:$0xff] %v14745_v61  ;;  %v14755_v13 = vand.u32 4294901760, %v357_v54  ;;  %v14782_v27 = vsub.f32 %v343_v37, %v14732_v55  ;;  %v14794_v8 = vadd.f32 %v9690_v33, %v14648_v38  ;;  %v9729_v50 = vpop.f32.mrf.mxu0  ;;  %v14838_v5 = vand.u32 4294901760, %v355_v53 }
 0x1ab   :  { %10223 = vmatprep.subr.mxu1 %v21249_v32  ;;  %3831 = vmatprep.mubr.f32.mxu1 %v21343_v48  ;;  %v21346_v32 = vld [vmem:[#allocation26_spill] sm:$0xff]  ;;  %21347 = vst [vmem:[#allocation7_spill] sm:$0xff] %v14774_v51  ;;  %v21351_v48 = vand.u32 4294901760, %v21322_v18  ;;  %v14800_v37 = vsub.f32 %v342_v25, %v14745_v61  ;;  %v14809_v38 = vsub.f32 %v358_v59, %v14743_v42  ;;  %v9691_v33 = vpop.f32.mrf.mxu1  ;;  %v21355_v18 = vld [vmem:[#allocation41_spill] sm:$0xff]  ;;  %v14814_v25 = vand.u32 4294901760, %v356_v22 }
 0x1ac   :  { %21344 = vst [vmem:[#allocation8_spill] sm:$0xff] %v14755_v13  ;;  %10176 = vmatpush3.msra.mxu0 %v21345_v0  ;;  %4012 = vmatprep.mubr.f32.mxu0 %v21346_v32  ;;  %21350 = vst [vmem:[#allocation30_spill] sm:$0xff] %v14782_v27  ;;  %v14822_v47 = vsub.f32 %v357_v54, %v14755_v13  ;;  %v9730_v56 = vpop.f32.mrf.mxu0  ;;  %v14826_v59 = vand.u32 4294901760, %v340_v60  ;;  %v21359_v54 = vand.u32 4294901760, %v21330_v26  ;;  %v354_v26 = vld [vmem:[%s19569_s1 + $0x3b8] sm:$0xff]  ;;  %v21365_v0 = vld [vmem:[#allocation54_spill] sm:$0xff] }
 0x1ad   :  { %10224 = vmatpush3.msra.mxu1 %v21348_v28  ;;  %4014 = vmatmul.mubr.f32.vlgmr.msra.gmra.mxu0 %v21349_v34  ;;  %21352 = vst [vmem:[#allocation56_spill] sm:$0xff] %v14800_v37  ;;  %v14803_v28 = vand.u32 4294901760, %v341_v46  ;;  %21354 = vst [vmem:[#allocation38_spill] sm:$0xff] %v14809_v38 }
 0x1ae   :  { %3835 = vmatmul.mubr.f32.gmra.mxu1 %v21351_v48  ;;  %10225 = vmatprep.subr.mxu1 %v21252_v16  ;;  %21356 = vst [vmem:[#allocation42_spill] sm:$0xff] %v14814_v25  ;;  %v14819_v48 = vsub.f32 %v14712_v19, %v20026_v52  ;;  %21357 = vst [vmem:[#allocation22_spill] sm:$0xff] %v14822_v47  ;;  %v9692_v16 = vpop.f32.mrf.mxu1  ;;  %v9731_v52 = vadd.f32 %v9730_v56, %v9729_v50 }
 0x1af   :  { %21353 = vst [vmem:[#allocation61_spill] sm:$0xff] %v14803_v28  ;;  %10257 = vmatprep.subr.mxu0 %v14626_v3  ;;  %10226 = vmatpush3.msra.mxu1 %v21355_v18  ;;  %21358 = vst [vmem:[#allocation24_spill] sm:$0xff] %v14826_v59  ;;  %v14831_v18 = vsub.f32 %v14722_v39, %v20027_v1  ;;  %v21361_v3 = vld [vmem:[#allocation53_spill] sm:$0xff]  ;;  %v14847_v56 = vsub.f32 %v341_v46, %v14803_v28 }
 0x1b0   :  { %10258 = vmatpush3.msra.mxu0 %v14631_v35  ;;  %10227 = vmatprep.subr.mxu1 %v21256_v58  ;;  %21360 = vst [vmem:[#allocation43_spill] sm:$0xff] %v14838_v5  ;;  %v339_v58 = vld [vmem:[%s19569_s1 + $0x340] sm:$0xff]  ;;  %v9693_v35 = vadd.f32 %v9692_v16, %v9691_v33  ;;  %v14858_v33 = vadd.f32 %v9731_v52, %v14561_v9  ;;  %v9694_v29 = vpop.f32.mrf.mxu1  ;;  %v21367_v52 = vand.u32 4294901760, %v14774_v51 }
 0x1b1   :  { %10259 = vmatprep.subr.mxu0 %v14638_v40  ;;  %3842 = vmatprep.mubr.f32.mxu1 %v21359_v54  ;;  %21362 = vst [vmem:[#allocation45_spill] sm:$0xff] %v14847_v56  ;;  %v338_v54 = vld [vmem:[%s19569_s1 + $0x338] sm:$0xff]  ;;  %v14866_v50 = vsub.f32 %v356_v22, %v14814_v25  ;;  %v14874_v9 = vsub.f32 %v340_v60, %v14826_v59  ;;  %v14882_v22 = vand.u32 4294901760, %v339_v58 }
 0x1b2   :  { %4019 = vmatprep.mubr.f32.mxu0 %v21361_v3  ;;  %10228 = vmatpush3.msra.mxu1 %v21258_v14  ;;  %v21363_v14 = vand.u32 4294901760, %v14443_v17  ;;  %v14869_v1 = vadd.f32 %v9693_v35, %v14700_v7  ;;  %v353_v35 = vld [vmem:[%s19569_s1 + $0x3b0] sm:$0xff]  ;;  %v9732_v7 = vpop.f32.mrf.mxu0  ;;  %v14894_v17 = vand.u32 4294901760, %v354_v26  ;;  %v14899_v46 = vsub.f32 %v355_v53, %v14838_v5  ;;  %v9695_v16 = vpop.f32.mrf.mxu1 }
 0x1b3   :  { %10260 = vmatpush3.msra.mxu0 %v14652_v15  ;;  %21364 = vst [vmem:[#allocation47_spill] sm:$0xff] %v14866_v50  ;;  %10229 = vmatprep.subr.mxu1 %v21260_v49  ;;  %21366 = vst [vmem:[#allocation5_spill] sm:$0xff] %v14874_v9  ;;  %v21369_v49 = vand.u32 4294901760, %v14782_v27 }
 0x1b4   :  { %3846 = vmatmul.mubr.f32.gmra.mxu1 %v21363_v14  ;;  %4021 = vmatmul.mubr.f32.gmra.mxu0 %v21365_v0  ;;  %v14880_v14 = vsub.f32 %v14774_v51, %v21367_v52  ;;  %21368 = vst [vmem:[#allocation49_spill] sm:$0xff] %v14882_v22  ;;  %21370 = vst [vmem:[#allocation12_spill] sm:$0xff] %v14894_v17  ;;  %v14896_v52 = vand.u32 4294901760, %v338_v54  ;;  %v9733_v53 = vpop.f32.mrf.mxu0  ;;  %v21375_v51 = vld [vmem:[#allocation59_spill] sm:$0xff] }
 0x1b5   :  { %10261 = vmatprep.subr.mxu0 %v14672_v23  ;;  %10230 = vmatpush3.msra.mxu1 %v21262_v21  ;;  %v14892_v60 = vsub.f32 %v14782_v27, %v21369_v49  ;;  %21372 = vst [vmem:[#allocation48_spill] sm:$0xff] %v14899_v46  ;;  %v21373_v23 = vand.u32 4294901760, %v14809_v38  ;;  %v21374_v49 = vand.u32 4294901760, %v14800_v37  ;;  %v9696_v27 = vadd.f32 %v9695_v16, %v9694_v29 }
 0x1b6   :  { %21371 = vst [vmem:[#allocation9_spill] sm:$0xff] %v14896_v52  ;;  %10262 = vmatpush3.msra.mxu0 %v14680_v24  ;;  %10231 = vmatprep.subr.mxu1 %v21264_v20  ;;  %v14916_v24 = vand.u32 4294901760, %v353_v35  ;;  %v21377_v20 = vand.u32 4294901760, %v14822_v47  ;;  %v9734_v40 = vadd.f32 %v9733_v53, %v9732_v7  ;;  %v14931_v16 = vsub.f32 %v339_v58, %v14882_v22  ;;  %v335_v58 = vld [vmem:[%s19569_s1 + $0x320] sm:$0xff] }
 0x1b7   :  { %v14906_v21 = vsub.f32 %v14809_v38, %v21373_v23  ;;  %v14911_v15 = vsub.f32 %v14800_v37, %v21374_v49  ;;  %10263 = vmatprep.subr.mxu0 %v14724_v63  ;;  %4026 = vmatprep.mubr.f32.mxu0 %v21375_v51  ;;  %v337_v49 = vld [vmem:[%s19569_s1 + $0x330] sm:$0xff]  ;;  %v21384_v63 = vand.u32 4294901760, %v14737_v36  ;;  %v21389_v37 = vand.u32 4294901760, %v14874_v9 }
 0x1b8   :  { %21376 = vst [vmem:[#allocation64_spill] sm:$0xff] %v14916_v24  ;;  %v14921_v23 = vsub.f32 %v14822_v47, %v21377_v20  ;;  %10232 = vmatpush3.msra.mxu1 %v21267_v4  ;;  %4165 = vmatprep.mubr.f32.mxu1 %v21346_v32  ;;  %21378 = vst [vmem:[#allocation58_spill] sm:$0xff] %v14931_v16  ;;  %v14935_v20 = vadd.f32 %v9696_v27, %v14777_v57  ;;  %v336_v32 = vld [vmem:[%s19569_s1 + $0x328] sm:$0xff]  ;;  %v9785_v57 = vpop.f32.mrf.mxu1  ;;  %v14953_v7 = vand.u32 4294901760, %v337_v49 }
 0x1b9   :  { %10264 = vmatpush3.msra.mxu0 %v14732_v55  ;;  %4167 = vmatmul.mubr.f32.vlgmr.msra.gmra.mxu1 %v21349_v34  ;;  %v14941_v4 = vsub.f32 %v338_v54, %v14896_v52  ;;  %v14948_v53 = vadd.f32 %v9734_v40, %v14585_v44  ;;  %v21380_v27 = vld [vmem:[#allocation27_spill] sm:$0xff]  ;;  %v21382_v54 = vand.u32 4294901760, %v14847_v56  ;;  %v14964_v44 = vsub.f32 %v354_v26, %v14894_v17  ;;  %v9735_v40 = vpop.f32.mrf.mxu0 }
 0x1ba   :  { %4028 = vmatmul.mubr.f32.gmra.mxu0 %v21380_v27  ;;  %10265 = vmatprep.subr.mxu0 %v14743_v42  ;;  %21381 = vst [vmem:[#allocation66_spill] sm:$0xff] %v14953_v7  ;;  %v14977_v55 = vsub.f32 %v353_v35, %v14916_v24  ;;  %v9786_v26 = vpop.f32.mrf.mxu1  ;;  %v14985_v36 = vand.u32 4294901760, %v336_v32 }
 0x1bb   :  { %21379 = vst [vmem:[#allocation14_spill] sm:$0xff] %v14941_v4  ;;  %v14958_v29 = vsub.f32 %v14847_v56, %v21382_v54  ;;  %21383 = vst [vmem:[#allocation25_spill] sm:$0xff] %v14964_v44  ;;  %10313 = vmatprep.subr.mxu1 %v21384_v63  ;;  %10266 = vmatpush3.msra.mxu0 %v14745_v61  ;;  %v21385_v54 = vand.u32 4294901760, %v14866_v50  ;;  %v21387_v56 = vand.u32 4294901760, %v14750_v62  ;;  %v352_v63 = vld [vmem:[%s19569_s1 + $0x3a8] sm:$0xff]  ;;  %v9736_v34 = vpop.f32.mrf.mxu0  ;;  %v21390_v62 = vand.u32 4294901760, %v14760_v45 }
 0x1bc   :  { %21386 = vst [vmem:[#allocation20_spill] sm:$0xff] %v14977_v55  ;;  %10267 = vmatprep.subr.mxu0 %v14755_v13  ;;  %21388 = vst [vmem:[#allocation33_spill] sm:$0xff] %v14985_v36  ;;  %v9787_v61 = vadd.f32 %v9786_v26, %v9785_v57  ;;  %v351_v13 = vld [vmem:[%s19569_s1 + $0x3a0] sm:$0xff]  ;;  %4172 = vmatprep.mubr.f32.mxu1 %v21361_v3  ;;  %v15010_v45 = vsub.f32 %v337_v49, %v14953_v7  ;;  %v21396_v3 = vld [vmem:[#allocation63_spill] sm:$0xff]  ;;  %v21400_v49 = vand.u32 4294901760, %v14931_v16 }
 0x1bd   :  { %v14974_v42 = vsub.f32 %v14866_v50, %v21385_v54  ;;  %10314 = vmatpush3.msra.mxu1 %v21387_v56  ;;  %v14990_v54 = vsub.f32 %v14874_v9, %v21389_v37  ;;  %v21391_v56 = vld [vmem:[#allocation62_spill] sm:$0xff]  ;;  %v21392_v50 = vand.u32 4294901760, %v14899_v46  ;;  %v15004_v37 = vand.u32 4294901760, %v335_v58  ;;  %10268 = vmatpush3.msra.mxu0 %v14803_v28  ;;  %v15030_v26 = vld [vmem:[%s19570_s0 + $0x38] sm:$0xff] }
 0x1be   :  { %10315 = vmatprep.subr.mxu1 %v21390_v62  ;;  %4033 = vmatprep.mubr.f32.mxu0 %v21391_v56  ;;  %v9737_v9 = vadd.f32 %v9736_v34, %v9735_v40  ;;  %21394 = vst [vmem:[#allocation3_spill] sm:$0xff] %v15010_v45  ;;  %v15018_v62 = vadd.f32 %v9787_v61, %v14858_v33  ;;  %v21395_v34 = vand.u32 4294901760, %v14788_v12  ;;  %v15023_v40 = vand.u32 4294901760, %v352_v63  ;;  %v9738_v61 = vpop.f32.mrf.mxu0 }
 0x1bf   :  { %v15002_v47 = vsub.f32 %v14899_v46, %v21392_v50  ;;  %21393 = vst [vmem:[#allocation19_spill] sm:$0xff] %v15004_v37  ;;  %v334_v50 = vld [vmem:[%s19569_s1 + $0x318] sm:$0xff]  ;;  %4035 = vmatmul.mubr.f32.gmra.mxu0 %v21396_v3  ;;  %4174 = vmatmul.mubr.f32.gmra.mxu1 %v21365_v0  ;;  %v15038_v12 = vsub.f32 %v336_v32, %v14985_v36  ;;  %v21401_v0 = vand.u32 4294901760, %v14819_v48 }
 0x1c0   :  { %10316 = vmatpush3.msra.mxu1 %v21395_v34  ;;  %21397 = vst [vmem:[#allocation68_spill] sm:$0xff] %v15023_v40  ;;  %v15033_v35 = vadd.f32 %v9737_v9, %v14614_v11  ;;  %10269 = vmatprep.subr.mxu0 %v14814_v25  ;;  %v15041_v34 = vand.u32 4294901760, %v351_v13  ;;  %v15046_v57 = vsub.f32 %v14931_v16, %v21400_v49  ;;  %v350_v11 = vld [vmem:[%s19569_s1 + $0x398] sm:$0xff]  ;;  %v9788_v9 = vpop.f32.mrf.mxu1  ;;  %v15058_v25 = vand.u32 4294901760, %v334_v50  ;;  %v333_v16 = vld [vmem:[%s19569_s1 + $0x310] sm:$0xff]  ;;  %v9739_v48 = vpop.f32.mrf.mxu0 }
 0x1c1   :  { %21398 = vst [vmem:[#allocation69_spill] sm:$0xff] %v15038_v12  ;;  %10317 = vmatprep.subr.mxu1 %v21401_v0  ;;  %10270 = vmatpush3.msra.mxu0 %v14826_v59  ;;  %v15056_v33 = vsub.f32 %v335_v58, %v15004_v37  ;;  %v21403_v49 = vand.u32 4294901760, %v14941_v4  ;;  %v21404_v0 = vand.u32 4294901760, %v14831_v18  ;;  %v21405_v58 = vand.u32 4294901760, %v14964_v44 }
 0x1c2   :  { %21399 = vst [vmem:[#allocation52_spill] sm:$0xff] %v15041_v34  ;;  %21402 = vst [vmem:[#allocation6_spill] sm:$0xff] %v15058_v25  ;;  %10271 = vmatprep.subr.mxu0 %v14838_v5  ;;  %v9740_v46 = vadd.f32 %v9739_v48, %v9738_v61  ;;  %v9789_v38 = vpop.f32.mrf.mxu1  ;;  %v21406_v18 = vand.u32 4294901760, %v14880_v14  ;;  %v15086_v5 = vand.u32 4294901760, %v350_v11  ;;  %v15099_v61 = vsub.f32 %v352_v63, %v15023_v40 }
 0x1c3   :  { %v15063_v28 = vsub.f32 %v14941_v4, %v21403_v49  ;;  %10318 = vmatpush3.msra.mxu1 %v21404_v0  ;;  %v15074_v32 = vsub.f32 %v14964_v44, %v21405_v58  ;;  %v130_v49 = vmax.f32 %v15030_v26, 0.0  ;;  %v15081_v4 = vld [vmem:[%s19570_s0 + $0x30] sm:$0xff]  ;;  %v21407_v0 = vld [vmem:[#allocation65_spill] sm:$0xff]  ;;  %v21409_v26 = vand.u32 4294901760, %v14977_v55  ;;  %4179 = vmatprep.mubr.f32.mxu1 %v21375_v51  ;;  %v332_v51 = vld [vmem:[%s19569_s1 + $0x308] sm:$0xff] }
 0x1c4   :  { %10319 = vmatprep.subr.mxu1 %v21406_v18  ;;  %4040 = vmatprep.mubr.f32.mxu0 %v21407_v0  ;;  %21408 = vst [vmem:[#allocation11_spill] sm:$0xff] %v15086_v5  ;;  %v15091_v58 = vld [vmem:[%s19569_s1 + $0x390] sm:$0xff]  ;;  %21410 = vst [vmem:[#allocation4_spill] sm:$0xff] %v15099_v61  ;;  %v9790_v48 = vadd.f32 %v9789_v38, %v9788_v9  ;;  %v15104_v18 = vand.u32 4294901760, %v333_v16  ;;  %v15108_v39 = vadd.f32 %v9740_v46, %v14660_v6  ;;  %v9741_v6 = vpop.f32.mrf.mxu0 }
 0x1c5   :  { %v15096_v59 = vsub.f32 %v14977_v55, %v21409_v26  ;;  %10272 = vmatpush3.msra.mxu0 %v14882_v22  ;;  %v21412_v26 = vand.u32 4294901760, %v14892_v60  ;;  %v21413_v55 = vld [vmem:[#allocation67_spill] sm:$0xff]  ;;  %v15118_v63 = vsub.f32 %v351_v13, %v15041_v34  ;;  %v129_v9 = vmax.f32 %v15081_v4, 0.0  ;;  %4181 = vmatmul.mubr.f32.gmra.mxu1 %v21380_v27  ;;  %v9791_v27 = vpop.f32.mrf.mxu1 }
 0x1c6   :  { %21411 = vst [vmem:[#allocation10_spill] sm:$0xff] %v15104_v18  ;;  %4042 = vmatmul.mubr.f32.gmra.mxu0 %v21413_v55  ;;  %v15122_v14 = vadd.f32 %v9790_v48, %v14948_v53  ;;  %10273 = vmatprep.subr.mxu0 %v14894_v17  ;;  %v15127_v46 = vsub.f32 %v334_v50, %v15058_v25  ;;  %v15130_v60 = vand.u32 4294901760, %v15091_v58  ;;  %v15137_v4 = vand.u32 4294901760, %v130_v49  ;;  %v15142_v53 = vld [vmem:[%s19570_s0 + $0xa8] sm:$0xff]  ;;  %v9742_v17 = vpop.f32.mrf.mxu0 }
 0x1c7   :  { %10320 = vmatpush3.msra.mxu1 %v21412_v26  ;;  %21414 = vst [vmem:[#allocation34_spill] sm:$0xff] %v15118_v63  ;;  %v21417_v26 = vand.u32 4294901760, %v15010_v45  ;;  %v21419_v48 = vand.u32 4294901760, %v14906_v21  ;;  %10274 = vmatpush3.msra.mxu0 %v14896_v52  ;;  %v15151_v44 = vsub.f32 %v350_v11, %v15086_v5  ;;  %v21420_v22 = vand.u32 4294901760, %v14911_v15  ;;  %v9792_v15 = vpop.f32.mrf.mxu1 }
 0x1c8   :  { %21415 = vst [vmem:[#allocation40_spill] sm:$0xff] %v15122_v14  ;;  %21416 = vst [vmem:[#allocation16_spill] sm:$0xff] %v15130_v60  ;;  %10275 = vmatprep.subr.mxu0 %v14916_v24  ;;  %v15157_v21 = vsub.f32 %v333_v16, %v15104_v18  ;;  %v15164_v38 = vand.u32 4294901760, %v332_v51  ;;  %v21422_v50 = vand.u32 4294901760, %v15038_v12  ;;  %v21424_v24 = vld [vmem:[#allocation70_spill] sm:$0xff]  ;;  %v144_v14 = vmax.f32 %v15142_v53, 0.0  ;;  %4186 = vmatprep.mubr.f32.mxu1 %v21391_v56 }
 0x1c9   :  { %v15135_v13 = vsub.f32 %v15010_v45, %v21417_v26  ;;  %21418 = vst [vmem:[#allocation37_spill] sm:$0xff] %v15137_v4  ;;  %10321 = vmatprep.subr.mxu1 %v21419_v48  ;;  %v15162_v48 = vld [vmem:[%s19569_s1 + $0x388] sm:$0xff]  ;;  %v9743_v26 = vadd.f32 %v9742_v17, %v9741_v6  ;;  %4047 = vmatprep.mubr.f32.mxu0 %v21424_v24  ;;  %v15177_v16 = vld [vmem:[%s19569_s1 + $0x380] sm:$0xff]  ;;  %v15180_v45 = vand.u32 4294901760, %v129_v9  ;;  %v21426_v53 = vand.u32 4294901760, %v14958_v29  ;;  %v9744_v29 = vpop.f32.mrf.mxu0 }
 0x1ca   :  { %10322 = vmatpush3.msra.mxu1 %v21420_v22  ;;  %21421 = vst [vmem:[#allocation46_spill] sm:$0xff] %v15164_v38  ;;  %v15169_v11 = vsub.f32 %v15038_v12, %v21422_v50  ;;  %v21423_v22 = vand.u32 4294901760, %v14921_v23  ;;  %v15186_v17 = vld [vmem:[%s19570_s0 + $0xa0] sm:$0xff]  ;;  %v9793_v23 = vadd.f32 %v9792_v15, %v9791_v27  ;;  %10276 = vmatpush3.msra.mxu0 %v14953_v7  ;;  %v15202_v27 = vand.u32 4294901760, %v15162_v48 }
 0x1cb   :  { %21425 = vst [vmem:[#allocation71_spill] sm:$0xff] %v15180_v45  ;;  %v15192_v50 = vsub.f32 %v130_v49, %v15137_v4  ;;  %v15196_v52 = vadd.f32 %v9743_v26, %v14715_v41  ;;  %v21427_v12 = vld [vmem:[#allocation18_spill] sm:$0xff]  ;;  %v21429_v56 = vand.u32 4294901760, %v15099_v61  ;;  %4188 = vmatmul.mubr.f32.gmra.mxu1 %v21396_v3  ;;  %10277 = vmatprep.subr.mxu0 %v15023_v40  ;;  %v15220_v6 = vand.u32 4294901760, %v15177_v16  ;;  %v9745_v7 = vpop.f32.mrf.mxu0 }
 0x1cc   :  { %10323 = vmatprep.subr.mxu1 %v21423_v22  ;;  %4049 = vmatmul.mubr.f32.gmra.mxu0 %v21427_v12  ;;  %21428 = vst [vmem:[#allocation44_spill] sm:$0xff] %v15202_v27  ;;  %v331_v49 = vld [vmem:[%s19569_s1 + $0x300] sm:$0xff]  ;;  %v15214_v26 = vadd.f32 %v9793_v23, %v15033_v35  ;;  %v143_v22 = vmax.f32 %v15186_v17, 0.0  ;;  %v15230_v35 = vld [vmem:[%s19570_s0 + $0x118] sm:$0xff]  ;;  %v9794_v23 = vpop.f32.mrf.mxu1  ;;  %v21432_v3 = vand.u32 4294901760, %v14974_v42  ;;  %v21433_v41 = vand.u32 4294901760, %v15118_v63 }
 0x1cd   :  { %10324 = vmatpush3.msra.mxu1 %v21426_v53  ;;  %v15207_v15 = vsub.f32 %v15099_v61, %v21429_v56  ;;  %21431 = vst [vmem:[#allocation60_spill] sm:$0xff] %v15220_v6  ;;  %v15224_v56 = vsub.f32 %v15091_v58, %v15130_v60  ;;  %10278 = vmatpush3.msra.mxu0 %v14985_v36  ;;  %v15246_v40 = vand.u32 4294901760, %v144_v14  ;;  %v21435_v61 = vand.u32 4294901760, %v14990_v54 }
 0x1ce   :  { %21430 = vst [vmem:[#allocation23_spill] sm:$0xff] %v15214_v26  ;;  %10325 = vmatprep.subr.mxu1 %v21432_v3  ;;  %v15236_v53 = vsub.f32 %v332_v51, %v15164_v38  ;;  %v15241_v58 = vsub.f32 %v15118_v63, %v21433_v41  ;;  %v15244_v17 = vsub.f32 %v129_v9, %v15180_v45  ;;  %v15251_v42 = vand.u32 4294901760, %v331_v49  ;;  %v9795_v9 = vpop.f32.mrf.mxu1  ;;  %v21439_v26 = vld [vmem:[#allocation32_spill] sm:$0xff] }
 0x1cf   :  { %21434 = vst [vmem:[#allocation26_spill] sm:$0xff] %v15246_v40  ;;  %10326 = vmatpush3.msra.mxu1 %v21435_v61  ;;  %10279 = vmatprep.subr.mxu0 %v15041_v34  ;;  %v21437_v3 = vand.u32 4294901760, %v15056_v33  ;;  %v9746_v36 = vadd.f32 %v9745_v7, %v9744_v29  ;;  %v21438_v63 = vand.u32 4294901760, %v15002_v47  ;;  %v21440_v54 = vand.u32 4294901760, %v15151_v44  ;;  %v21443_v34 = vld [vmem:[#allocation2_spill] sm:$0xff] }
 0x1d0   :  { %21436 = vst [vmem:[#allocation29_spill] sm:$0xff] %v15251_v42  ;;  %4054 = vmatprep.mubr.f32.mxu0 %v21439_v26  ;;  %v158_v51 = vmax.f32 %v15230_v35, 0.0  ;;  %v9796_v7 = vadd.f32 %v9795_v9, %v9794_v23  ;;  %4193 = vmatprep.mubr.f32.mxu1 %v21407_v0  ;;  %v4625_v47 = vand.u32 4294901760, %v15207_v15  ;;  %v15278_v29 = vand.u32 4294901760, %v143_v22 }
 0x1d1   :  { %v15257_v41 = vsub.f32 %v15056_v33, %v21437_v3  ;;  %10327 = vmatprep.subr.mxu1 %v21438_v63  ;;  %v15265_v61 = vsub.f32 %v15151_v44, %v21440_v54  ;;  %v15272_v3 = vld [vmem:[%s19570_s0 + $0x110] sm:$0xff]  ;;  %10280 = vmatpush3.msra.mxu0 %v15004_v37  ;;  %v15281_v54 = vadd.f32 %v9746_v36, %v14794_v8  ;;  %v21442_v35 = vand.u32 4294901760, %v15046_v57  ;;  %v9747_v63 = vpop.f32.mrf.mxu0 }
 0x1d2   :  { %21441 = vst [vmem:[#allocation36_spill] sm:$0xff] %v15278_v29  ;;  %4056 = vmatmul.mubr.f32.gmra.mxu0 %v21443_v34  ;;  %v15289_v9 = vsub.f32 %v144_v14, %v15246_v40  ;;  %v15292_v15 = vadd.f32 %v9796_v7, %v15108_v39  ;;  %4195 = vmatmul.mubr.f32.gmra.mxu1 %v21413_v55  ;;  %v21444_v36 = vand.u32 4294901760, %v15192_v50  ;;  %v157_v14 = vmax.f32 %v15272_v3, 0.0  ;;  %v15309_v39 = vld [vmem:[%s19570_s0 + $0x188] sm:$0xff]  ;;  %v9797_v55 = vpop.f32.mrf.mxu1 }
 0x1d3   :  { %10328 = vmatpush3.msra.mxu1 %v21442_v35  ;;  %10281 = vmatprep.subr.mxu0 %v15086_v5  ;;  %v15297_v8 = vsub.f32 %v331_v49, %v15251_v42  ;;  %v21445_v7 = vand.u32 4294901760, %v15074_v32  ;;  %v15322_v3 = vsub.f32 %v15162_v48, %v15202_v27  ;;  %v15324_v35 = vand.u32 4294901760, %v158_v51  ;;  %v9748_v0 = vpop.f32.mrf.mxu0  ;;  %v15341_v48 = vld [vmem:[%s19570_s0 + $0x180] sm:$0xff] }
 0x1d4   :  { %v15302_v57 = vsub.f32 %v15192_v50, %v21444_v36  ;;  %10282 = vmatpush3.msra.mxu0 %v15058_v25  ;;  %v21446_v36 = vand.u32 4294901760, %v15127_v46  ;;  %v21448_v5 = vand.u32 4294901760, %v15063_v28  ;;  %v21449_v32 = vand.u32 4294901760, %v15224_v56  ;;  %v9798_v28 = vpop.f32.mrf.mxu1  ;;  %4061 = vmatprep.mubr.f32.mxu0 %v14413_v31 }
 0x1d5   :  { %10329 = vmatprep.subr.mxu1 %v21445_v7  ;;  %21447 = vst [vmem:[#allocation41_spill] sm:$0xff] %v15324_v35  ;;  %10283 = vmatprep.subr.mxu0 %v15130_v60  ;;  %v15336_v49 = vsub.f32 %v143_v22, %v15278_v29  ;;  %v9749_v25 = vadd.f32 %v9748_v0, %v9747_v63  ;;  %v172_v22 = vmax.f32 %v15309_v39, 0.0  ;;  %v15358_v0 = vand.u32 4294901760, %v157_v14  ;;  %v21454_v39 = vld [vmem:[#allocation15_spill] sm:$0xff] }
 0x1d6   :  { %v15318_v23 = vsub.f32 %v15127_v46, %v21446_v36  ;;  %10330 = vmatpush3.msra.mxu1 %v21448_v5  ;;  %v15332_v7 = vsub.f32 %v15224_v56, %v21449_v32  ;;  %v21450_v5 = vand.u32 4294901760, %v15096_v59  ;;  %v21451_v32 = vand.u32 4294901760, %v15244_v17  ;;  %4200 = vmatprep.mubr.f32.mxu1 %v21424_v24  ;;  %v9800_v24 = vpop.f32.mrf.mxu1 }
 0x1d7   :  { %v20118_v36 = vand.u32 4294901760, %v15289_v9  ;;  %v9799_v37 = vadd.f32 %v9798_v28, %v9797_v55  ;;  %10284 = vmatpush3.msra.mxu0 %v15104_v18  ;;  %v4321_v63 = vand.u32 4294901760, %v15302_v57  ;;  %v15356_v59 = vsub.f32 %v15177_v16, %v15220_v6  ;;  %21452 = vst [vmem:[#allocation53_spill] sm:$0xff] %v15358_v0  ;;  %v15374_v16 = vld [vmem:[%s19570_s0 + $0x1f8] sm:$0xff]  ;;  %4202 = vmatmul.mubr.f32.gmra.mxu1 %v21427_v12 }
 0x1d8   :  { %10331 = vmatprep.subr.mxu1 %v21450_v5  ;;  %v4326_v60 = vsub.f32 %v15244_v17, %v21451_v32  ;;  %v15361_v5 = vadd.f32 %v9749_v25, %v14869_v1  ;;  %v21453_v32 = vand.u32 4294901760, %v15135_v13  ;;  %4063 = vmatmul.mubr.f32.gmra.mxu0 %v21454_v39  ;;  %v15368_v55 = vsub.f32 %v158_v51, %v15324_v35  ;;  %v9750_v25 = vpop.f32.mrf.mxu0 }
 0x1d9   :  { %v171_v57 = vmax.f32 %v15341_v48, 0.0  ;;  %v15377_v1 = vadd.f32 %v9799_v37, %v15196_v52  ;;  %10285 = vmatprep.subr.mxu0 %v15202_v27  ;;  %v4527_v13 = vand.u32 4294901760, %v15318_v23  ;;  %v4646_v51 = vand.u32 4294901760, %v15332_v7  ;;  %v15399_v7 = vld [vmem:[%s19570_s0 + $0x1f0] sm:$0xff]  ;;  %4207 = vmatprep.mubr.f32.mxu1 %v21439_v26 }
 0x1da   :  { %10332 = vmatpush3.msra.mxu1 %v21453_v32  ;;  %21455 = vst [vmem:[#allocation54_spill] sm:$0xff] %v15368_v55  ;;  %v21456_v28 = vand.u32 4294901760, %v15157_v21  ;;  %10286 = vmatpush3.msra.mxu0 %v15164_v38  ;;  %v4327_v52 = vand.u32 4294901760, %v4326_v60  ;;  %v4335_v37 = vsub.f32 %v15289_v9, %v20118_v36  ;;  %v15394_v23 = vand.u32 4294901760, %v172_v22  ;;  %v9801_v38 = vpop.f32.mrf.mxu1 }
 0x1db   :  { %10333 = vmatprep.subr.mxu1 %v4625_v47  ;;  %v21458_v32 = vand.u32 4294901760, %v15169_v11  ;;  %10287 = vmatprep.subr.mxu0 %v15220_v6  ;;  %v15406_v47 = vsub.f32 %v157_v14, %v15358_v0  ;;  %v186_v36 = vmax.f32 %v15374_v16, 0.0  ;;  %v21459_v27 = vand.u32 4294901760, %v15241_v58 }
 0x1dc   :  { %v15386_v48 = vsub.f32 %v15157_v21, %v21456_v28  ;;  %21457 = vst [vmem:[#allocation59_spill] sm:$0xff] %v15394_v23  ;;  %v9751_v28 = vpop.f32.mrf.mxu0  ;;  %v21460_v18 = vand.u32 4294901760, %v15322_v3  ;;  %v15416_v6 = vand.u32 4294901760, %v171_v57  ;;  %v9802_v60 = vadd.f32 %v9801_v38, %v9800_v24  ;;  %10288 = vmatpush3.msra.mxu0 %v15251_v42  ;;  %4322 = vmatprep.mubr.f32.mxu0 %v4321_v63 }
 0x1dd   :  { %10334 = vmatpush3.msra.mxu1 %v21458_v32  ;;  %v9752_v12 = vadd.f32 %v9751_v28, %v9750_v25  ;;  %v20127_v32 = vand.u32 4294901760, %v15368_v55  ;;  %v21462_v14 = vand.u32 4294901760, %v15336_v49  ;;  %v185_v26 = vmax.f32 %v15399_v7, 0.0  ;;  %4328 = vmatmul.mubr.f32.vlgmr.msra.gmra.mxu0 %v4327_v52 }
 0x1de   :  { %10335 = vmatprep.subr.mxu1 %v21459_v27  ;;  %v4652_v11 = vsub.f32 %v15322_v3, %v21460_v18  ;;  %21461 = vst [vmem:[#allocation27_spill] sm:$0xff] %v15416_v6  ;;  %v20128_v27 = vand.u32 4294901760, %v15297_v8  ;;  %v21463_v18 = vand.u32 4294901760, %v15257_v41  ;;  %v4534_v38 = vand.u32 4294901760, %v15386_v48  ;;  %v9841_v7 = vpop.f32.mrf.mxu0  ;;  %4209 = vmatmul.mubr.f32.gmra.mxu1 %v21443_v34 }
 0x1df   :  { %v4341_v16 = vsub.f32 %v15336_v49, %v21462_v14  ;;  %v15425_v58 = vadd.f32 %v9752_v12, %v14935_v20  ;;  %v21464_v24 = vand.u32 4294901760, %v15236_v53  ;;  %v15434_v25 = vsub.f32 %v172_v22, %v15394_v23  ;;  %v9803_v22 = vpop.f32.mrf.mxu1  ;;  %10369 = vmatprep.subr.mxu0 %v14658_v30  ;;  %4214 = vmatprep.mubr.f32.mxu1 %v14413_v31 }
 0x1e0   :  { %10336 = vmatpush3.msra.mxu1 %v21463_v18  ;;  %v15437_v28 = vadd.f32 %v9802_v60, %v15281_v54  ;;  %v21466_v20 = vand.u32 4294901760, %v15265_v61  ;;  %v4336_v41 = vand.u32 4294901760, %v4335_v37  ;;  %v21467_v52 = vand.u32 4294901760, %v15356_v59  ;;  %v15451_v54 = vld [vmem:[%s19570_s0 + $0x268] sm:$0xff]  ;;  %v9842_v60 = vpop.f32.mrf.mxu0  ;;  %10370 = vmatpush3.msra.mxu0 %v14667_v10 }
 0x1e1   :  { %v4540_v63 = vsub.f32 %v15236_v53, %v21464_v24  ;;  %21465 = vst [vmem:[#allocation62_spill] sm:$0xff] %v15434_v25  ;;  %v20135_v12 = vand.u32 4294901760, %v15406_v47  ;;  %v15446_v14 = vand.u32 4294901760, %v186_v36  ;;  %v4653_v34 = vand.u32 4294901760, %v4652_v11  ;;  %v9804_v11 = vpop.f32.mrf.mxu1  ;;  %10371 = vmatprep.subr.mxu0 %v14675_v43 }
 0x1e2   :  { %10337 = vmatprep.subr.mxu1 %v21466_v20  ;;  %v4659_v48 = vsub.f32 %v15356_v59, %v21467_v52  ;;  %v4350_v61 = vsub.f32 %v15368_v55, %v20127_v32  ;;  %v15458_v37 = vsub.f32 %v171_v57, %v15416_v6  ;;  %v4342_v18 = vand.u32 4294901760, %v4341_v16  ;;  %4337 = vmatprep.mubr.f32.mxu0 %v4336_v41 }
 0x1e3   :  { %21468 = vst [vmem:[#allocation63_spill] sm:$0xff] %v15446_v14  ;;  %10338 = vmatpush3.msra.mxu1 %v4527_v13  ;;  %v4547_v24 = vsub.f32 %v15297_v8, %v20128_v27  ;;  %v15464_v20 = vand.u32 4294901760, %v185_v26  ;;  %v15469_v13 = vld [vmem:[%s19570_s0 + $0x260] sm:$0xff]  ;;  %v9843_v52 = vadd.f32 %v9842_v60, %v9841_v7  ;;  %v4541_v57 = vand.u32 4294901760, %v4540_v63  ;;  %10372 = vmatpush3.msra.mxu0 %v14685_v2  ;;  %v101_v60 = vld [vmem:[%s19570_s0 + $0x2d0] sm:$0xff] }
 0x1e4   :  { %21469 = vst [vmem:[#allocation65_spill] sm:$0xff] %v15458_v37  ;;  %10339 = vmatprep.subr.mxu1 %v4646_v51  ;;  %v20133_v51 = vand.u32 4294901760, %v15434_v25  ;;  %v200_v16 = vmax.f32 %v15451_v54, 0.0  ;;  %v9805_v32 = vadd.f32 %v9804_v11, %v9803_v22  ;;  %v4660_v27 = vand.u32 4294901760, %v4659_v48  ;;  %4216 = vmatmul.mubr.f32.gmra.mxu1 %v21454_v39  ;;  %v9806_v48 = vpop.f32.mrf.mxu1  ;;  %v9844_v39 = vpop.f32.mrf.mxu0 }
 0x1e5   :  { %21470 = vst [vmem:[#allocation67_spill] sm:$0xff] %v15464_v20  ;;  %10340 = vmatpush3.msra.mxu1 %v4534_v38  ;;  %v4356_v42 = vsub.f32 %v15406_v47, %v20135_v12  ;;  %v15479_v55 = vsub.f32 %v186_v36, %v15446_v14  ;;  %v15482_v7 = vadd.f32 %v9843_v52, %v15018_v62  ;;  %v4351_v31 = vand.u32 4294901760, %v4350_v61  ;;  %v102_v62 = vld [vmem:[%s19570_s0 + $0x2d8] sm:$0xff]  ;;  %v21479_v12 = vld [vmem:[#allocation40_spill] sm:$0xff] }
 0x1e6   :  { %v20134_v63 = vand.u32 4294901760, %v15458_v37  ;;  %v199_v38 = vmax.f32 %v15469_v13, 0.0  ;;  %v15489_v41 = vadd.f32 %v9805_v32, %v15361_v5  ;;  %4343 = vmatmul.mubr.f32.gmra.mxu0 %v4342_v18  ;;  %10341 = vmatprep.subr.mxu1 %v4653_v34  ;;  %v4548_v36 = vand.u32 4294901760, %v4547_v24  ;;  %v9807_v22 = vpop.f32.mrf.mxu1  ;;  %v21474_v34 = vld [vmem:[#allocation55_spill] sm:$0xff]  ;;  %v9845_v24 = vpop.f32.mrf.mxu0 }
 0x1e7   :  { %21471 = vst [vmem:[#allocation70_spill] sm:$0xff] %v15479_v55  ;;  %v15492_v54 = vsub.f32 %v185_v26, %v15464_v20  ;;  %10373 = vmatprep.subr.mxu0 %v14712_v19  ;;  %10342 = vmatpush3.msra.mxu1 %v4541_v57  ;;  %v4365_v5 = vsub.f32 %v15434_v25, %v20133_v51  ;;  %v15501_v32 = vand.u32 4294901760, %v200_v16  ;;  %v4357_v26 = vand.u32 4294901760, %v4356_v42  ;;  %v21475_v13 = vld [vmem:[#allocation7_spill] sm:$0xff]  ;;  %v21485_v42 = vld [vmem:[#allocation50_spill] sm:$0xff]  ;;  %v21488_v25 = vld [vmem:[#allocation13_spill] sm:$0xff] }
 0x1e8   :  { %10374 = vmatpush3.msra.mxu0 %v21474_v34  ;;  %10343 = vmatprep.subr.mxu1 %v4660_v27  ;;  %v20138_v61 = vand.u32 4294901760, %v15479_v55  ;;  %v9808_v18 = vadd.f32 %v9807_v22, %v9806_v48  ;;  %v4371_v11 = vsub.f32 %v15458_v37, %v20134_v63  ;;  %v15512_v52 = vand.u32 4294901760, %v199_v38  ;;  %v21477_v48 = vld [vmem:[#allocation30_spill] sm:$0xff] }
 0x1e9   :  { %21472 = vst [vmem:[#allocation18_spill] sm:$0xff] %v15492_v54  ;;  %21473 = vst [vmem:[#allocation32_spill] sm:$0xff] %v15501_v32  ;;  %10375 = vmatprep.subr.mxu0 %v21475_v13  ;;  %4352 = vmatprep.mubr.f32.mxu0 %v4351_v31  ;;  %v214_v57 = vmax.f32 %v102_v62, 0.0  ;;  %v9846_v27 = vadd.f32 %v9845_v24, %v9844_v39  ;;  %v4366_v31 = vand.u32 4294901760, %v4365_v5  ;;  %v213_v63 = vmax.f32 %v101_v60, 0.0  ;;  %v21480_v39 = vld [vmem:[#allocation38_spill] sm:$0xff]  ;;  %v9847_v5 = vpop.f32.mrf.mxu0 }
 0x1ea   :  { %21476 = vst [vmem:[#allocation2_spill] sm:$0xff] %v15512_v52  ;;  %10344 = vmatpush3.msra.mxu1 %v4548_v36  ;;  %4663 = vmatprep.mubr.f32.mxu1 %v15137_v4  ;;  %v15517_v51 = vadd.f32 %v9808_v18, %v15425_v58  ;;  %v15522_v22 = vsub.f32 %v200_v16, %v15501_v32  ;;  %v9897_v36 = vpop.f32.mrf.mxu1  ;;  %v116_v18 = vld [vmem:[%s19570_s0 + $0x348] sm:$0xff]  ;;  %v21481_v24 = vld [vmem:[#allocation17_spill] sm:$0xff]  ;;  %v21482_v16 = vld [vmem:[#allocation56_spill] sm:$0xff]  ;;  %v4372_v60 = vand.u32 4294901760, %v4371_v11 }
 0x1eb   :  { %10376 = vmatpush3.msra.mxu0 %v21477_v48  ;;  %4665 = vmatmul.mubr.f32.vlgmr.msra.gmra.mxu1 %v15180_v45  ;;  %v15525_v62 = vadd.f32 %v9846_v27, %v21479_v12  ;;  %v4380_v58 = vsub.f32 %v15479_v55, %v20138_v61  ;;  %v15537_v12 = vsub.f32 %v199_v38, %v15512_v52  ;;  %v21486_v45 = vld [vmem:[#allocation22_spill] sm:$0xff]  ;;  %v21487_v61 = vand.u32 4294901760, %v15492_v54  ;;  %v9848_v37 = vpop.f32.mrf.mxu0  ;;  %v21493_v38 = vld [vmem:[#allocation23_spill] sm:$0xff] }
 0x1ec   :  { %21478 = vst [vmem:[#allocation15_spill] sm:$0xff] %v15522_v22  ;;  %4358 = vmatmul.mubr.f32.gmra.mxu0 %v4357_v26  ;;  %10377 = vmatprep.subr.mxu0 %v21480_v39  ;;  %v15539_v26 = vand.u32 4294901760, %v214_v57  ;;  %v9898_v27 = vpop.f32.mrf.mxu1  ;;  %v115_v55 = vld [vmem:[%s19570_s0 + $0x340] sm:$0xff]  ;;  %v21491_v39 = vld [vmem:[#allocation31_spill] sm:$0xff] }
 0x1ed   :  { %10425 = vmatprep.subr.mxu1 %v21481_v24  ;;  %10378 = vmatpush3.msra.mxu0 %v21482_v16  ;;  %21483 = vst [vmem:[#allocation55_spill] sm:$0xff] %v15537_v12  ;;  %v4386_v4 = vsub.f32 %v15492_v54, %v21487_v61  ;;  %v9899_v11 = vadd.f32 %v9898_v27, %v9897_v36  ;;  %v15551_v16 = vand.u32 4294901760, %v213_v63  ;;  %v4381_v61 = vand.u32 4294901760, %v4380_v58 }
 0x1ee   :  { %21484 = vst [vmem:[#allocation7_spill] sm:$0xff] %v15539_v26  ;;  %10426 = vmatpush3.msra.mxu1 %v21485_v42  ;;  %10379 = vmatprep.subr.mxu0 %v21486_v45  ;;  %v228_v42 = vmax.f32 %v116_v18, 0.0  ;;  %v9849_v24 = vadd.f32 %v9848_v37, %v9847_v5  ;;  %v21490_v45 = vld [vmem:[#allocation45_spill] sm:$0xff]  ;;  %v227_v27 = vmax.f32 %v115_v55, 0.0  ;;  %v9850_v37 = vpop.f32.mrf.mxu0  ;;  %v21494_v5 = vld [vmem:[#allocation47_spill] sm:$0xff]  ;;  %v9900_v58 = vpop.f32.mrf.mxu1 }
 0x1ef   :  { %10427 = vmatprep.subr.mxu1 %v21488_v25  ;;  %4367 = vmatprep.mubr.f32.mxu0 %v4366_v31  ;;  %21489 = vst [vmem:[#allocation30_spill] sm:$0xff] %v15551_v16  ;;  %v15556_v54 = vadd.f32 %v9899_v11, %v15482_v7  ;;  %v15561_v31 = vsub.f32 %v214_v57, %v15539_v26  ;;  %v21496_v7 = vld [vmem:[#allocation5_spill] sm:$0xff]  ;;  %v4387_v11 = vand.u32 4294901760, %v4386_v4  ;;  %v21502_v4 = vand.u32 4294901760, %v15537_v12 }
 0x1f0   :  { %4670 = vmatprep.mubr.f32.mxu1 %v15246_v40  ;;  %10380 = vmatpush3.msra.mxu0 %v21490_v45  ;;  %v2776_v18 = vadd.f32 %v9849_v24, %v21493_v38  ;;  %v21495_v40 = vld [vmem:[#allocation57_spill] sm:$0xff]  ;;  %v15572_v57 = vsub.f32 %v213_v63, %v15551_v16  ;;  %v15574_v55 = vand.u32 4294901760, %v228_v42  ;;  %v9851_v24 = vpop.f32.mrf.mxu0  ;;  %v21499_v38 = vld [vmem:[#allocation35_spill] sm:$0xff]  ;;  %v15583_v63 = vand.u32 4294901760, %v227_v27  ;;  %v21504_v45 = vld [vmem:[#allocation58_spill] sm:$0xff] }
 0x1f1   :  { %10428 = vmatpush3.msra.mxu1 %v21491_v39  ;;  %4373 = vmatmul.mubr.f32.gmra.mxu0 %v4372_v60  ;;  %21492 = vst [vmem:[#allocation40_spill] sm:$0xff] %v15561_v31  ;;  %v21497_v60 = vand.u32 4294901760, %v15522_v22  ;;  %v9901_v39 = vpop.f32.mrf.mxu1 }
 0x1f2   :  { %4672 = vmatmul.mubr.f32.gmra.mxu1 %v15278_v29  ;;  %10381 = vmatprep.subr.mxu0 %v21494_v5  ;;  %21498 = vst [vmem:[#allocation13_spill] sm:$0xff] %v15572_v57  ;;  %v21500_v29 = vld [vmem:[#allocation48_spill] sm:$0xff]  ;;  %v9852_v5 = vadd.f32 %v9851_v24, %v9850_v37  ;;  %21503 = vst [vmem:[#allocation23_spill] sm:$0xff] %v15583_v63  ;;  %v21505_v37 = vld [vmem:[#allocation39_spill] sm:$0xff] }
 0x1f3   :  { %10429 = vmatprep.subr.mxu1 %v21495_v40  ;;  %10382 = vmatpush3.msra.mxu0 %v21496_v7  ;;  %v4395_v36 = vsub.f32 %v15522_v22, %v21497_v60  ;;  %v21501_v40 = vld [vmem:[#allocation21_spill] sm:$0xff]  ;;  %v4401_v7 = vsub.f32 %v15537_v12, %v21502_v4  ;;  %v9902_v22 = vadd.f32 %v9901_v39, %v9900_v58  ;;  %v9853_v60 = vpop.f32.mrf.mxu0  ;;  %v9903_v58 = vpop.f32.mrf.mxu1 }
 0x1f4   :  { %10430 = vmatpush3.msra.mxu1 %v21499_v38  ;;  %10383 = vmatprep.subr.mxu0 %v21500_v29  ;;  %v2783_v29 = vadd.f32 %v9852_v5, %v15292_v15  ;;  %v21507_v39 = vld [vmem:[#allocation25_spill] sm:$0xff]  ;;  %v21509_v15 = vld [vmem:[#allocation14_spill] sm:$0xff] }
 0x1f5   :  { %10431 = vmatprep.subr.mxu1 %v21501_v40  ;;  %4382 = vmatprep.mubr.f32.mxu0 %v4381_v61  ;;  %v4396_v24 = vand.u32 4294901760, %v4395_v36  ;;  %v15591_v40 = vsub.f32 %v228_v42, %v15574_v55  ;;  %v15594_v4 = vadd.f32 %v9902_v22, %v15525_v62  ;;  %v4402_v5 = vand.u32 4294901760, %v4401_v7  ;;  %v9854_v22 = vpop.f32.mrf.mxu0  ;;  %v21511_v62 = vld [vmem:[#allocation51_spill] sm:$0xff]  ;;  %v21512_v61 = vld [vmem:[#allocation20_spill] sm:$0xff]  ;;  %v9904_v12 = vpop.f32.mrf.mxu1 }
 0x1f6   :  { %4677 = vmatprep.mubr.f32.mxu1 %v15324_v35  ;;  %10384 = vmatpush3.msra.mxu0 %v21504_v45  ;;  %v21508_v35 = vld [vmem:[#allocation28_spill] sm:$0xff]  ;;  %v21510_v36 = vand.u32 4294901760, %v15561_v31  ;;  %v15604_v42 = vsub.f32 %v227_v27, %v15583_v63  ;;  %v21515_v27 = vld [vmem:[#allocation3_spill] sm:$0xff] }
 0x1f7   :  { %10432 = vmatpush3.msra.mxu1 %v21505_v37  ;;  %4388 = vmatmul.mubr.f32.gmra.mxu0 %v4387_v11  ;;  %21506 = vst [vmem:[#allocation35_spill] sm:$0xff] %v15591_v40 }
 0x1f8   :  { %4679 = vmatmul.mubr.f32.gmra.mxu1 %v15358_v0  ;;  %10385 = vmatprep.subr.mxu0 %v21507_v39  ;;  %v4410_v11 = vsub.f32 %v15561_v31, %v21510_v36  ;;  %v9855_v0 = vadd.f32 %v9854_v22, %v9853_v60  ;;  %v21513_v39 = vld [vmem:[#allocation8_spill] sm:$0xff]  ;;  %v9905_v36 = vadd.f32 %v9904_v12, %v9903_v58  ;;  %v9906_v12 = vpop.f32.mrf.mxu1  ;;  %v21518_v58 = vld [vmem:[#allocation42_spill] sm:$0xff] }
 0x1f9   :  { %10433 = vmatprep.subr.mxu1 %v21508_v35  ;;  %10386 = vmatpush3.msra.mxu0 %v21509_v15  ;;  %v21514_v15 = vand.u32 4294901760, %v15572_v57  ;;  %v21519_v35 = vld [vmem:[#allocation69_spill] sm:$0xff] }
 0x1fa   :  { %10434 = vmatpush3.msra.mxu1 %v21511_v62  ;;  %10387 = vmatprep.subr.mxu0 %v21512_v61  ;;  %v2790_v31 = vadd.f32 %v9855_v0, %v15377_v1  ;;  %v21516_v62 = vld [vmem:[#allocation61_spill] sm:$0xff]  ;;  %v4411_v60 = vand.u32 4294901760, %v4410_v11  ;;  %v21520_v0 = vand.u32 4294901760, %v15591_v40  ;;  %v21521_v11 = vld [vmem:[#allocation24_spill] sm:$0xff]  ;;  %v9907_v22 = vpop.f32.mrf.mxu1 }
 0x1fb   :  { %10435 = vmatprep.subr.mxu1 %v21513_v39  ;;  %4397 = vmatprep.mubr.f32.mxu0 %v4396_v24  ;;  %v4416_v7 = vsub.f32 %v15572_v57, %v21514_v15  ;;  %v15618_v24 = vadd.f32 %v9905_v36, %v2776_v18  ;;  %v9856_v39 = vpop.f32.mrf.mxu0  ;;  %v21517_v15 = vld [vmem:[#allocation4_spill] sm:$0xff]  ;;  %v21522_v18 = vld [vmem:[#allocation34_spill] sm:$0xff]  ;;  %v21524_v57 = vand.u32 4294901760, %v15604_v42 }
 0x1fc   :  { %4684 = vmatprep.mubr.f32.mxu1 %v15394_v23  ;;  %10388 = vmatpush3.msra.mxu0 %v21515_v27  ;;  %v4425_v1 = vsub.f32 %v15591_v40, %v21520_v0  ;;  %v21525_v0 = vld [vmem:[#allocation49_spill] sm:$0xff] }
 0x1fd   :  { %10436 = vmatpush3.msra.mxu1 %v21516_v62  ;;  %4403 = vmatmul.mubr.f32.gmra.mxu0 %v4402_v5  ;;  %v4417_v23 = vand.u32 4294901760, %v4416_v7  ;;  %v9857_v5 = vpop.f32.mrf.mxu0 }
 0x1fe   :  { %4686 = vmatmul.mubr.f32.gmra.mxu1 %v15416_v6  ;;  %10389 = vmatprep.subr.mxu0 %v21517_v15  ;;  %v9858_v36 = vadd.f32 %v9857_v5, %v9856_v39  ;;  %v21523_v6 = vld [vmem:[#allocation43_spill] sm:$0xff]  ;;  %v4426_v40 = vand.u32 4294901760, %v4425_v1 }
 0x1ff   :  { %10437 = vmatprep.subr.mxu1 %v21518_v58  ;;  %10390 = vmatpush3.msra.mxu0 %v21519_v35  ;;  %v4431_v58 = vsub.f32 %v15604_v42, %v21524_v57  ;;  %v9908_v35 = vadd.f32 %v9907_v22, %v9906_v12  ;;  %v9859_v5 = vpop.f32.mrf.mxu0  ;;  %v21526_v57 = vld [vmem:[#allocation12_spill] sm:$0xff] }
 0x200   :  { %10438 = vmatpush3.msra.mxu1 %v21521_v11  ;;  %10391 = vmatprep.subr.mxu0 %v21522_v18  ;;  %v2797_v7 = vadd.f32 %v9858_v36, %v15437_v28  ;;  %v21529_v36 = vld [vmem:[#allocation66_spill] sm:$0xff] }
 0x201   :  { %10439 = vmatprep.subr.mxu1 %v21523_v6  ;;  %4412 = vmatprep.mubr.f32.mxu0 %v4411_v60  ;;  %v15637_v39 = vadd.f32 %v9908_v35, %v2783_v29  ;;  %v9909_v60 = vpop.f32.mrf.mxu1  ;;  %v4432_v22 = vand.u32 4294901760, %v4431_v58  ;;  %v9860_v12 = vpop.f32.mrf.mxu0  ;;  %v21528_v29 = vld [vmem:[#allocation64_spill] sm:$0xff] }
 0x202   :  { %4691 = vmatprep.mubr.f32.mxu1 %v15446_v14  ;;  %10392 = vmatpush3.msra.mxu0 %v15056_v33  ;;  %v21527_v14 = vld [vmem:[#allocation9_spill] sm:$0xff] }
 0x203   :  { %10440 = vmatpush3.msra.mxu1 %v21525_v0  ;;  %4418 = vmatmul.mubr.f32.gmra.mxu0 %v4417_v23  ;;  %v9861_v23 = vadd.f32 %v9860_v12, %v9859_v5  ;;  %v9910_v28 = vpop.f32.mrf.mxu1  ;;  %v21530_v12 = vld [vmem:[#allocation68_spill] sm:$0xff] }
 0x204   :  { %4693 = vmatmul.mubr.f32.gmra.mxu1 %v15464_v20  ;;  %10393 = vmatprep.subr.mxu0 %v15151_v44  ;;  %v9911_v35 = vadd.f32 %v9910_v28, %v9909_v60  ;;  %v21531_v60 = vld [vmem:[#allocation33_spill] sm:$0xff] }
 0x205   :  { %10441 = vmatprep.subr.mxu1 %v21526_v57  ;;  %10394 = vmatpush3.msra.mxu0 %v15127_v46  ;;  %v2804_v1 = vadd.f32 %v9861_v23, %v15489_v41 }
 0x206   :  { %10442 = vmatpush3.msra.mxu1 %v21527_v14  ;;  %10395 = vmatprep.subr.mxu0 %v15224_v56  ;;  %v15650_v58 = vadd.f32 %v9911_v35, %v2790_v31  ;;  %v9862_v20 = vpop.f32.mrf.mxu0  ;;  %v9912_v5 = vpop.f32.mrf.mxu1  ;;  %v21533_v35 = vld [vmem:[#allocation19_spill] sm:$0xff] }
 0x207   :  { %10443 = vmatprep.subr.mxu1 %v21528_v29  ;;  %4427 = vmatprep.mubr.f32.mxu0 %v4426_v40 }
 0x208   :  { %4698 = vmatprep.mubr.f32.mxu1 %v15501_v32  ;;  %10396 = vmatpush3.msra.mxu0 %v15157_v21  ;;  %v9863_v40 = vpop.f32.mrf.mxu0  ;;  %v9913_v23 = vpop.f32.mrf.mxu1 }
 0x209   :  { %10444 = vmatpush3.msra.mxu1 %v21529_v36  ;;  %4433 = vmatmul.mubr.f32.gmra.mxu0 %v4432_v22  ;;  %v9864_v41 = vadd.f32 %v9863_v40, %v9862_v20  ;;  %v21532_v22 = vld [vmem:[#allocation52_spill] sm:$0xff]  ;;  %v9914_v31 = vadd.f32 %v9913_v23, %v9912_v5  ;;  %v21534_v20 = vld [vmem:[#allocation11_spill] sm:$0xff]  ;;  %v21535_v5 = vand.u32 4294901760, %v14658_v30  ;;  %v21536_v23 = vld [vmem:[#allocation6_spill] sm:$0xff] }
 0x20a   :  { %4700 = vmatmul.mubr.f32.gmra.mxu1 %v15512_v52  ;;  %10397 = vmatprep.subr.mxu0 %v15322_v3  ;;  %v21540_v30 = vld [vmem:[#allocation10_spill] sm:$0xff] }
 0x20b   :  { %10445 = vmatprep.subr.mxu1 %v21530_v12  ;;  %10398 = vmatpush3.msra.mxu0 %v15236_v53  ;;  %v2811_v28 = vadd.f32 %v9864_v41, %v15517_v51  ;;  %v15665_v52 = vadd.f32 %v9914_v31, %v2797_v7  ;;  %v21537_v51 = vand.u32 4294901760, %v14667_v10  ;;  %v21538_v41 = vld [vmem:[#allocation16_spill] sm:$0xff]  ;;  %v21539_v31 = vand.u32 4294901760, %v14675_v43 }
 0x20c   :  { %10446 = vmatpush3.msra.mxu1 %v21531_v60  ;;  %10399 = vmatprep.subr.mxu0 %v15356_v59  ;;  %v9953_v32 = vpop.f32.mrf.mxu0  ;;  %v9915_v40 = vpop.f32.mrf.mxu1  ;;  %v21542_v43 = vld [vmem:[#allocation44_spill] sm:$0xff] }
 0x20d   :  { %10447 = vmatprep.subr.mxu1 %v21532_v22  ;;  %4705 = vmatprep.mubr.f32.mxu1 %v15539_v26 }
 0x20e   :  { %10400 = vmatpush3.msra.mxu0 %v15297_v8  ;;  %4849 = vmatprep.mubr.f32.mxu0 %v15192_v50  ;;  %v9954_v26 = vpop.f32.mrf.mxu0 }
 0x20f   :  { %10448 = vmatpush3.msra.mxu1 %v21533_v35  ;;  %4852 = vmatmul.mubr.f32.vlgmr.msra.gmra.mxu0 %v15244_v17  ;;  %v9916_v35 = vpop.f32.mrf.mxu1  ;;  %v9955_v7 = vadd.f32 %v9954_v26, %v9953_v32 }
 0x210   :  { %4707 = vmatmul.mubr.f32.gmra.mxu1 %v15551_v16  ;;  %10449 = vmatprep.subr.mxu1 %v21534_v20  ;;  %v9917_v16 = vadd.f32 %v9916_v35, %v9915_v40  ;;  %v21543_v35 = vand.u32 4294901760, %v14712_v19  ;;  %v21544_v40 = vld [vmem:[#allocation46_spill] sm:$0xff]  ;;  %v21550_v19 = vand.u32 4294901760, %v15192_v50  ;;  %v21556_v50 = vld [vmem:[#allocation56_spill] sm:$0xff] }
 0x211   :  { %10481 = vmatprep.subr.mxu0 %v21535_v5  ;;  %10450 = vmatpush3.msra.mxu1 %v21536_v23  ;;  %v3076_v5 = vadd.f32 %v9955_v7, %v15556_v54  ;;  %v21541_v23 = vand.u32 4294901760, %v14685_v2  ;;  %v21545_v54 = vand.u32 4294901760, %v21474_v34  ;;  %v21546_v2 = vld [vmem:[#allocation60_spill] sm:$0xff]  ;;  %v21548_v7 = vld [vmem:[#allocation54_spill] sm:$0xff]  ;;  %v21551_v34 = vand.u32 4294901760, %v21477_v48 }
 0x212   :  { %10482 = vmatpush3.msra.mxu0 %v21537_v51  ;;  %10451 = vmatprep.subr.mxu1 %v21538_v41  ;;  %v15684_v10 = vadd.f32 %v9917_v16, %v2804_v1  ;;  %v21547_v1 = vand.u32 4294901760, %v21475_v13  ;;  %v21558_v48 = vld [vmem:[#allocation50_spill] sm:$0xff] }
 0x213   :  { %10483 = vmatprep.subr.mxu0 %v21539_v31  ;;  %4712 = vmatprep.mubr.f32.mxu1 %v15574_v55  ;;  %v9918_v32 = vpop.f32.mrf.mxu1 }
 0x214   :  { %4858 = vmatprep.mubr.f32.mxu0 %v15289_v9  ;;  %10452 = vmatpush3.msra.mxu1 %v21540_v30  ;;  %v9956_v26 = vpop.f32.mrf.mxu0 }
 0x215   :  { %10484 = vmatpush3.msra.mxu0 %v21541_v23  ;;  %4714 = vmatmul.mubr.f32.gmra.mxu1 %v15583_v63  ;;  %v9919_v51 = vpop.f32.mrf.mxu1  ;;  %v21549_v63 = vld [vmem:[#allocation29_spill] sm:$0xff] }
 0x216   :  { %4861 = vmatmul.mubr.f32.gmra.mxu0 %v15336_v49  ;;  %10453 = vmatprep.subr.mxu1 %v21542_v43  ;;  %v9920_v23 = vadd.f32 %v9919_v51, %v9918_v32  ;;  %v9957_v16 = vpop.f32.mrf.mxu0  ;;  %v21553_v51 = vld [vmem:[#allocation38_spill] sm:$0xff] }
 0x217   :  { %10485 = vmatprep.subr.mxu0 %v21543_v35  ;;  %10454 = vmatpush3.msra.mxu1 %v21544_v40  ;;  %v9958_v31 = vadd.f32 %v9957_v16, %v9956_v26  ;;  %v21554_v26 = vand.u32 4294901760, %v21553_v51  ;;  %v21562_v51 = vand.u32 4294901760, %v15289_v9 }
 0x218   :  { %10486 = vmatpush3.msra.mxu0 %v21545_v54  ;;  %10455 = vmatprep.subr.mxu1 %v21546_v2  ;;  %v15700_v35 = vadd.f32 %v9920_v23, %v2811_v28  ;;  %v21552_v54 = vand.u32 4294901760, %v15244_v17  ;;  %v21557_v28 = vand.u32 4294901760, %v21556_v50 }
 0x219   :  { %10487 = vmatprep.subr.mxu0 %v21547_v1  ;;  %4867 = vmatprep.mubr.f32.mxu0 %v21548_v7  ;;  %v3091_v32 = vadd.f32 %v9958_v31, %v15594_v4  ;;  %v10009_v13 = vpop.f32.mrf.mxu1  ;;  %v21555_v1 = vld [vmem:[#allocation17_spill] sm:$0xff]  ;;  %v21561_v31 = vld [vmem:[#allocation62_spill] sm:$0xff] }
 0x21a   :  { %10456 = vmatpush3.msra.mxu1 %v21549_v63  ;;  %5019 = vmatprep.mubr.f32.mxu1 %v21550_v19  ;;  %v9959_v16 = vpop.f32.mrf.mxu0  ;;  %v21559_v19 = vld [vmem:[#allocation22_spill] sm:$0xff] }
 0x21b   :  { %10488 = vmatpush3.msra.mxu0 %v21551_v34  ;;  %5023 = vmatmul.mubr.f32.vlgmr.msra.gmra.mxu1 %v21552_v54  ;;  %v10010_v23 = vpop.f32.mrf.mxu1  ;;  %v21560_v17 = vand.u32 4294901760, %v21559_v19 }
 0x21c   :  { %4870 = vmatmul.mubr.f32.gmra.mxu0 %v15406_v47  ;;  %10489 = vmatprep.subr.mxu0 %v21554_v26  ;;  %v9960_v34 = vpop.f32.mrf.mxu0  ;;  %v10011_v4 = vadd.f32 %v10010_v23, %v10009_v13  ;;  %v21563_v26 = vld [vmem:[#allocation45_spill] sm:$0xff]  ;;  %v21568_v23 = vld [vmem:[#allocation47_spill] sm:$0xff] }
 0x21d   :  { %10537 = vmatprep.subr.mxu1 %v21555_v1  ;;  %10490 = vmatpush3.msra.mxu0 %v21557_v28  ;;  %v9961_v54 = vadd.f32 %v9960_v34, %v9959_v16  ;;  %v21564_v1 = vand.u32 4294901760, %v21563_v26  ;;  %v21565_v28 = vld [vmem:[#allocation31_spill] sm:$0xff]  ;;  %v21569_v16 = vand.u32 4294901760, %v21568_v23  ;;  %v21571_v34 = vld [vmem:[#allocation5_spill] sm:$0xff]  ;;  %v21578_v23 = vand.u32 4294901760, %v21504_v45  ;;  %v21584_v45 = vld [vmem:[#allocation14_spill] sm:$0xff] }
 0x21e   :  { %10538 = vmatpush3.msra.mxu1 %v21558_v48  ;;  %10491 = vmatprep.subr.mxu0 %v21560_v17  ;;  %v15722_v50 = vadd.f32 %v10011_v4, %v3076_v5  ;;  %v21566_v48 = vld [vmem:[#allocation65_spill] sm:$0xff]  ;;  %v21573_v4 = vld [vmem:[#allocation48_spill] sm:$0xff] }
 0x21f   :  { %10539 = vmatprep.subr.mxu1 %v21488_v25  ;;  %4876 = vmatprep.mubr.f32.mxu0 %v21561_v31  ;;  %v3106_v19 = vadd.f32 %v9961_v54, %v15618_v24  ;;  %v9962_v13 = vpop.f32.mrf.mxu0  ;;  %v21567_v25 = vand.u32 4294901760, %v15336_v49  ;;  %v21570_v17 = vld [vmem:[#allocation57_spill] sm:$0xff]  ;;  %v21574_v26 = vand.u32 4294901760, %v21573_v4  ;;  %v21576_v49 = vld [vmem:[#allocation70_spill] sm:$0xff]  ;;  %v21585_v4 = vand.u32 4294901760, %v21584_v45 }
 0x220   :  { %5030 = vmatprep.mubr.f32.mxu1 %v21562_v51  ;;  %10492 = vmatpush3.msra.mxu0 %v21564_v1  ;;  %v10012_v9 = vpop.f32.mrf.mxu1  ;;  %v21572_v51 = vand.u32 4294901760, %v21571_v34  ;;  %v21575_v1 = vld [vmem:[#allocation21_spill] sm:$0xff]  ;;  %v21580_v34 = vand.u32 4294901760, %v15406_v47  ;;  %v21589_v47 = vld [vmem:[#allocation15_spill] sm:$0xff] }
 0x221   :  { %10540 = vmatpush3.msra.mxu1 %v21565_v28  ;;  %4879 = vmatmul.mubr.f32.gmra.mxu0 %v21566_v48  ;;  %v9963_v5 = vpop.f32.mrf.mxu0 }
 0x222   :  { %5034 = vmatmul.mubr.f32.gmra.mxu1 %v21567_v25  ;;  %10493 = vmatprep.subr.mxu0 %v21569_v16  ;;  %v9964_v24 = vadd.f32 %v9963_v5, %v9962_v13  ;;  %v10013_v54 = vpop.f32.mrf.mxu1  ;;  %v21577_v25 = vand.u32 4294901760, %v21548_v7  ;;  %v21583_v5 = vld [vmem:[#allocation28_spill] sm:$0xff] }
 0x223   :  { %10541 = vmatprep.subr.mxu1 %v21570_v17  ;;  %10494 = vmatpush3.msra.mxu0 %v21572_v51  ;;  %v10014_v28 = vadd.f32 %v10013_v54, %v10012_v9  ;;  %v21581_v51 = vld [vmem:[#allocation25_spill] sm:$0xff]  ;;  %v21588_v54 = vld [vmem:[#allocation8_spill] sm:$0xff] }
 0x224   :  { %10542 = vmatpush3.msra.mxu1 %v21499_v38  ;;  %10495 = vmatprep.subr.mxu0 %v21574_v26  ;;  %v3121_v16 = vadd.f32 %v9964_v24, %v15637_v39  ;;  %v21579_v38 = vld [vmem:[#allocation18_spill] sm:$0xff]  ;;  %v21582_v9 = vand.u32 4294901760, %v21581_v51  ;;  %v21586_v26 = vld [vmem:[#allocation51_spill] sm:$0xff] }
 0x225   :  { %10543 = vmatprep.subr.mxu1 %v21575_v1  ;;  %4885 = vmatprep.mubr.f32.mxu0 %v21576_v49  ;;  %v15746_v17 = vadd.f32 %v10014_v28, %v3091_v32  ;;  %v9965_v13 = vpop.f32.mrf.mxu0  ;;  %v21590_v28 = vand.u32 4294901760, %v21561_v31 }
 0x226   :  { %5041 = vmatprep.mubr.f32.mxu1 %v21577_v25  ;;  %10496 = vmatpush3.msra.mxu0 %v21578_v23  ;;  %v10015_v7 = vpop.f32.mrf.mxu1  ;;  %v21591_v25 = vand.u32 4294901760, %v21515_v27  ;;  %v394_v23 = vld [vmem:[%s19569_s1 + $0x4f8] sm:$0xff]  ;;  %v21593_v27 = vand.u32 4294901760, %v21566_v48  ;;  %v21599_v48 = vand.u32 4294901760, %v21522_v18  ;;  %v21604_v18 = vand.u32 4294901760, %v15056_v33 }
 0x227   :  { %10544 = vmatpush3.msra.mxu1 %v21505_v37  ;;  %4888 = vmatmul.mubr.f32.gmra.mxu0 %v21579_v38  ;;  %v9966_v39 = vpop.f32.mrf.mxu0  ;;  %v21587_v37 = vand.u32 4294901760, %v21512_v61 }
 0x228   :  { %5045 = vmatmul.mubr.f32.gmra.mxu1 %v21580_v34  ;;  %10497 = vmatprep.subr.mxu0 %v21582_v9  ;;  %v9967_v32 = vadd.f32 %v9966_v39, %v9965_v13  ;;  %v10016_v24 = vpop.f32.mrf.mxu1  ;;  %v21592_v13 = vld [vmem:[#allocation55_spill] sm:$0xff]  ;;  %v378_v34 = vld [vmem:[%s19569_s1 + $0x478] sm:$0xff]  ;;  %v21594_v9 = vand.u32 4294901760, %v21517_v15  ;;  %v377_v39 = vld [vmem:[%s19569_s1 + $0x470] sm:$0xff] }
 0x229   :  { %10545 = vmatprep.subr.mxu1 %v21583_v5  ;;  %10498 = vmatpush3.msra.mxu0 %v21585_v4  ;;  %v10017_v1 = vadd.f32 %v10016_v24, %v10015_v7  ;;  %v21595_v7 = vld [vmem:[#allocation42_spill] sm:$0xff]  ;;  %v21596_v5 = vld [vmem:[#allocation69_spill] sm:$0xff]  ;;  %v15787_v4 = vand.u32 4294901760, %v394_v23  ;;  %v15792_v15 = vand.u32 4294901760, %v378_v34 }
 0x22a   :  { %10546 = vmatpush3.msra.mxu1 %v21586_v26  ;;  %10499 = vmatprep.subr.mxu0 %v21587_v37  ;;  %v15768_v61 = vadd.f32 %v9967_v32, %v15650_v58  ;;  %v393_v58 = vld [vmem:[%s19569_s1 + $0x4f0] sm:$0xff]  ;;  %v21597_v45 = vand.u32 4294901760, %v21596_v5 }
 0x22b   :  { %10547 = vmatprep.subr.mxu1 %v21588_v54  ;;  %4894 = vmatprep.mubr.f32.mxu0 %v21589_v47  ;;  %v15775_v31 = vadd.f32 %v10017_v1, %v3106_v19  ;;  %v9968_v51 = vpop.f32.mrf.mxu0  ;;  %21598 = vst [vmem:[#allocation58_spill] sm:$0xff] %v15787_v4  ;;  %21600 = vst [vmem:[#allocation39_spill] sm:$0xff] %v15792_v15  ;;  %v21601_v32 = vld [vmem:[#allocation40_spill] sm:$0xff]  ;;  %v15799_v24 = vand.u32 4294901760, %v393_v58  ;;  %v392_v1 = vld [vmem:[%s19569_s1 + $0x4e8] sm:$0xff]  ;;  %v15819_v33 = vsub.f32 %v394_v23, %v15787_v4 }
 0x22c   :  { %5052 = vmatprep.mubr.f32.mxu1 %v21590_v28  ;;  %10500 = vmatpush3.msra.mxu0 %v21591_v25  ;;  %v15813_v25 = vand.u32 4294901760, %v377_v39  ;;  %v15833_v23 = vand.u32 4294901760, %v392_v1 }
 0x22d   :  { %10548 = vmatpush3.msra.mxu1 %v21516_v62  ;;  %4897 = vmatmul.mubr.f32.gmra.mxu0 %v21592_v13  ;;  %v10018_v62 = vpop.f32.mrf.mxu1  ;;  %v9969_v19 = vpop.f32.mrf.mxu0  ;;  %21602 = vst [vmem:[#allocation20_spill] sm:$0xff] %v15799_v24 }
 0x22e   :  { %5056 = vmatmul.mubr.f32.gmra.mxu1 %v21593_v27  ;;  %10501 = vmatprep.subr.mxu0 %v21594_v9  ;;  %v9970_v26 = vadd.f32 %v9969_v19, %v9968_v51  ;;  %21606 = vst [vmem:[#allocation3_spill] sm:$0xff] %v15813_v25  ;;  %v21607_v9 = vand.u32 4294901760, %v21579_v38  ;;  %21610 = vst [vmem:[#allocation61_spill] sm:$0xff] %v15833_v23 }
 0x22f   :  { %10549 = vmatprep.subr.mxu1 %v21595_v7  ;;  %10502 = vmatpush3.msra.mxu0 %v21597_v45  ;;  %v10019_v37 = vpop.f32.mrf.mxu1  ;;  %v21609_v7 = vand.u32 4294901760, %v15127_v46  ;;  %v15846_v46 = vsub.f32 %v377_v39, %v15813_v25 }
 0x230   :  { %10550 = vmatpush3.msra.mxu1 %v21521_v11  ;;  %10503 = vmatprep.subr.mxu0 %v21599_v48  ;;  %v10020_v54 = vadd.f32 %v10019_v37, %v10018_v62  ;;  %v21603_v11 = vand.u32 4294901760, %v21576_v49  ;;  %v15809_v28 = vadd.f32 %v9970_v26, %v15665_v52  ;;  %v376_v49 = vld [vmem:[%s19569_s1 + $0x468] sm:$0xff]  ;;  %v21608_v52 = vand.u32 4294901760, %v15151_v44 }
 0x231   :  { %10551 = vmatprep.subr.mxu1 %v21523_v6  ;;  %4903 = vmatprep.mubr.f32.mxu0 %v21601_v32  ;;  %v21605_v6 = vld [vmem:[#allocation13_spill] sm:$0xff]  ;;  %v9971_v27 = vpop.f32.mrf.mxu0  ;;  %v21611_v44 = vand.u32 4294901760, %v15224_v56  ;;  %v15841_v38 = vand.u32 4294901760, %v376_v49  ;;  %v21614_v56 = vand.u32 4294901760, %v21589_v47  ;;  %v21615_v48 = vand.u32 4294901760, %v15157_v21 }
 0x232   :  { %5063 = vmatprep.mubr.f32.mxu1 %v21603_v11  ;;  %10504 = vmatpush3.msra.mxu0 %v21604_v18  ;;  %v15821_v51 = vadd.f32 %v10020_v54, %v3121_v16  ;;  %v10021_v62 = vpop.f32.mrf.mxu1  ;;  %v15836_v16 = vsub.f32 %v393_v58, %v15799_v24  ;;  %v391_v58 = vld [vmem:[%s19569_s1 + $0x4e0] sm:$0xff]  ;;  %v390_v47 = vld [vmem:[%s19569_s1 + $0x4d8] sm:$0xff]  ;;  %v15873_v54 = vsub.f32 %v392_v1, %v15833_v23  ;;  %v21617_v18 = vand.u32 4294901760, %v15322_v3  ;;  %v389_v1 = vld [vmem:[%s19569_s1 + $0x4d0] sm:$0xff] }
 0x233   :  { %10552 = vmatpush3.msra.mxu1 %v21525_v0  ;;  %4906 = vmatmul.mubr.f32.gmra.mxu0 %v21605_v6  ;;  %v15828_v0 = vsub.f32 %v378_v34, %v15792_v15  ;;  %v9972_v5 = vpop.f32.mrf.mxu0  ;;  %21612 = vst [vmem:[#allocation4_spill] sm:$0xff] %v15841_v38  ;;  %v374_v21 = vld [vmem:[%s19569_s1 + $0x458] sm:$0xff] }
 0x234   :  { %5067 = vmatmul.mubr.f32.gmra.mxu1 %v21607_v9  ;;  %10505 = vmatprep.subr.mxu0 %v21608_v52  ;;  %v9973_v34 = vadd.f32 %v9972_v5, %v9971_v27  ;;  %v10022_v45 = vpop.f32.mrf.mxu1  ;;  %v20186_v37 = vand.u32 4294901760, %v15836_v16  ;;  %v15883_v27 = vsub.f32 %v376_v49, %v15841_v38  ;;  %v15885_v9 = vand.u32 4294901760, %v391_v58 }
 0x235   :  { %10553 = vmatprep.subr.mxu1 %v21526_v57  ;;  %10506 = vmatpush3.msra.mxu0 %v21609_v7  ;;  %v21613_v57 = vld [vmem:[#allocation35_spill] sm:$0xff]  ;;  %v10023_v19 = vadd.f32 %v10022_v45, %v10021_v62  ;;  %v20187_v39 = vand.u32 4294901760, %v15828_v0  ;;  %v20185_v49 = vand.u32 4294901760, %v15846_v46  ;;  %v21622_v7 = vand.u32 4294901760, %v15356_v59 }
 0x236   :  { %10554 = vmatpush3.msra.mxu1 %v21527_v14  ;;  %10507 = vmatprep.subr.mxu0 %v21611_v44  ;;  %v20188_v14 = vand.u32 4294901760, %v15819_v33  ;;  %v15861_v26 = vadd.f32 %v9973_v34, %v15684_v10  ;;  %21618 = vst [vmem:[#allocation24_spill] sm:$0xff] %v15883_v27  ;;  %21619 = vst [vmem:[#allocation34_spill] sm:$0xff] %v15885_v9  ;;  %v15904_v5 = vand.u32 4294901760, %v390_v47  ;;  %v21625_v45 = vand.u32 4294901760, %v21601_v32  ;;  %v388_v32 = vld [vmem:[%s19569_s1 + $0x4c8] sm:$0xff] }
 0x237   :  { %10555 = vmatprep.subr.mxu1 %v21528_v29  ;;  %4912 = vmatprep.mubr.f32.mxu0 %v21613_v57  ;;  %v375_v29 = vld [vmem:[%s19569_s1 + $0x460] sm:$0xff]  ;;  %v15876_v10 = vadd.f32 %v10023_v19, %v15768_v61  ;;  %v9974_v11 = vpop.f32.mrf.mxu0  ;;  %v21620_v61 = vand.u32 4294901760, %v15236_v53  ;;  %v15911_v53 = vsub.f32 %v15828_v0, %v20187_v39  ;;  %v15921_v59 = vsub.f32 %v15836_v16, %v20186_v37  ;;  %v373_v19 = vld [vmem:[%s19569_s1 + $0x450] sm:$0xff] }
 0x238   :  { %5074 = vmatprep.mubr.f32.mxu1 %v21614_v56  ;;  %10508 = vmatpush3.msra.mxu0 %v21615_v48  ;;  %v10024_v52 = vpop.f32.mrf.mxu1  ;;  %v15898_v3 = vsub.f32 %v15819_v33, %v20188_v14  ;;  %21623 = vst [vmem:[#allocation49_spill] sm:$0xff] %v15904_v5  ;;  %v20189_v56 = vand.u32 4294901760, %v15873_v54 }
 0x239   :  { %10556 = vmatpush3.msra.mxu1 %v21529_v36  ;;  %4915 = vmatmul.mubr.f32.gmra.mxu0 %v15604_v42  ;;  %v21616_v36 = vand.u32 4294901760, %v21592_v13  ;;  %v15893_v13 = vand.u32 4294901760, %v375_v29  ;;  %v9975_v62 = vpop.f32.mrf.mxu0 }
 0x23a   :  { %10509 = vmatprep.subr.mxu0 %v21617_v18  ;;  %10557 = vmatprep.subr.mxu1 %v21530_v12  ;;  %v15906_v12 = vand.u32 4294901760, %v374_v21  ;;  %v9976_v44 = vadd.f32 %v9975_v62, %v9974_v11  ;;  %v10025_v34 = vpop.f32.mrf.mxu1  ;;  %v21627_v11 = vand.u32 4294901760, %v15297_v8  ;;  %v15935_v18 = vsub.f32 %v391_v58, %v15885_v9  ;;  %v21630_v62 = vld [vmem:[#allocation19_spill] sm:$0xff] }
 0x23b   :  { %5078 = vmatmul.mubr.f32.gmra.mxu1 %v21616_v36  ;;  %10510 = vmatpush3.msra.mxu0 %v21620_v61  ;;  %21621 = vst [vmem:[#allocation43_spill] sm:$0xff] %v15893_v13  ;;  %v10026_v48 = vadd.f32 %v10025_v34, %v10024_v52  ;;  %v20190_v36 = vand.u32 4294901760, %v15883_v27  ;;  %v21631_v52 = vld [vmem:[#allocation71_spill] sm:$0xff]  ;;  %v15943_v8 = vsub.f32 %v375_v29, %v15893_v13 }
 0x23c   :  { %10558 = vmatpush3.msra.mxu1 %v21531_v60  ;;  %10511 = vmatprep.subr.mxu0 %v21622_v7  ;;  %21624 = vst [vmem:[#allocation12_spill] sm:$0xff] %v15906_v12  ;;  %v15916_v60 = vand.u32 4294901760, %v389_v1  ;;  %21629 = vst [vmem:[#allocation64_spill] sm:$0xff] %v15935_v18  ;;  %v15938_v61 = vadd.f32 %v9976_v44, %v15700_v35  ;;  %v15949_v34 = vsub.f32 %v15846_v46, %v20185_v49  ;;  %v372_v58 = vld [vmem:[%s19569_s1 + $0x448] sm:$0xff]  ;;  %v387_v49 = vld [vmem:[%s19569_s1 + $0x4c0] sm:$0xff] }
 0x23d   :  { %10559 = vmatprep.subr.mxu1 %v21532_v22  ;;  %5085 = vmatprep.mubr.f32.mxu1 %v21625_v45  ;;  %v21628_v22 = vld [vmem:[#allocation37_spill] sm:$0xff]  ;;  %21632 = vst [vmem:[#allocation66_spill] sm:$0xff] %v15943_v8  ;;  %v15955_v35 = vadd.f32 %v10026_v48, %v15809_v28  ;;  %v10065_v44 = vpop.f32.mrf.mxu0  ;;  %v21633_v45 = vand.u32 4294901760, %v21605_v6  ;;  %v15961_v29 = vsub.f32 %v374_v21, %v15906_v12  ;;  %v21637_v6 = vld [vmem:[#allocation6_spill] sm:$0xff]  ;;  %v15975_v21 = vand.u32 4294901760, %v388_v32 }
 0x23e   :  { %21626 = vst [vmem:[#allocation9_spill] sm:$0xff] %v15916_v60  ;;  %10512 = vmatpush3.msra.mxu0 %v21627_v11  ;;  %5266 = vmatprep.mubr.f32.mxu0 %v21628_v22  ;;  %v15970_v28 = vsub.f32 %v390_v47, %v15904_v5  ;;  %v10027_v48 = vpop.f32.mrf.mxu1  ;;  %v15983_v37 = vsub.f32 %v389_v1, %v15916_v60  ;;  %v15987_v47 = vand.u32 4294901760, %v372_v58  ;;  %v21641_v1 = vand.u32 4294901760, %v21613_v57  ;;  %v386_v57 = vld [vmem:[%s19569_s1 + $0x4b8] sm:$0xff]  ;;  %v21647_v11 = vld [vmem:[#allocation36_spill] sm:$0xff] }
 0x23f   :  { %10560 = vmatpush3.msra.mxu1 %v21630_v62  ;;  %5268 = vmatmul.mubr.f32.vlgmr.msra.gmra.mxu0 %v21631_v52  ;;  %21634 = vst [vmem:[#allocation68_spill] sm:$0xff] %v15961_v29  ;;  %v15964_v62 = vand.u32 4294901760, %v373_v19  ;;  %21638 = vst [vmem:[#allocation11_spill] sm:$0xff] %v15975_v21  ;;  %v10066_v39 = vpop.f32.mrf.mxu0  ;;  %v15999_v7 = vand.u32 4294901760, %v387_v49 }
 0x240   :  { %5089 = vmatmul.mubr.f32.gmra.mxu1 %v21633_v45  ;;  %10561 = vmatprep.subr.mxu1 %v21534_v20  ;;  %21636 = vst [vmem:[#allocation52_spill] sm:$0xff] %v15970_v28  ;;  %v15980_v45 = vsub.f32 %v15873_v54, %v20189_v56  ;;  %21639 = vst [vmem:[#allocation16_spill] sm:$0xff] %v15983_v37  ;;  %v10028_v20 = vpop.f32.mrf.mxu1  ;;  %v10067_v56 = vadd.f32 %v10066_v39, %v10065_v44 }
 0x241   :  { %21635 = vst [vmem:[#allocation33_spill] sm:$0xff] %v15964_v62  ;;  %10593 = vmatprep.subr.mxu0 %v15787_v4  ;;  %10562 = vmatpush3.msra.mxu1 %v21637_v6  ;;  %21640 = vst [vmem:[#allocation10_spill] sm:$0xff] %v15987_v47  ;;  %v15992_v6 = vsub.f32 %v15883_v27, %v20190_v36  ;;  %v21643_v4 = vld [vmem:[#allocation26_spill] sm:$0xff]  ;;  %v16008_v39 = vsub.f32 %v373_v19, %v15964_v62 }
 0x242   :  { %10594 = vmatpush3.msra.mxu0 %v15792_v15  ;;  %10563 = vmatprep.subr.mxu1 %v21538_v41  ;;  %21642 = vst [vmem:[#allocation44_spill] sm:$0xff] %v15999_v7  ;;  %v371_v41 = vld [vmem:[%s19569_s1 + $0x440] sm:$0xff]  ;;  %v10029_v15 = vadd.f32 %v10028_v20, %v10027_v48  ;;  %v16019_v48 = vadd.f32 %v10067_v56, %v15722_v50  ;;  %v21649_v56 = vand.u32 4294901760, %v15935_v18 }
 0x243   :  { %10595 = vmatprep.subr.mxu0 %v15799_v24  ;;  %5096 = vmatprep.mubr.f32.mxu1 %v21641_v1  ;;  %21644 = vst [vmem:[#allocation46_spill] sm:$0xff] %v16008_v39  ;;  %v370_v1 = vld [vmem:[%s19569_s1 + $0x438] sm:$0xff]  ;;  %v16027_v44 = vsub.f32 %v388_v32, %v15975_v21  ;;  %v10030_v14 = vpop.f32.mrf.mxu1  ;;  %v16035_v50 = vsub.f32 %v372_v58, %v15987_v47  ;;  %v16043_v32 = vand.u32 4294901760, %v371_v41 }
 0x244   :  { %5273 = vmatprep.mubr.f32.mxu0 %v21643_v4  ;;  %10564 = vmatpush3.msra.mxu1 %v21540_v30  ;;  %v21645_v30 = vand.u32 4294901760, %v15604_v42  ;;  %v16030_v36 = vadd.f32 %v10029_v15, %v15861_v26  ;;  %v385_v15 = vld [vmem:[%s19569_s1 + $0x4b0] sm:$0xff]  ;;  %v10068_v26 = vpop.f32.mrf.mxu0  ;;  %v16055_v42 = vand.u32 4294901760, %v386_v57  ;;  %v16060_v19 = vsub.f32 %v387_v49, %v15999_v7 }
 0x245   :  { %10596 = vmatpush3.msra.mxu0 %v15813_v25  ;;  %21646 = vst [vmem:[#allocation60_spill] sm:$0xff] %v16027_v44  ;;  %10565 = vmatprep.subr.mxu1 %v21542_v43  ;;  %21648 = vst [vmem:[#allocation54_spill] sm:$0xff] %v16035_v50  ;;  %v21651_v43 = vand.u32 4294901760, %v15943_v8  ;;  %v10031_v20 = vpop.f32.mrf.mxu1 }
 0x246   :  { %5100 = vmatmul.mubr.f32.gmra.mxu1 %v21645_v30  ;;  %5275 = vmatmul.mubr.f32.gmra.mxu0 %v21647_v11  ;;  %v16041_v30 = vsub.f32 %v15935_v18, %v21649_v56  ;;  %21650 = vst [vmem:[#allocation29_spill] sm:$0xff] %v16043_v32  ;;  %21652 = vst [vmem:[#allocation38_spill] sm:$0xff] %v16055_v42  ;;  %v16057_v56 = vand.u32 4294901760, %v370_v1  ;;  %v10069_v49 = vpop.f32.mrf.mxu0  ;;  %v21657_v18 = vld [vmem:[#allocation41_spill] sm:$0xff] }
 0x247   :  { %10597 = vmatprep.subr.mxu0 %v15833_v23  ;;  %10566 = vmatpush3.msra.mxu1 %v21544_v40  ;;  %v16053_v58 = vsub.f32 %v15943_v8, %v21651_v43  ;;  %21654 = vst [vmem:[#allocation56_spill] sm:$0xff] %v16060_v19  ;;  %v21655_v23 = vand.u32 4294901760, %v15970_v28  ;;  %v21656_v43 = vand.u32 4294901760, %v15961_v29  ;;  %v10032_v8 = vadd.f32 %v10031_v20, %v10030_v14 }
 0x248   :  { %21653 = vst [vmem:[#allocation17_spill] sm:$0xff] %v16057_v56  ;;  %10598 = vmatpush3.msra.mxu0 %v15841_v38  ;;  %10567 = vmatprep.subr.mxu1 %v21546_v2  ;;  %v16077_v38 = vand.u32 4294901760, %v385_v15  ;;  %v21659_v2 = vand.u32 4294901760, %v15983_v37  ;;  %v10070_v24 = vadd.f32 %v10069_v49, %v10068_v26  ;;  %v16092_v20 = vsub.f32 %v371_v41, %v16043_v32  ;;  %v367_v41 = vld [vmem:[%s19569_s1 + $0x420] sm:$0xff] }
 0x249   :  { %v16067_v40 = vsub.f32 %v15970_v28, %v21655_v23  ;;  %v16072_v25 = vsub.f32 %v15961_v29, %v21656_v43  ;;  %10599 = vmatprep.subr.mxu0 %v15885_v9  ;;  %5280 = vmatprep.mubr.f32.mxu0 %v21657_v18  ;;  %v369_v43 = vld [vmem:[%s19569_s1 + $0x430] sm:$0xff]  ;;  %v21666_v9 = vand.u32 4294901760, %v15898_v3  ;;  %v21671_v29 = vand.u32 4294901760, %v16035_v50 }
 0x24a   :  { %21658 = vst [vmem:[#allocation50_spill] sm:$0xff] %v16077_v38  ;;  %v16082_v23 = vsub.f32 %v15983_v37, %v21659_v2  ;;  %10568 = vmatpush3.msra.mxu1 %v21549_v63  ;;  %5419 = vmatprep.mubr.f32.mxu1 %v21628_v22  ;;  %21660 = vst [vmem:[#allocation22_spill] sm:$0xff] %v16092_v20  ;;  %v16096_v2 = vadd.f32 %v10032_v8, %v15938_v61  ;;  %v368_v22 = vld [vmem:[%s19569_s1 + $0x428] sm:$0xff]  ;;  %v10121_v61 = vpop.f32.mrf.mxu1  ;;  %v21662_v8 = vld [vmem:[#allocation53_spill] sm:$0xff]  ;;  %v16114_v26 = vand.u32 4294901760, %v369_v43 }
 0x24b   :  { %10600 = vmatpush3.msra.mxu0 %v15893_v13  ;;  %5421 = vmatmul.mubr.f32.vlgmr.msra.gmra.mxu1 %v21631_v52  ;;  %v16102_v63 = vsub.f32 %v370_v1, %v16057_v56  ;;  %v16109_v49 = vadd.f32 %v10070_v24, %v15746_v17  ;;  %v21664_v1 = vand.u32 4294901760, %v16008_v39  ;;  %v16125_v17 = vsub.f32 %v386_v57, %v16055_v42  ;;  %v10071_v24 = vpop.f32.mrf.mxu0 }
 0x24c   :  { %5282 = vmatmul.mubr.f32.gmra.mxu0 %v21662_v8  ;;  %10601 = vmatprep.subr.mxu0 %v15904_v5  ;;  %21663 = vst [vmem:[#allocation45_spill] sm:$0xff] %v16114_v26  ;;  %v16138_v13 = vsub.f32 %v385_v15, %v16077_v38  ;;  %v10122_v57 = vpop.f32.mrf.mxu1  ;;  %v16146_v3 = vand.u32 4294901760, %v368_v22 }
 0x24d   :  { %21661 = vst [vmem:[#allocation62_spill] sm:$0xff] %v16102_v63  ;;  %v16119_v14 = vsub.f32 %v16008_v39, %v21664_v1  ;;  %21665 = vst [vmem:[#allocation31_spill] sm:$0xff] %v16125_v17  ;;  %10649 = vmatprep.subr.mxu1 %v21666_v9  ;;  %10602 = vmatpush3.msra.mxu0 %v15906_v12  ;;  %v21667_v1 = vand.u32 4294901760, %v16027_v44  ;;  %v21669_v39 = vand.u32 4294901760, %v15911_v53  ;;  %v384_v9 = vld [vmem:[%s19569_s1 + $0x4a8] sm:$0xff]  ;;  %v10072_v52 = vpop.f32.mrf.mxu0  ;;  %v21672_v53 = vand.u32 4294901760, %v15921_v59 }
 0x24e   :  { %21668 = vst [vmem:[#allocation65_spill] sm:$0xff] %v16138_v13  ;;  %10603 = vmatprep.subr.mxu0 %v15916_v60  ;;  %21670 = vst [vmem:[#allocation47_spill] sm:$0xff] %v16146_v3  ;;  %v10123_v12 = vadd.f32 %v10122_v57, %v10121_v61  ;;  %v383_v60 = vld [vmem:[%s19569_s1 + $0x4a0] sm:$0xff]  ;;  %5426 = vmatprep.mubr.f32.mxu1 %v21643_v4  ;;  %v16171_v59 = vsub.f32 %v369_v43, %v16114_v26  ;;  %v21678_v4 = vld [vmem:[#allocation27_spill] sm:$0xff]  ;;  %v21682_v43 = vand.u32 4294901760, %v16092_v20 }
 0x24f   :  { %v16135_v5 = vsub.f32 %v16027_v44, %v21667_v1  ;;  %10650 = vmatpush3.msra.mxu1 %v21669_v39  ;;  %v16151_v1 = vsub.f32 %v16035_v50, %v21671_v29  ;;  %v21673_v39 = vld [vmem:[#allocation59_spill] sm:$0xff]  ;;  %v21674_v44 = vand.u32 4294901760, %v16060_v19  ;;  %v16165_v29 = vand.u32 4294901760, %v367_v41  ;;  %10604 = vmatpush3.msra.mxu0 %v15964_v62 }
 0x250   :  { %10651 = vmatprep.subr.mxu1 %v21672_v53  ;;  %5287 = vmatprep.mubr.f32.mxu0 %v21673_v39  ;;  %v10073_v50 = vadd.f32 %v10072_v52, %v10071_v24  ;;  %21676 = vst [vmem:[#allocation5_spill] sm:$0xff] %v16171_v59  ;;  %v16179_v53 = vadd.f32 %v10123_v12, %v16019_v48  ;;  %v21677_v52 = vand.u32 4294901760, %v15949_v34  ;;  %v16184_v24 = vand.u32 4294901760, %v384_v9  ;;  %v16191_v57 = vld [vmem:[%s19570_s0 + $0x48] sm:$0xff]  ;;  %v10074_v12 = vpop.f32.mrf.mxu0 }
 0x251   :  { %v16163_v37 = vsub.f32 %v16060_v19, %v21674_v44  ;;  %21675 = vst [vmem:[#allocation57_spill] sm:$0xff] %v16165_v29  ;;  %v366_v44 = vld [vmem:[%s19569_s1 + $0x418] sm:$0xff]  ;;  %5289 = vmatmul.mubr.f32.gmra.mxu0 %v21678_v4  ;;  %5428 = vmatmul.mubr.f32.gmra.mxu1 %v21647_v11  ;;  %v16199_v34 = vsub.f32 %v368_v22, %v16146_v3  ;;  %v21683_v11 = vand.u32 4294901760, %v15980_v45 }
 0x252   :  { %10652 = vmatpush3.msra.mxu1 %v21677_v52  ;;  %21679 = vst [vmem:[#allocation48_spill] sm:$0xff] %v16184_v24  ;;  %v16194_v15 = vadd.f32 %v10073_v50, %v15775_v31  ;;  %10605 = vmatprep.subr.mxu0 %v15975_v21  ;;  %v16202_v52 = vand.u32 4294901760, %v383_v60  ;;  %v16207_v61 = vsub.f32 %v16092_v20, %v21682_v43  ;;  %v382_v31 = vld [vmem:[%s19569_s1 + $0x498] sm:$0xff]  ;;  %v10124_v50 = vpop.f32.mrf.mxu1  ;;  %v16219_v21 = vand.u32 4294901760, %v366_v44  ;;  %v365_v20 = vld [vmem:[%s19569_s1 + $0x410] sm:$0xff]  ;;  %v10075_v45 = vpop.f32.mrf.mxu0 }
 0x253   :  { %21680 = vst [vmem:[#allocation21_spill] sm:$0xff] %v16199_v34  ;;  %10653 = vmatprep.subr.mxu1 %v21683_v11  ;;  %10606 = vmatpush3.msra.mxu0 %v15987_v47  ;;  %v16217_v48 = vsub.f32 %v367_v41, %v16165_v29  ;;  %v21685_v43 = vand.u32 4294901760, %v16102_v63  ;;  %v21686_v11 = vand.u32 4294901760, %v15992_v6  ;;  %v21687_v41 = vand.u32 4294901760, %v16125_v17 }
 0x254   :  { %21681 = vst [vmem:[#allocation70_spill] sm:$0xff] %v16202_v52  ;;  %21684 = vst [vmem:[#allocation18_spill] sm:$0xff] %v16219_v21  ;;  %10607 = vmatprep.subr.mxu0 %v15999_v7  ;;  %v10076_v19 = vadd.f32 %v10075_v45, %v10074_v12  ;;  %v10125_v28 = vpop.f32.mrf.mxu1  ;;  %v21688_v6 = vand.u32 4294901760, %v16041_v30  ;;  %v16247_v7 = vand.u32 4294901760, %v382_v31  ;;  %v16260_v12 = vsub.f32 %v384_v9, %v16184_v24 }
 0x255   :  { %v16224_v62 = vsub.f32 %v16102_v63, %v21685_v43  ;;  %10654 = vmatpush3.msra.mxu1 %v21686_v11  ;;  %v16235_v22 = vsub.f32 %v16125_v17, %v21687_v41  ;;  %v132_v43 = vmax.f32 %v16191_v57, 0.0  ;;  %v16242_v63 = vld [vmem:[%s19570_s0 + $0x40] sm:$0xff]  ;;  %v21689_v11 = vld [vmem:[#allocation63_spill] sm:$0xff]  ;;  %v16252_v41 = vld [vmem:[%s19569_s1 + $0x490] sm:$0xff]  ;;  %v21691_v57 = vand.u32 4294901760, %v16138_v13  ;;  %5433 = vmatprep.mubr.f32.mxu1 %v21657_v18 }
 0x256   :  { %10655 = vmatprep.subr.mxu1 %v21688_v6  ;;  %5294 = vmatprep.mubr.f32.mxu0 %v21689_v11  ;;  %21690 = vst [vmem:[#allocation25_spill] sm:$0xff] %v16247_v7  ;;  %21692 = vst [vmem:[#allocation28_spill] sm:$0xff] %v16260_v12  ;;  %v10126_v45 = vadd.f32 %v10125_v28, %v10124_v50  ;;  %v16265_v6 = vand.u32 4294901760, %v365_v20  ;;  %v16269_v27 = vadd.f32 %v10076_v19, %v15821_v51  ;;  %v364_v18 = vld [vmem:[%s19569_s1 + $0x408] sm:$0xff]  ;;  %v10077_v51 = vpop.f32.mrf.mxu0 }
 0x257   :  { %v16257_v47 = vsub.f32 %v16138_v13, %v21691_v57  ;;  %10608 = vmatpush3.msra.mxu0 %v16043_v32  ;;  %v21694_v57 = vand.u32 4294901760, %v16053_v58  ;;  %v21695_v13 = vld [vmem:[#allocation67_spill] sm:$0xff]  ;;  %v16279_v9 = vsub.f32 %v383_v60, %v16202_v52  ;;  %v131_v50 = vmax.f32 %v16242_v63, 0.0  ;;  %5435 = vmatmul.mubr.f32.gmra.mxu1 %v21662_v8  ;;  %v10127_v8 = vpop.f32.mrf.mxu1 }
 0x258   :  { %21693 = vst [vmem:[#allocation14_spill] sm:$0xff] %v16265_v6  ;;  %5296 = vmatmul.mubr.f32.gmra.mxu0 %v21695_v13  ;;  %v16283_v30 = vadd.f32 %v10126_v45, %v16109_v49  ;;  %10609 = vmatprep.subr.mxu0 %v16055_v42  ;;  %v16288_v19 = vsub.f32 %v366_v44, %v16219_v21  ;;  %v16291_v58 = vand.u32 4294901760, %v16252_v41  ;;  %v16298_v63 = vand.u32 4294901760, %v132_v43  ;;  %v16303_v49 = vld [vmem:[%s19570_s0 + $0xb8] sm:$0xff]  ;;  %v10078_v42 = vpop.f32.mrf.mxu0 }
 0x259   :  { %10656 = vmatpush3.msra.mxu1 %v21694_v57  ;;  %21696 = vst [vmem:[#allocation51_spill] sm:$0xff] %v16279_v9  ;;  %v21699_v57 = vand.u32 4294901760, %v16171_v59  ;;  %v21701_v45 = vand.u32 4294901760, %v16067_v40  ;;  %10610 = vmatpush3.msra.mxu0 %v16057_v56  ;;  %v16312_v17 = vsub.f32 %v382_v31, %v16247_v7  ;;  %v21702_v32 = vand.u32 4294901760, %v16072_v25  ;;  %v10128_v25 = vpop.f32.mrf.mxu1 }
 0x25a   :  { %21697 = vst [vmem:[#allocation8_spill] sm:$0xff] %v16283_v30  ;;  %21698 = vst [vmem:[#allocation15_spill] sm:$0xff] %v16291_v58  ;;  %10611 = vmatprep.subr.mxu0 %v16077_v38  ;;  %v16318_v40 = vsub.f32 %v365_v20, %v16265_v6  ;;  %v16325_v28 = vand.u32 4294901760, %v364_v18  ;;  %v21704_v44 = vand.u32 4294901760, %v16199_v34  ;;  %v21706_v38 = vld [vmem:[#allocation32_spill] sm:$0xff]  ;;  %v16338_v20 = vld [vmem:[%s19569_s1 + $0x480] sm:$0xff]  ;;  %5440 = vmatprep.mubr.f32.mxu1 %v21673_v39 }
 0x25b   :  { %v16296_v60 = vsub.f32 %v16171_v59, %v21699_v57  ;;  %21700 = vst [vmem:[#allocation55_spill] sm:$0xff] %v16298_v63  ;;  %10657 = vmatprep.subr.mxu1 %v21701_v45  ;;  %v16323_v45 = vld [vmem:[%s19569_s1 + $0x488] sm:$0xff]  ;;  %v10079_v57 = vadd.f32 %v10078_v42, %v10077_v51  ;;  %5301 = vmatprep.mubr.f32.mxu0 %v21706_v38  ;;  %v16341_v59 = vand.u32 4294901760, %v131_v50  ;;  %v146_v30 = vmax.f32 %v16303_v49, 0.0  ;;  %v16347_v42 = vld [vmem:[%s19570_s0 + $0xb0] sm:$0xff] }
 0x25c   :  { %10658 = vmatpush3.msra.mxu1 %v21702_v32  ;;  %21703 = vst [vmem:[#allocation42_spill] sm:$0xff] %v16325_v28  ;;  %v16330_v31 = vsub.f32 %v16199_v34, %v21704_v44  ;;  %v21705_v32 = vand.u32 4294901760, %v16082_v23  ;;  %v10129_v23 = vadd.f32 %v10128_v25, %v10127_v8  ;;  %10612 = vmatpush3.msra.mxu0 %v16114_v26  ;;  %v21708_v49 = vand.u32 4294901760, %v16119_v14  ;;  %v21709_v34 = vld [vmem:[#allocation2_spill] sm:$0xff]  ;;  %v10080_v14 = vpop.f32.mrf.mxu0 }
 0x25d   :  { %21707 = vst [vmem:[#allocation69_spill] sm:$0xff] %v16341_v59  ;;  %v16353_v44 = vsub.f32 %v132_v43, %v16298_v63  ;;  %v16357_v56 = vadd.f32 %v10079_v57, %v15876_v10  ;;  %5303 = vmatmul.mubr.f32.gmra.mxu0 %v21709_v34  ;;  %v16363_v8 = vand.u32 4294901760, %v16323_v45  ;;  %v21711_v39 = vand.u32 4294901760, %v16260_v12  ;;  %v363_v43 = vld [vmem:[%s19569_s1 + $0x400] sm:$0xff]  ;;  %5442 = vmatmul.mubr.f32.gmra.mxu1 %v21678_v4 }
 0x25e   :  { %10659 = vmatprep.subr.mxu1 %v21705_v32  ;;  %v16375_v57 = vadd.f32 %v10129_v23, %v16194_v15  ;;  %10613 = vmatprep.subr.mxu0 %v16184_v24  ;;  %v16381_v51 = vand.u32 4294901760, %v16338_v20  ;;  %v145_v32 = vmax.f32 %v16347_v42, 0.0  ;;  %v16391_v15 = vld [vmem:[%s19570_s0 + $0x128] sm:$0xff]  ;;  %v10130_v23 = vpop.f32.mrf.mxu1  ;;  %v21714_v4 = vand.u32 4294901760, %v16135_v5  ;;  %v10081_v26 = vpop.f32.mrf.mxu0 }
 0x25f   :  { %10660 = vmatpush3.msra.mxu1 %v21708_v49  ;;  %21710 = vst [vmem:[#allocation40_spill] sm:$0xff] %v16363_v8  ;;  %v16368_v25 = vsub.f32 %v16260_v12, %v21711_v39  ;;  %v16385_v39 = vsub.f32 %v16252_v41, %v16291_v58  ;;  %10614 = vmatpush3.msra.mxu0 %v16146_v3  ;;  %v21715_v10 = vand.u32 4294901760, %v16279_v9  ;;  %v16407_v24 = vand.u32 4294901760, %v146_v30 }
 0x260   :  { %21712 = vst [vmem:[#allocation13_spill] sm:$0xff] %v16375_v57  ;;  %21713 = vst [vmem:[#allocation35_spill] sm:$0xff] %v16381_v51  ;;  %10661 = vmatprep.subr.mxu1 %v21714_v4  ;;  %v16397_v49 = vsub.f32 %v364_v18, %v16325_v28  ;;  %v16405_v42 = vsub.f32 %v131_v50, %v16341_v59  ;;  %v21717_v12 = vand.u32 4294901760, %v16151_v1  ;;  %10615 = vmatprep.subr.mxu0 %v16202_v52  ;;  %v10131_v50 = vpop.f32.mrf.mxu1  ;;  %v21721_v57 = vld [vmem:[#allocation7_spill] sm:$0xff]  ;;  %v21725_v52 = vld [vmem:[#allocation30_spill] sm:$0xff] }
 0x261   :  { %v16402_v41 = vsub.f32 %v16279_v9, %v21715_v10  ;;  %21716 = vst [vmem:[#allocation37_spill] sm:$0xff] %v16407_v24  ;;  %v16412_v5 = vand.u32 4294901760, %v363_v43  ;;  %v21719_v4 = vand.u32 4294901760, %v16217_v48  ;;  %v10082_v3 = vadd.f32 %v10081_v26, %v10080_v14  ;;  %5308 = vmatprep.mubr.f32.mxu0 %v21721_v57  ;;  %5447 = vmatprep.mubr.f32.mxu1 %v21689_v11 }
 0x262   :  { %10662 = vmatpush3.msra.mxu1 %v21717_v12  ;;  %v21720_v9 = vand.u32 4294901760, %v16163_v37  ;;  %v21722_v1 = vand.u32 4294901760, %v16312_v17  ;;  %v160_v18 = vmax.f32 %v16391_v15, 0.0  ;;  %v10132_v26 = vadd.f32 %v10131_v50, %v10130_v23  ;;  %10616 = vmatpush3.msra.mxu0 %v16165_v29 }
 0x263   :  { %21718 = vst [vmem:[#allocation19_spill] sm:$0xff] %v16412_v5  ;;  %v16418_v10 = vsub.f32 %v16217_v48, %v21719_v4  ;;  %v16433_v4 = vld [vmem:[%s19570_s0 + $0x120] sm:$0xff]  ;;  %v5879_v37 = vand.u32 4294901760, %v16368_v25  ;;  %v16439_v14 = vand.u32 4294901760, %v145_v32  ;;  %v21724_v15 = vand.u32 4294901760, %v16207_v61  ;;  %5310 = vmatmul.mubr.f32.gmra.mxu0 %v21725_v52  ;;  %5449 = vmatmul.mubr.f32.gmra.mxu1 %v21695_v13  ;;  %v10133_v13 = vpop.f32.mrf.mxu1 }
 0x264   :  { %10663 = vmatprep.subr.mxu1 %v21720_v9  ;;  %v16426_v12 = vsub.f32 %v16312_v17, %v21722_v1  ;;  %v16442_v1 = vadd.f32 %v10082_v3, %v15955_v35  ;;  %v16450_v50 = vsub.f32 %v146_v30, %v16407_v24  ;;  %v16453_v25 = vadd.f32 %v10132_v26, %v16269_v27  ;;  %v10083_v9 = vpop.f32.mrf.mxu0  ;;  %v16470_v27 = vld [vmem:[%s19570_s0 + $0x198] sm:$0xff] }
 0x265   :  { %21723 = vst [vmem:[#allocation71_spill] sm:$0xff] %v16439_v14  ;;  %10664 = vmatpush3.msra.mxu1 %v21724_v15  ;;  %10617 = vmatprep.subr.mxu0 %v16247_v7  ;;  %v16458_v35 = vsub.f32 %v363_v43, %v16412_v5  ;;  %v21726_v3 = vand.u32 4294901760, %v16353_v44  ;;  %v159_v30 = vmax.f32 %v16433_v4, 0.0  ;;  %v21727_v26 = vand.u32 4294901760, %v16235_v22 }
 0x266   :  { %10618 = vmatpush3.msra.mxu0 %v16219_v21  ;;  %v16483_v4 = vsub.f32 %v16323_v45, %v16363_v8  ;;  %v16485_v15 = vand.u32 4294901760, %v160_v18  ;;  %v10084_v11 = vpop.f32.mrf.mxu0  ;;  %v21730_v7 = vand.u32 4294901760, %v16224_v62  ;;  %v21731_v22 = vand.u32 4294901760, %v16385_v39  ;;  %v16502_v45 = vld [vmem:[%s19570_s0 + $0x190] sm:$0xff]  ;;  %v10134_v62 = vpop.f32.mrf.mxu1  ;;  %5315 = vmatprep.mubr.f32.mxu0 %v15574_v55 }
 0x267   :  { %v16463_v61 = vsub.f32 %v16353_v44, %v21726_v3  ;;  %10665 = vmatprep.subr.mxu1 %v21727_v26  ;;  %v21728_v3 = vand.u32 4294901760, %v16288_v19  ;;  %10619 = vmatprep.subr.mxu0 %v16291_v58  ;;  %v16497_v43 = vsub.f32 %v145_v32, %v16439_v14  ;;  %v10085_v21 = vadd.f32 %v10084_v11, %v10083_v9 }
 0x268   :  { %21729 = vst [vmem:[#allocation6_spill] sm:$0xff] %v16485_v15  ;;  %10666 = vmatpush3.msra.mxu1 %v21730_v7  ;;  %v16493_v26 = vsub.f32 %v16385_v39, %v21731_v22  ;;  %v21732_v7 = vand.u32 4294901760, %v16257_v47  ;;  %v21733_v22 = vand.u32 4294901760, %v16405_v42  ;;  %v174_v32 = vmax.f32 %v16470_v27, 0.0  ;;  %5454 = vmatprep.mubr.f32.mxu1 %v21706_v38  ;;  %v21736_v27 = vld [vmem:[#allocation23_spill] sm:$0xff] }
 0x269   :  { %v16479_v23 = vsub.f32 %v16288_v19, %v21728_v3  ;;  %v20281_v3 = vand.u32 4294901760, %v16450_v50  ;;  %v10135_v29 = vadd.f32 %v10134_v62, %v10133_v13  ;;  %10620 = vmatpush3.msra.mxu0 %v16265_v6  ;;  %v5575_v9 = vand.u32 4294901760, %v16463_v61  ;;  %5456 = vmatmul.mubr.f32.gmra.mxu1 %v21709_v34  ;;  %v10136_v38 = vpop.f32.mrf.mxu1 }
 0x26a   :  { %10667 = vmatprep.subr.mxu1 %v21732_v7  ;;  %v5580_v58 = vsub.f32 %v16405_v42, %v21733_v22  ;;  %v16517_v47 = vsub.f32 %v16338_v20, %v16381_v51  ;;  %v16519_v11 = vand.u32 4294901760, %v159_v30  ;;  %v16522_v7 = vadd.f32 %v10085_v21, %v16030_v36  ;;  %5317 = vmatmul.mubr.f32.gmra.mxu0 %v21736_v27  ;;  %v16535_v20 = vld [vmem:[%s19570_s0 + $0x208] sm:$0xff]  ;;  %v10086_v21 = vpop.f32.mrf.mxu0 }
 0x26b   :  { %v21735_v22 = vand.u32 4294901760, %v16296_v60  ;;  %v16529_v13 = vsub.f32 %v160_v18, %v16485_v15  ;;  %v173_v61 = vmax.f32 %v16502_v45, 0.0  ;;  %v16538_v36 = vadd.f32 %v10135_v29, %v16357_v56  ;;  %10621 = vmatprep.subr.mxu0 %v16363_v8  ;;  %5461 = vmatprep.mubr.f32.mxu1 %v21721_v57 }
 0x26c   :  { %21734 = vst [vmem:[#allocation26_spill] sm:$0xff] %v16519_v11  ;;  %v5781_v60 = vand.u32 4294901760, %v16479_v23  ;;  %v5900_v18 = vand.u32 4294901760, %v16493_v26  ;;  %v21738_v62 = vand.u32 4294901760, %v16318_v40  ;;  %10622 = vmatpush3.msra.mxu0 %v16325_v28  ;;  %v5581_v56 = vand.u32 4294901760, %v5580_v58  ;;  %v16560_v26 = vld [vmem:[%s19570_s0 + $0x200] sm:$0xff]  ;;  %v10137_v28 = vpop.f32.mrf.mxu1  ;;  %5576 = vmatprep.mubr.f32.mxu0 %v5575_v9 }
 0x26d   :  { %10668 = vmatpush3.msra.mxu1 %v21735_v22  ;;  %21737 = vst [vmem:[#allocation36_spill] sm:$0xff] %v16529_v13  ;;  %v5589_v29 = vsub.f32 %v16450_v50, %v20281_v3  ;;  %v16555_v23 = vand.u32 4294901760, %v174_v32  ;;  %v21740_v22 = vand.u32 4294901760, %v16330_v31  ;;  %10623 = vmatprep.subr.mxu0 %v16381_v51  ;;  %v188_v3 = vmax.f32 %v16535_v20, 0.0 }
 0x26e   :  { %v16547_v45 = vsub.f32 %v16318_v40, %v21738_v62  ;;  %10669 = vmatprep.subr.mxu1 %v5879_v37  ;;  %v10087_v62 = vpop.f32.mrf.mxu0  ;;  %v16567_v37 = vsub.f32 %v159_v30, %v16519_v11  ;;  %v21741_v8 = vand.u32 4294901760, %v16402_v41  ;;  %v21742_v6 = vand.u32 4294901760, %v16483_v4  ;;  %10624 = vmatpush3.msra.mxu0 %v16412_v5 }
 0x26f   :  { %21739 = vst [vmem:[#allocation41_spill] sm:$0xff] %v16555_v23  ;;  %10670 = vmatpush3.msra.mxu1 %v21740_v22  ;;  %v10088_v34 = vadd.f32 %v10087_v62, %v10086_v21  ;;  %v20290_v22 = vand.u32 4294901760, %v16529_v13  ;;  %v16577_v51 = vand.u32 4294901760, %v173_v61  ;;  %v10138_v58 = vadd.f32 %v10137_v28, %v10136_v38  ;;  %5582 = vmatmul.mubr.f32.vlgmr.msra.gmra.mxu0 %v5581_v56 }
 0x270   :  { %10671 = vmatprep.subr.mxu1 %v21741_v8  ;;  %v5906_v31 = vsub.f32 %v16483_v4, %v21742_v6  ;;  %v21744_v30 = vand.u32 4294901760, %v16497_v43  ;;  %v20291_v8 = vand.u32 4294901760, %v16458_v35  ;;  %v187_v57 = vmax.f32 %v16560_v26, 0.0  ;;  %v10177_v26 = vpop.f32.mrf.mxu0  ;;  %5463 = vmatmul.mubr.f32.gmra.mxu1 %v21725_v52 }
 0x271   :  { %21743 = vst [vmem:[#allocation53_spill] sm:$0xff] %v16577_v51  ;;  %v16586_v41 = vadd.f32 %v10088_v34, %v16096_v2  ;;  %v21745_v6 = vand.u32 4294901760, %v16418_v10  ;;  %v5788_v28 = vand.u32 4294901760, %v16547_v45  ;;  %v21746_v38 = vand.u32 4294901760, %v16397_v49  ;;  %10705 = vmatprep.subr.mxu0 %v15819_v33  ;;  %5468 = vmatprep.mubr.f32.mxu1 %v15574_v55 }
 0x272   :  { %v5595_v20 = vsub.f32 %v16497_v43, %v21744_v30  ;;  %v16595_v21 = vsub.f32 %v174_v32, %v16555_v23  ;;  %v16598_v62 = vadd.f32 %v10138_v58, %v16442_v1  ;;  %v21748_v2 = vand.u32 4294901760, %v16426_v12  ;;  %v16612_v1 = vld [vmem:[%s19570_s0 + $0x278] sm:$0xff]  ;;  %v10139_v32 = vpop.f32.mrf.mxu1  ;;  %v10178_v58 = vpop.f32.mrf.mxu0  ;;  %10706 = vmatpush3.msra.mxu0 %v15828_v0 }
 0x273   :  { %10672 = vmatpush3.msra.mxu1 %v21745_v6  ;;  %v5794_v9 = vsub.f32 %v16397_v49, %v21746_v38  ;;  %v5590_v10 = vand.u32 4294901760, %v5589_v29  ;;  %v21749_v56 = vand.u32 4294901760, %v16517_v47  ;;  %v20298_v34 = vand.u32 4294901760, %v16567_v37  ;;  %10707 = vmatprep.subr.mxu0 %v15836_v16 }
 0x274   :  { %21747 = vst [vmem:[#allocation59_spill] sm:$0xff] %v16595_v21  ;;  %10673 = vmatprep.subr.mxu1 %v21748_v2  ;;  %v16607_v30 = vand.u32 4294901760, %v188_v3  ;;  %v5907_v52 = vand.u32 4294901760, %v5906_v31  ;;  %v5604_v12 = vsub.f32 %v16529_v13, %v20290_v22  ;;  %v16619_v29 = vsub.f32 %v173_v61, %v16577_v51  ;;  %v10140_v31 = vpop.f32.mrf.mxu1  ;;  %10708 = vmatpush3.msra.mxu0 %v15846_v46 }
 0x275   :  { %v5913_v45 = vsub.f32 %v16517_v47, %v21749_v56  ;;  %10674 = vmatpush3.msra.mxu1 %v5781_v60  ;;  %v5596_v6 = vand.u32 4294901760, %v5595_v20  ;;  %v5801_v38 = vsub.f32 %v16458_v35, %v20291_v8  ;;  %v16625_v2 = vand.u32 4294901760, %v187_v57  ;;  %v16630_v60 = vld [vmem:[%s19570_s0 + $0x270] sm:$0xff]  ;;  %5591 = vmatprep.mubr.f32.mxu0 %v5590_v10 }
 0x276   :  { %21750 = vst [vmem:[#allocation27_spill] sm:$0xff] %v16607_v30  ;;  %21751 = vst [vmem:[#allocation63_spill] sm:$0xff] %v16619_v29  ;;  %10675 = vmatprep.subr.mxu1 %v5900_v18  ;;  %v10179_v56 = vadd.f32 %v10178_v58, %v10177_v26  ;;  %v5795_v61 = vand.u32 4294901760, %v5794_v9  ;;  %v20296_v18 = vand.u32 4294901760, %v16595_v21  ;;  %v202_v20 = vmax.f32 %v16612_v1, 0.0  ;;  %5470 = vmatmul.mubr.f32.gmra.mxu1 %v21736_v27  ;;  %v10180_v27 = vpop.f32.mrf.mxu0  ;;  %v103_v58 = vld [vmem:[%s19570_s0 + $0x2e0] sm:$0xff] }
 0x277   :  { %21752 = vst [vmem:[#allocation67_spill] sm:$0xff] %v16625_v2  ;;  %v10141_v22 = vadd.f32 %v10140_v31, %v10139_v32  ;;  %10676 = vmatpush3.msra.mxu1 %v5788_v28  ;;  %v5914_v8 = vand.u32 4294901760, %v5913_v45  ;;  %v5610_v5 = vsub.f32 %v16567_v37, %v20298_v34  ;;  %v16640_v13 = vsub.f32 %v188_v3, %v16607_v30  ;;  %v10142_v45 = vpop.f32.mrf.mxu1  ;;  %v21761_v34 = vld [vmem:[#allocation8_spill] sm:$0xff] }
 0x278   :  { %v16643_v26 = vadd.f32 %v10179_v56, %v16179_v53  ;;  %v5605_v55 = vand.u32 4294901760, %v5604_v12  ;;  %v20297_v9 = vand.u32 4294901760, %v16619_v29  ;;  %v201_v28 = vmax.f32 %v16630_v60, 0.0  ;;  %5597 = vmatmul.mubr.f32.gmra.mxu0 %v5596_v6  ;;  %10677 = vmatprep.subr.mxu1 %v5907_v52  ;;  %v104_v53 = vld [vmem:[%s19570_s0 + $0x2e8] sm:$0xff]  ;;  %v21756_v52 = vld [vmem:[#allocation24_spill] sm:$0xff] }
 0x279   :  { %21753 = vst [vmem:[#allocation32_spill] sm:$0xff] %v16640_v13  ;;  %v16650_v10 = vadd.f32 %v10141_v22, %v16522_v7  ;;  %v5802_v3 = vand.u32 4294901760, %v5801_v38  ;;  %v16653_v1 = vsub.f32 %v187_v57, %v16625_v2  ;;  %10709 = vmatprep.subr.mxu0 %v15873_v54  ;;  %10678 = vmatpush3.msra.mxu1 %v5795_v61  ;;  %v16662_v22 = vand.u32 4294901760, %v202_v20  ;;  %v10143_v32 = vpop.f32.mrf.mxu1  ;;  %v10181_v38 = vpop.f32.mrf.mxu0  ;;  %v21757_v60 = vld [vmem:[#allocation64_spill] sm:$0xff] }
 0x27a   :  { %v5619_v7 = vsub.f32 %v16595_v21, %v20296_v18  ;;  %10710 = vmatpush3.msra.mxu0 %v21756_v52  ;;  %10679 = vmatprep.subr.mxu1 %v5914_v8  ;;  %v5611_v57 = vand.u32 4294901760, %v5610_v5  ;;  %v20301_v12 = vand.u32 4294901760, %v16640_v13  ;;  %v10144_v6 = vadd.f32 %v10143_v32, %v10142_v45  ;;  %v21759_v45 = vld [vmem:[#allocation66_spill] sm:$0xff]  ;;  %v21767_v5 = vld [vmem:[#allocation39_spill] sm:$0xff]  ;;  %v21770_v21 = vld [vmem:[#allocation20_spill] sm:$0xff] }
 0x27b   :  { %21754 = vst [vmem:[#allocation2_spill] sm:$0xff] %v16653_v1  ;;  %21755 = vst [vmem:[#allocation7_spill] sm:$0xff] %v16662_v22  ;;  %10711 = vmatprep.subr.mxu0 %v21757_v60  ;;  %5606 = vmatprep.mubr.f32.mxu0 %v5605_v55  ;;  %v5625_v31 = vsub.f32 %v16619_v29, %v20297_v9  ;;  %v16673_v56 = vand.u32 4294901760, %v201_v28  ;;  %v216_v61 = vmax.f32 %v104_v53, 0.0  ;;  %v215_v9 = vmax.f32 %v103_v58, 0.0 }
 0x27c   :  { %v10182_v8 = vadd.f32 %v10181_v38, %v10180_v27  ;;  %10680 = vmatpush3.msra.mxu1 %v5802_v3  ;;  %5917 = vmatprep.mubr.f32.mxu1 %v16298_v63  ;;  %v16678_v18 = vadd.f32 %v10144_v6, %v16586_v41  ;;  %v5620_v55 = vand.u32 4294901760, %v5619_v7  ;;  %v16683_v32 = vsub.f32 %v202_v20, %v16662_v22  ;;  %v10233_v3 = vpop.f32.mrf.mxu1  ;;  %v21762_v27 = vld [vmem:[#allocation52_spill] sm:$0xff]  ;;  %v118_v6 = vld [vmem:[%s19570_s0 + $0x358] sm:$0xff]  ;;  %v10183_v7 = vpop.f32.mrf.mxu0  ;;  %v21763_v38 = vld [vmem:[#allocation58_spill] sm:$0xff] }
 0x27d   :  { %21758 = vst [vmem:[#allocation30_spill] sm:$0xff] %v16673_v56  ;;  %10712 = vmatpush3.msra.mxu0 %v21759_v45  ;;  %5919 = vmatmul.mubr.f32.vlgmr.msra.gmra.mxu1 %v16341_v59  ;;  %v5634_v41 = vsub.f32 %v16640_v13, %v20301_v12  ;;  %v21764_v20 = vld [vmem:[#allocation68_spill] sm:$0xff]  ;;  %v5626_v58 = vand.u32 4294901760, %v5625_v31  ;;  %v21769_v12 = vand.u32 4294901760, %v16653_v1 }
 0x27e   :  { %21760 = vst [vmem:[#allocation23_spill] sm:$0xff] %v16683_v32  ;;  %v16686_v53 = vadd.f32 %v10182_v8, %v21761_v34  ;;  %5612 = vmatmul.mubr.f32.gmra.mxu0 %v5611_v57  ;;  %10713 = vmatprep.subr.mxu0 %v21762_v27  ;;  %v16698_v34 = vsub.f32 %v201_v28, %v16673_v56  ;;  %v16700_v57 = vand.u32 4294901760, %v216_v61  ;;  %v10234_v8 = vpop.f32.mrf.mxu1  ;;  %v21768_v59 = vld [vmem:[#allocation16_spill] sm:$0xff]  ;;  %v10184_v29 = vpop.f32.mrf.mxu0  ;;  %v21773_v27 = vld [vmem:[#allocation3_spill] sm:$0xff]  ;;  %v21775_v28 = vld [vmem:[#allocation13_spill] sm:$0xff] }
 0x27f   :  { %10761 = vmatprep.subr.mxu1 %v21763_v38  ;;  %10714 = vmatpush3.msra.mxu0 %v21764_v20  ;;  %v5640_v63 = vsub.f32 %v16653_v1, %v21769_v12  ;;  %v117_v13 = vld [vmem:[%s19570_s0 + $0x350] sm:$0xff]  ;;  %v10235_v31 = vadd.f32 %v10234_v8, %v10233_v3  ;;  %v16712_v20 = vand.u32 4294901760, %v215_v9  ;;  %v10185_v38 = vadd.f32 %v10184_v29, %v10183_v7 }
 0x280   :  { %21765 = vst [vmem:[#allocation24_spill] sm:$0xff] %v16698_v34  ;;  %21766 = vst [vmem:[#allocation64_spill] sm:$0xff] %v16700_v57  ;;  %10762 = vmatpush3.msra.mxu1 %v21767_v5  ;;  %10715 = vmatprep.subr.mxu0 %v21768_v59  ;;  %v230_v5 = vmax.f32 %v118_v6, 0.0  ;;  %v21772_v59 = vld [vmem:[#allocation46_spill] sm:$0xff]  ;;  %v5635_v12 = vand.u32 4294901760, %v5634_v41  ;;  %v229_v8 = vmax.f32 %v117_v13, 0.0  ;;  %v10186_v29 = vpop.f32.mrf.mxu0  ;;  %v10236_v41 = vpop.f32.mrf.mxu1 }
 0x281   :  { %10763 = vmatprep.subr.mxu1 %v21770_v21  ;;  %5621 = vmatprep.mubr.f32.mxu0 %v5620_v55  ;;  %21771 = vst [vmem:[#allocation66_spill] sm:$0xff] %v16712_v20  ;;  %v16717_v1 = vadd.f32 %v10235_v31, %v16643_v26  ;;  %v16722_v55 = vsub.f32 %v216_v61, %v16700_v57  ;;  %v21776_v7 = vld [vmem:[#allocation60_spill] sm:$0xff]  ;;  %v21778_v26 = vld [vmem:[#allocation54_spill] sm:$0xff]  ;;  %v5641_v31 = vand.u32 4294901760, %v5640_v63  ;;  %v21784_v63 = vand.u32 4294901760, %v16698_v34 }
 0x282   :  { %5924 = vmatprep.mubr.f32.mxu1 %v16407_v24  ;;  %10716 = vmatpush3.msra.mxu0 %v21772_v59  ;;  %v4030_v6 = vadd.f32 %v10185_v38, %v21775_v28  ;;  %v21777_v24 = vld [vmem:[#allocation61_spill] sm:$0xff]  ;;  %v16733_v61 = vsub.f32 %v215_v9, %v16712_v20  ;;  %v16735_v13 = vand.u32 4294901760, %v230_v5  ;;  %v10187_v38 = vpop.f32.mrf.mxu0  ;;  %v21781_v28 = vld [vmem:[#allocation4_spill] sm:$0xff]  ;;  %v16744_v9 = vand.u32 4294901760, %v229_v8  ;;  %v21786_v59 = vld [vmem:[#allocation22_spill] sm:$0xff] }
 0x283   :  { %10764 = vmatpush3.msra.mxu1 %v21773_v27  ;;  %5627 = vmatmul.mubr.f32.gmra.mxu0 %v5626_v58  ;;  %21774 = vst [vmem:[#allocation8_spill] sm:$0xff] %v16722_v55  ;;  %v21779_v58 = vand.u32 4294901760, %v16683_v32  ;;  %v10237_v27 = vpop.f32.mrf.mxu1 }
 0x284   :  { %5926 = vmatmul.mubr.f32.gmra.mxu1 %v16439_v14  ;;  %10717 = vmatprep.subr.mxu0 %v21776_v7  ;;  %21780 = vst [vmem:[#allocation20_spill] sm:$0xff] %v16733_v61  ;;  %v21782_v14 = vld [vmem:[#allocation56_spill] sm:$0xff]  ;;  %v10188_v7 = vadd.f32 %v10187_v38, %v10186_v29  ;;  %21785 = vst [vmem:[#allocation13_spill] sm:$0xff] %v16744_v9  ;;  %v21787_v29 = vld [vmem:[#allocation43_spill] sm:$0xff] }
 0x285   :  { %10765 = vmatprep.subr.mxu1 %v21777_v24  ;;  %10718 = vmatpush3.msra.mxu0 %v21778_v26  ;;  %v5649_v3 = vsub.f32 %v16683_v32, %v21779_v58  ;;  %v21783_v24 = vld [vmem:[#allocation34_spill] sm:$0xff]  ;;  %v5655_v26 = vsub.f32 %v16698_v34, %v21784_v63  ;;  %v10238_v32 = vadd.f32 %v10237_v27, %v10236_v41  ;;  %v21789_v27 = vld [vmem:[#allocation31_spill] sm:$0xff]  ;;  %v10239_v41 = vpop.f32.mrf.mxu1 }
 0x286   :  { %10766 = vmatpush3.msra.mxu1 %v21781_v28  ;;  %10719 = vmatprep.subr.mxu0 %v21782_v14  ;;  %v4037_v14 = vadd.f32 %v10188_v7, %v16453_v25  ;;  %v10189_v58 = vpop.f32.mrf.mxu0  ;;  %v21791_v25 = vld [vmem:[#allocation62_spill] sm:$0xff] }
 0x287   :  { %10767 = vmatprep.subr.mxu1 %v21783_v24  ;;  %5636 = vmatprep.mubr.f32.mxu0 %v5635_v12  ;;  %v5650_v38 = vand.u32 4294901760, %v5649_v3  ;;  %v16752_v24 = vsub.f32 %v230_v5, %v16735_v13  ;;  %v16755_v63 = vadd.f32 %v10238_v32, %v16686_v53  ;;  %v5656_v7 = vand.u32 4294901760, %v5655_v26  ;;  %v21793_v53 = vld [vmem:[#allocation12_spill] sm:$0xff]  ;;  %v21794_v12 = vld [vmem:[#allocation65_spill] sm:$0xff]  ;;  %v10240_v34 = vpop.f32.mrf.mxu1 }
 0x288   :  { %5931 = vmatprep.mubr.f32.mxu1 %v16485_v15  ;;  %10720 = vmatpush3.msra.mxu0 %v21786_v59  ;;  %v21790_v15 = vld [vmem:[#allocation49_spill] sm:$0xff]  ;;  %v21792_v3 = vand.u32 4294901760, %v16722_v55  ;;  %v16765_v5 = vsub.f32 %v229_v8, %v16744_v9  ;;  %v10190_v32 = vpop.f32.mrf.mxu0 }
 0x289   :  { %10768 = vmatpush3.msra.mxu1 %v21787_v29  ;;  %5642 = vmatmul.mubr.f32.gmra.mxu0 %v5641_v31  ;;  %21788 = vst [vmem:[#allocation4_spill] sm:$0xff] %v16752_v24  ;;  %v21797_v8 = vld [vmem:[#allocation5_spill] sm:$0xff] }
 0x28a   :  { %5933 = vmatmul.mubr.f32.gmra.mxu1 %v16519_v11  ;;  %10721 = vmatprep.subr.mxu0 %v21789_v27  ;;  %v5664_v31 = vsub.f32 %v16722_v55, %v21792_v3  ;;  %v10191_v11 = vadd.f32 %v10190_v32, %v10189_v58  ;;  %v21795_v27 = vld [vmem:[#allocation9_spill] sm:$0xff]  ;;  %v10241_v3 = vadd.f32 %v10240_v34, %v10239_v41  ;;  %v21800_v41 = vld [vmem:[#allocation11_spill] sm:$0xff] }
 0x28b   :  { %10769 = vmatprep.subr.mxu1 %v21790_v15  ;;  %10722 = vmatpush3.msra.mxu0 %v21791_v25  ;;  %v21796_v25 = vand.u32 4294901760, %v16733_v61  ;;  %v10242_v34 = vpop.f32.mrf.mxu1  ;;  %v21801_v15 = vld [vmem:[#allocation21_spill] sm:$0xff] }
 0x28c   :  { %10770 = vmatpush3.msra.mxu1 %v21793_v53  ;;  %10723 = vmatprep.subr.mxu0 %v21794_v12  ;;  %v4044_v55 = vadd.f32 %v10191_v11, %v16538_v36  ;;  %v21798_v53 = vld [vmem:[#allocation33_spill] sm:$0xff]  ;;  %v5665_v58 = vand.u32 4294901760, %v5664_v31  ;;  %v21802_v11 = vand.u32 4294901760, %v16752_v24  ;;  %v21803_v31 = vld [vmem:[#allocation10_spill] sm:$0xff] }
 0x28d   :  { %10771 = vmatprep.subr.mxu1 %v21795_v27  ;;  %5651 = vmatprep.mubr.f32.mxu0 %v5650_v38  ;;  %v5670_v26 = vsub.f32 %v16733_v61, %v21796_v25  ;;  %v16779_v38 = vadd.f32 %v10241_v3, %v4030_v6  ;;  %v10192_v27 = vpop.f32.mrf.mxu0  ;;  %v21799_v25 = vld [vmem:[#allocation28_spill] sm:$0xff]  ;;  %v21804_v6 = vld [vmem:[#allocation51_spill] sm:$0xff]  ;;  %v10243_v32 = vpop.f32.mrf.mxu1  ;;  %v21806_v61 = vand.u32 4294901760, %v16765_v5 }
 0x28e   :  { %5938 = vmatprep.mubr.f32.mxu1 %v16555_v23  ;;  %10724 = vmatpush3.msra.mxu0 %v21797_v8  ;;  %v5679_v36 = vsub.f32 %v16752_v24, %v21802_v11  ;;  %v21807_v11 = vld [vmem:[#allocation29_spill] sm:$0xff] }
 0x28f   :  { %10772 = vmatpush3.msra.mxu1 %v21798_v53  ;;  %5657 = vmatmul.mubr.f32.gmra.mxu0 %v5656_v7  ;;  %v5671_v23 = vand.u32 4294901760, %v5670_v26  ;;  %v10193_v7 = vpop.f32.mrf.mxu0 }
 0x290   :  { %5940 = vmatmul.mubr.f32.gmra.mxu1 %v16577_v51  ;;  %10725 = vmatprep.subr.mxu0 %v21799_v25  ;;  %v10194_v3 = vadd.f32 %v10193_v7, %v10192_v27  ;;  %v21805_v51 = vld [vmem:[#allocation44_spill] sm:$0xff]  ;;  %v5680_v24 = vand.u32 4294901760, %v5679_v36 }
 0x291   :  { %10773 = vmatprep.subr.mxu1 %v21800_v41  ;;  %10726 = vmatpush3.msra.mxu0 %v21801_v15  ;;  %v5685_v41 = vsub.f32 %v16765_v5, %v21806_v61  ;;  %v10244_v15 = vadd.f32 %v10243_v32, %v10242_v34  ;;  %v21808_v61 = vld [vmem:[#allocation38_spill] sm:$0xff] }
 0x292   :  { %10774 = vmatpush3.msra.mxu1 %v21803_v31  ;;  %10727 = vmatprep.subr.mxu0 %v21804_v6  ;;  %v4051_v26 = vadd.f32 %v10194_v3, %v16598_v62  ;;  %v10195_v7 = vpop.f32.mrf.mxu0  ;;  %v21811_v3 = vld [vmem:[#allocation45_spill] sm:$0xff] }
 0x293   :  { %10775 = vmatprep.subr.mxu1 %v21805_v51  ;;  %5666 = vmatprep.mubr.f32.mxu0 %v5665_v58  ;;  %v16798_v27 = vadd.f32 %v10244_v15, %v4037_v14  ;;  %v10245_v58 = vpop.f32.mrf.mxu1  ;;  %v5686_v32 = vand.u32 4294901760, %v5685_v41  ;;  %v21810_v14 = vld [vmem:[#allocation50_spill] sm:$0xff] }
 0x294   :  { %5945 = vmatprep.mubr.f32.mxu1 %v16607_v30  ;;  %10728 = vmatpush3.msra.mxu0 %v16217_v48  ;;  %v10196_v34 = vpop.f32.mrf.mxu0  ;;  %v21809_v30 = vld [vmem:[#allocation17_spill] sm:$0xff] }
 0x295   :  { %10776 = vmatpush3.msra.mxu1 %v21807_v11  ;;  %5672 = vmatmul.mubr.f32.gmra.mxu0 %v5671_v23  ;;  %v10197_v23 = vadd.f32 %v10196_v34, %v10195_v7  ;;  %v10246_v62 = vpop.f32.mrf.mxu1  ;;  %v21812_v34 = vld [vmem:[#allocation48_spill] sm:$0xff] }
 0x296   :  { %5947 = vmatmul.mubr.f32.gmra.mxu1 %v16625_v2  ;;  %10729 = vmatprep.subr.mxu0 %v16312_v17  ;;  %v10247_v15 = vadd.f32 %v10246_v62, %v10245_v58  ;;  %v21813_v58 = vld [vmem:[#allocation47_spill] sm:$0xff] }
 0x297   :  { %10777 = vmatprep.subr.mxu1 %v21808_v61  ;;  %10730 = vmatpush3.msra.mxu0 %v16288_v19  ;;  %v4058_v36 = vadd.f32 %v10197_v23, %v16650_v10  ;;  %v10248_v7 = vpop.f32.mrf.mxu1 }
 0x298   :  { %10778 = vmatpush3.msra.mxu1 %v21809_v30  ;;  %10731 = vmatprep.subr.mxu0 %v16385_v39  ;;  %v16811_v41 = vadd.f32 %v10247_v15, %v4044_v55  ;;  %v10198_v2 = vpop.f32.mrf.mxu0  ;;  %v21815_v15 = vld [vmem:[#allocation57_spill] sm:$0xff] }
 0x299   :  { %10779 = vmatprep.subr.mxu1 %v21810_v14  ;;  %5681 = vmatprep.mubr.f32.mxu0 %v5680_v24  ;;  %v10249_v23 = vpop.f32.mrf.mxu1 }
 0x29a   :  { %5952 = vmatprep.mubr.f32.mxu1 %v16662_v22  ;;  %10732 = vmatpush3.msra.mxu0 %v16318_v40  ;;  %v10199_v24 = vpop.f32.mrf.mxu0  ;;  %v10250_v55 = vadd.f32 %v10249_v23, %v10248_v7  ;;  %v21817_v7 = vand.u32 4294901760, %v15819_v33  ;;  %v21818_v23 = vld [vmem:[#allocation18_spill] sm:$0xff] }
 0x29b   :  { %10780 = vmatpush3.msra.mxu1 %v21811_v3  ;;  %5687 = vmatmul.mubr.f32.gmra.mxu0 %v5686_v32  ;;  %v10200_v10 = vadd.f32 %v10199_v24, %v10198_v2  ;;  %v21814_v32 = vld [vmem:[#allocation70_spill] sm:$0xff]  ;;  %v21816_v2 = vld [vmem:[#allocation25_spill] sm:$0xff] }
 0x29c   :  { %5954 = vmatmul.mubr.f32.gmra.mxu1 %v16673_v56  ;;  %10733 = vmatprep.subr.mxu0 %v16483_v4  ;;  %v16826_v56 = vadd.f32 %v10250_v55, %v4051_v26  ;;  %v21821_v55 = vand.u32 4294901760, %v15836_v16  ;;  %v21822_v33 = vld [vmem:[#allocation14_spill] sm:$0xff]  ;;  %v21824_v16 = vld [vmem:[#allocation40_spill] sm:$0xff] }
 0x29d   :  { %10781 = vmatprep.subr.mxu1 %v21812_v34  ;;  %10734 = vmatpush3.msra.mxu0 %v16397_v49  ;;  %v4065_v62 = vadd.f32 %v10200_v10, %v16678_v18  ;;  %v10289_v22 = vpop.f32.mrf.mxu0  ;;  %v21819_v18 = vand.u32 4294901760, %v15828_v0  ;;  %v21820_v10 = vld [vmem:[#allocation15_spill] sm:$0xff] }
 0x29e   :  { %10782 = vmatpush3.msra.mxu1 %v21813_v58  ;;  %10735 = vmatprep.subr.mxu0 %v16517_v47  ;;  %v10251_v24 = vpop.f32.mrf.mxu1 }
 0x29f   :  { %10783 = vmatprep.subr.mxu1 %v21814_v32  ;;  %5959 = vmatprep.mubr.f32.mxu1 %v16700_v57  ;;  %v10290_v57 = vpop.f32.mrf.mxu0 }
 0x2a0   :  { %10736 = vmatpush3.msra.mxu0 %v16458_v35  ;;  %6103 = vmatprep.mubr.f32.mxu0 %v16353_v44  ;;  %v10291_v26 = vadd.f32 %v10290_v57, %v10289_v22 }
 0x2a1   :  { %10784 = vmatpush3.msra.mxu1 %v21815_v15  ;;  %6106 = vmatmul.mubr.f32.vlgmr.msra.gmra.mxu0 %v16405_v42  ;;  %v10252_v15 = vpop.f32.mrf.mxu1 }
 0x2a2   :  { %5961 = vmatmul.mubr.f32.gmra.mxu1 %v16712_v20  ;;  %10785 = vmatprep.subr.mxu1 %v21816_v2  ;;  %v10253_v20 = vadd.f32 %v10252_v15, %v10251_v24  ;;  %v21825_v15 = vand.u32 4294901760, %v15873_v54  ;;  %v21826_v24 = vld [vmem:[#allocation42_spill] sm:$0xff]  ;;  %v21832_v54 = vand.u32 4294901760, %v16353_v44  ;;  %v21838_v44 = vld [vmem:[#allocation68_spill] sm:$0xff] }
 0x2a3   :  { %10817 = vmatprep.subr.mxu0 %v21817_v7  ;;  %10786 = vmatpush3.msra.mxu1 %v21818_v23  ;;  %v4330_v7 = vadd.f32 %v10291_v26, %v16717_v1  ;;  %v21823_v23 = vand.u32 4294901760, %v15846_v46  ;;  %v21827_v1 = vand.u32 4294901760, %v21756_v52  ;;  %v21828_v46 = vld [vmem:[#allocation35_spill] sm:$0xff]  ;;  %v21830_v26 = vld [vmem:[#allocation36_spill] sm:$0xff]  ;;  %v21833_v52 = vand.u32 4294901760, %v21759_v45 }
 0x2a4   :  { %10818 = vmatpush3.msra.mxu0 %v21819_v18  ;;  %10787 = vmatprep.subr.mxu1 %v21820_v10  ;;  %v16845_v0 = vadd.f32 %v10253_v20, %v4058_v36  ;;  %v10254_v22 = vpop.f32.mrf.mxu1  ;;  %v21829_v36 = vand.u32 4294901760, %v21757_v60  ;;  %v21840_v45 = vld [vmem:[#allocation39_spill] sm:$0xff] }
 0x2a5   :  { %10819 = vmatprep.subr.mxu0 %v21821_v55  ;;  %5966 = vmatprep.mubr.f32.mxu1 %v16735_v13 }
 0x2a6   :  { %6112 = vmatprep.mubr.f32.mxu0 %v16450_v50  ;;  %10788 = vmatpush3.msra.mxu1 %v21822_v33  ;;  %v10292_v57 = vpop.f32.mrf.mxu0  ;;  %v10255_v18 = vpop.f32.mrf.mxu1 }
 0x2a7   :  { %10820 = vmatpush3.msra.mxu0 %v21823_v23  ;;  %5968 = vmatmul.mubr.f32.gmra.mxu1 %v16744_v9  ;;  %v10256_v23 = vadd.f32 %v10255_v18, %v10254_v22  ;;  %v21831_v9 = vld [vmem:[#allocation19_spill] sm:$0xff]  ;;  %v21835_v18 = vld [vmem:[#allocation52_spill] sm:$0xff] }
 0x2a8   :  { %6115 = vmatmul.mubr.f32.gmra.mxu0 %v16497_v43  ;;  %10789 = vmatprep.subr.mxu1 %v21824_v16  ;;  %v10293_v20 = vpop.f32.mrf.mxu0 }
 0x2a9   :  { %10821 = vmatprep.subr.mxu0 %v21825_v15  ;;  %10790 = vmatpush3.msra.mxu1 %v21826_v24  ;;  %v10294_v55 = vadd.f32 %v10293_v20, %v10292_v57  ;;  %v16861_v15 = vadd.f32 %v10256_v23, %v4065_v62  ;;  %v21836_v57 = vand.u32 4294901760, %v21835_v18  ;;  %v21839_v62 = vand.u32 4294901760, %v21838_v44 }
 0x2aa   :  { %10822 = vmatpush3.msra.mxu0 %v21827_v1  ;;  %10791 = vmatprep.subr.mxu1 %v21828_v46  ;;  %v21834_v1 = vand.u32 4294901760, %v16405_v42  ;;  %v21844_v18 = vand.u32 4294901760, %v16450_v50 }
 0x2ab   :  { %10823 = vmatprep.subr.mxu0 %v21829_v36  ;;  %6121 = vmatprep.mubr.f32.mxu0 %v21830_v26  ;;  %v4345_v22 = vadd.f32 %v10294_v55, %v16755_v63  ;;  %v10345_v60 = vpop.f32.mrf.mxu1  ;;  %v21837_v36 = vld [vmem:[#allocation58_spill] sm:$0xff]  ;;  %v21843_v55 = vld [vmem:[#allocation59_spill] sm:$0xff] }
 0x2ac   :  { %10792 = vmatpush3.msra.mxu1 %v21831_v9  ;;  %6273 = vmatprep.mubr.f32.mxu1 %v21832_v54  ;;  %v10295_v20 = vpop.f32.mrf.mxu0  ;;  %v21841_v54 = vld [vmem:[#allocation16_spill] sm:$0xff] }
 0x2ad   :  { %10824 = vmatpush3.msra.mxu0 %v21833_v52  ;;  %6277 = vmatmul.mubr.f32.vlgmr.msra.gmra.mxu1 %v21834_v1  ;;  %v10346_v23 = vpop.f32.mrf.mxu1  ;;  %v21842_v42 = vand.u32 4294901760, %v21841_v54 }
 0x2ae   :  { %6124 = vmatmul.mubr.f32.gmra.mxu0 %v16567_v37  ;;  %10825 = vmatprep.subr.mxu0 %v21836_v57  ;;  %v10296_v52 = vpop.f32.mrf.mxu0  ;;  %v10347_v63 = vadd.f32 %v10346_v23, %v10345_v60  ;;  %v21845_v57 = vld [vmem:[#allocation46_spill] sm:$0xff]  ;;  %v21850_v23 = vld [vmem:[#allocation60_spill] sm:$0xff] }
 0x2af   :  { %10873 = vmatprep.subr.mxu1 %v21837_v36  ;;  %10826 = vmatpush3.msra.mxu0 %v21839_v62  ;;  %v10297_v1 = vadd.f32 %v10296_v52, %v10295_v20  ;;  %v21846_v36 = vand.u32 4294901760, %v21845_v57  ;;  %v21847_v62 = vld [vmem:[#allocation3_spill] sm:$0xff]  ;;  %v21851_v20 = vand.u32 4294901760, %v21850_v23  ;;  %v21853_v52 = vld [vmem:[#allocation54_spill] sm:$0xff]  ;;  %v21860_v23 = vand.u32 4294901760, %v21786_v59 }
 0x2b0   :  { %10874 = vmatpush3.msra.mxu1 %v21840_v45  ;;  %10827 = vmatprep.subr.mxu0 %v21842_v42  ;;  %v16883_v44 = vadd.f32 %v10347_v63, %v4330_v7  ;;  %v21848_v45 = vld [vmem:[#allocation63_spill] sm:$0xff]  ;;  %v21852_v42 = vld [vmem:[#allocation61_spill] sm:$0xff]  ;;  %v21855_v63 = vld [vmem:[#allocation56_spill] sm:$0xff] }
 0x2b1   :  { %10875 = vmatprep.subr.mxu1 %v21770_v21  ;;  %6130 = vmatprep.mubr.f32.mxu0 %v21843_v55  ;;  %v4360_v54 = vadd.f32 %v10297_v1, %v16779_v38  ;;  %v10298_v60 = vpop.f32.mrf.mxu0  ;;  %v21849_v21 = vand.u32 4294901760, %v16497_v43  ;;  %v21856_v57 = vand.u32 4294901760, %v21855_v63  ;;  %v21858_v43 = vld [vmem:[#allocation32_spill] sm:$0xff]  ;;  %v21866_v59 = vld [vmem:[#allocation62_spill] sm:$0xff] }
 0x2b2   :  { %6284 = vmatprep.mubr.f32.mxu1 %v21844_v18  ;;  %10828 = vmatpush3.msra.mxu0 %v21846_v36  ;;  %v10348_v50 = vpop.f32.mrf.mxu1  ;;  %v21854_v18 = vand.u32 4294901760, %v21853_v52  ;;  %v21857_v36 = vld [vmem:[#allocation34_spill] sm:$0xff]  ;;  %v21862_v52 = vand.u32 4294901760, %v16567_v37  ;;  %v21867_v63 = vand.u32 4294901760, %v21866_v59  ;;  %v21871_v37 = vld [vmem:[#allocation23_spill] sm:$0xff] }
 0x2b3   :  { %10876 = vmatpush3.msra.mxu1 %v21847_v62  ;;  %6133 = vmatmul.mubr.f32.gmra.mxu0 %v21848_v45  ;;  %v10299_v7 = vpop.f32.mrf.mxu0 }
 0x2b4   :  { %6288 = vmatmul.mubr.f32.gmra.mxu1 %v21849_v21  ;;  %10829 = vmatprep.subr.mxu0 %v21851_v20  ;;  %v10300_v38 = vadd.f32 %v10299_v7, %v10298_v60  ;;  %v10349_v1 = vpop.f32.mrf.mxu1  ;;  %v21859_v21 = vand.u32 4294901760, %v21830_v26  ;;  %v21865_v7 = vld [vmem:[#allocation49_spill] sm:$0xff] }
 0x2b5   :  { %10877 = vmatprep.subr.mxu1 %v21852_v42  ;;  %10830 = vmatpush3.msra.mxu0 %v21854_v18  ;;  %v10350_v62 = vadd.f32 %v10349_v1, %v10348_v50  ;;  %v21863_v18 = vld [vmem:[#allocation31_spill] sm:$0xff]  ;;  %v21870_v1 = vld [vmem:[#allocation9_spill] sm:$0xff] }
 0x2b6   :  { %10878 = vmatpush3.msra.mxu1 %v21781_v28  ;;  %10831 = vmatprep.subr.mxu0 %v21856_v57  ;;  %v4375_v20 = vadd.f32 %v10300_v38, %v16798_v27  ;;  %v21861_v28 = vld [vmem:[#allocation2_spill] sm:$0xff]  ;;  %v21864_v50 = vand.u32 4294901760, %v21863_v18  ;;  %v21868_v57 = vld [vmem:[#allocation12_spill] sm:$0xff] }
 0x2b7   :  { %10879 = vmatprep.subr.mxu1 %v21857_v36  ;;  %6139 = vmatprep.mubr.f32.mxu0 %v21858_v43  ;;  %v16907_v42 = vadd.f32 %v10350_v62, %v4345_v22  ;;  %v10301_v60 = vpop.f32.mrf.mxu0  ;;  %v21872_v62 = vand.u32 4294901760, %v21843_v55 }
 0x2b8   :  { %6295 = vmatprep.mubr.f32.mxu1 %v21859_v21  ;;  %10832 = vmatpush3.msra.mxu0 %v21860_v23  ;;  %v10351_v26 = vpop.f32.mrf.mxu1  ;;  %v21873_v21 = vand.u32 4294901760, %v21797_v8  ;;  %v426_v23 = vld [vmem:[%s19569_s1 + $0x5f8] sm:$0xff]  ;;  %v21875_v8 = vand.u32 4294901760, %v21848_v45  ;;  %v21881_v45 = vand.u32 4294901760, %v21804_v6  ;;  %v21886_v6 = vand.u32 4294901760, %v16217_v48 }
 0x2b9   :  { %10880 = vmatpush3.msra.mxu1 %v21787_v29  ;;  %6142 = vmatmul.mubr.f32.gmra.mxu0 %v21861_v28  ;;  %v10302_v27 = vpop.f32.mrf.mxu0  ;;  %v21869_v29 = vand.u32 4294901760, %v21794_v12 }
 0x2ba   :  { %6299 = vmatmul.mubr.f32.gmra.mxu1 %v21862_v52  ;;  %10833 = vmatprep.subr.mxu0 %v21864_v50  ;;  %v10303_v22 = vadd.f32 %v10302_v27, %v10301_v60  ;;  %v10352_v38 = vpop.f32.mrf.mxu1  ;;  %v21874_v60 = vld [vmem:[#allocation24_spill] sm:$0xff]  ;;  %v410_v52 = vld [vmem:[%s19569_s1 + $0x578] sm:$0xff]  ;;  %v21876_v50 = vand.u32 4294901760, %v21799_v25 }
 0x2bb   :  { %10881 = vmatprep.subr.mxu1 %v21865_v7  ;;  %10834 = vmatpush3.msra.mxu0 %v21867_v63  ;;  %v10353_v36 = vadd.f32 %v10352_v38, %v10351_v26  ;;  %v21877_v26 = vld [vmem:[#allocation11_spill] sm:$0xff]  ;;  %v21878_v7 = vld [vmem:[#allocation21_spill] sm:$0xff]  ;;  %v16948_v63 = vand.u32 4294901760, %v426_v23  ;;  %v16953_v25 = vand.u32 4294901760, %v410_v52  ;;  %v409_v27 = vld [vmem:[%s19569_s1 + $0x570] sm:$0xff] }
 0x2bc   :  { %10882 = vmatpush3.msra.mxu1 %v21868_v57  ;;  %10835 = vmatprep.subr.mxu0 %v21869_v29  ;;  %v16929_v12 = vadd.f32 %v10303_v22, %v16811_v41  ;;  %v425_v41 = vld [vmem:[%s19569_s1 + $0x5f0] sm:$0xff]  ;;  %v21879_v59 = vand.u32 4294901760, %v21878_v7 }
 0x2bd   :  { %10883 = vmatprep.subr.mxu1 %v21870_v1  ;;  %6148 = vmatprep.mubr.f32.mxu0 %v21871_v37  ;;  %v16936_v55 = vadd.f32 %v10353_v36, %v4360_v54  ;;  %v10304_v18 = vpop.f32.mrf.mxu0  ;;  %21880 = vst [vmem:[#allocation22_spill] sm:$0xff] %v16948_v63  ;;  %21882 = vst [vmem:[#allocation43_spill] sm:$0xff] %v16953_v25  ;;  %v21883_v22 = vld [vmem:[#allocation8_spill] sm:$0xff]  ;;  %v16960_v38 = vand.u32 4294901760, %v425_v41  ;;  %v424_v36 = vld [vmem:[%s19569_s1 + $0x5e8] sm:$0xff]  ;;  %v16980_v48 = vsub.f32 %v426_v23, %v16948_v63 }
 0x2be   :  { %6306 = vmatprep.mubr.f32.mxu1 %v21872_v62  ;;  %10836 = vmatpush3.msra.mxu0 %v21873_v21  ;;  %v16974_v21 = vand.u32 4294901760, %v409_v27  ;;  %v16994_v23 = vand.u32 4294901760, %v424_v36 }
 0x2bf   :  { %10884 = vmatpush3.msra.mxu1 %v21798_v53  ;;  %6151 = vmatmul.mubr.f32.gmra.mxu0 %v21874_v60  ;;  %v10354_v53 = vpop.f32.mrf.mxu1  ;;  %v10305_v54 = vpop.f32.mrf.mxu0  ;;  %21884 = vst [vmem:[#allocation65_spill] sm:$0xff] %v16960_v38 }
 0x2c0   :  { %6310 = vmatmul.mubr.f32.gmra.mxu1 %v21875_v8  ;;  %10837 = vmatprep.subr.mxu0 %v21876_v50  ;;  %v10306_v57 = vadd.f32 %v10305_v54, %v10304_v18  ;;  %21888 = vst [vmem:[#allocation5_spill] sm:$0xff] %v16974_v21  ;;  %v21889_v50 = vand.u32 4294901760, %v21861_v28  ;;  %21892 = vst [vmem:[#allocation33_spill] sm:$0xff] %v16994_v23 }
 0x2c1   :  { %10885 = vmatprep.subr.mxu1 %v21877_v26  ;;  %10838 = vmatpush3.msra.mxu0 %v21879_v59  ;;  %v10355_v29 = vpop.f32.mrf.mxu1  ;;  %v21891_v26 = vand.u32 4294901760, %v16288_v19  ;;  %v17007_v19 = vsub.f32 %v409_v27, %v16974_v21 }
 0x2c2   :  { %10886 = vmatpush3.msra.mxu1 %v21803_v31  ;;  %10839 = vmatprep.subr.mxu0 %v21881_v45  ;;  %v10356_v1 = vadd.f32 %v10355_v29, %v10354_v53  ;;  %v21885_v31 = vand.u32 4294901760, %v21858_v43  ;;  %v16970_v62 = vadd.f32 %v10306_v57, %v16826_v56  ;;  %v408_v43 = vld [vmem:[%s19569_s1 + $0x568] sm:$0xff]  ;;  %v21890_v56 = vand.u32 4294901760, %v16312_v17 }
 0x2c3   :  { %10887 = vmatprep.subr.mxu1 %v21805_v51  ;;  %6157 = vmatprep.mubr.f32.mxu0 %v21883_v22  ;;  %v21887_v51 = vld [vmem:[#allocation20_spill] sm:$0xff]  ;;  %v10307_v8 = vpop.f32.mrf.mxu0  ;;  %v21893_v17 = vand.u32 4294901760, %v16385_v39  ;;  %v17002_v28 = vand.u32 4294901760, %v408_v43  ;;  %v21896_v39 = vand.u32 4294901760, %v21871_v37  ;;  %v21897_v45 = vand.u32 4294901760, %v16318_v40  ;;  %v422_v37 = vld [vmem:[%s19569_s1 + $0x5d8] sm:$0xff] }
 0x2c4   :  { %6317 = vmatprep.mubr.f32.mxu1 %v21885_v31  ;;  %10840 = vmatpush3.msra.mxu0 %v21886_v6  ;;  %v16982_v18 = vadd.f32 %v10356_v1, %v4375_v20  ;;  %v10357_v53 = vpop.f32.mrf.mxu1  ;;  %v16997_v20 = vsub.f32 %v425_v41, %v16960_v38  ;;  %v423_v41 = vld [vmem:[%s19569_s1 + $0x5e0] sm:$0xff]  ;;  %v406_v40 = vld [vmem:[%s19569_s1 + $0x558] sm:$0xff]  ;;  %v17034_v1 = vsub.f32 %v424_v36, %v16994_v23  ;;  %v21899_v6 = vand.u32 4294901760, %v16483_v4  ;;  %v421_v36 = vld [vmem:[%s19569_s1 + $0x5d0] sm:$0xff] }
 0x2c5   :  { %10888 = vmatpush3.msra.mxu1 %v21807_v11  ;;  %6160 = vmatmul.mubr.f32.gmra.mxu0 %v21887_v51  ;;  %v16989_v11 = vsub.f32 %v410_v52, %v16953_v25  ;;  %v10308_v7 = vpop.f32.mrf.mxu0  ;;  %21894 = vst [vmem:[#allocation28_spill] sm:$0xff] %v17002_v28 }
 0x2c6   :  { %6321 = vmatmul.mubr.f32.gmra.mxu1 %v21889_v50  ;;  %10841 = vmatprep.subr.mxu0 %v21890_v56  ;;  %v10309_v52 = vadd.f32 %v10308_v7, %v10307_v8  ;;  %v10358_v59 = vpop.f32.mrf.mxu1  ;;  %v20349_v29 = vand.u32 4294901760, %v16997_v20  ;;  %v17044_v8 = vsub.f32 %v408_v43, %v17002_v28  ;;  %v17046_v50 = vand.u32 4294901760, %v423_v41 }
 0x2c7   :  { %10889 = vmatprep.subr.mxu1 %v21808_v61  ;;  %10842 = vmatpush3.msra.mxu0 %v21891_v26  ;;  %v21895_v61 = vld [vmem:[#allocation4_spill] sm:$0xff]  ;;  %v10359_v54 = vadd.f32 %v10358_v59, %v10357_v53  ;;  %v20350_v27 = vand.u32 4294901760, %v16989_v11  ;;  %v20348_v43 = vand.u32 4294901760, %v17007_v19  ;;  %v21904_v26 = vand.u32 4294901760, %v16517_v47 }
 0x2c8   :  { %10890 = vmatpush3.msra.mxu1 %v21809_v30  ;;  %10843 = vmatprep.subr.mxu0 %v21893_v17  ;;  %v20351_v30 = vand.u32 4294901760, %v16980_v48  ;;  %v17022_v57 = vadd.f32 %v10309_v52, %v16845_v0  ;;  %21900 = vst [vmem:[#allocation10_spill] sm:$0xff] %v17044_v8  ;;  %21901 = vst [vmem:[#allocation51_spill] sm:$0xff] %v17046_v50  ;;  %v17065_v7 = vand.u32 4294901760, %v422_v37  ;;  %v21907_v59 = vand.u32 4294901760, %v21883_v22  ;;  %v420_v22 = vld [vmem:[%s19569_s1 + $0x5c8] sm:$0xff] }
 0x2c9   :  { %10891 = vmatprep.subr.mxu1 %v21810_v14  ;;  %6166 = vmatprep.mubr.f32.mxu0 %v21895_v61  ;;  %v407_v14 = vld [vmem:[%s19569_s1 + $0x560] sm:$0xff]  ;;  %v17037_v0 = vadd.f32 %v10359_v54, %v16929_v12  ;;  %v10310_v31 = vpop.f32.mrf.mxu0  ;;  %v21902_v12 = vand.u32 4294901760, %v16397_v49  ;;  %v17072_v49 = vsub.f32 %v16989_v11, %v20350_v27  ;;  %v17082_v47 = vsub.f32 %v16997_v20, %v20349_v29  ;;  %v405_v54 = vld [vmem:[%s19569_s1 + $0x550] sm:$0xff] }
 0x2ca   :  { %6328 = vmatprep.mubr.f32.mxu1 %v21896_v39  ;;  %10844 = vmatpush3.msra.mxu0 %v21897_v45  ;;  %v10360_v56 = vpop.f32.mrf.mxu1  ;;  %v17059_v4 = vsub.f32 %v16980_v48, %v20351_v30  ;;  %21905 = vst [vmem:[#allocation29_spill] sm:$0xff] %v17065_v7  ;;  %v20352_v39 = vand.u32 4294901760, %v17034_v1 }
 0x2cb   :  { %10892 = vmatpush3.msra.mxu1 %v21811_v3  ;;  %6169 = vmatmul.mubr.f32.gmra.mxu0 %v16765_v5  ;;  %v21898_v3 = vand.u32 4294901760, %v21874_v60  ;;  %v17054_v60 = vand.u32 4294901760, %v407_v14  ;;  %v10311_v53 = vpop.f32.mrf.mxu0 }
 0x2cc   :  { %10845 = vmatprep.subr.mxu0 %v21899_v6  ;;  %10893 = vmatprep.subr.mxu1 %v21812_v34  ;;  %v17067_v34 = vand.u32 4294901760, %v406_v40  ;;  %v10312_v17 = vadd.f32 %v10311_v53, %v10310_v31  ;;  %v10361_v52 = vpop.f32.mrf.mxu1  ;;  %v21909_v31 = vand.u32 4294901760, %v16458_v35  ;;  %v17096_v6 = vsub.f32 %v423_v41, %v17046_v50  ;;  %v21912_v53 = vld [vmem:[#allocation57_spill] sm:$0xff]  ;;  %v404_v41 = vld [vmem:[%s19569_s1 + $0x548] sm:$0xff] }
 0x2cd   :  { %6332 = vmatmul.mubr.f32.gmra.mxu1 %v21898_v3  ;;  %10846 = vmatpush3.msra.mxu0 %v21902_v12  ;;  %21903 = vst [vmem:[#allocation44_spill] sm:$0xff] %v17054_v60  ;;  %v10362_v45 = vadd.f32 %v10361_v52, %v10360_v56  ;;  %v20353_v3 = vand.u32 4294901760, %v17044_v8  ;;  %v21913_v56 = vld [vmem:[#allocation69_spill] sm:$0xff]  ;;  %v17104_v35 = vsub.f32 %v407_v14, %v17054_v60 }
 0x2ce   :  { %10894 = vmatpush3.msra.mxu1 %v21813_v58  ;;  %10847 = vmatprep.subr.mxu0 %v21904_v26  ;;  %21906 = vst [vmem:[#allocation38_spill] sm:$0xff] %v17067_v34  ;;  %v17077_v58 = vand.u32 4294901760, %v421_v36  ;;  %21911 = vst [vmem:[#allocation50_spill] sm:$0xff] %v17096_v6  ;;  %v17099_v12 = vadd.f32 %v10312_v17, %v16861_v15  ;;  %v17110_v52 = vsub.f32 %v17007_v19, %v20348_v43  ;;  %v419_v43 = vld [vmem:[%s19569_s1 + $0x5c0] sm:$0xff] }
 0x2cf   :  { %10895 = vmatprep.subr.mxu1 %v21814_v32  ;;  %6339 = vmatprep.mubr.f32.mxu1 %v21907_v59  ;;  %v21910_v32 = vld [vmem:[#allocation55_spill] sm:$0xff]  ;;  %21914 = vst [vmem:[#allocation45_spill] sm:$0xff] %v17104_v35  ;;  %v17116_v15 = vadd.f32 %v10362_v45, %v16970_v62  ;;  %v10401_v17 = vpop.f32.mrf.mxu0  ;;  %v21915_v59 = vand.u32 4294901760, %v21887_v51  ;;  %v17122_v14 = vsub.f32 %v406_v40, %v17067_v34  ;;  %v21919_v51 = vld [vmem:[#allocation18_spill] sm:$0xff]  ;;  %v17136_v40 = vand.u32 4294901760, %v420_v22 }
 0x2d0   :  { %21908 = vst [vmem:[#allocation17_spill] sm:$0xff] %v17077_v58  ;;  %10848 = vmatpush3.msra.mxu0 %v21909_v31  ;;  %6520 = vmatprep.mubr.f32.mxu0 %v21910_v32  ;;  %v17131_v62 = vsub.f32 %v422_v37, %v17065_v7  ;;  %v10363_v45 = vpop.f32.mrf.mxu1  ;;  %v17144_v29 = vsub.f32 %v421_v36, %v17077_v58  ;;  %v17148_v37 = vand.u32 4294901760, %v404_v41  ;;  %v21923_v36 = vand.u32 4294901760, %v21895_v61  ;;  %v418_v61 = vld [vmem:[%s19569_s1 + $0x5b8] sm:$0xff]  ;;  %v21929_v31 = vld [vmem:[#allocation71_spill] sm:$0xff] }
 0x2d1   :  { %10896 = vmatpush3.msra.mxu1 %v21912_v53  ;;  %6522 = vmatmul.mubr.f32.vlgmr.msra.gmra.mxu0 %v21913_v56  ;;  %21916 = vst [vmem:[#allocation48_spill] sm:$0xff] %v17122_v14  ;;  %v17125_v53 = vand.u32 4294901760, %v405_v54  ;;  %21920 = vst [vmem:[#allocation25_spill] sm:$0xff] %v17136_v40  ;;  %v10402_v27 = vpop.f32.mrf.mxu0  ;;  %v17160_v26 = vand.u32 4294901760, %v419_v43 }
 0x2d2   :  { %6343 = vmatmul.mubr.f32.gmra.mxu1 %v21915_v59  ;;  %10897 = vmatprep.subr.mxu1 %v21816_v2  ;;  %21918 = vst [vmem:[#allocation70_spill] sm:$0xff] %v17131_v62  ;;  %v17141_v59 = vsub.f32 %v17034_v1, %v20352_v39  ;;  %21921 = vst [vmem:[#allocation15_spill] sm:$0xff] %v17144_v29  ;;  %v10364_v2 = vpop.f32.mrf.mxu1  ;;  %v10403_v39 = vadd.f32 %v10402_v27, %v10401_v17 }
 0x2d3   :  { %21917 = vst [vmem:[#allocation47_spill] sm:$0xff] %v17125_v53  ;;  %10929 = vmatprep.subr.mxu0 %v16948_v63  ;;  %10898 = vmatpush3.msra.mxu1 %v21919_v51  ;;  %21922 = vst [vmem:[#allocation14_spill] sm:$0xff] %v17148_v37  ;;  %v17153_v51 = vsub.f32 %v17044_v8, %v20353_v3  ;;  %v21925_v63 = vld [vmem:[#allocation37_spill] sm:$0xff]  ;;  %v17169_v27 = vsub.f32 %v405_v54, %v17125_v53 }
 0x2d4   :  { %10930 = vmatpush3.msra.mxu0 %v16953_v25  ;;  %10899 = vmatprep.subr.mxu1 %v21820_v10  ;;  %21924 = vst [vmem:[#allocation40_spill] sm:$0xff] %v17160_v26  ;;  %v403_v10 = vld [vmem:[%s19569_s1 + $0x540] sm:$0xff]  ;;  %v10365_v25 = vadd.f32 %v10364_v2, %v10363_v45  ;;  %v17180_v45 = vadd.f32 %v10403_v39, %v16883_v44  ;;  %v21931_v39 = vand.u32 4294901760, %v17096_v6 }
 0x2d5   :  { %10931 = vmatprep.subr.mxu0 %v16960_v38  ;;  %6350 = vmatprep.mubr.f32.mxu1 %v21923_v36  ;;  %21926 = vst [vmem:[#allocation42_spill] sm:$0xff] %v17169_v27  ;;  %v402_v36 = vld [vmem:[%s19569_s1 + $0x538] sm:$0xff]  ;;  %v17188_v17 = vsub.f32 %v420_v22, %v17136_v40  ;;  %v10366_v30 = vpop.f32.mrf.mxu1  ;;  %v17196_v44 = vsub.f32 %v404_v41, %v17148_v37  ;;  %v17204_v22 = vand.u32 4294901760, %v403_v10 }
 0x2d6   :  { %6527 = vmatprep.mubr.f32.mxu0 %v21925_v63  ;;  %10900 = vmatpush3.msra.mxu1 %v21822_v33  ;;  %v21927_v33 = vand.u32 4294901760, %v16765_v5  ;;  %v17191_v3 = vadd.f32 %v10365_v25, %v17022_v57  ;;  %v417_v25 = vld [vmem:[%s19569_s1 + $0x5b0] sm:$0xff]  ;;  %v10404_v57 = vpop.f32.mrf.mxu0  ;;  %v17216_v5 = vand.u32 4294901760, %v418_v61  ;;  %v17221_v54 = vsub.f32 %v419_v43, %v17160_v26 }
 0x2d7   :  { %10932 = vmatpush3.msra.mxu0 %v16974_v21  ;;  %21928 = vst [vmem:[#allocation35_spill] sm:$0xff] %v17188_v17  ;;  %10901 = vmatprep.subr.mxu1 %v21824_v16  ;;  %21930 = vst [vmem:[#allocation36_spill] sm:$0xff] %v17196_v44  ;;  %v21933_v16 = vand.u32 4294901760, %v17104_v35  ;;  %v10367_v2 = vpop.f32.mrf.mxu1 }
 0x2d8   :  { %6354 = vmatmul.mubr.f32.gmra.mxu1 %v21927_v33  ;;  %6529 = vmatmul.mubr.f32.gmra.mxu0 %v21929_v31  ;;  %v17202_v33 = vsub.f32 %v17096_v6, %v21931_v39  ;;  %21932 = vst [vmem:[#allocation19_spill] sm:$0xff] %v17204_v22  ;;  %21934 = vst [vmem:[#allocation52_spill] sm:$0xff] %v17216_v5  ;;  %v17218_v39 = vand.u32 4294901760, %v402_v36  ;;  %v10405_v43 = vpop.f32.mrf.mxu0  ;;  %v21939_v6 = vld [vmem:[#allocation6_spill] sm:$0xff] }
 0x2d9   :  { %10933 = vmatprep.subr.mxu0 %v16994_v23  ;;  %10902 = vmatpush3.msra.mxu1 %v21826_v24  ;;  %v17214_v41 = vsub.f32 %v17104_v35, %v21933_v16  ;;  %21936 = vst [vmem:[#allocation68_spill] sm:$0xff] %v17221_v54  ;;  %v21937_v23 = vand.u32 4294901760, %v17131_v62  ;;  %v21938_v16 = vand.u32 4294901760, %v17122_v14  ;;  %v10368_v35 = vadd.f32 %v10367_v2, %v10366_v30 }
 0x2da   :  { %21935 = vst [vmem:[#allocation58_spill] sm:$0xff] %v17218_v39  ;;  %10934 = vmatpush3.msra.mxu0 %v17002_v28  ;;  %10903 = vmatprep.subr.mxu1 %v21828_v46  ;;  %v17238_v28 = vand.u32 4294901760, %v417_v25  ;;  %v21941_v46 = vand.u32 4294901760, %v17144_v29  ;;  %v10406_v38 = vadd.f32 %v10405_v43, %v10404_v57  ;;  %v17253_v2 = vsub.f32 %v403_v10, %v17204_v22  ;;  %v399_v10 = vld [vmem:[%s19569_s1 + $0x520] sm:$0xff] }
 0x2db   :  { %v17228_v24 = vsub.f32 %v17131_v62, %v21937_v23  ;;  %v17233_v21 = vsub.f32 %v17122_v14, %v21938_v16  ;;  %10935 = vmatprep.subr.mxu0 %v17046_v50  ;;  %6534 = vmatprep.mubr.f32.mxu0 %v21939_v6  ;;  %v401_v16 = vld [vmem:[%s19569_s1 + $0x530] sm:$0xff]  ;;  %v21948_v50 = vand.u32 4294901760, %v17059_v4  ;;  %v21953_v14 = vand.u32 4294901760, %v17196_v44 }
 0x2dc   :  { %21940 = vst [vmem:[#allocation39_spill] sm:$0xff] %v17238_v28  ;;  %v17243_v23 = vsub.f32 %v17144_v29, %v21941_v46  ;;  %10904 = vmatpush3.msra.mxu1 %v21831_v9  ;;  %6673 = vmatprep.mubr.f32.mxu1 %v21910_v32  ;;  %21942 = vst [vmem:[#allocation16_spill] sm:$0xff] %v17253_v2  ;;  %v17257_v46 = vadd.f32 %v10368_v35, %v17099_v12  ;;  %v400_v32 = vld [vmem:[%s19569_s1 + $0x528] sm:$0xff]  ;;  %v10457_v12 = vpop.f32.mrf.mxu1  ;;  %v21944_v35 = vld [vmem:[#allocation26_spill] sm:$0xff]  ;;  %v17275_v57 = vand.u32 4294901760, %v401_v16 }
 0x2dd   :  { %10936 = vmatpush3.msra.mxu0 %v17054_v60  ;;  %6675 = vmatmul.mubr.f32.vlgmr.msra.gmra.mxu1 %v21913_v56  ;;  %v17263_v9 = vsub.f32 %v402_v36, %v17218_v39  ;;  %v17270_v43 = vadd.f32 %v10406_v38, %v16907_v42  ;;  %v21946_v36 = vand.u32 4294901760, %v17169_v27  ;;  %v17286_v42 = vsub.f32 %v418_v61, %v17216_v5  ;;  %v10407_v38 = vpop.f32.mrf.mxu0 }
 0x2de   :  { %6536 = vmatmul.mubr.f32.gmra.mxu0 %v21944_v35  ;;  %10937 = vmatprep.subr.mxu0 %v17065_v7  ;;  %21945 = vst [vmem:[#allocation46_spill] sm:$0xff] %v17275_v57  ;;  %v17299_v60 = vsub.f32 %v417_v25, %v17238_v28  ;;  %v10458_v61 = vpop.f32.mrf.mxu1  ;;  %v17307_v4 = vand.u32 4294901760, %v400_v32 }
 0x2df   :  { %21943 = vst [vmem:[#allocation59_spill] sm:$0xff] %v17263_v9  ;;  %v17280_v30 = vsub.f32 %v17169_v27, %v21946_v36  ;;  %21947 = vst [vmem:[#allocation3_spill] sm:$0xff] %v17286_v42  ;;  %10985 = vmatprep.subr.mxu1 %v21948_v50  ;;  %10938 = vmatpush3.msra.mxu0 %v17067_v34  ;;  %v21949_v36 = vand.u32 4294901760, %v17188_v17  ;;  %v21951_v27 = vand.u32 4294901760, %v17072_v49  ;;  %v416_v50 = vld [vmem:[%s19569_s1 + $0x5a8] sm:$0xff]  ;;  %v10408_v56 = vpop.f32.mrf.mxu0  ;;  %v21954_v49 = vand.u32 4294901760, %v17082_v47 }
 0x2e0   :  { %21950 = vst [vmem:[#allocation63_spill] sm:$0xff] %v17299_v60  ;;  %10939 = vmatprep.subr.mxu0 %v17077_v58  ;;  %21952 = vst [vmem:[#allocation60_spill] sm:$0xff] %v17307_v4  ;;  %v10459_v34 = vadd.f32 %v10458_v61, %v10457_v12  ;;  %v415_v58 = vld [vmem:[%s19569_s1 + $0x5a0] sm:$0xff]  ;;  %6680 = vmatprep.mubr.f32.mxu1 %v21925_v63  ;;  %v17332_v47 = vsub.f32 %v401_v16, %v17275_v57  ;;  %v21960_v63 = vld [vmem:[#allocation53_spill] sm:$0xff]  ;;  %v21964_v16 = vand.u32 4294901760, %v17253_v2 }
 0x2e1   :  { %v17296_v7 = vsub.f32 %v17188_v17, %v21949_v36  ;;  %10986 = vmatpush3.msra.mxu1 %v21951_v27  ;;  %v17312_v36 = vsub.f32 %v17196_v44, %v21953_v14  ;;  %v21955_v27 = vld [vmem:[#allocation41_spill] sm:$0xff]  ;;  %v21956_v17 = vand.u32 4294901760, %v17221_v54  ;;  %v17326_v14 = vand.u32 4294901760, %v399_v10  ;;  %10940 = vmatpush3.msra.mxu0 %v17125_v53 }
 0x2e2   :  { %10987 = vmatprep.subr.mxu1 %v21954_v49  ;;  %6541 = vmatprep.mubr.f32.mxu0 %v21955_v27  ;;  %v10409_v44 = vadd.f32 %v10408_v56, %v10407_v38  ;;  %21958 = vst [vmem:[#allocation54_spill] sm:$0xff] %v17332_v47  ;;  %v17340_v49 = vadd.f32 %v10459_v34, %v17180_v45  ;;  %v21959_v56 = vand.u32 4294901760, %v17110_v52  ;;  %v17345_v38 = vand.u32 4294901760, %v416_v50  ;;  %v17352_v61 = vld [vmem:[%s19570_s0 + $0x58] sm:$0xff]  ;;  %v10410_v34 = vpop.f32.mrf.mxu0 }
 0x2e3   :  { %v17324_v29 = vsub.f32 %v17221_v54, %v21956_v17  ;;  %21957 = vst [vmem:[#allocation61_spill] sm:$0xff] %v17326_v14  ;;  %v398_v17 = vld [vmem:[%s19569_s1 + $0x518] sm:$0xff]  ;;  %6543 = vmatmul.mubr.f32.gmra.mxu0 %v21960_v63  ;;  %6682 = vmatmul.mubr.f32.gmra.mxu1 %v21929_v31  ;;  %v17360_v52 = vsub.f32 %v400_v32, %v17307_v4  ;;  %v21965_v31 = vand.u32 4294901760, %v17141_v59 }
 0x2e4   :  { %10988 = vmatpush3.msra.mxu1 %v21959_v56  ;;  %21961 = vst [vmem:[#allocation56_spill] sm:$0xff] %v17345_v38  ;;  %v17355_v25 = vadd.f32 %v10409_v44, %v16936_v55  ;;  %10941 = vmatprep.subr.mxu0 %v17136_v40  ;;  %v17363_v56 = vand.u32 4294901760, %v415_v58  ;;  %v17368_v12 = vsub.f32 %v17253_v2, %v21964_v16  ;;  %v414_v55 = vld [vmem:[%s19569_s1 + $0x598] sm:$0xff]  ;;  %v10460_v44 = vpop.f32.mrf.mxu1  ;;  %v17380_v40 = vand.u32 4294901760, %v398_v17  ;;  %v397_v2 = vld [vmem:[%s19569_s1 + $0x510] sm:$0xff]  ;;  %v10411_v59 = vpop.f32.mrf.mxu0 }
 0x2e5   :  { %21962 = vst [vmem:[#allocation34_spill] sm:$0xff] %v17360_v52  ;;  %10989 = vmatprep.subr.mxu1 %v21965_v31  ;;  %10942 = vmatpush3.msra.mxu0 %v17148_v37  ;;  %v17378_v45 = vsub.f32 %v399_v10, %v17326_v14  ;;  %v21967_v16 = vand.u32 4294901760, %v17263_v9  ;;  %v21968_v31 = vand.u32 4294901760, %v17153_v51  ;;  %v21969_v10 = vand.u32 4294901760, %v17286_v42 }
 0x2e6   :  { %21963 = vst [vmem:[#allocation32_spill] sm:$0xff] %v17363_v56  ;;  %21966 = vst [vmem:[#allocation2_spill] sm:$0xff] %v17380_v40  ;;  %10943 = vmatprep.subr.mxu0 %v17160_v26  ;;  %v10412_v54 = vadd.f32 %v10411_v59, %v10410_v34  ;;  %v10461_v62 = vpop.f32.mrf.mxu1  ;;  %v21970_v51 = vand.u32 4294901760, %v17202_v33  ;;  %v17408_v26 = vand.u32 4294901760, %v414_v55  ;;  %v17421_v34 = vsub.f32 %v416_v50, %v17345_v38 }
 0x2e7   :  { %v17385_v53 = vsub.f32 %v17263_v9, %v21967_v16  ;;  %10990 = vmatpush3.msra.mxu1 %v21968_v31  ;;  %v17396_v32 = vsub.f32 %v17286_v42, %v21969_v10  ;;  %v134_v16 = vmax.f32 %v17352_v61, 0.0  ;;  %v17403_v9 = vld [vmem:[%s19570_s0 + $0x50] sm:$0xff]  ;;  %v21971_v31 = vld [vmem:[#allocation27_spill] sm:$0xff]  ;;  %v21973_v61 = vand.u32 4294901760, %v17299_v60  ;;  %6687 = vmatprep.mubr.f32.mxu1 %v21939_v6 }
 0x2e8   :  { %10991 = vmatprep.subr.mxu1 %v21970_v51  ;;  %6548 = vmatprep.mubr.f32.mxu0 %v21971_v31  ;;  %21972 = vst [vmem:[#allocation31_spill] sm:$0xff] %v17408_v26  ;;  %v17413_v10 = vld [vmem:[%s19569_s1 + $0x590] sm:$0xff]  ;;  %21974 = vst [vmem:[#allocation49_spill] sm:$0xff] %v17421_v34  ;;  %v10462_v59 = vadd.f32 %v10461_v62, %v10460_v44  ;;  %v17426_v51 = vand.u32 4294901760, %v397_v2  ;;  %v17430_v8 = vadd.f32 %v10412_v54, %v16982_v18  ;;  %v396_v6 = vld [vmem:[%s19569_s1 + $0x508] sm:$0xff]  ;;  %v10413_v18 = vpop.f32.mrf.mxu0 }
 0x2e9   :  { %v17418_v37 = vsub.f32 %v17299_v60, %v21973_v61  ;;  %10944 = vmatpush3.msra.mxu0 %v17204_v22  ;;  %v21976_v61 = vand.u32 4294901760, %v17214_v41  ;;  %v21977_v60 = vld [vmem:[#allocation67_spill] sm:$0xff]  ;;  %v17440_v50 = vsub.f32 %v415_v58, %v17363_v56  ;;  %v133_v44 = vmax.f32 %v17403_v9, 0.0  ;;  %6689 = vmatmul.mubr.f32.gmra.mxu1 %v21944_v35  ;;  %v10463_v35 = vpop.f32.mrf.mxu1 }
 0x2ea   :  { %21975 = vst [vmem:[#allocation62_spill] sm:$0xff] %v17426_v51  ;;  %6550 = vmatmul.mubr.f32.gmra.mxu0 %v21977_v60  ;;  %v17444_v33 = vadd.f32 %v10462_v59, %v17270_v43  ;;  %10945 = vmatprep.subr.mxu0 %v17216_v5  ;;  %v17449_v54 = vsub.f32 %v398_v17, %v17380_v40  ;;  %v17452_v41 = vand.u32 4294901760, %v17413_v10  ;;  %v17459_v9 = vand.u32 4294901760, %v134_v16  ;;  %v17464_v43 = vld [vmem:[%s19570_s0 + $0xc8] sm:$0xff]  ;;  %v10414_v5 = vpop.f32.mrf.mxu0 }
 0x2eb   :  { %10992 = vmatpush3.msra.mxu1 %v21976_v61  ;;  %21978 = vst [vmem:[#allocation12_spill] sm:$0xff] %v17440_v50  ;;  %v21981_v61 = vand.u32 4294901760, %v17332_v47  ;;  %v21983_v59 = vand.u32 4294901760, %v17228_v24  ;;  %10946 = vmatpush3.msra.mxu0 %v17218_v39  ;;  %v17473_v42 = vsub.f32 %v414_v55, %v17408_v26  ;;  %v21984_v22 = vand.u32 4294901760, %v17233_v21  ;;  %v10464_v21 = vpop.f32.mrf.mxu1 }
 0x2ec   :  { %21979 = vst [vmem:[#allocation9_spill] sm:$0xff] %v17444_v33  ;;  %21980 = vst [vmem:[#allocation23_spill] sm:$0xff] %v17452_v41  ;;  %10947 = vmatprep.subr.mxu0 %v17238_v28  ;;  %v17479_v24 = vsub.f32 %v397_v2, %v17426_v51  ;;  %v17486_v62 = vand.u32 4294901760, %v396_v6  ;;  %v21986_v17 = vand.u32 4294901760, %v17360_v52  ;;  %v21988_v28 = vld [vmem:[#allocation7_spill] sm:$0xff]  ;;  %v17499_v2 = vld [vmem:[%s19569_s1 + $0x580] sm:$0xff]  ;;  %6694 = vmatprep.mubr.f32.mxu1 %v21955_v27 }
 0x2ed   :  { %v17457_v58 = vsub.f32 %v17332_v47, %v21981_v61  ;;  %21982 = vst [vmem:[#allocation24_spill] sm:$0xff] %v17459_v9  ;;  %10993 = vmatprep.subr.mxu1 %v21983_v59  ;;  %v17484_v59 = vld [vmem:[%s19569_s1 + $0x588] sm:$0xff]  ;;  %v10415_v61 = vadd.f32 %v10414_v5, %v10413_v18  ;;  %6555 = vmatprep.mubr.f32.mxu0 %v21988_v28  ;;  %v17502_v47 = vand.u32 4294901760, %v133_v44  ;;  %v148_v33 = vmax.f32 %v17464_v43, 0.0  ;;  %v17508_v5 = vld [vmem:[%s19570_s0 + $0xc0] sm:$0xff] }
 0x2ee   :  { %10994 = vmatpush3.msra.mxu1 %v21984_v22  ;;  %21985 = vst [vmem:[#allocation11_spill] sm:$0xff] %v17486_v62  ;;  %v17491_v55 = vsub.f32 %v17360_v52, %v21986_v17  ;;  %v21987_v22 = vand.u32 4294901760, %v17243_v23  ;;  %v10465_v23 = vadd.f32 %v10464_v21, %v10463_v35  ;;  %10948 = vmatpush3.msra.mxu0 %v17275_v57  ;;  %v21990_v43 = vand.u32 4294901760, %v17280_v30  ;;  %v21991_v52 = vld [vmem:[#allocation30_spill] sm:$0xff]  ;;  %v10416_v30 = vpop.f32.mrf.mxu0 }
 0x2ef   :  { %21989 = vst [vmem:[#allocation21_spill] sm:$0xff] %v17502_v47  ;;  %v17514_v17 = vsub.f32 %v134_v16, %v17459_v9  ;;  %v17518_v39 = vadd.f32 %v10415_v61, %v17037_v0  ;;  %6557 = vmatmul.mubr.f32.gmra.mxu0 %v21991_v52  ;;  %v17524_v35 = vand.u32 4294901760, %v17484_v59  ;;  %v21993_v27 = vand.u32 4294901760, %v17421_v34  ;;  %v395_v16 = vld [vmem:[%s19569_s1 + $0x500] sm:$0xff]  ;;  %6696 = vmatmul.mubr.f32.gmra.mxu1 %v21960_v63 }
 0x2f0   :  { %10995 = vmatprep.subr.mxu1 %v21987_v22  ;;  %v17536_v61 = vadd.f32 %v10465_v23, %v17355_v25  ;;  %10949 = vmatprep.subr.mxu0 %v17345_v38  ;;  %v17542_v18 = vand.u32 4294901760, %v17499_v2  ;;  %v147_v22 = vmax.f32 %v17508_v5, 0.0  ;;  %v17552_v25 = vld [vmem:[%s19570_s0 + $0x138] sm:$0xff]  ;;  %v10466_v23 = vpop.f32.mrf.mxu1  ;;  %v21996_v63 = vand.u32 4294901760, %v17296_v7  ;;  %v10417_v57 = vpop.f32.mrf.mxu0 }
 0x2f1   :  { %10996 = vmatpush3.msra.mxu1 %v21990_v43  ;;  %21992 = vst [vmem:[#allocation8_spill] sm:$0xff] %v17524_v35  ;;  %v17529_v21 = vsub.f32 %v17421_v34, %v21993_v27  ;;  %v17546_v27 = vsub.f32 %v17413_v10, %v17452_v41  ;;  %10950 = vmatpush3.msra.mxu0 %v17307_v4  ;;  %v21997_v0 = vand.u32 4294901760, %v17440_v50  ;;  %v17568_v38 = vand.u32 4294901760, %v148_v33 }
 0x2f2   :  { %21994 = vst [vmem:[#allocation20_spill] sm:$0xff] %v17536_v61  ;;  %21995 = vst [vmem:[#allocation4_spill] sm:$0xff] %v17542_v18  ;;  %10997 = vmatprep.subr.mxu1 %v21996_v63  ;;  %v17558_v43 = vsub.f32 %v396_v6, %v17486_v62  ;;  %v17566_v5 = vsub.f32 %v133_v44, %v17502_v47  ;;  %v21999_v34 = vand.u32 4294901760, %v17312_v36  ;;  %10951 = vmatprep.subr.mxu0 %v17363_v56  ;;  %v10467_v44 = vpop.f32.mrf.mxu1  ;;  %v22003_v61 = vld [vmem:[#allocation64_spill] sm:$0xff]  ;;  %v22007_v56 = vld [vmem:[#allocation66_spill] sm:$0xff] }
 0x2f3   :  { %v17563_v10 = vsub.f32 %v17440_v50, %v21997_v0  ;;  %21998 = vst [vmem:[#allocation55_spill] sm:$0xff] %v17568_v38  ;;  %v17573_v7 = vand.u32 4294901760, %v395_v16  ;;  %v22001_v63 = vand.u32 4294901760, %v17378_v45  ;;  %v10418_v4 = vadd.f32 %v10417_v57, %v10416_v30  ;;  %6562 = vmatprep.mubr.f32.mxu0 %v22003_v61  ;;  %6701 = vmatprep.mubr.f32.mxu1 %v21971_v31 }
 0x2f4   :  { %10998 = vmatpush3.msra.mxu1 %v21999_v34  ;;  %v22002_v50 = vand.u32 4294901760, %v17324_v29  ;;  %v22004_v36 = vand.u32 4294901760, %v17473_v42  ;;  %v162_v6 = vmax.f32 %v17552_v25, 0.0  ;;  %v10468_v57 = vadd.f32 %v10467_v44, %v10466_v23  ;;  %10952 = vmatpush3.msra.mxu0 %v17326_v14 }
 0x2f5   :  { %22000 = vst [vmem:[#allocation57_spill] sm:$0xff] %v17573_v7  ;;  %v17579_v0 = vsub.f32 %v17378_v45, %v22001_v63  ;;  %v17594_v63 = vld [vmem:[%s19570_s0 + $0x130] sm:$0xff]  ;;  %v7133_v29 = vand.u32 4294901760, %v17529_v21  ;;  %v17600_v30 = vand.u32 4294901760, %v147_v22  ;;  %v22006_v25 = vand.u32 4294901760, %v17368_v12  ;;  %6564 = vmatmul.mubr.f32.gmra.mxu0 %v22007_v56  ;;  %6703 = vmatmul.mubr.f32.gmra.mxu1 %v21977_v60  ;;  %v10469_v60 = vpop.f32.mrf.mxu1 }
 0x2f6   :  { %10999 = vmatprep.subr.mxu1 %v22002_v50  ;;  %v17587_v34 = vsub.f32 %v17473_v42, %v22004_v36  ;;  %v17603_v36 = vadd.f32 %v10418_v4, %v17116_v15  ;;  %v17611_v44 = vsub.f32 %v148_v33, %v17568_v38  ;;  %v17614_v21 = vadd.f32 %v10468_v57, %v17430_v8  ;;  %v10419_v50 = vpop.f32.mrf.mxu0  ;;  %v17631_v8 = vld [vmem:[%s19570_s0 + $0x1a8] sm:$0xff] }
 0x2f7   :  { %22005 = vst [vmem:[#allocation69_spill] sm:$0xff] %v17600_v30  ;;  %11000 = vmatpush3.msra.mxu1 %v22006_v25  ;;  %10953 = vmatprep.subr.mxu0 %v17408_v26  ;;  %v17619_v15 = vsub.f32 %v395_v16, %v17573_v7  ;;  %v22008_v4 = vand.u32 4294901760, %v17514_v17  ;;  %v161_v33 = vmax.f32 %v17594_v63, 0.0  ;;  %v22009_v57 = vand.u32 4294901760, %v17396_v32 }
 0x2f8   :  { %10954 = vmatpush3.msra.mxu0 %v17380_v40  ;;  %v17644_v63 = vsub.f32 %v17484_v59, %v17524_v35  ;;  %v17646_v25 = vand.u32 4294901760, %v162_v6  ;;  %v10420_v31 = vpop.f32.mrf.mxu0  ;;  %v22012_v26 = vand.u32 4294901760, %v17385_v53  ;;  %v22013_v32 = vand.u32 4294901760, %v17546_v27  ;;  %v17663_v59 = vld [vmem:[%s19570_s0 + $0x1a0] sm:$0xff]  ;;  %v10470_v53 = vpop.f32.mrf.mxu1  ;;  %6569 = vmatprep.mubr.f32.mxu0 %v16735_v13 }
 0x2f9   :  { %v17624_v12 = vsub.f32 %v17514_v17, %v22008_v4  ;;  %11001 = vmatprep.subr.mxu1 %v22009_v57  ;;  %v22010_v4 = vand.u32 4294901760, %v17449_v54  ;;  %10955 = vmatprep.subr.mxu0 %v17452_v41  ;;  %v17658_v16 = vsub.f32 %v147_v22, %v17600_v30  ;;  %v10421_v40 = vadd.f32 %v10420_v31, %v10419_v50 }
 0x2fa   :  { %22011 = vst [vmem:[#allocation18_spill] sm:$0xff] %v17646_v25  ;;  %11002 = vmatpush3.msra.mxu1 %v22012_v26  ;;  %v17654_v57 = vsub.f32 %v17546_v27, %v22013_v32  ;;  %v22014_v26 = vand.u32 4294901760, %v17418_v37  ;;  %v22015_v32 = vand.u32 4294901760, %v17566_v5  ;;  %v176_v22 = vmax.f32 %v17631_v8, 0.0  ;;  %6708 = vmatprep.mubr.f32.mxu1 %v21988_v28  ;;  %v22018_v8 = vld [vmem:[#allocation13_spill] sm:$0xff] }
 0x2fb   :  { %v17640_v23 = vsub.f32 %v17449_v54, %v22010_v4  ;;  %v20444_v4 = vand.u32 4294901760, %v17611_v44  ;;  %v10471_v14 = vadd.f32 %v10470_v53, %v10469_v60  ;;  %10956 = vmatpush3.msra.mxu0 %v17426_v51  ;;  %v6829_v50 = vand.u32 4294901760, %v17624_v12  ;;  %6710 = vmatmul.mubr.f32.gmra.mxu1 %v21991_v52  ;;  %v10472_v28 = vpop.f32.mrf.mxu1 }
 0x2fc   :  { %11003 = vmatprep.subr.mxu1 %v22014_v26  ;;  %v6834_v41 = vsub.f32 %v17566_v5, %v22015_v32  ;;  %v17678_v37 = vsub.f32 %v17499_v2, %v17542_v18  ;;  %v17680_v31 = vand.u32 4294901760, %v161_v33  ;;  %v17683_v26 = vadd.f32 %v10421_v40, %v17191_v3  ;;  %6571 = vmatmul.mubr.f32.gmra.mxu0 %v22018_v8  ;;  %v17696_v2 = vld [vmem:[%s19570_s0 + $0x218] sm:$0xff]  ;;  %v10422_v40 = vpop.f32.mrf.mxu0 }
 0x2fd   :  { %v22017_v32 = vand.u32 4294901760, %v17457_v58  ;;  %v17690_v60 = vsub.f32 %v162_v6, %v17646_v25  ;;  %v175_v12 = vmax.f32 %v17663_v59, 0.0  ;;  %v17699_v3 = vadd.f32 %v10471_v14, %v17518_v39  ;;  %10957 = vmatprep.subr.mxu0 %v17524_v35  ;;  %6715 = vmatprep.mubr.f32.mxu1 %v22003_v61 }
 0x2fe   :  { %22016 = vst [vmem:[#allocation37_spill] sm:$0xff] %v17680_v31  ;;  %v7035_v58 = vand.u32 4294901760, %v17640_v23  ;;  %v7154_v6 = vand.u32 4294901760, %v17654_v57  ;;  %v22020_v53 = vand.u32 4294901760, %v17479_v24  ;;  %10958 = vmatpush3.msra.mxu0 %v17486_v62  ;;  %v6835_v39 = vand.u32 4294901760, %v6834_v41  ;;  %v17721_v57 = vld [vmem:[%s19570_s0 + $0x210] sm:$0xff]  ;;  %v10473_v62 = vpop.f32.mrf.mxu1  ;;  %6830 = vmatprep.mubr.f32.mxu0 %v6829_v50 }
 0x2ff   :  { %11004 = vmatpush3.msra.mxu1 %v22017_v32  ;;  %22019 = vst [vmem:[#allocation71_spill] sm:$0xff] %v17690_v60  ;;  %v6843_v14 = vsub.f32 %v17611_v44, %v20444_v4  ;;  %v17716_v23 = vand.u32 4294901760, %v176_v22  ;;  %v22022_v32 = vand.u32 4294901760, %v17491_v55  ;;  %10959 = vmatprep.subr.mxu0 %v17542_v18  ;;  %v190_v4 = vmax.f32 %v17696_v2, 0.0 }
 0x300   :  { %v17708_v59 = vsub.f32 %v17479_v24, %v22020_v53  ;;  %11005 = vmatprep.subr.mxu1 %v7133_v29  ;;  %v10423_v53 = vpop.f32.mrf.mxu0  ;;  %v17728_v29 = vsub.f32 %v161_v33, %v17680_v31  ;;  %v22023_v35 = vand.u32 4294901760, %v17563_v10  ;;  %v22024_v51 = vand.u32 4294901760, %v17644_v63  ;;  %10960 = vmatpush3.msra.mxu0 %v17573_v7 }
 0x301   :  { %22021 = vst [vmem:[#allocation6_spill] sm:$0xff] %v17716_v23  ;;  %11006 = vmatpush3.msra.mxu1 %v22022_v32  ;;  %v10424_v52 = vadd.f32 %v10423_v53, %v10422_v40  ;;  %v20453_v32 = vand.u32 4294901760, %v17690_v60  ;;  %v17738_v18 = vand.u32 4294901760, %v175_v12  ;;  %v10474_v41 = vadd.f32 %v10473_v62, %v10472_v28  ;;  %6836 = vmatmul.mubr.f32.vlgmr.msra.gmra.mxu0 %v6835_v39 }
 0x302   :  { %11007 = vmatprep.subr.mxu1 %v22023_v35  ;;  %v7160_v55 = vsub.f32 %v17644_v63, %v22024_v51  ;;  %v22026_v33 = vand.u32 4294901760, %v17658_v16  ;;  %v20454_v35 = vand.u32 4294901760, %v17619_v15  ;;  %v189_v61 = vmax.f32 %v17721_v57, 0.0  ;;  %v10513_v57 = vpop.f32.mrf.mxu0  ;;  %6717 = vmatmul.mubr.f32.gmra.mxu1 %v22007_v56 }
 0x303   :  { %22025 = vst [vmem:[#allocation26_spill] sm:$0xff] %v17738_v18  ;;  %v17747_v10 = vadd.f32 %v10424_v52, %v17257_v46  ;;  %v22027_v51 = vand.u32 4294901760, %v17579_v0  ;;  %v7042_v62 = vand.u32 4294901760, %v17708_v59  ;;  %v22028_v28 = vand.u32 4294901760, %v17558_v43  ;;  %11041 = vmatprep.subr.mxu0 %v16980_v48  ;;  %6722 = vmatprep.mubr.f32.mxu1 %v16735_v13 }
 0x304   :  { %v6849_v2 = vsub.f32 %v17658_v16, %v22026_v33  ;;  %v17756_v40 = vsub.f32 %v176_v22, %v17716_v23  ;;  %v17759_v53 = vadd.f32 %v10474_v41, %v17603_v36  ;;  %v22030_v46 = vand.u32 4294901760, %v17587_v34  ;;  %v17773_v36 = vld [vmem:[%s19570_s0 + $0x288] sm:$0xff]  ;;  %v10475_v22 = vpop.f32.mrf.mxu1  ;;  %v10514_v41 = vpop.f32.mrf.mxu0  ;;  %11042 = vmatpush3.msra.mxu0 %v16989_v11 }
 0x305   :  { %11008 = vmatpush3.msra.mxu1 %v22027_v51  ;;  %v7048_v50 = vsub.f32 %v17558_v43, %v22028_v28  ;;  %v6844_v0 = vand.u32 4294901760, %v6843_v14  ;;  %v22031_v39 = vand.u32 4294901760, %v17678_v37  ;;  %v20461_v52 = vand.u32 4294901760, %v17728_v29  ;;  %11043 = vmatprep.subr.mxu0 %v16997_v20 }
 0x306   :  { %22029 = vst [vmem:[#allocation41_spill] sm:$0xff] %v17756_v40  ;;  %11009 = vmatprep.subr.mxu1 %v22030_v46  ;;  %v17768_v33 = vand.u32 4294901760, %v190_v4  ;;  %v7161_v56 = vand.u32 4294901760, %v7160_v55  ;;  %v6858_v34 = vsub.f32 %v17690_v60, %v20453_v32  ;;  %v17780_v14 = vsub.f32 %v175_v12, %v17738_v18  ;;  %v10476_v55 = vpop.f32.mrf.mxu1  ;;  %11044 = vmatpush3.msra.mxu0 %v17007_v19 }
 0x307   :  { %v7167_v59 = vsub.f32 %v17678_v37, %v22031_v39  ;;  %11010 = vmatpush3.msra.mxu1 %v7035_v58  ;;  %v6850_v51 = vand.u32 4294901760, %v6849_v2  ;;  %v7055_v28 = vsub.f32 %v17619_v15, %v20454_v35  ;;  %v17786_v46 = vand.u32 4294901760, %v189_v61  ;;  %v17791_v58 = vld [vmem:[%s19570_s0 + $0x280] sm:$0xff]  ;;  %6845 = vmatprep.mubr.f32.mxu0 %v6844_v0 }
 0x308   :  { %22032 = vst [vmem:[#allocation53_spill] sm:$0xff] %v17768_v33  ;;  %22033 = vst [vmem:[#allocation27_spill] sm:$0xff] %v17780_v14  ;;  %11011 = vmatprep.subr.mxu1 %v7154_v6  ;;  %v10515_v39 = vadd.f32 %v10514_v41, %v10513_v57  ;;  %v7049_v12 = vand.u32 4294901760, %v7048_v50  ;;  %v20459_v6 = vand.u32 4294901760, %v17756_v40  ;;  %v204_v2 = vmax.f32 %v17773_v36, 0.0  ;;  %6724 = vmatmul.mubr.f32.gmra.mxu1 %v22018_v8  ;;  %v10516_v8 = vpop.f32.mrf.mxu0  ;;  %v105_v41 = vld [vmem:[%s19570_s0 + $0x2f0] sm:$0xff] }
 0x309   :  { %22034 = vst [vmem:[#allocation67_spill] sm:$0xff] %v17786_v46  ;;  %v10477_v32 = vadd.f32 %v10476_v55, %v10475_v22  ;;  %11012 = vmatpush3.msra.mxu1 %v7042_v62  ;;  %v7168_v35 = vand.u32 4294901760, %v7167_v59  ;;  %v6864_v7 = vsub.f32 %v17728_v29, %v20461_v52  ;;  %v17801_v60 = vsub.f32 %v190_v4, %v17768_v33  ;;  %v10478_v59 = vpop.f32.mrf.mxu1  ;;  %v22043_v52 = vld [vmem:[#allocation9_spill] sm:$0xff] }
 0x30a   :  { %v17804_v57 = vadd.f32 %v10515_v39, %v17340_v49  ;;  %v6859_v13 = vand.u32 4294901760, %v6858_v34  ;;  %v20460_v50 = vand.u32 4294901760, %v17780_v14  ;;  %v203_v62 = vmax.f32 %v17791_v58, 0.0  ;;  %6851 = vmatmul.mubr.f32.gmra.mxu0 %v6850_v51  ;;  %11013 = vmatprep.subr.mxu1 %v7161_v56  ;;  %v106_v49 = vld [vmem:[%s19570_s0 + $0x2f8] sm:$0xff]  ;;  %v22038_v56 = vld [vmem:[#allocation10_spill] sm:$0xff] }
 0x30b   :  { %22035 = vst [vmem:[#allocation7_spill] sm:$0xff] %v17801_v60  ;;  %v17811_v0 = vadd.f32 %v10477_v32, %v17683_v26  ;;  %v7056_v4 = vand.u32 4294901760, %v7055_v28  ;;  %v17814_v36 = vsub.f32 %v189_v61, %v17786_v46  ;;  %11045 = vmatprep.subr.mxu0 %v17034_v1  ;;  %11014 = vmatpush3.msra.mxu1 %v7049_v12  ;;  %v17823_v32 = vand.u32 4294901760, %v204_v2  ;;  %v10479_v22 = vpop.f32.mrf.mxu1  ;;  %v10517_v28 = vpop.f32.mrf.mxu0  ;;  %v22039_v58 = vld [vmem:[#allocation50_spill] sm:$0xff] }
 0x30c   :  { %v6873_v26 = vsub.f32 %v17756_v40, %v20459_v6  ;;  %11046 = vmatpush3.msra.mxu0 %v22038_v56  ;;  %11015 = vmatprep.subr.mxu1 %v7168_v35  ;;  %v6865_v61 = vand.u32 4294901760, %v6864_v7  ;;  %v20464_v34 = vand.u32 4294901760, %v17801_v60  ;;  %v10480_v51 = vadd.f32 %v10479_v22, %v10478_v59  ;;  %v22041_v59 = vld [vmem:[#allocation45_spill] sm:$0xff]  ;;  %v22049_v7 = vld [vmem:[#allocation43_spill] sm:$0xff] }
 0x30d   :  { %22036 = vst [vmem:[#allocation30_spill] sm:$0xff] %v17814_v36  ;;  %22037 = vst [vmem:[#allocation64_spill] sm:$0xff] %v17823_v32  ;;  %11047 = vmatprep.subr.mxu0 %v22039_v58  ;;  %6860 = vmatprep.mubr.f32.mxu0 %v6859_v13  ;;  %v6879_v55 = vsub.f32 %v17780_v14, %v20460_v50  ;;  %v17834_v39 = vand.u32 4294901760, %v203_v62  ;;  %v218_v12 = vmax.f32 %v106_v49, 0.0  ;;  %v217_v50 = vmax.f32 %v105_v41, 0.0  ;;  %v22052_v40 = vld [vmem:[#allocation65_spill] sm:$0xff] }
 0x30e   :  { %v10518_v35 = vadd.f32 %v10517_v28, %v10516_v8  ;;  %11016 = vmatpush3.msra.mxu1 %v7056_v4  ;;  %7171 = vmatprep.mubr.f32.mxu1 %v17459_v9  ;;  %v17839_v6 = vadd.f32 %v10480_v51, %v17747_v10  ;;  %v6874_v13 = vand.u32 4294901760, %v6873_v26  ;;  %v17844_v22 = vsub.f32 %v204_v2, %v17823_v32  ;;  %v10569_v4 = vpop.f32.mrf.mxu1  ;;  %v22044_v8 = vld [vmem:[#allocation70_spill] sm:$0xff]  ;;  %v120_v51 = vld [vmem:[%s19570_s0 + $0x368] sm:$0xff]  ;;  %v10519_v26 = vpop.f32.mrf.mxu0  ;;  %v22046_v2 = vld [vmem:[#allocation48_spill] sm:$0xff] }
 0x30f   :  { %22040 = vst [vmem:[#allocation66_spill] sm:$0xff] %v17834_v39  ;;  %11048 = vmatpush3.msra.mxu0 %v22041_v59  ;;  %7173 = vmatmul.mubr.f32.vlgmr.msra.gmra.mxu1 %v17502_v47  ;;  %v6888_v10 = vsub.f32 %v17801_v60, %v20464_v34  ;;  %v22045_v28 = vld [vmem:[#allocation22_spill] sm:$0xff]  ;;  %v6880_v41 = vand.u32 4294901760, %v6879_v55  ;;  %v22050_v47 = vld [vmem:[#allocation15_spill] sm:$0xff]  ;;  %v22051_v34 = vand.u32 4294901760, %v17814_v36 }
 0x310   :  { %22042 = vst [vmem:[#allocation13_spill] sm:$0xff] %v17844_v22  ;;  %v17847_v49 = vadd.f32 %v10518_v35, %v22043_v52  ;;  %6866 = vmatmul.mubr.f32.gmra.mxu0 %v6865_v61  ;;  %11049 = vmatprep.subr.mxu0 %v22044_v8  ;;  %v17859_v52 = vsub.f32 %v203_v62, %v17834_v39  ;;  %v17861_v61 = vand.u32 4294901760, %v218_v12  ;;  %v10570_v35 = vpop.f32.mrf.mxu1  ;;  %v119_v60 = vld [vmem:[%s19570_s0 + $0x360] sm:$0xff]  ;;  %v10520_v14 = vpop.f32.mrf.mxu0  ;;  %v22055_v8 = vld [vmem:[#allocation5_spill] sm:$0xff]  ;;  %v22057_v62 = vld [vmem:[#allocation20_spill] sm:$0xff] }
 0x311   :  { %11097 = vmatprep.subr.mxu1 %v22045_v28  ;;  %11050 = vmatpush3.msra.mxu0 %v22046_v2  ;;  %v6894_v9 = vsub.f32 %v17814_v36, %v22051_v34  ;;  %v10571_v55 = vadd.f32 %v10570_v35, %v10569_v4  ;;  %v17873_v2 = vand.u32 4294901760, %v217_v50  ;;  %v10521_v28 = vadd.f32 %v10520_v14, %v10519_v26  ;;  %v22058_v26 = vld [vmem:[#allocation35_spill] sm:$0xff] }
 0x312   :  { %22047 = vst [vmem:[#allocation10_spill] sm:$0xff] %v17859_v52  ;;  %22048 = vst [vmem:[#allocation50_spill] sm:$0xff] %v17861_v61  ;;  %11098 = vmatpush3.msra.mxu1 %v22049_v7  ;;  %11051 = vmatprep.subr.mxu0 %v22050_v47  ;;  %v232_v7 = vmax.f32 %v120_v51, 0.0  ;;  %v22054_v47 = vld [vmem:[#allocation42_spill] sm:$0xff]  ;;  %v6889_v34 = vand.u32 4294901760, %v6888_v10  ;;  %v231_v35 = vmax.f32 %v119_v60, 0.0  ;;  %v10522_v14 = vpop.f32.mrf.mxu0  ;;  %v10572_v10 = vpop.f32.mrf.mxu1 }
 0x313   :  { %11099 = vmatprep.subr.mxu1 %v22052_v40  ;;  %6875 = vmatprep.mubr.f32.mxu0 %v6874_v13  ;;  %22053 = vst [vmem:[#allocation45_spill] sm:$0xff] %v17873_v2  ;;  %v17878_v36 = vadd.f32 %v10571_v55, %v17804_v57  ;;  %v17883_v13 = vsub.f32 %v218_v12, %v17861_v61  ;;  %v22060_v57 = vld [vmem:[#allocation36_spill] sm:$0xff]  ;;  %v6895_v55 = vand.u32 4294901760, %v6894_v9  ;;  %v22066_v9 = vand.u32 4294901760, %v17859_v52 }
 0x314   :  { %7178 = vmatprep.mubr.f32.mxu1 %v17568_v38  ;;  %11052 = vmatpush3.msra.mxu0 %v22054_v47  ;;  %v5284_v51 = vadd.f32 %v10521_v28, %v22057_v62  ;;  %v22059_v38 = vld [vmem:[#allocation33_spill] sm:$0xff]  ;;  %v17894_v12 = vsub.f32 %v217_v50, %v17873_v2  ;;  %v17896_v60 = vand.u32 4294901760, %v232_v7  ;;  %v10523_v28 = vpop.f32.mrf.mxu0  ;;  %v22063_v62 = vld [vmem:[#allocation28_spill] sm:$0xff]  ;;  %v17905_v50 = vand.u32 4294901760, %v231_v35 }
 0x315   :  { %11100 = vmatpush3.msra.mxu1 %v22055_v8  ;;  %6881 = vmatmul.mubr.f32.gmra.mxu0 %v6880_v41  ;;  %22056 = vst [vmem:[#allocation9_spill] sm:$0xff] %v17883_v13  ;;  %v22061_v41 = vand.u32 4294901760, %v17844_v22  ;;  %v10573_v8 = vpop.f32.mrf.mxu1  ;;  %v22068_v47 = vld [vmem:[#allocation16_spill] sm:$0xff] }
 0x316   :  { %7180 = vmatmul.mubr.f32.gmra.mxu1 %v17600_v30  ;;  %11053 = vmatprep.subr.mxu0 %v22058_v26  ;;  %22062 = vst [vmem:[#allocation65_spill] sm:$0xff] %v17894_v12  ;;  %v22064_v30 = vld [vmem:[#allocation68_spill] sm:$0xff]  ;;  %v10524_v26 = vadd.f32 %v10523_v28, %v10522_v14  ;;  %22067 = vst [vmem:[#allocation20_spill] sm:$0xff] %v17905_v50 }
 0x317   :  { %11101 = vmatprep.subr.mxu1 %v22059_v38  ;;  %11054 = vmatpush3.msra.mxu0 %v22060_v57  ;;  %v6903_v4 = vsub.f32 %v17844_v22, %v22061_v41  ;;  %v22065_v38 = vld [vmem:[#allocation51_spill] sm:$0xff]  ;;  %v6909_v57 = vsub.f32 %v17859_v52, %v22066_v9  ;;  %v10574_v22 = vadd.f32 %v10573_v8, %v10572_v10  ;;  %v22069_v14 = vld [vmem:[#allocation44_spill] sm:$0xff]  ;;  %v10575_v10 = vpop.f32.mrf.mxu1 }
 0x318   :  { %11102 = vmatpush3.msra.mxu1 %v22063_v62  ;;  %11055 = vmatprep.subr.mxu0 %v22064_v30  ;;  %v5291_v30 = vadd.f32 %v10524_v26, %v17614_v21  ;;  %v10525_v41 = vpop.f32.mrf.mxu0  ;;  %v22071_v8 = vld [vmem:[#allocation3_spill] sm:$0xff] }
 0x319   :  { %11103 = vmatprep.subr.mxu1 %v22065_v38  ;;  %6890 = vmatprep.mubr.f32.mxu0 %v6889_v34  ;;  %v6904_v28 = vand.u32 4294901760, %v6903_v4  ;;  %v17913_v38 = vsub.f32 %v232_v7, %v17896_v60  ;;  %v17916_v9 = vadd.f32 %v10574_v22, %v17847_v49  ;;  %v22073_v21 = vld [vmem:[#allocation59_spill] sm:$0xff]  ;;  %v6910_v26 = vand.u32 4294901760, %v6909_v57  ;;  %v22075_v49 = vld [vmem:[#allocation38_spill] sm:$0xff]  ;;  %v10576_v52 = vpop.f32.mrf.mxu1 }
 0x31a   :  { %7185 = vmatprep.mubr.f32.mxu1 %v17646_v25  ;;  %11056 = vmatpush3.msra.mxu0 %v22068_v47  ;;  %v22072_v25 = vld [vmem:[#allocation29_spill] sm:$0xff]  ;;  %v22074_v4 = vand.u32 4294901760, %v17883_v13  ;;  %v17926_v7 = vsub.f32 %v231_v35, %v17905_v50  ;;  %v10526_v22 = vpop.f32.mrf.mxu0  ;;  %v22076_v34 = vld [vmem:[#allocation63_spill] sm:$0xff]  ;;  %v22079_v35 = vld [vmem:[#allocation54_spill] sm:$0xff] }
 0x31b   :  { %11104 = vmatpush3.msra.mxu1 %v22069_v14  ;;  %6896 = vmatmul.mubr.f32.gmra.mxu0 %v6895_v55  ;;  %22070 = vst [vmem:[#allocation28_spill] sm:$0xff] %v17913_v38 }
 0x31c   :  { %7187 = vmatmul.mubr.f32.gmra.mxu1 %v17680_v31  ;;  %11057 = vmatprep.subr.mxu0 %v22071_v8  ;;  %v6918_v55 = vsub.f32 %v17883_v13, %v22074_v4  ;;  %v10527_v31 = vadd.f32 %v10526_v22, %v10525_v41  ;;  %v22077_v8 = vld [vmem:[#allocation17_spill] sm:$0xff]  ;;  %v10577_v4 = vadd.f32 %v10576_v52, %v10575_v10 }
 0x31d   :  { %11105 = vmatprep.subr.mxu1 %v22072_v25  ;;  %11058 = vmatpush3.msra.mxu0 %v22073_v21  ;;  %v22078_v21 = vand.u32 4294901760, %v17894_v12  ;;  %v10578_v52 = vpop.f32.mrf.mxu1  ;;  %v22082_v10 = vld [vmem:[#allocation25_spill] sm:$0xff]  ;;  %v22083_v25 = vld [vmem:[#allocation34_spill] sm:$0xff] }
 0x31e   :  { %11106 = vmatpush3.msra.mxu1 %v22075_v49  ;;  %11059 = vmatprep.subr.mxu0 %v22076_v34  ;;  %v5298_v13 = vadd.f32 %v10527_v31, %v17699_v3  ;;  %v22080_v49 = vld [vmem:[#allocation47_spill] sm:$0xff]  ;;  %v6919_v41 = vand.u32 4294901760, %v6918_v55  ;;  %v22084_v31 = vand.u32 4294901760, %v17913_v38  ;;  %v22085_v55 = vld [vmem:[#allocation14_spill] sm:$0xff] }
 0x31f   :  { %11107 = vmatprep.subr.mxu1 %v22077_v8  ;;  %6905 = vmatprep.mubr.f32.mxu0 %v6904_v28  ;;  %v6924_v57 = vsub.f32 %v17894_v12, %v22078_v21  ;;  %v17940_v28 = vadd.f32 %v10577_v4, %v5284_v51  ;;  %v10528_v8 = vpop.f32.mrf.mxu0  ;;  %v22081_v21 = vld [vmem:[#allocation49_spill] sm:$0xff]  ;;  %v22086_v51 = vld [vmem:[#allocation12_spill] sm:$0xff]  ;;  %v10579_v22 = vpop.f32.mrf.mxu1  ;;  %v22088_v12 = vand.u32 4294901760, %v17926_v7 }
 0x320   :  { %7192 = vmatprep.mubr.f32.mxu1 %v17716_v23  ;;  %11060 = vmatpush3.msra.mxu0 %v22079_v35  ;;  %v6933_v3 = vsub.f32 %v17913_v38, %v22084_v31  ;;  %v22089_v31 = vld [vmem:[#allocation19_spill] sm:$0xff] }
 0x321   :  { %11108 = vmatpush3.msra.mxu1 %v22080_v49  ;;  %6911 = vmatmul.mubr.f32.gmra.mxu0 %v6910_v26  ;;  %v6925_v23 = vand.u32 4294901760, %v6924_v57  ;;  %v10529_v26 = vpop.f32.mrf.mxu0 }
 0x322   :  { %7194 = vmatmul.mubr.f32.gmra.mxu1 %v17738_v18  ;;  %11061 = vmatprep.subr.mxu0 %v22081_v21  ;;  %v10530_v4 = vadd.f32 %v10529_v26, %v10528_v8  ;;  %v22087_v18 = vld [vmem:[#allocation40_spill] sm:$0xff]  ;;  %v6934_v38 = vand.u32 4294901760, %v6933_v3 }
 0x323   :  { %11109 = vmatprep.subr.mxu1 %v22082_v10  ;;  %11062 = vmatpush3.msra.mxu0 %v22083_v25  ;;  %v6939_v10 = vsub.f32 %v17926_v7, %v22088_v12  ;;  %v10580_v25 = vadd.f32 %v10579_v22, %v10578_v52  ;;  %v10531_v26 = vpop.f32.mrf.mxu0  ;;  %v22090_v12 = vld [vmem:[#allocation52_spill] sm:$0xff] }
 0x324   :  { %11110 = vmatpush3.msra.mxu1 %v22085_v55  ;;  %11063 = vmatprep.subr.mxu0 %v22086_v51  ;;  %v5305_v57 = vadd.f32 %v10530_v4, %v17759_v53  ;;  %v22093_v4 = vld [vmem:[#allocation46_spill] sm:$0xff] }
 0x325   :  { %11111 = vmatprep.subr.mxu1 %v22087_v18  ;;  %6920 = vmatprep.mubr.f32.mxu0 %v6919_v41  ;;  %v17959_v8 = vadd.f32 %v10580_v25, %v5291_v30  ;;  %v10581_v41 = vpop.f32.mrf.mxu1  ;;  %v6940_v22 = vand.u32 4294901760, %v6939_v10  ;;  %v10532_v52 = vpop.f32.mrf.mxu0  ;;  %v22092_v30 = vld [vmem:[#allocation39_spill] sm:$0xff] }
 0x326   :  { %7199 = vmatprep.mubr.f32.mxu1 %v17768_v33  ;;  %11064 = vmatpush3.msra.mxu0 %v17378_v45  ;;  %v22091_v33 = vld [vmem:[#allocation58_spill] sm:$0xff] }
 0x327   :  { %11112 = vmatpush3.msra.mxu1 %v22089_v31  ;;  %6926 = vmatmul.mubr.f32.gmra.mxu0 %v6925_v23  ;;  %v10533_v23 = vadd.f32 %v10532_v52, %v10531_v26  ;;  %v10582_v53 = vpop.f32.mrf.mxu1  ;;  %v22094_v52 = vld [vmem:[#allocation56_spill] sm:$0xff] }
 0x328   :  { %7201 = vmatmul.mubr.f32.gmra.mxu1 %v17786_v46  ;;  %11065 = vmatprep.subr.mxu0 %v17473_v42  ;;  %v10583_v25 = vadd.f32 %v10582_v53, %v10581_v41  ;;  %v22095_v41 = vld [vmem:[#allocation60_spill] sm:$0xff] }
 0x329   :  { %11113 = vmatprep.subr.mxu1 %v22090_v12  ;;  %11066 = vmatpush3.msra.mxu0 %v17449_v54  ;;  %v5312_v3 = vadd.f32 %v10533_v23, %v17811_v0  ;;  %v10584_v26 = vpop.f32.mrf.mxu1 }
 0x32a   :  { %11114 = vmatpush3.msra.mxu1 %v22091_v33  ;;  %11067 = vmatprep.subr.mxu0 %v17546_v27  ;;  %v17972_v10 = vadd.f32 %v10583_v25, %v5298_v13  ;;  %v10534_v46 = vpop.f32.mrf.mxu0  ;;  %v22097_v25 = vld [vmem:[#allocation61_spill] sm:$0xff] }
 0x32b   :  { %11115 = vmatprep.subr.mxu1 %v22092_v30  ;;  %6935 = vmatprep.mubr.f32.mxu0 %v6934_v38  ;;  %v10585_v23 = vpop.f32.mrf.mxu1 }
 0x32c   :  { %7206 = vmatprep.mubr.f32.mxu1 %v17823_v32  ;;  %11068 = vmatpush3.msra.mxu0 %v17479_v24  ;;  %v10535_v38 = vpop.f32.mrf.mxu0  ;;  %v10586_v13 = vadd.f32 %v10585_v23, %v10584_v26  ;;  %v22099_v26 = vand.u32 4294901760, %v16980_v48  ;;  %v22100_v23 = vld [vmem:[#allocation2_spill] sm:$0xff] }
 0x32d   :  { %11116 = vmatpush3.msra.mxu1 %v22093_v4  ;;  %6941 = vmatmul.mubr.f32.gmra.mxu0 %v6940_v22  ;;  %v10536_v0 = vadd.f32 %v10535_v38, %v10534_v46  ;;  %v22096_v22 = vld [vmem:[#allocation32_spill] sm:$0xff]  ;;  %v22098_v46 = vld [vmem:[#allocation31_spill] sm:$0xff]  ;;  %v22104_v48 = vld [vmem:[#allocation62_spill] sm:$0xff] }
 0x32e   :  { %7208 = vmatmul.mubr.f32.gmra.mxu1 %v17834_v39  ;;  %11069 = vmatprep.subr.mxu0 %v17644_v63  ;;  %v17987_v39 = vadd.f32 %v10586_v13, %v5305_v57  ;;  %v22103_v13 = vand.u32 4294901760, %v16997_v20  ;;  %v22106_v20 = vld [vmem:[#allocation8_spill] sm:$0xff] }
 0x32f   :  { %11117 = vmatprep.subr.mxu1 %v22094_v52  ;;  %11070 = vmatpush3.msra.mxu0 %v17558_v43  ;;  %v5319_v53 = vadd.f32 %v10536_v0, %v17839_v6  ;;  %v10625_v32 = vpop.f32.mrf.mxu0  ;;  %v22101_v6 = vand.u32 4294901760, %v16989_v11  ;;  %v22102_v0 = vld [vmem:[#allocation23_spill] sm:$0xff] }
 0x330   :  { %11118 = vmatpush3.msra.mxu1 %v22095_v41  ;;  %11071 = vmatprep.subr.mxu0 %v17678_v37  ;;  %v10587_v38 = vpop.f32.mrf.mxu1 }
 0x331   :  { %11119 = vmatprep.subr.mxu1 %v22096_v22  ;;  %7213 = vmatprep.mubr.f32.mxu1 %v17861_v61  ;;  %v10626_v61 = vpop.f32.mrf.mxu0 }
 0x332   :  { %11072 = vmatpush3.msra.mxu0 %v17619_v15  ;;  %7357 = vmatprep.mubr.f32.mxu0 %v17514_v17  ;;  %v10627_v57 = vadd.f32 %v10626_v61, %v10625_v32 }
 0x333   :  { %11120 = vmatpush3.msra.mxu1 %v22097_v25  ;;  %7360 = vmatmul.mubr.f32.vlgmr.msra.gmra.mxu0 %v17566_v5  ;;  %v10588_v25 = vpop.f32.mrf.mxu1 }
 0x334   :  { %7215 = vmatmul.mubr.f32.gmra.mxu1 %v17873_v2  ;;  %11121 = vmatprep.subr.mxu1 %v22098_v46  ;;  %v10589_v2 = vadd.f32 %v10588_v25, %v10587_v38  ;;  %v22107_v25 = vand.u32 4294901760, %v17034_v1  ;;  %v22108_v38 = vld [vmem:[#allocation11_spill] sm:$0xff]  ;;  %v22114_v1 = vand.u32 4294901760, %v17514_v17  ;;  %v22120_v17 = vld [vmem:[#allocation48_spill] sm:$0xff] }
 0x335   :  { %11153 = vmatprep.subr.mxu0 %v22099_v26  ;;  %11122 = vmatpush3.msra.mxu1 %v22100_v23  ;;  %v5584_v26 = vadd.f32 %v10627_v57, %v17878_v36  ;;  %v22105_v23 = vand.u32 4294901760, %v17007_v19  ;;  %v22109_v36 = vand.u32 4294901760, %v22038_v56  ;;  %v22110_v19 = vld [vmem:[#allocation4_spill] sm:$0xff]  ;;  %v22112_v57 = vld [vmem:[#allocation71_spill] sm:$0xff]  ;;  %v22115_v56 = vand.u32 4294901760, %v22041_v59 }
 0x336   :  { %11154 = vmatpush3.msra.mxu0 %v22101_v6  ;;  %11123 = vmatprep.subr.mxu1 %v22102_v0  ;;  %v18006_v11 = vadd.f32 %v10589_v2, %v5312_v3  ;;  %v10590_v32 = vpop.f32.mrf.mxu1  ;;  %v22111_v3 = vand.u32 4294901760, %v22039_v58  ;;  %v22122_v59 = vld [vmem:[#allocation43_spill] sm:$0xff] }
 0x337   :  { %11155 = vmatprep.subr.mxu0 %v22103_v13  ;;  %7220 = vmatprep.mubr.f32.mxu1 %v17896_v60 }
 0x338   :  { %7366 = vmatprep.mubr.f32.mxu0 %v17611_v44  ;;  %11124 = vmatpush3.msra.mxu1 %v22104_v48  ;;  %v10628_v61 = vpop.f32.mrf.mxu0  ;;  %v10591_v6 = vpop.f32.mrf.mxu1 }
 0x339   :  { %11156 = vmatpush3.msra.mxu0 %v22105_v23  ;;  %7222 = vmatmul.mubr.f32.gmra.mxu1 %v17905_v50  ;;  %v10592_v23 = vadd.f32 %v10591_v6, %v10590_v32  ;;  %v22113_v50 = vld [vmem:[#allocation57_spill] sm:$0xff]  ;;  %v22117_v6 = vld [vmem:[#allocation70_spill] sm:$0xff] }
 0x33a   :  { %7369 = vmatmul.mubr.f32.gmra.mxu0 %v17658_v16  ;;  %11125 = vmatprep.subr.mxu1 %v22106_v20  ;;  %v10629_v2 = vpop.f32.mrf.mxu0 }
 0x33b   :  { %11157 = vmatprep.subr.mxu0 %v22107_v25  ;;  %11126 = vmatpush3.msra.mxu1 %v22108_v38  ;;  %v10630_v13 = vadd.f32 %v10629_v2, %v10628_v61  ;;  %v18022_v25 = vadd.f32 %v10592_v23, %v5319_v53  ;;  %v22118_v61 = vand.u32 4294901760, %v22117_v6  ;;  %v22121_v53 = vand.u32 4294901760, %v22120_v17 }
 0x33c   :  { %11158 = vmatpush3.msra.mxu0 %v22109_v36  ;;  %11127 = vmatprep.subr.mxu1 %v22110_v19  ;;  %v22116_v36 = vand.u32 4294901760, %v17566_v5  ;;  %v22126_v6 = vand.u32 4294901760, %v17611_v44 }
 0x33d   :  { %11159 = vmatprep.subr.mxu0 %v22111_v3  ;;  %7375 = vmatprep.mubr.f32.mxu0 %v22112_v57  ;;  %v5599_v32 = vadd.f32 %v10630_v13, %v17916_v9  ;;  %v10681_v58 = vpop.f32.mrf.mxu1  ;;  %v22119_v3 = vld [vmem:[#allocation22_spill] sm:$0xff]  ;;  %v22125_v13 = vld [vmem:[#allocation41_spill] sm:$0xff] }
 0x33e   :  { %11128 = vmatpush3.msra.mxu1 %v22113_v50  ;;  %7527 = vmatprep.mubr.f32.mxu1 %v22114_v1  ;;  %v10631_v2 = vpop.f32.mrf.mxu0  ;;  %v22123_v1 = vld [vmem:[#allocation15_spill] sm:$0xff] }
 0x33f   :  { %11160 = vmatpush3.msra.mxu0 %v22115_v56  ;;  %7531 = vmatmul.mubr.f32.vlgmr.msra.gmra.mxu1 %v22116_v36  ;;  %v10682_v23 = vpop.f32.mrf.mxu1  ;;  %v22124_v5 = vand.u32 4294901760, %v22123_v1 }
 0x340   :  { %7378 = vmatmul.mubr.f32.gmra.mxu0 %v17728_v29  ;;  %11161 = vmatprep.subr.mxu0 %v22118_v61  ;;  %v10632_v56 = vpop.f32.mrf.mxu0  ;;  %v10683_v9 = vadd.f32 %v10682_v23, %v10681_v58  ;;  %v22127_v61 = vld [vmem:[#allocation42_spill] sm:$0xff]  ;;  %v22132_v23 = vld [vmem:[#allocation35_spill] sm:$0xff] }
 0x341   :  { %11209 = vmatprep.subr.mxu1 %v22119_v3  ;;  %11162 = vmatpush3.msra.mxu0 %v22121_v53  ;;  %v10633_v36 = vadd.f32 %v10632_v56, %v10631_v2  ;;  %v22128_v3 = vand.u32 4294901760, %v22127_v61  ;;  %v22129_v53 = vld [vmem:[#allocation5_spill] sm:$0xff]  ;;  %v22133_v2 = vand.u32 4294901760, %v22132_v23  ;;  %v22135_v56 = vld [vmem:[#allocation36_spill] sm:$0xff]  ;;  %v22142_v23 = vand.u32 4294901760, %v22068_v47  ;;  %v22148_v47 = vld [vmem:[#allocation59_spill] sm:$0xff] }
 0x342   :  { %11210 = vmatpush3.msra.mxu1 %v22122_v59  ;;  %11163 = vmatprep.subr.mxu0 %v22124_v5  ;;  %v18044_v17 = vadd.f32 %v10683_v9, %v5584_v26  ;;  %v22130_v59 = vld [vmem:[#allocation27_spill] sm:$0xff]  ;;  %v22134_v5 = vld [vmem:[#allocation33_spill] sm:$0xff]  ;;  %v22137_v9 = vld [vmem:[#allocation68_spill] sm:$0xff] }
 0x343   :  { %11211 = vmatprep.subr.mxu1 %v22052_v40  ;;  %7384 = vmatprep.mubr.f32.mxu0 %v22125_v13  ;;  %v5614_v1 = vadd.f32 %v10633_v36, %v17940_v28  ;;  %v10634_v58 = vpop.f32.mrf.mxu0  ;;  %v22131_v40 = vand.u32 4294901760, %v17658_v16  ;;  %v22138_v61 = vand.u32 4294901760, %v22137_v9  ;;  %v22140_v16 = vld [vmem:[#allocation7_spill] sm:$0xff]  ;;  %v22149_v9 = vand.u32 4294901760, %v22148_v47 }
 0x344   :  { %7538 = vmatprep.mubr.f32.mxu1 %v22126_v6  ;;  %11164 = vmatpush3.msra.mxu0 %v22128_v3  ;;  %v10684_v44 = vpop.f32.mrf.mxu1  ;;  %v22136_v6 = vand.u32 4294901760, %v22135_v56  ;;  %v22139_v3 = vld [vmem:[#allocation51_spill] sm:$0xff]  ;;  %v22144_v56 = vand.u32 4294901760, %v17728_v29  ;;  %v22153_v29 = vld [vmem:[#allocation13_spill] sm:$0xff] }
 0x345   :  { %11212 = vmatpush3.msra.mxu1 %v22129_v53  ;;  %7387 = vmatmul.mubr.f32.gmra.mxu0 %v22130_v59  ;;  %v10635_v26 = vpop.f32.mrf.mxu0 }
 0x346   :  { %7542 = vmatmul.mubr.f32.gmra.mxu1 %v22131_v40  ;;  %11165 = vmatprep.subr.mxu0 %v22133_v2  ;;  %v10636_v28 = vadd.f32 %v10635_v26, %v10634_v58  ;;  %v10685_v36 = vpop.f32.mrf.mxu1  ;;  %v22141_v40 = vand.u32 4294901760, %v22112_v57  ;;  %v22147_v26 = vld [vmem:[#allocation29_spill] sm:$0xff] }
 0x347   :  { %11213 = vmatprep.subr.mxu1 %v22134_v5  ;;  %11166 = vmatpush3.msra.mxu0 %v22136_v6  ;;  %v10686_v53 = vadd.f32 %v10685_v36, %v10684_v44  ;;  %v22145_v6 = vld [vmem:[#allocation3_spill] sm:$0xff]  ;;  %v22152_v36 = vld [vmem:[#allocation17_spill] sm:$0xff] }
 0x348   :  { %11214 = vmatpush3.msra.mxu1 %v22063_v62  ;;  %11167 = vmatprep.subr.mxu0 %v22138_v61  ;;  %v5629_v2 = vadd.f32 %v10636_v28, %v17959_v8  ;;  %v22143_v62 = vld [vmem:[#allocation30_spill] sm:$0xff]  ;;  %v22146_v44 = vand.u32 4294901760, %v22145_v6 }
 0x349   :  { %11215 = vmatprep.subr.mxu1 %v22139_v3  ;;  %7393 = vmatprep.mubr.f32.mxu0 %v22140_v16  ;;  %v18068_v5 = vadd.f32 %v10686_v53, %v5599_v32  ;;  %v10637_v58 = vpop.f32.mrf.mxu0  ;;  %v22150_v61 = vld [vmem:[#allocation38_spill] sm:$0xff]  ;;  %v22154_v53 = vand.u32 4294901760, %v22125_v13 }
 0x34a   :  { %7549 = vmatprep.mubr.f32.mxu1 %v22141_v40  ;;  %11168 = vmatpush3.msra.mxu0 %v22142_v23  ;;  %v10687_v57 = vpop.f32.mrf.mxu1  ;;  %v22155_v40 = vand.u32 4294901760, %v22079_v35  ;;  %v458_v23 = vld [vmem:[%s19569_s1 + $0x6f8] sm:$0xff]  ;;  %v22157_v35 = vand.u32 4294901760, %v22130_v59  ;;  %v22163_v59 = vand.u32 4294901760, %v22086_v51  ;;  %v22168_v51 = vand.u32 4294901760, %v17378_v45 }
 0x34b   :  { %11216 = vmatpush3.msra.mxu1 %v22069_v14  ;;  %7396 = vmatmul.mubr.f32.gmra.mxu0 %v22143_v62  ;;  %v10638_v8 = vpop.f32.mrf.mxu0  ;;  %v22151_v14 = vand.u32 4294901760, %v22076_v34 }
 0x34c   :  { %7553 = vmatmul.mubr.f32.gmra.mxu1 %v22144_v56  ;;  %11169 = vmatprep.subr.mxu0 %v22146_v44  ;;  %v10639_v32 = vadd.f32 %v10638_v8, %v10637_v58  ;;  %v10688_v28 = vpop.f32.mrf.mxu1  ;;  %v22156_v58 = vld [vmem:[#allocation10_spill] sm:$0xff]  ;;  %v442_v56 = vld [vmem:[%s19569_s1 + $0x678] sm:$0xff]  ;;  %v22158_v44 = vand.u32 4294901760, %v22081_v21  ;;  %v441_v8 = vld [vmem:[%s19569_s1 + $0x670] sm:$0xff] }
 0x34d   :  { %11217 = vmatprep.subr.mxu1 %v22147_v26  ;;  %11170 = vmatpush3.msra.mxu0 %v22149_v9  ;;  %v10689_v3 = vadd.f32 %v10688_v28, %v10687_v57  ;;  %v22159_v57 = vld [vmem:[#allocation25_spill] sm:$0xff]  ;;  %v22160_v26 = vld [vmem:[#allocation34_spill] sm:$0xff]  ;;  %v18109_v9 = vand.u32 4294901760, %v458_v23  ;;  %v18114_v21 = vand.u32 4294901760, %v442_v56 }
 0x34e   :  { %11218 = vmatpush3.msra.mxu1 %v22150_v61  ;;  %11171 = vmatprep.subr.mxu0 %v22151_v14  ;;  %v18090_v34 = vadd.f32 %v10639_v32, %v17972_v10  ;;  %v457_v10 = vld [vmem:[%s19569_s1 + $0x6f0] sm:$0xff]  ;;  %v22161_v47 = vand.u32 4294901760, %v22160_v26  ;;  %v22165_v32 = vld [vmem:[#allocation9_spill] sm:$0xff] }
 0x34f   :  { %11219 = vmatprep.subr.mxu1 %v22152_v36  ;;  %7402 = vmatprep.mubr.f32.mxu0 %v22153_v29  ;;  %v18097_v13 = vadd.f32 %v10689_v3, %v5614_v1  ;;  %v10640_v6 = vpop.f32.mrf.mxu0  ;;  %22162 = vst [vmem:[#allocation16_spill] sm:$0xff] %v18109_v9  ;;  %22164 = vst [vmem:[#allocation44_spill] sm:$0xff] %v18114_v21  ;;  %v18121_v28 = vand.u32 4294901760, %v457_v10  ;;  %v456_v3 = vld [vmem:[%s19569_s1 + $0x6e8] sm:$0xff]  ;;  %v18141_v45 = vsub.f32 %v458_v23, %v18109_v9 }
 0x350   :  { %7560 = vmatprep.mubr.f32.mxu1 %v22154_v53  ;;  %11172 = vmatpush3.msra.mxu0 %v22155_v40  ;;  %v18135_v40 = vand.u32 4294901760, %v441_v8  ;;  %v18155_v23 = vand.u32 4294901760, %v456_v3 }
 0x351   :  { %11220 = vmatpush3.msra.mxu1 %v22080_v49  ;;  %7405 = vmatmul.mubr.f32.gmra.mxu0 %v22156_v58  ;;  %v10690_v49 = vpop.f32.mrf.mxu1  ;;  %v10641_v1 = vpop.f32.mrf.mxu0  ;;  %22166 = vst [vmem:[#allocation63_spill] sm:$0xff] %v18121_v28 }
 0x352   :  { %7564 = vmatmul.mubr.f32.gmra.mxu1 %v22157_v35  ;;  %11173 = vmatprep.subr.mxu0 %v22158_v44  ;;  %v10642_v61 = vadd.f32 %v10641_v1, %v10640_v6  ;;  %22170 = vst [vmem:[#allocation54_spill] sm:$0xff] %v18135_v40  ;;  %v22171_v44 = vand.u32 4294901760, %v22143_v62  ;;  %22174 = vst [vmem:[#allocation47_spill] sm:$0xff] %v18155_v23 }
 0x353   :  { %11221 = vmatprep.subr.mxu1 %v22159_v57  ;;  %11174 = vmatpush3.msra.mxu0 %v22161_v47  ;;  %v10691_v14 = vpop.f32.mrf.mxu1  ;;  %v22173_v57 = vand.u32 4294901760, %v17449_v54  ;;  %v18168_v54 = vsub.f32 %v441_v8, %v18135_v40 }
 0x354   :  { %11222 = vmatpush3.msra.mxu1 %v22085_v55  ;;  %11175 = vmatprep.subr.mxu0 %v22163_v59  ;;  %v10692_v36 = vadd.f32 %v10691_v14, %v10690_v49  ;;  %v22167_v55 = vand.u32 4294901760, %v22140_v16  ;;  %v18131_v53 = vadd.f32 %v10642_v61, %v17987_v39  ;;  %v440_v16 = vld [vmem:[%s19569_s1 + $0x668] sm:$0xff]  ;;  %v22172_v39 = vand.u32 4294901760, %v17473_v42 }
 0x355   :  { %11223 = vmatprep.subr.mxu1 %v22087_v18  ;;  %7411 = vmatprep.mubr.f32.mxu0 %v22165_v32  ;;  %v22169_v18 = vld [vmem:[#allocation65_spill] sm:$0xff]  ;;  %v10643_v35 = vpop.f32.mrf.mxu0  ;;  %v22175_v42 = vand.u32 4294901760, %v17546_v27  ;;  %v18163_v62 = vand.u32 4294901760, %v440_v16  ;;  %v22178_v27 = vand.u32 4294901760, %v22153_v29  ;;  %v22179_v59 = vand.u32 4294901760, %v17479_v24 }
 0x356   :  { %7571 = vmatprep.mubr.f32.mxu1 %v22167_v55  ;;  %11176 = vmatpush3.msra.mxu0 %v22168_v51  ;;  %v18143_v6 = vadd.f32 %v10692_v36, %v5629_v2  ;;  %v10693_v49 = vpop.f32.mrf.mxu1  ;;  %v18158_v2 = vsub.f32 %v457_v10, %v18121_v28  ;;  %v455_v10 = vld [vmem:[%s19569_s1 + $0x6e0] sm:$0xff]  ;;  %v454_v29 = vld [vmem:[%s19569_s1 + $0x6d8] sm:$0xff]  ;;  %v18195_v36 = vsub.f32 %v456_v3, %v18155_v23  ;;  %v22181_v51 = vand.u32 4294901760, %v17644_v63  ;;  %v453_v3 = vld [vmem:[%s19569_s1 + $0x6d0] sm:$0xff] }
 0x357   :  { %11224 = vmatpush3.msra.mxu1 %v22089_v31  ;;  %7414 = vmatmul.mubr.f32.gmra.mxu0 %v22169_v18  ;;  %v18150_v31 = vsub.f32 %v442_v56, %v18114_v21  ;;  %v10644_v26 = vpop.f32.mrf.mxu0  ;;  %22176 = vst [vmem:[#allocation49_spill] sm:$0xff] %v18163_v62  ;;  %v438_v24 = vld [vmem:[%s19569_s1 + $0x658] sm:$0xff] }
 0x358   :  { %7575 = vmatmul.mubr.f32.gmra.mxu1 %v22171_v44  ;;  %11177 = vmatprep.subr.mxu0 %v22172_v39  ;;  %v10645_v56 = vadd.f32 %v10644_v26, %v10643_v35  ;;  %v10694_v47 = vpop.f32.mrf.mxu1  ;;  %v20512_v14 = vand.u32 4294901760, %v18158_v2  ;;  %v18205_v35 = vsub.f32 %v440_v16, %v18163_v62  ;;  %v18207_v44 = vand.u32 4294901760, %v455_v10 }
 0x359   :  { %11225 = vmatprep.subr.mxu1 %v22090_v12  ;;  %11178 = vmatpush3.msra.mxu0 %v22173_v57  ;;  %v22177_v12 = vld [vmem:[#allocation28_spill] sm:$0xff]  ;;  %v10695_v1 = vadd.f32 %v10694_v47, %v10693_v49  ;;  %v20513_v8 = vand.u32 4294901760, %v18150_v31  ;;  %v20511_v16 = vand.u32 4294901760, %v18168_v54  ;;  %v22186_v57 = vand.u32 4294901760, %v17678_v37 }
 0x35a   :  { %11226 = vmatpush3.msra.mxu1 %v22091_v33  ;;  %11179 = vmatprep.subr.mxu0 %v22175_v42  ;;  %v20514_v33 = vand.u32 4294901760, %v18141_v45  ;;  %v18183_v61 = vadd.f32 %v10645_v56, %v18006_v11  ;;  %22182 = vst [vmem:[#allocation14_spill] sm:$0xff] %v18205_v35  ;;  %22183 = vst [vmem:[#allocation12_spill] sm:$0xff] %v18207_v44  ;;  %v18226_v26 = vand.u32 4294901760, %v454_v29  ;;  %v22189_v47 = vand.u32 4294901760, %v22165_v32  ;;  %v452_v32 = vld [vmem:[%s19569_s1 + $0x6c8] sm:$0xff] }
 0x35b   :  { %11227 = vmatprep.subr.mxu1 %v22092_v30  ;;  %7420 = vmatprep.mubr.f32.mxu0 %v22177_v12  ;;  %v439_v30 = vld [vmem:[%s19569_s1 + $0x660] sm:$0xff]  ;;  %v18198_v11 = vadd.f32 %v10695_v1, %v18090_v34  ;;  %v10646_v55 = vpop.f32.mrf.mxu0  ;;  %v22184_v34 = vand.u32 4294901760, %v17558_v43  ;;  %v18233_v43 = vsub.f32 %v18150_v31, %v20513_v8  ;;  %v18243_v37 = vsub.f32 %v18158_v2, %v20512_v14  ;;  %v437_v1 = vld [vmem:[%s19569_s1 + $0x650] sm:$0xff] }
 0x35c   :  { %7582 = vmatprep.mubr.f32.mxu1 %v22178_v27  ;;  %11180 = vmatpush3.msra.mxu0 %v22179_v59  ;;  %v10696_v39 = vpop.f32.mrf.mxu1  ;;  %v18220_v63 = vsub.f32 %v18141_v45, %v20514_v33  ;;  %22187 = vst [vmem:[#allocation19_spill] sm:$0xff] %v18226_v26  ;;  %v20515_v27 = vand.u32 4294901760, %v18195_v36 }
 0x35d   :  { %11228 = vmatpush3.msra.mxu1 %v22093_v4  ;;  %7423 = vmatmul.mubr.f32.gmra.mxu0 %v17926_v7  ;;  %v22180_v4 = vand.u32 4294901760, %v22156_v58  ;;  %v18215_v58 = vand.u32 4294901760, %v439_v30  ;;  %v10647_v49 = vpop.f32.mrf.mxu0 }
 0x35e   :  { %11181 = vmatprep.subr.mxu0 %v22181_v51  ;;  %11229 = vmatprep.subr.mxu1 %v22094_v52  ;;  %v18228_v52 = vand.u32 4294901760, %v438_v24  ;;  %v10648_v42 = vadd.f32 %v10647_v49, %v10646_v55  ;;  %v10697_v56 = vpop.f32.mrf.mxu1  ;;  %v22191_v55 = vand.u32 4294901760, %v17619_v15  ;;  %v18257_v51 = vsub.f32 %v455_v10, %v18207_v44  ;;  %v22194_v49 = vld [vmem:[#allocation61_spill] sm:$0xff]  ;;  %v436_v10 = vld [vmem:[%s19569_s1 + $0x648] sm:$0xff] }
 0x35f   :  { %7586 = vmatmul.mubr.f32.gmra.mxu1 %v22180_v4  ;;  %11182 = vmatpush3.msra.mxu0 %v22184_v34  ;;  %22185 = vst [vmem:[#allocation40_spill] sm:$0xff] %v18215_v58  ;;  %v10698_v59 = vadd.f32 %v10697_v56, %v10696_v39  ;;  %v20516_v4 = vand.u32 4294901760, %v18205_v35  ;;  %v22195_v39 = vld [vmem:[#allocation21_spill] sm:$0xff]  ;;  %v18265_v15 = vsub.f32 %v439_v30, %v18215_v58 }
 0x360   :  { %11230 = vmatpush3.msra.mxu1 %v22095_v41  ;;  %11183 = vmatprep.subr.mxu0 %v22186_v57  ;;  %22188 = vst [vmem:[#allocation52_spill] sm:$0xff] %v18228_v52  ;;  %v18238_v41 = vand.u32 4294901760, %v453_v3  ;;  %22193 = vst [vmem:[#allocation39_spill] sm:$0xff] %v18257_v51  ;;  %v18260_v34 = vadd.f32 %v10648_v42, %v18022_v25  ;;  %v18271_v56 = vsub.f32 %v18168_v54, %v20511_v16  ;;  %v451_v16 = vld [vmem:[%s19569_s1 + $0x6c0] sm:$0xff] }
 0x361   :  { %11231 = vmatprep.subr.mxu1 %v22096_v22  ;;  %7593 = vmatprep.mubr.f32.mxu1 %v22189_v47  ;;  %v22192_v22 = vld [vmem:[#allocation24_spill] sm:$0xff]  ;;  %22196 = vst [vmem:[#allocation46_spill] sm:$0xff] %v18265_v15  ;;  %v18277_v25 = vadd.f32 %v10698_v59, %v18131_v53  ;;  %v10737_v42 = vpop.f32.mrf.mxu0  ;;  %v22197_v47 = vand.u32 4294901760, %v22169_v18  ;;  %v18283_v30 = vsub.f32 %v438_v24, %v18228_v52  ;;  %v22201_v18 = vld [vmem:[#allocation2_spill] sm:$0xff]  ;;  %v18297_v24 = vand.u32 4294901760, %v452_v32 }
 0x362   :  { %22190 = vst [vmem:[#allocation58_spill] sm:$0xff] %v18238_v41  ;;  %11184 = vmatpush3.msra.mxu0 %v22191_v55  ;;  %7774 = vmatprep.mubr.f32.mxu0 %v22192_v22  ;;  %v18292_v53 = vsub.f32 %v454_v29, %v18226_v26  ;;  %v10699_v59 = vpop.f32.mrf.mxu1  ;;  %v18305_v14 = vsub.f32 %v453_v3, %v18238_v41  ;;  %v18309_v29 = vand.u32 4294901760, %v436_v10  ;;  %v22205_v3 = vand.u32 4294901760, %v22177_v12  ;;  %v450_v12 = vld [vmem:[%s19569_s1 + $0x6b8] sm:$0xff] }
 0x363   :  { %11232 = vmatpush3.msra.mxu1 %v22194_v49  ;;  %7776 = vmatmul.mubr.f32.vlgmr.msra.gmra.mxu0 %v22195_v39  ;;  %22198 = vst [vmem:[#allocation56_spill] sm:$0xff] %v18283_v30  ;;  %v18286_v49 = vand.u32 4294901760, %v437_v1  ;;  %22202 = vst [vmem:[#allocation31_spill] sm:$0xff] %v18297_v24  ;;  %v10738_v8 = vpop.f32.mrf.mxu0  ;;  %v18321_v57 = vand.u32 4294901760, %v451_v16  ;;  %v22211_v55 = vld [vmem:[#allocation69_spill] sm:$0xff] }
 0x364   :  { %7597 = vmatmul.mubr.f32.gmra.mxu1 %v22197_v47  ;;  %11233 = vmatprep.subr.mxu1 %v22098_v46  ;;  %22200 = vst [vmem:[#allocation32_spill] sm:$0xff] %v18292_v53  ;;  %v18302_v47 = vsub.f32 %v18195_v36, %v20515_v27  ;;  %22203 = vst [vmem:[#allocation23_spill] sm:$0xff] %v18305_v14  ;;  %v10700_v46 = vpop.f32.mrf.mxu1  ;;  %v10739_v27 = vadd.f32 %v10738_v8, %v10737_v42 }
 0x365   :  { %22199 = vst [vmem:[#allocation60_spill] sm:$0xff] %v18286_v49  ;;  %11265 = vmatprep.subr.mxu0 %v18109_v9  ;;  %11234 = vmatpush3.msra.mxu1 %v22201_v18  ;;  %22204 = vst [vmem:[#allocation62_spill] sm:$0xff] %v18309_v29  ;;  %v18314_v18 = vsub.f32 %v18205_v35, %v20516_v4  ;;  %v22207_v9 = vld [vmem:[#allocation55_spill] sm:$0xff]  ;;  %v18330_v8 = vsub.f32 %v437_v1, %v18286_v49 }
 0x366   :  { %11266 = vmatpush3.msra.mxu0 %v18114_v21  ;;  %11235 = vmatprep.subr.mxu1 %v22102_v0  ;;  %22206 = vst [vmem:[#allocation8_spill] sm:$0xff] %v18321_v57  ;;  %v435_v0 = vld [vmem:[%s19569_s1 + $0x640] sm:$0xff]  ;;  %v10701_v21 = vadd.f32 %v10700_v46, %v10699_v59  ;;  %v18341_v59 = vadd.f32 %v10739_v27, %v18044_v17  ;;  %v22213_v27 = vand.u32 4294901760, %v18257_v51 }
 0x367   :  { %11267 = vmatprep.subr.mxu0 %v18121_v28  ;;  %7604 = vmatprep.mubr.f32.mxu1 %v22205_v3  ;;  %22208 = vst [vmem:[#allocation11_spill] sm:$0xff] %v18330_v8  ;;  %v434_v3 = vld [vmem:[%s19569_s1 + $0x638] sm:$0xff]  ;;  %v18349_v42 = vsub.f32 %v452_v32, %v18297_v24  ;;  %v10702_v33 = vpop.f32.mrf.mxu1  ;;  %v18357_v17 = vsub.f32 %v436_v10, %v18309_v29  ;;  %v18365_v32 = vand.u32 4294901760, %v435_v0 }
 0x368   :  { %7781 = vmatprep.mubr.f32.mxu0 %v22207_v9  ;;  %11236 = vmatpush3.msra.mxu1 %v22104_v48  ;;  %v22209_v48 = vand.u32 4294901760, %v17926_v7  ;;  %v18352_v4 = vadd.f32 %v10701_v21, %v18183_v61  ;;  %v449_v21 = vld [vmem:[%s19569_s1 + $0x6b0] sm:$0xff]  ;;  %v10740_v61 = vpop.f32.mrf.mxu0  ;;  %v18377_v7 = vand.u32 4294901760, %v450_v12  ;;  %v18382_v1 = vsub.f32 %v451_v16, %v18321_v57 }
 0x369   :  { %11268 = vmatpush3.msra.mxu0 %v18135_v40  ;;  %22210 = vst [vmem:[#allocation4_spill] sm:$0xff] %v18349_v42  ;;  %11237 = vmatprep.subr.mxu1 %v22106_v20  ;;  %22212 = vst [vmem:[#allocation71_spill] sm:$0xff] %v18357_v17  ;;  %v22215_v20 = vand.u32 4294901760, %v18265_v15  ;;  %v10703_v46 = vpop.f32.mrf.mxu1 }
 0x36a   :  { %7608 = vmatmul.mubr.f32.gmra.mxu1 %v22209_v48  ;;  %7783 = vmatmul.mubr.f32.gmra.mxu0 %v22211_v55  ;;  %v18363_v48 = vsub.f32 %v18257_v51, %v22213_v27  ;;  %22214 = vst [vmem:[#allocation57_spill] sm:$0xff] %v18365_v32  ;;  %22216 = vst [vmem:[#allocation70_spill] sm:$0xff] %v18377_v7  ;;  %v18379_v27 = vand.u32 4294901760, %v434_v3  ;;  %v10741_v16 = vpop.f32.mrf.mxu0  ;;  %v22221_v51 = vld [vmem:[#allocation18_spill] sm:$0xff] }
 0x36b   :  { %11269 = vmatprep.subr.mxu0 %v18155_v23  ;;  %11238 = vmatpush3.msra.mxu1 %v22108_v38  ;;  %v18375_v10 = vsub.f32 %v18265_v15, %v22215_v20  ;;  %22218 = vst [vmem:[#allocation48_spill] sm:$0xff] %v18382_v1  ;;  %v22219_v23 = vand.u32 4294901760, %v18292_v53  ;;  %v22220_v20 = vand.u32 4294901760, %v18283_v30  ;;  %v10704_v15 = vadd.f32 %v10703_v46, %v10702_v33 }
 0x36c   :  { %22217 = vst [vmem:[#allocation22_spill] sm:$0xff] %v18379_v27  ;;  %11270 = vmatpush3.msra.mxu0 %v18163_v62  ;;  %11239 = vmatprep.subr.mxu1 %v22110_v19  ;;  %v18399_v62 = vand.u32 4294901760, %v449_v21  ;;  %v22223_v19 = vand.u32 4294901760, %v18305_v14  ;;  %v10742_v28 = vadd.f32 %v10741_v16, %v10740_v61  ;;  %v18414_v46 = vsub.f32 %v435_v0, %v18365_v32  ;;  %v431_v0 = vld [vmem:[%s19569_s1 + $0x620] sm:$0xff] }
 0x36d   :  { %v18389_v38 = vsub.f32 %v18292_v53, %v22219_v23  ;;  %v18394_v40 = vsub.f32 %v18283_v30, %v22220_v20  ;;  %11271 = vmatprep.subr.mxu0 %v18207_v44  ;;  %7788 = vmatprep.mubr.f32.mxu0 %v22221_v51  ;;  %v433_v20 = vld [vmem:[%s19569_s1 + $0x630] sm:$0xff]  ;;  %v22230_v44 = vand.u32 4294901760, %v18220_v63  ;;  %v22235_v30 = vand.u32 4294901760, %v18357_v17 }
 0x36e   :  { %22222 = vst [vmem:[#allocation43_spill] sm:$0xff] %v18399_v62  ;;  %v18404_v23 = vsub.f32 %v18305_v14, %v22223_v19  ;;  %11240 = vmatpush3.msra.mxu1 %v22113_v50  ;;  %7927 = vmatprep.mubr.f32.mxu1 %v22192_v22  ;;  %22224 = vst [vmem:[#allocation15_spill] sm:$0xff] %v18414_v46  ;;  %v18418_v19 = vadd.f32 %v10704_v15, %v18260_v34  ;;  %v432_v22 = vld [vmem:[%s19569_s1 + $0x628] sm:$0xff]  ;;  %v10793_v34 = vpop.f32.mrf.mxu1  ;;  %v22226_v15 = vld [vmem:[#allocation37_spill] sm:$0xff]  ;;  %v18436_v61 = vand.u32 4294901760, %v433_v20 }
 0x36f   :  { %11272 = vmatpush3.msra.mxu0 %v18215_v58  ;;  %7929 = vmatmul.mubr.f32.vlgmr.msra.gmra.mxu1 %v22195_v39  ;;  %v18424_v50 = vsub.f32 %v434_v3, %v18379_v27  ;;  %v18431_v16 = vadd.f32 %v10742_v28, %v18068_v5  ;;  %v22228_v3 = vand.u32 4294901760, %v18330_v8  ;;  %v18447_v5 = vsub.f32 %v450_v12, %v18377_v7  ;;  %v10743_v28 = vpop.f32.mrf.mxu0 }
 0x370   :  { %7790 = vmatmul.mubr.f32.gmra.mxu0 %v22226_v15  ;;  %11273 = vmatprep.subr.mxu0 %v18226_v26  ;;  %22227 = vst [vmem:[#allocation42_spill] sm:$0xff] %v18436_v61  ;;  %v18460_v58 = vsub.f32 %v449_v21, %v18399_v62  ;;  %v10794_v12 = vpop.f32.mrf.mxu1  ;;  %v18468_v63 = vand.u32 4294901760, %v432_v22 }
 0x371   :  { %22225 = vst [vmem:[#allocation41_spill] sm:$0xff] %v18424_v50  ;;  %v18441_v33 = vsub.f32 %v18330_v8, %v22228_v3  ;;  %22229 = vst [vmem:[#allocation5_spill] sm:$0xff] %v18447_v5  ;;  %11321 = vmatprep.subr.mxu1 %v22230_v44  ;;  %11274 = vmatpush3.msra.mxu0 %v18228_v52  ;;  %v22231_v3 = vand.u32 4294901760, %v18349_v42  ;;  %v22233_v8 = vand.u32 4294901760, %v18233_v43  ;;  %v448_v44 = vld [vmem:[%s19569_s1 + $0x6a8] sm:$0xff]  ;;  %v10744_v39 = vpop.f32.mrf.mxu0  ;;  %v22236_v43 = vand.u32 4294901760, %v18243_v37 }
 0x372   :  { %22232 = vst [vmem:[#allocation27_spill] sm:$0xff] %v18460_v58  ;;  %11275 = vmatprep.subr.mxu0 %v18238_v41  ;;  %22234 = vst [vmem:[#allocation35_spill] sm:$0xff] %v18468_v63  ;;  %v10795_v52 = vadd.f32 %v10794_v12, %v10793_v34  ;;  %v447_v41 = vld [vmem:[%s19569_s1 + $0x6a0] sm:$0xff]  ;;  %7934 = vmatprep.mubr.f32.mxu1 %v22207_v9  ;;  %v18493_v37 = vsub.f32 %v433_v20, %v18436_v61  ;;  %v18513_v12 = vld [vmem:[%s19570_s0 + $0x68] sm:$0xff]  ;;  %v22246_v20 = vand.u32 4294901760, %v18414_v46 }
 0x373   :  { %v18457_v26 = vsub.f32 %v18349_v42, %v22231_v3  ;;  %11322 = vmatpush3.msra.mxu1 %v22233_v8  ;;  %v18473_v3 = vsub.f32 %v18357_v17, %v22235_v30  ;;  %v22237_v8 = vld [vmem:[#allocation6_spill] sm:$0xff]  ;;  %v22238_v42 = vand.u32 4294901760, %v18382_v1  ;;  %v18487_v30 = vand.u32 4294901760, %v431_v0  ;;  %11276 = vmatpush3.msra.mxu0 %v18286_v49 }
 0x374   :  { %11323 = vmatprep.subr.mxu1 %v22236_v43  ;;  %7795 = vmatprep.mubr.f32.mxu0 %v22237_v8  ;;  %v10745_v17 = vadd.f32 %v10744_v39, %v10743_v28  ;;  %22240 = vst [vmem:[#allocation36_spill] sm:$0xff] %v18493_v37  ;;  %v18501_v43 = vadd.f32 %v10795_v52, %v18341_v59  ;;  %v22241_v39 = vand.u32 4294901760, %v18271_v56  ;;  %v22242_v9 = vld [vmem:[#allocation26_spill] sm:$0xff]  ;;  %v18506_v28 = vand.u32 4294901760, %v448_v44  ;;  %v10746_v52 = vpop.f32.mrf.mxu0 }
 0x375   :  { %v18485_v14 = vsub.f32 %v18382_v1, %v22238_v42  ;;  %22239 = vst [vmem:[#allocation33_spill] sm:$0xff] %v18487_v30  ;;  %v430_v42 = vld [vmem:[%s19569_s1 + $0x618] sm:$0xff]  ;;  %7797 = vmatmul.mubr.f32.gmra.mxu0 %v22242_v9  ;;  %7936 = vmatmul.mubr.f32.gmra.mxu1 %v22211_v55  ;;  %v18521_v56 = vsub.f32 %v432_v22, %v18468_v63  ;;  %v22247_v55 = vand.u32 4294901760, %v18302_v47 }
 0x376   :  { %11324 = vmatpush3.msra.mxu1 %v22241_v39  ;;  %22243 = vst [vmem:[#allocation68_spill] sm:$0xff] %v18506_v28  ;;  %v18516_v21 = vadd.f32 %v10745_v17, %v18097_v13  ;;  %11277 = vmatprep.subr.mxu0 %v18297_v24  ;;  %v18524_v39 = vand.u32 4294901760, %v447_v41  ;;  %v18529_v34 = vsub.f32 %v18414_v46, %v22246_v20  ;;  %v446_v13 = vld [vmem:[%s19569_s1 + $0x698] sm:$0xff]  ;;  %v10796_v17 = vpop.f32.mrf.mxu1  ;;  %v18541_v24 = vand.u32 4294901760, %v430_v42  ;;  %v429_v46 = vld [vmem:[%s19569_s1 + $0x610] sm:$0xff]  ;;  %v10747_v47 = vpop.f32.mrf.mxu0 }
 0x377   :  { %22244 = vst [vmem:[#allocation51_spill] sm:$0xff] %v18521_v56  ;;  %11325 = vmatprep.subr.mxu1 %v22247_v55  ;;  %11278 = vmatpush3.msra.mxu0 %v18309_v29  ;;  %v18539_v59 = vsub.f32 %v431_v0, %v18487_v30  ;;  %v22249_v20 = vand.u32 4294901760, %v18424_v50  ;;  %v22250_v55 = vand.u32 4294901760, %v18314_v18  ;;  %v22251_v0 = vand.u32 4294901760, %v18447_v5 }
 0x378   :  { %22245 = vst [vmem:[#allocation7_spill] sm:$0xff] %v18524_v39  ;;  %22248 = vst [vmem:[#allocation30_spill] sm:$0xff] %v18541_v24  ;;  %11279 = vmatprep.subr.mxu0 %v18321_v57  ;;  %v10748_v1 = vadd.f32 %v10747_v47, %v10746_v52  ;;  %v10797_v53 = vpop.f32.mrf.mxu1  ;;  %v22252_v18 = vand.u32 4294901760, %v18363_v48  ;;  %v18569_v57 = vand.u32 4294901760, %v446_v13  ;;  %v18582_v52 = vsub.f32 %v448_v44, %v18506_v28 }
 0x379   :  { %v18546_v49 = vsub.f32 %v18424_v50, %v22249_v20  ;;  %11326 = vmatpush3.msra.mxu1 %v22250_v55  ;;  %v18557_v22 = vsub.f32 %v18447_v5, %v22251_v0  ;;  %v136_v20 = vmax.f32 %v18513_v12, 0.0  ;;  %v18564_v50 = vld [vmem:[%s19570_s0 + $0x60] sm:$0xff]  ;;  %v22253_v55 = vld [vmem:[#allocation53_spill] sm:$0xff]  ;;  %v18574_v0 = vld [vmem:[%s19569_s1 + $0x690] sm:$0xff]  ;;  %v22255_v12 = vand.u32 4294901760, %v18460_v58  ;;  %7941 = vmatprep.mubr.f32.mxu1 %v22221_v51 }
 0x37a   :  { %11327 = vmatprep.subr.mxu1 %v22252_v18  ;;  %7802 = vmatprep.mubr.f32.mxu0 %v22253_v55  ;;  %22254 = vst [vmem:[#allocation3_spill] sm:$0xff] %v18569_v57  ;;  %22256 = vst [vmem:[#allocation29_spill] sm:$0xff] %v18582_v52  ;;  %v10798_v47 = vadd.f32 %v10797_v53, %v10796_v17  ;;  %v18587_v18 = vand.u32 4294901760, %v429_v46  ;;  %v18591_v35 = vadd.f32 %v10748_v1, %v18143_v6  ;;  %v428_v51 = vld [vmem:[%s19569_s1 + $0x608] sm:$0xff]  ;;  %v10749_v6 = vpop.f32.mrf.mxu0 }
 0x37b   :  { %v18579_v29 = vsub.f32 %v18460_v58, %v22255_v12  ;;  %11280 = vmatpush3.msra.mxu0 %v18365_v32  ;;  %v22258_v12 = vand.u32 4294901760, %v18375_v10  ;;  %v22259_v58 = vld [vmem:[#allocation67_spill] sm:$0xff]  ;;  %v18601_v44 = vsub.f32 %v447_v41, %v18524_v39  ;;  %v135_v17 = vmax.f32 %v18564_v50, 0.0  ;;  %7943 = vmatmul.mubr.f32.gmra.mxu1 %v22226_v15  ;;  %v10799_v15 = vpop.f32.mrf.mxu1 }
 0x37c   :  { %22257 = vst [vmem:[#allocation59_spill] sm:$0xff] %v18587_v18  ;;  %7804 = vmatmul.mubr.f32.gmra.mxu0 %v22259_v58  ;;  %v18605_v48 = vadd.f32 %v10798_v47, %v18431_v16  ;;  %11281 = vmatprep.subr.mxu0 %v18377_v7  ;;  %v18610_v1 = vsub.f32 %v430_v42, %v18541_v24  ;;  %v18613_v10 = vand.u32 4294901760, %v18574_v0  ;;  %v18620_v50 = vand.u32 4294901760, %v136_v20  ;;  %v18625_v16 = vld [vmem:[%s19570_s0 + $0xd8] sm:$0xff]  ;;  %v10750_v7 = vpop.f32.mrf.mxu0 }
 0x37d   :  { %11328 = vmatpush3.msra.mxu1 %v22258_v12  ;;  %22260 = vst [vmem:[#allocation38_spill] sm:$0xff] %v18601_v44  ;;  %v22263_v12 = vand.u32 4294901760, %v18493_v37  ;;  %v22265_v47 = vand.u32 4294901760, %v18389_v38  ;;  %11282 = vmatpush3.msra.mxu0 %v18379_v27  ;;  %v18634_v5 = vsub.f32 %v446_v13, %v18569_v57  ;;  %v22266_v32 = vand.u32 4294901760, %v18394_v40  ;;  %v10800_v40 = vpop.f32.mrf.mxu1 }
 0x37e   :  { %22261 = vst [vmem:[#allocation17_spill] sm:$0xff] %v18605_v48  ;;  %22262 = vst [vmem:[#allocation13_spill] sm:$0xff] %v18613_v10  ;;  %11283 = vmatprep.subr.mxu0 %v18399_v62  ;;  %v18640_v38 = vsub.f32 %v429_v46, %v18587_v18  ;;  %v18647_v53 = vand.u32 4294901760, %v428_v51  ;;  %v22268_v42 = vand.u32 4294901760, %v18521_v56  ;;  %v22270_v62 = vld [vmem:[#allocation64_spill] sm:$0xff]  ;;  %v18660_v46 = vld [vmem:[%s19569_s1 + $0x680] sm:$0xff]  ;;  %7948 = vmatprep.mubr.f32.mxu1 %v22237_v8 }
 0x37f   :  { %v18618_v41 = vsub.f32 %v18493_v37, %v22263_v12  ;;  %22264 = vst [vmem:[#allocation10_spill] sm:$0xff] %v18620_v50  ;;  %11329 = vmatprep.subr.mxu1 %v22265_v47  ;;  %v18645_v47 = vld [vmem:[%s19569_s1 + $0x688] sm:$0xff]  ;;  %v10751_v12 = vadd.f32 %v10750_v7, %v10749_v6  ;;  %7809 = vmatprep.mubr.f32.mxu0 %v22270_v62  ;;  %v18663_v37 = vand.u32 4294901760, %v135_v17  ;;  %v150_v48 = vmax.f32 %v18625_v16, 0.0  ;;  %v18669_v7 = vld [vmem:[%s19570_s0 + $0xd0] sm:$0xff] }
 0x380   :  { %11330 = vmatpush3.msra.mxu1 %v22266_v32  ;;  %22267 = vst [vmem:[#allocation25_spill] sm:$0xff] %v18647_v53  ;;  %v18652_v13 = vsub.f32 %v18521_v56, %v22268_v42  ;;  %v22269_v32 = vand.u32 4294901760, %v18404_v23  ;;  %v10801_v23 = vadd.f32 %v10800_v40, %v10799_v15  ;;  %11284 = vmatpush3.msra.mxu0 %v18436_v61  ;;  %v22272_v16 = vand.u32 4294901760, %v18441_v33  ;;  %v22273_v56 = vld [vmem:[#allocation66_spill] sm:$0xff]  ;;  %v10752_v33 = vpop.f32.mrf.mxu0 }
 0x381   :  { %22271 = vst [vmem:[#allocation34_spill] sm:$0xff] %v18663_v37  ;;  %v18675_v42 = vsub.f32 %v136_v20, %v18620_v50  ;;  %v18679_v27 = vadd.f32 %v10751_v12, %v18198_v11  ;;  %7811 = vmatmul.mubr.f32.gmra.mxu0 %v22273_v56  ;;  %v18685_v15 = vand.u32 4294901760, %v18645_v47  ;;  %v22275_v8 = vand.u32 4294901760, %v18582_v52  ;;  %v427_v20 = vld [vmem:[%s19569_s1 + $0x600] sm:$0xff]  ;;  %7950 = vmatmul.mubr.f32.gmra.mxu1 %v22242_v9 }
 0x382   :  { %11331 = vmatprep.subr.mxu1 %v22269_v32  ;;  %v18697_v12 = vadd.f32 %v10801_v23, %v18516_v21  ;;  %11285 = vmatprep.subr.mxu0 %v18506_v28  ;;  %v18703_v6 = vand.u32 4294901760, %v18660_v46  ;;  %v149_v32 = vmax.f32 %v18669_v7, 0.0  ;;  %v18713_v21 = vld [vmem:[%s19570_s0 + $0x148] sm:$0xff]  ;;  %v10802_v23 = vpop.f32.mrf.mxu1  ;;  %v22278_v9 = vand.u32 4294901760, %v18457_v26  ;;  %v10753_v61 = vpop.f32.mrf.mxu0 }
 0x383   :  { %11332 = vmatpush3.msra.mxu1 %v22272_v16  ;;  %22274 = vst [vmem:[#allocation9_spill] sm:$0xff] %v18685_v15  ;;  %v18690_v40 = vsub.f32 %v18582_v52, %v22275_v8  ;;  %v18707_v8 = vsub.f32 %v18574_v0, %v18613_v10  ;;  %11286 = vmatpush3.msra.mxu0 %v18468_v63  ;;  %v22279_v11 = vand.u32 4294901760, %v18601_v44  ;;  %v18729_v28 = vand.u32 4294901760, %v150_v48 }
 0x384   :  { %22276 = vst [vmem:[#allocation65_spill] sm:$0xff] %v18697_v12  ;;  %22277 = vst [vmem:[#allocation28_spill] sm:$0xff] %v18703_v6  ;;  %11333 = vmatprep.subr.mxu1 %v22278_v9  ;;  %v18719_v16 = vsub.f32 %v428_v51, %v18647_v53  ;;  %v18727_v7 = vsub.f32 %v135_v17, %v18663_v37  ;;  %v22281_v52 = vand.u32 4294901760, %v18473_v3  ;;  %11287 = vmatprep.subr.mxu0 %v18524_v39  ;;  %v10803_v17 = vpop.f32.mrf.mxu1  ;;  %v22285_v12 = vld [vmem:[#allocation50_spill] sm:$0xff]  ;;  %v22289_v39 = vld [vmem:[#allocation45_spill] sm:$0xff] }
 0x385   :  { %v18724_v0 = vsub.f32 %v18601_v44, %v22279_v11  ;;  %22280 = vst [vmem:[#allocation24_spill] sm:$0xff] %v18729_v28  ;;  %v18734_v26 = vand.u32 4294901760, %v427_v20  ;;  %v22283_v9 = vand.u32 4294901760, %v18539_v59  ;;  %v10754_v63 = vadd.f32 %v10753_v61, %v10752_v33  ;;  %7816 = vmatprep.mubr.f32.mxu0 %v22285_v12  ;;  %7955 = vmatprep.mubr.f32.mxu1 %v22253_v55 }
 0x386   :  { %11334 = vmatpush3.msra.mxu1 %v22281_v52  ;;  %v22284_v44 = vand.u32 4294901760, %v18485_v14  ;;  %v22286_v3 = vand.u32 4294901760, %v18634_v5  ;;  %v164_v51 = vmax.f32 %v18713_v21, 0.0  ;;  %v10804_v61 = vadd.f32 %v10803_v17, %v10802_v23  ;;  %11288 = vmatpush3.msra.mxu0 %v18487_v30 }
 0x387   :  { %22282 = vst [vmem:[#allocation61_spill] sm:$0xff] %v18734_v26  ;;  %v18740_v11 = vsub.f32 %v18539_v59, %v22283_v9  ;;  %v18755_v9 = vld [vmem:[%s19570_s0 + $0x140] sm:$0xff]  ;;  %v8387_v14 = vand.u32 4294901760, %v18690_v40  ;;  %v18761_v33 = vand.u32 4294901760, %v149_v32  ;;  %v22288_v21 = vand.u32 4294901760, %v18529_v34  ;;  %7818 = vmatmul.mubr.f32.gmra.mxu0 %v22289_v39  ;;  %7957 = vmatmul.mubr.f32.gmra.mxu1 %v22259_v58  ;;  %v10805_v58 = vpop.f32.mrf.mxu1 }
 0x388   :  { %11335 = vmatprep.subr.mxu1 %v22284_v44  ;;  %v18748_v52 = vsub.f32 %v18634_v5, %v22286_v3  ;;  %v18764_v3 = vadd.f32 %v10754_v63, %v18277_v25  ;;  %v18772_v17 = vsub.f32 %v150_v48, %v18729_v28  ;;  %v18775_v40 = vadd.f32 %v10804_v61, %v18591_v35  ;;  %v10755_v44 = vpop.f32.mrf.mxu0  ;;  %v18792_v35 = vld [vmem:[%s19570_s0 + $0x1b8] sm:$0xff] }
 0x389   :  { %22287 = vst [vmem:[#allocation21_spill] sm:$0xff] %v18761_v33  ;;  %11336 = vmatpush3.msra.mxu1 %v22288_v21  ;;  %11289 = vmatprep.subr.mxu0 %v18569_v57  ;;  %v18780_v25 = vsub.f32 %v427_v20, %v18734_v26  ;;  %v22290_v63 = vand.u32 4294901760, %v18675_v42  ;;  %v163_v48 = vmax.f32 %v18755_v9, 0.0  ;;  %v22291_v61 = vand.u32 4294901760, %v18557_v22 }
 0x38a   :  { %11290 = vmatpush3.msra.mxu0 %v18541_v24  ;;  %v18805_v9 = vsub.f32 %v18645_v47, %v18685_v15  ;;  %v18807_v21 = vand.u32 4294901760, %v164_v51  ;;  %v10756_v55 = vpop.f32.mrf.mxu0  ;;  %v22294_v57 = vand.u32 4294901760, %v18546_v49  ;;  %v22295_v22 = vand.u32 4294901760, %v18707_v8  ;;  %v18824_v47 = vld [vmem:[%s19570_s0 + $0x1b0] sm:$0xff]  ;;  %v10806_v49 = vpop.f32.mrf.mxu1  ;;  %7823 = vmatprep.mubr.f32.mxu0 %v17896_v60 }
 0x38b   :  { %v18785_v34 = vsub.f32 %v18675_v42, %v22290_v63  ;;  %11337 = vmatprep.subr.mxu1 %v22291_v61  ;;  %v22292_v63 = vand.u32 4294901760, %v18610_v1  ;;  %11291 = vmatprep.subr.mxu0 %v18613_v10  ;;  %v18819_v20 = vsub.f32 %v149_v32, %v18761_v33  ;;  %v10757_v24 = vadd.f32 %v10756_v55, %v10755_v44 }
 0x38c   :  { %22293 = vst [vmem:[#allocation2_spill] sm:$0xff] %v18807_v21  ;;  %11338 = vmatpush3.msra.mxu1 %v22294_v57  ;;  %v18815_v61 = vsub.f32 %v18707_v8, %v22295_v22  ;;  %v22296_v57 = vand.u32 4294901760, %v18579_v29  ;;  %v22297_v22 = vand.u32 4294901760, %v18727_v7  ;;  %v178_v32 = vmax.f32 %v18792_v35, 0.0  ;;  %7962 = vmatprep.mubr.f32.mxu1 %v22270_v62  ;;  %v22300_v35 = vld [vmem:[#allocation20_spill] sm:$0xff] }
 0x38d   :  { %v18801_v23 = vsub.f32 %v18610_v1, %v22292_v63  ;;  %v20607_v63 = vand.u32 4294901760, %v18772_v17  ;;  %v10807_v30 = vadd.f32 %v10806_v49, %v10805_v58  ;;  %11292 = vmatpush3.msra.mxu0 %v18587_v18  ;;  %v8083_v44 = vand.u32 4294901760, %v18785_v34  ;;  %7964 = vmatmul.mubr.f32.gmra.mxu1 %v22273_v56  ;;  %v10808_v62 = vpop.f32.mrf.mxu1 }
 0x38e   :  { %11339 = vmatprep.subr.mxu1 %v22296_v57  ;;  %v8088_v10 = vsub.f32 %v18727_v7, %v22297_v22  ;;  %v18839_v29 = vsub.f32 %v18660_v46, %v18703_v6  ;;  %v18841_v55 = vand.u32 4294901760, %v163_v48  ;;  %v18844_v57 = vadd.f32 %v10757_v24, %v18352_v4  ;;  %7825 = vmatmul.mubr.f32.gmra.mxu0 %v22300_v35  ;;  %v18857_v46 = vld [vmem:[%s19570_s0 + $0x228] sm:$0xff]  ;;  %v10758_v24 = vpop.f32.mrf.mxu0 }
 0x38f   :  { %v22299_v22 = vand.u32 4294901760, %v18618_v41  ;;  %v18851_v58 = vsub.f32 %v164_v51, %v18807_v21  ;;  %v177_v34 = vmax.f32 %v18824_v47, 0.0  ;;  %v18860_v4 = vadd.f32 %v10807_v30, %v18679_v27  ;;  %11293 = vmatprep.subr.mxu0 %v18685_v15  ;;  %7969 = vmatprep.mubr.f32.mxu1 %v22285_v12 }
 0x390   :  { %22298 = vst [vmem:[#allocation55_spill] sm:$0xff] %v18841_v55  ;;  %v8289_v41 = vand.u32 4294901760, %v18801_v23  ;;  %v8408_v51 = vand.u32 4294901760, %v18815_v61  ;;  %v22302_v49 = vand.u32 4294901760, %v18640_v38  ;;  %11294 = vmatpush3.msra.mxu0 %v18647_v53  ;;  %v8089_v27 = vand.u32 4294901760, %v8088_v10  ;;  %v18882_v61 = vld [vmem:[%s19570_s0 + $0x220] sm:$0xff]  ;;  %v10809_v53 = vpop.f32.mrf.mxu1  ;;  %8084 = vmatprep.mubr.f32.mxu0 %v8083_v44 }
 0x391   :  { %11340 = vmatpush3.msra.mxu1 %v22299_v22  ;;  %22301 = vst [vmem:[#allocation69_spill] sm:$0xff] %v18851_v58  ;;  %v8097_v30 = vsub.f32 %v18772_v17, %v20607_v63  ;;  %v18877_v23 = vand.u32 4294901760, %v178_v32  ;;  %v22304_v22 = vand.u32 4294901760, %v18652_v13  ;;  %11295 = vmatprep.subr.mxu0 %v18703_v6  ;;  %v192_v63 = vmax.f32 %v18857_v46, 0.0 }
 0x392   :  { %v18869_v47 = vsub.f32 %v18640_v38, %v22302_v49  ;;  %11341 = vmatprep.subr.mxu1 %v8387_v14  ;;  %v10759_v49 = vpop.f32.mrf.mxu0  ;;  %v18889_v14 = vsub.f32 %v163_v48, %v18841_v55  ;;  %v22305_v15 = vand.u32 4294901760, %v18724_v0  ;;  %v22306_v18 = vand.u32 4294901760, %v18805_v9  ;;  %11296 = vmatpush3.msra.mxu0 %v18734_v26 }
 0x393   :  { %22303 = vst [vmem:[#allocation18_spill] sm:$0xff] %v18877_v23  ;;  %11342 = vmatpush3.msra.mxu1 %v22304_v22  ;;  %v10760_v56 = vadd.f32 %v10759_v49, %v10758_v24  ;;  %v20616_v22 = vand.u32 4294901760, %v18851_v58  ;;  %v18899_v6 = vand.u32 4294901760, %v177_v34  ;;  %v10810_v10 = vadd.f32 %v10809_v53, %v10808_v62  ;;  %8090 = vmatmul.mubr.f32.vlgmr.msra.gmra.mxu0 %v8089_v27 }
 0x394   :  { %11343 = vmatprep.subr.mxu1 %v22305_v15  ;;  %v8414_v13 = vsub.f32 %v18805_v9, %v22306_v18  ;;  %v22308_v48 = vand.u32 4294901760, %v18819_v20  ;;  %v20617_v15 = vand.u32 4294901760, %v18780_v25  ;;  %v191_v12 = vmax.f32 %v18882_v61, 0.0  ;;  %v10849_v61 = vpop.f32.mrf.mxu0  ;;  %7971 = vmatmul.mubr.f32.gmra.mxu1 %v22289_v39 }
 0x395   :  { %22307 = vst [vmem:[#allocation37_spill] sm:$0xff] %v18899_v6  ;;  %v18908_v0 = vadd.f32 %v10760_v56, %v18418_v19  ;;  %v22309_v18 = vand.u32 4294901760, %v18740_v11  ;;  %v8296_v53 = vand.u32 4294901760, %v18869_v47  ;;  %v22310_v62 = vand.u32 4294901760, %v18719_v16  ;;  %11377 = vmatprep.subr.mxu0 %v18141_v45  ;;  %7976 = vmatprep.mubr.f32.mxu1 %v17896_v60 }
 0x396   :  { %v8103_v46 = vsub.f32 %v18819_v20, %v22308_v48  ;;  %v18917_v24 = vsub.f32 %v178_v32, %v18877_v23  ;;  %v18920_v49 = vadd.f32 %v10810_v10, %v18764_v3  ;;  %v22312_v19 = vand.u32 4294901760, %v18748_v52  ;;  %v18934_v3 = vld [vmem:[%s19570_s0 + $0x298] sm:$0xff]  ;;  %v10811_v32 = vpop.f32.mrf.mxu1  ;;  %v10850_v10 = vpop.f32.mrf.mxu0  ;;  %11378 = vmatpush3.msra.mxu0 %v18150_v31 }
 0x397   :  { %11344 = vmatpush3.msra.mxu1 %v22309_v18  ;;  %v8302_v44 = vsub.f32 %v18719_v16, %v22310_v62  ;;  %v8098_v11 = vand.u32 4294901760, %v8097_v30  ;;  %v22313_v27 = vand.u32 4294901760, %v18839_v29  ;;  %v20624_v56 = vand.u32 4294901760, %v18889_v14  ;;  %11379 = vmatprep.subr.mxu0 %v18158_v2 }
 0x398   :  { %22311 = vst [vmem:[#allocation6_spill] sm:$0xff] %v18917_v24  ;;  %11345 = vmatprep.subr.mxu1 %v22312_v19  ;;  %v18929_v48 = vand.u32 4294901760, %v192_v63  ;;  %v8415_v39 = vand.u32 4294901760, %v8414_v13  ;;  %v8112_v52 = vsub.f32 %v18851_v58, %v20616_v22  ;;  %v18941_v30 = vsub.f32 %v177_v34, %v18899_v6  ;;  %v10812_v13 = vpop.f32.mrf.mxu1  ;;  %11380 = vmatpush3.msra.mxu0 %v18168_v54 }
 0x399   :  { %v8421_v47 = vsub.f32 %v18839_v29, %v22313_v27  ;;  %11346 = vmatpush3.msra.mxu1 %v8289_v41  ;;  %v8104_v18 = vand.u32 4294901760, %v8103_v46  ;;  %v8309_v62 = vsub.f32 %v18780_v25, %v20617_v15  ;;  %v18947_v19 = vand.u32 4294901760, %v191_v12  ;;  %v18952_v41 = vld [vmem:[%s19570_s0 + $0x290] sm:$0xff]  ;;  %8099 = vmatprep.mubr.f32.mxu0 %v8098_v11 }
 0x39a   :  { %22314 = vst [vmem:[#allocation26_spill] sm:$0xff] %v18929_v48  ;;  %22315 = vst [vmem:[#allocation53_spill] sm:$0xff] %v18941_v30  ;;  %11347 = vmatprep.subr.mxu1 %v8408_v51  ;;  %v10851_v27 = vadd.f32 %v10850_v10, %v10849_v61  ;;  %v8303_v34 = vand.u32 4294901760, %v8302_v44  ;;  %v20622_v51 = vand.u32 4294901760, %v18917_v24  ;;  %v206_v46 = vmax.f32 %v18934_v3, 0.0  ;;  %7978 = vmatmul.mubr.f32.gmra.mxu1 %v22300_v35  ;;  %v10852_v35 = vpop.f32.mrf.mxu0  ;;  %v107_v10 = vld [vmem:[%s19570_s0 + $0x300] sm:$0xff] }
 0x39b   :  { %22316 = vst [vmem:[#allocation67_spill] sm:$0xff] %v18947_v19  ;;  %v10813_v22 = vadd.f32 %v10812_v13, %v10811_v32  ;;  %11348 = vmatpush3.msra.mxu1 %v8296_v53  ;;  %v8422_v15 = vand.u32 4294901760, %v8421_v47  ;;  %v8118_v26 = vsub.f32 %v18889_v14, %v20624_v56  ;;  %v18962_v58 = vsub.f32 %v192_v63, %v18929_v48  ;;  %v10814_v47 = vpop.f32.mrf.mxu1  ;;  %v22325_v56 = vld [vmem:[#allocation17_spill] sm:$0xff] }
 0x39c   :  { %v18965_v61 = vadd.f32 %v10851_v27, %v18501_v43  ;;  %v8113_v60 = vand.u32 4294901760, %v8112_v52  ;;  %v20623_v44 = vand.u32 4294901760, %v18941_v30  ;;  %v205_v53 = vmax.f32 %v18952_v41, 0.0  ;;  %8105 = vmatmul.mubr.f32.gmra.mxu0 %v8104_v18  ;;  %11349 = vmatprep.subr.mxu1 %v8415_v39  ;;  %v108_v43 = vld [vmem:[%s19570_s0 + $0x308] sm:$0xff]  ;;  %v22320_v39 = vld [vmem:[#allocation14_spill] sm:$0xff] }
 0x39d   :  { %22317 = vst [vmem:[#allocation64_spill] sm:$0xff] %v18962_v58  ;;  %v18972_v11 = vadd.f32 %v10813_v22, %v18844_v57  ;;  %v8310_v63 = vand.u32 4294901760, %v8309_v62  ;;  %v18975_v3 = vsub.f32 %v191_v12, %v18947_v19  ;;  %11381 = vmatprep.subr.mxu0 %v18195_v36  ;;  %11350 = vmatpush3.msra.mxu1 %v8303_v34  ;;  %v18984_v22 = vand.u32 4294901760, %v206_v46  ;;  %v10815_v32 = vpop.f32.mrf.mxu1  ;;  %v10853_v62 = vpop.f32.mrf.mxu0  ;;  %v22321_v41 = vld [vmem:[#allocation39_spill] sm:$0xff] }
 0x39e   :  { %v8127_v57 = vsub.f32 %v18917_v24, %v20622_v51  ;;  %11382 = vmatpush3.msra.mxu0 %v22320_v39  ;;  %11351 = vmatprep.subr.mxu1 %v8422_v15  ;;  %v8119_v12 = vand.u32 4294901760, %v8118_v26  ;;  %v20627_v52 = vand.u32 4294901760, %v18962_v58  ;;  %v10816_v18 = vadd.f32 %v10815_v32, %v10814_v47  ;;  %v22323_v47 = vld [vmem:[#allocation46_spill] sm:$0xff]  ;;  %v22331_v26 = vld [vmem:[#allocation44_spill] sm:$0xff]  ;;  %v22334_v24 = vld [vmem:[#allocation63_spill] sm:$0xff] }
 0x39f   :  { %22318 = vst [vmem:[#allocation66_spill] sm:$0xff] %v18975_v3  ;;  %22319 = vst [vmem:[#allocation50_spill] sm:$0xff] %v18984_v22  ;;  %11383 = vmatprep.subr.mxu0 %v22321_v41  ;;  %8114 = vmatprep.mubr.f32.mxu0 %v8113_v60  ;;  %v8133_v13 = vsub.f32 %v18941_v30, %v20623_v44  ;;  %v18995_v27 = vand.u32 4294901760, %v205_v53  ;;  %v220_v34 = vmax.f32 %v108_v43, 0.0  ;;  %v219_v44 = vmax.f32 %v107_v10, 0.0 }
 0x3a0   :  { %v10854_v15 = vadd.f32 %v10853_v62, %v10852_v35  ;;  %11352 = vmatpush3.msra.mxu1 %v8310_v63  ;;  %8425 = vmatprep.mubr.f32.mxu1 %v18620_v50  ;;  %v19000_v51 = vadd.f32 %v10816_v18, %v18908_v0  ;;  %v8128_v60 = vand.u32 4294901760, %v8127_v57  ;;  %v19005_v32 = vsub.f32 %v206_v46, %v18984_v22  ;;  %v10905_v63 = vpop.f32.mrf.mxu1  ;;  %v22326_v35 = vld [vmem:[#allocation32_spill] sm:$0xff]  ;;  %v122_v18 = vld [vmem:[%s19570_s0 + $0x378] sm:$0xff]  ;;  %v10855_v57 = vpop.f32.mrf.mxu0 }
 0x3a1   :  { %22322 = vst [vmem:[#allocation45_spill] sm:$0xff] %v18995_v27  ;;  %11384 = vmatpush3.msra.mxu0 %v22323_v47  ;;  %8427 = vmatmul.mubr.f32.vlgmr.msra.gmra.mxu1 %v18663_v37  ;;  %v8142_v0 = vsub.f32 %v18962_v58, %v20627_v52  ;;  %v22327_v62 = vld [vmem:[#allocation16_spill] sm:$0xff]  ;;  %v8134_v10 = vand.u32 4294901760, %v8133_v13  ;;  %v22332_v37 = vld [vmem:[#allocation23_spill] sm:$0xff]  ;;  %v22333_v52 = vand.u32 4294901760, %v18975_v3 }
 0x3a2   :  { %22324 = vst [vmem:[#allocation20_spill] sm:$0xff] %v19005_v32  ;;  %v19008_v43 = vadd.f32 %v10854_v15, %v22325_v56  ;;  %8120 = vmatmul.mubr.f32.gmra.mxu0 %v8119_v12  ;;  %11385 = vmatprep.subr.mxu0 %v22326_v35  ;;  %v22328_v46 = vld [vmem:[#allocation56_spill] sm:$0xff]  ;;  %v19020_v56 = vsub.f32 %v205_v53, %v18995_v27  ;;  %v19022_v12 = vand.u32 4294901760, %v220_v34  ;;  %v10906_v15 = vpop.f32.mrf.mxu1  ;;  %v10856_v30 = vpop.f32.mrf.mxu0  ;;  %v22337_v35 = vld [vmem:[#allocation54_spill] sm:$0xff]  ;;  %v22339_v53 = vld [vmem:[#allocation65_spill] sm:$0xff] }
 0x3a3   :  { %11433 = vmatprep.subr.mxu1 %v22327_v62  ;;  %11386 = vmatpush3.msra.mxu0 %v22328_v46  ;;  %v8148_v50 = vsub.f32 %v18975_v3, %v22333_v52  ;;  %v121_v58 = vld [vmem:[%s19570_s0 + $0x370] sm:$0xff]  ;;  %v10907_v13 = vadd.f32 %v10906_v15, %v10905_v63  ;;  %v19034_v46 = vand.u32 4294901760, %v219_v44  ;;  %v10857_v62 = vadd.f32 %v10856_v30, %v10855_v57 }
 0x3a4   :  { %22329 = vst [vmem:[#allocation14_spill] sm:$0xff] %v19020_v56  ;;  %22330 = vst [vmem:[#allocation39_spill] sm:$0xff] %v19022_v12  ;;  %11434 = vmatpush3.msra.mxu1 %v22331_v26  ;;  %11387 = vmatprep.subr.mxu0 %v22332_v37  ;;  %v234_v26 = vmax.f32 %v122_v18, 0.0  ;;  %v22336_v37 = vld [vmem:[#allocation11_spill] sm:$0xff]  ;;  %v8143_v52 = vand.u32 4294901760, %v8142_v0  ;;  %v233_v15 = vmax.f32 %v121_v58, 0.0  ;;  %v10858_v30 = vpop.f32.mrf.mxu0  ;;  %v10908_v0 = vpop.f32.mrf.mxu1 }
 0x3a5   :  { %11435 = vmatprep.subr.mxu1 %v22334_v24  ;;  %8129 = vmatprep.mubr.f32.mxu0 %v8128_v60  ;;  %22335 = vst [vmem:[#allocation46_spill] sm:$0xff] %v19034_v46  ;;  %v19039_v3 = vadd.f32 %v10907_v13, %v18965_v61  ;;  %v19044_v60 = vsub.f32 %v220_v34, %v19022_v12  ;;  %v22340_v57 = vld [vmem:[#allocation4_spill] sm:$0xff]  ;;  %v22342_v61 = vld [vmem:[#allocation71_spill] sm:$0xff]  ;;  %v8149_v13 = vand.u32 4294901760, %v8148_v50  ;;  %v22348_v50 = vand.u32 4294901760, %v19020_v56 }
 0x3a6   :  { %8432 = vmatprep.mubr.f32.mxu1 %v18729_v28  ;;  %11388 = vmatpush3.msra.mxu0 %v22336_v37  ;;  %v6538_v18 = vadd.f32 %v10857_v62, %v22339_v53  ;;  %v22341_v28 = vld [vmem:[#allocation47_spill] sm:$0xff]  ;;  %v19055_v34 = vsub.f32 %v219_v44, %v19034_v46  ;;  %v19057_v58 = vand.u32 4294901760, %v234_v26  ;;  %v10859_v62 = vpop.f32.mrf.mxu0  ;;  %v22345_v53 = vld [vmem:[#allocation49_spill] sm:$0xff]  ;;  %v19066_v44 = vand.u32 4294901760, %v233_v15 }
 0x3a7   :  { %11436 = vmatpush3.msra.mxu1 %v22337_v35  ;;  %8135 = vmatmul.mubr.f32.gmra.mxu0 %v8134_v10  ;;  %22338 = vst [vmem:[#allocation17_spill] sm:$0xff] %v19044_v60  ;;  %v22343_v10 = vand.u32 4294901760, %v19005_v32  ;;  %v10909_v35 = vpop.f32.mrf.mxu1  ;;  %v22350_v37 = vld [vmem:[#allocation15_spill] sm:$0xff] }
 0x3a8   :  { %8434 = vmatmul.mubr.f32.gmra.mxu1 %v18761_v33  ;;  %11389 = vmatprep.subr.mxu0 %v22340_v57  ;;  %22344 = vst [vmem:[#allocation63_spill] sm:$0xff] %v19055_v34  ;;  %v22346_v33 = vld [vmem:[#allocation48_spill] sm:$0xff]  ;;  %v10860_v57 = vadd.f32 %v10859_v62, %v10858_v30  ;;  %22349 = vst [vmem:[#allocation65_spill] sm:$0xff] %v19066_v44 }
 0x3a9   :  { %11437 = vmatprep.subr.mxu1 %v22341_v28  ;;  %11390 = vmatpush3.msra.mxu0 %v22342_v61  ;;  %v8157_v63 = vsub.f32 %v19005_v32, %v22343_v10  ;;  %v22347_v28 = vld [vmem:[#allocation12_spill] sm:$0xff]  ;;  %v8163_v61 = vsub.f32 %v19020_v56, %v22348_v50  ;;  %v10910_v32 = vadd.f32 %v10909_v35, %v10908_v0  ;;  %v22353_v35 = vld [vmem:[#allocation5_spill] sm:$0xff]  ;;  %v10911_v0 = vpop.f32.mrf.mxu1 }
 0x3aa   :  { %11438 = vmatpush3.msra.mxu1 %v22345_v53  ;;  %11391 = vmatprep.subr.mxu0 %v22346_v33  ;;  %v6545_v33 = vadd.f32 %v10860_v57, %v18775_v40  ;;  %v22351_v30 = vld [vmem:[#allocation40_spill] sm:$0xff]  ;;  %v10861_v10 = vpop.f32.mrf.mxu0  ;;  %v22355_v40 = vld [vmem:[#allocation41_spill] sm:$0xff] }
 0x3ab   :  { %11439 = vmatprep.subr.mxu1 %v22347_v28  ;;  %8144 = vmatprep.mubr.f32.mxu0 %v8143_v52  ;;  %v8158_v62 = vand.u32 4294901760, %v8157_v63  ;;  %v19074_v28 = vsub.f32 %v234_v26, %v19057_v58  ;;  %v19077_v50 = vadd.f32 %v10910_v32, %v19008_v43  ;;  %v8164_v57 = vand.u32 4294901760, %v8163_v61  ;;  %v22357_v43 = vld [vmem:[#allocation52_spill] sm:$0xff]  ;;  %v22358_v52 = vld [vmem:[#allocation27_spill] sm:$0xff]  ;;  %v10912_v56 = vpop.f32.mrf.mxu1 }
 0x3ac   :  { %8439 = vmatprep.mubr.f32.mxu1 %v18807_v21  ;;  %11392 = vmatpush3.msra.mxu0 %v22350_v37  ;;  %v22354_v21 = vld [vmem:[#allocation19_spill] sm:$0xff]  ;;  %v22356_v63 = vand.u32 4294901760, %v19044_v60  ;;  %v19087_v26 = vsub.f32 %v233_v15, %v19066_v44  ;;  %v10862_v32 = vpop.f32.mrf.mxu0  ;;  %v22361_v15 = vld [vmem:[#allocation36_spill] sm:$0xff] }
 0x3ad   :  { %11440 = vmatpush3.msra.mxu1 %v22351_v30  ;;  %8150 = vmatmul.mubr.f32.gmra.mxu0 %v8149_v13  ;;  %22352 = vst [vmem:[#allocation49_spill] sm:$0xff] %v19074_v28 }
 0x3ae   :  { %8441 = vmatmul.mubr.f32.gmra.mxu1 %v18841_v55  ;;  %11393 = vmatprep.subr.mxu0 %v22353_v35  ;;  %v8172_v13 = vsub.f32 %v19044_v60, %v22356_v63  ;;  %v10863_v55 = vadd.f32 %v10862_v32, %v10861_v10  ;;  %v22359_v35 = vld [vmem:[#allocation58_spill] sm:$0xff]  ;;  %v10913_v63 = vadd.f32 %v10912_v56, %v10911_v0  ;;  %v22364_v0 = vld [vmem:[#allocation31_spill] sm:$0xff] }
 0x3af   :  { %11441 = vmatprep.subr.mxu1 %v22354_v21  ;;  %11394 = vmatpush3.msra.mxu0 %v22355_v40  ;;  %v22360_v40 = vand.u32 4294901760, %v19055_v34  ;;  %v10914_v56 = vpop.f32.mrf.mxu1  ;;  %v22365_v21 = vld [vmem:[#allocation51_spill] sm:$0xff] }
 0x3b0   :  { %11442 = vmatpush3.msra.mxu1 %v22357_v43  ;;  %11395 = vmatprep.subr.mxu0 %v22358_v52  ;;  %v6552_v60 = vadd.f32 %v10863_v55, %v18860_v4  ;;  %v22362_v43 = vld [vmem:[#allocation60_spill] sm:$0xff]  ;;  %v8173_v10 = vand.u32 4294901760, %v8172_v13  ;;  %v22366_v55 = vand.u32 4294901760, %v19074_v28  ;;  %v22367_v13 = vld [vmem:[#allocation62_spill] sm:$0xff] }
 0x3b1   :  { %11443 = vmatprep.subr.mxu1 %v22359_v35  ;;  %8159 = vmatprep.mubr.f32.mxu0 %v8158_v62  ;;  %v8178_v61 = vsub.f32 %v19055_v34, %v22360_v40  ;;  %v19101_v62 = vadd.f32 %v10913_v63, %v6538_v18  ;;  %v10864_v35 = vpop.f32.mrf.mxu0  ;;  %v22363_v40 = vld [vmem:[#allocation29_spill] sm:$0xff]  ;;  %v22368_v18 = vld [vmem:[#allocation38_spill] sm:$0xff]  ;;  %v10915_v32 = vpop.f32.mrf.mxu1  ;;  %v22370_v34 = vand.u32 4294901760, %v19087_v26 }
 0x3b2   :  { %8446 = vmatprep.mubr.f32.mxu1 %v18877_v23  ;;  %11396 = vmatpush3.msra.mxu0 %v22361_v15  ;;  %v8187_v4 = vsub.f32 %v19074_v28, %v22366_v55  ;;  %v22371_v55 = vld [vmem:[#allocation57_spill] sm:$0xff] }
 0x3b3   :  { %11444 = vmatpush3.msra.mxu1 %v22362_v43  ;;  %8165 = vmatmul.mubr.f32.gmra.mxu0 %v8164_v57  ;;  %v8179_v23 = vand.u32 4294901760, %v8178_v61  ;;  %v10865_v57 = vpop.f32.mrf.mxu0 }
 0x3b4   :  { %8448 = vmatmul.mubr.f32.gmra.mxu1 %v18899_v6  ;;  %11397 = vmatprep.subr.mxu0 %v22363_v40  ;;  %v10866_v63 = vadd.f32 %v10865_v57, %v10864_v35  ;;  %v22369_v6 = vld [vmem:[#allocation8_spill] sm:$0xff]  ;;  %v8188_v28 = vand.u32 4294901760, %v8187_v4 }
 0x3b5   :  { %11445 = vmatprep.subr.mxu1 %v22364_v0  ;;  %11398 = vmatpush3.msra.mxu0 %v22365_v21  ;;  %v8193_v0 = vsub.f32 %v19087_v26, %v22370_v34  ;;  %v10916_v21 = vadd.f32 %v10915_v32, %v10914_v56  ;;  %v10867_v57 = vpop.f32.mrf.mxu0  ;;  %v22372_v34 = vld [vmem:[#allocation70_spill] sm:$0xff] }
 0x3b6   :  { %11446 = vmatpush3.msra.mxu1 %v22367_v13  ;;  %11399 = vmatprep.subr.mxu0 %v22368_v18  ;;  %v6559_v61 = vadd.f32 %v10866_v63, %v18920_v49  ;;  %v22375_v63 = vld [vmem:[#allocation42_spill] sm:$0xff] }
 0x3b7   :  { %11447 = vmatprep.subr.mxu1 %v22369_v6  ;;  %8174 = vmatprep.mubr.f32.mxu0 %v8173_v10  ;;  %v19120_v35 = vadd.f32 %v10916_v21, %v6545_v33  ;;  %v10917_v10 = vpop.f32.mrf.mxu1  ;;  %v8194_v32 = vand.u32 4294901760, %v8193_v0  ;;  %v10868_v56 = vpop.f32.mrf.mxu0  ;;  %v22374_v33 = vld [vmem:[#allocation43_spill] sm:$0xff] }
 0x3b8   :  { %8453 = vmatprep.mubr.f32.mxu1 %v18929_v48  ;;  %11400 = vmatpush3.msra.mxu0 %v18539_v59  ;;  %v22373_v48 = vld [vmem:[#allocation22_spill] sm:$0xff] }
 0x3b9   :  { %11448 = vmatpush3.msra.mxu1 %v22371_v55  ;;  %8180 = vmatmul.mubr.f32.gmra.mxu0 %v8179_v23  ;;  %v10869_v23 = vadd.f32 %v10868_v56, %v10867_v57  ;;  %v10918_v49 = vpop.f32.mrf.mxu1  ;;  %v22376_v56 = vld [vmem:[#allocation68_spill] sm:$0xff] }
 0x3ba   :  { %8455 = vmatmul.mubr.f32.gmra.mxu1 %v18947_v19  ;;  %11401 = vmatprep.subr.mxu0 %v18634_v5  ;;  %v10919_v21 = vadd.f32 %v10918_v49, %v10917_v10  ;;  %v22377_v10 = vld [vmem:[#allocation35_spill] sm:$0xff] }
 0x3bb   :  { %11449 = vmatprep.subr.mxu1 %v22372_v34  ;;  %11402 = vmatpush3.msra.mxu0 %v18610_v1  ;;  %v6566_v4 = vadd.f32 %v10869_v23, %v18972_v11  ;;  %v10920_v57 = vpop.f32.mrf.mxu1 }
 0x3bc   :  { %11450 = vmatpush3.msra.mxu1 %v22373_v48  ;;  %11403 = vmatprep.subr.mxu0 %v18707_v8  ;;  %v19133_v0 = vadd.f32 %v10919_v21, %v6552_v60  ;;  %v10870_v19 = vpop.f32.mrf.mxu0  ;;  %v22379_v21 = vld [vmem:[#allocation33_spill] sm:$0xff] }
 0x3bd   :  { %11451 = vmatprep.subr.mxu1 %v22374_v33  ;;  %8189 = vmatprep.mubr.f32.mxu0 %v8188_v28  ;;  %v10921_v23 = vpop.f32.mrf.mxu1 }
 0x3be   :  { %8460 = vmatprep.mubr.f32.mxu1 %v18984_v22  ;;  %11404 = vmatpush3.msra.mxu0 %v18640_v38  ;;  %v10871_v28 = vpop.f32.mrf.mxu0  ;;  %v10922_v60 = vadd.f32 %v10921_v23, %v10920_v57  ;;  %v22381_v57 = vand.u32 4294901760, %v18141_v45  ;;  %v22382_v23 = vld [vmem:[#allocation30_spill] sm:$0xff]  ;;  %v22386_v45 = vld [vmem:[#allocation59_spill] sm:$0xff] }
 0x3bf   :  { %11452 = vmatpush3.msra.mxu1 %v22375_v63  ;;  %8195 = vmatmul.mubr.f32.gmra.mxu0 %v8194_v32  ;;  %v10872_v11 = vadd.f32 %v10871_v28, %v10870_v19  ;;  %v22378_v32 = vld [vmem:[#allocation7_spill] sm:$0xff] }
 0x3c0   :  { %8462 = vmatmul.mubr.f32.gmra.mxu1 %v18995_v27  ;;  %11405 = vmatprep.subr.mxu0 %v18805_v9  ;;  %v19148_v27 = vadd.f32 %v10922_v60, %v6559_v61  ;;  %v22380_v19 = vld [vmem:[#allocation3_spill] sm:$0xff]  ;;  %v22385_v60 = vand.u32 4294901760, %v18158_v2  ;;  %v22388_v2 = vld [vmem:[#allocation9_spill] sm:$0xff] }
 0x3c1   :  { %11453 = vmatprep.subr.mxu1 %v22376_v56  ;;  %11406 = vmatpush3.msra.mxu0 %v18719_v16  ;;  %v6573_v49 = vadd.f32 %v10872_v11, %v19000_v51  ;;  %v10961_v22 = vpop.f32.mrf.mxu0  ;;  %v22383_v51 = vand.u32 4294901760, %v18150_v31  ;;  %v22384_v11 = vld [vmem:[#allocation13_spill] sm:$0xff] }
 0x3c2   :  { %11454 = vmatpush3.msra.mxu1 %v22377_v10  ;;  %11407 = vmatprep.subr.mxu0 %v18839_v29  ;;  %v10923_v28 = vpop.f32.mrf.mxu1 }
 0x3c3   :  { %11455 = vmatprep.subr.mxu1 %v22378_v32  ;;  %8467 = vmatprep.mubr.f32.mxu1 %v19022_v12  ;;  %v10962_v12 = vpop.f32.mrf.mxu0 }
 0x3c4   :  { %11408 = vmatpush3.msra.mxu0 %v18780_v25  ;;  %8611 = vmatprep.mubr.f32.mxu0 %v18675_v42  ;;  %v10963_v61 = vadd.f32 %v10962_v12, %v10961_v22 }
 0x3c5   :  { %11456 = vmatpush3.msra.mxu1 %v22379_v21  ;;  %8614 = vmatmul.mubr.f32.vlgmr.msra.gmra.mxu0 %v18727_v7  ;;  %v10924_v21 = vpop.f32.mrf.mxu1 }
 0x3c6   :  { %8469 = vmatmul.mubr.f32.gmra.mxu1 %v19034_v46  ;;  %11457 = vmatprep.subr.mxu1 %v22380_v19  ;;  %v10925_v46 = vadd.f32 %v10924_v21, %v10923_v28  ;;  %v22389_v21 = vand.u32 4294901760, %v18195_v36  ;;  %v22390_v28 = vld [vmem:[#allocation25_spill] sm:$0xff]  ;;  %v22396_v36 = vand.u32 4294901760, %v18675_v42  ;;  %v22402_v42 = vld [vmem:[#allocation56_spill] sm:$0xff] }
 0x3c7   :  { %11489 = vmatprep.subr.mxu0 %v22381_v57  ;;  %11458 = vmatpush3.msra.mxu1 %v22382_v23  ;;  %v6838_v57 = vadd.f32 %v10963_v61, %v19039_v3  ;;  %v22387_v23 = vand.u32 4294901760, %v18168_v54  ;;  %v22391_v3 = vand.u32 4294901760, %v22320_v39  ;;  %v22392_v54 = vld [vmem:[#allocation28_spill] sm:$0xff]  ;;  %v22394_v61 = vld [vmem:[#allocation69_spill] sm:$0xff]  ;;  %v22397_v39 = vand.u32 4294901760, %v22323_v47 }
 0x3c8   :  { %11490 = vmatpush3.msra.mxu0 %v22383_v51  ;;  %11459 = vmatprep.subr.mxu1 %v22384_v11  ;;  %v19167_v31 = vadd.f32 %v10925_v46, %v6566_v4  ;;  %v10926_v22 = vpop.f32.mrf.mxu1  ;;  %v22393_v4 = vand.u32 4294901760, %v22321_v41  ;;  %v22404_v47 = vld [vmem:[#allocation44_spill] sm:$0xff] }
 0x3c9   :  { %11491 = vmatprep.subr.mxu0 %v22385_v60  ;;  %8474 = vmatprep.mubr.f32.mxu1 %v19057_v58 }
 0x3ca   :  { %8620 = vmatprep.mubr.f32.mxu0 %v18772_v17  ;;  %11460 = vmatpush3.msra.mxu1 %v22386_v45  ;;  %v10964_v12 = vpop.f32.mrf.mxu0  ;;  %v10927_v51 = vpop.f32.mrf.mxu1 }
 0x3cb   :  { %11492 = vmatpush3.msra.mxu0 %v22387_v23  ;;  %8476 = vmatmul.mubr.f32.gmra.mxu1 %v19066_v44  ;;  %v10928_v23 = vadd.f32 %v10927_v51, %v10926_v22  ;;  %v22395_v44 = vld [vmem:[#allocation61_spill] sm:$0xff]  ;;  %v22399_v51 = vld [vmem:[#allocation32_spill] sm:$0xff] }
 0x3cc   :  { %8623 = vmatmul.mubr.f32.gmra.mxu0 %v18819_v20  ;;  %11461 = vmatprep.subr.mxu1 %v22388_v2  ;;  %v10965_v46 = vpop.f32.mrf.mxu0 }
 0x3cd   :  { %11493 = vmatprep.subr.mxu0 %v22389_v21  ;;  %11462 = vmatpush3.msra.mxu1 %v22390_v28  ;;  %v10966_v60 = vadd.f32 %v10965_v46, %v10964_v12  ;;  %v19183_v21 = vadd.f32 %v10928_v23, %v6573_v49  ;;  %v22400_v12 = vand.u32 4294901760, %v22399_v51  ;;  %v22403_v49 = vand.u32 4294901760, %v22402_v42 }
 0x3ce   :  { %11494 = vmatpush3.msra.mxu0 %v22391_v3  ;;  %11463 = vmatprep.subr.mxu1 %v22392_v54  ;;  %v22398_v3 = vand.u32 4294901760, %v18727_v7  ;;  %v22408_v51 = vand.u32 4294901760, %v18772_v17 }
 0x3cf   :  { %11495 = vmatprep.subr.mxu0 %v22393_v4  ;;  %8629 = vmatprep.mubr.f32.mxu0 %v22394_v61  ;;  %v6853_v22 = vadd.f32 %v10966_v60, %v19077_v50  ;;  %v11017_v41 = vpop.f32.mrf.mxu1  ;;  %v22401_v4 = vld [vmem:[#allocation16_spill] sm:$0xff]  ;;  %v22407_v60 = vld [vmem:[#allocation6_spill] sm:$0xff] }
 0x3d0   :  { %11464 = vmatpush3.msra.mxu1 %v22395_v44  ;;  %8781 = vmatprep.mubr.f32.mxu1 %v22396_v36  ;;  %v10967_v46 = vpop.f32.mrf.mxu0  ;;  %v22405_v36 = vld [vmem:[#allocation23_spill] sm:$0xff] }
 0x3d1   :  { %11496 = vmatpush3.msra.mxu0 %v22397_v39  ;;  %8785 = vmatmul.mubr.f32.vlgmr.msra.gmra.mxu1 %v22398_v3  ;;  %v11018_v23 = vpop.f32.mrf.mxu1  ;;  %v22406_v7 = vand.u32 4294901760, %v22405_v36 }
 0x3d2   :  { %8632 = vmatmul.mubr.f32.gmra.mxu0 %v18889_v14  ;;  %11497 = vmatprep.subr.mxu0 %v22400_v12  ;;  %v10968_v39 = vpop.f32.mrf.mxu0  ;;  %v11019_v50 = vadd.f32 %v11018_v23, %v11017_v41  ;;  %v22409_v12 = vld [vmem:[#allocation11_spill] sm:$0xff]  ;;  %v22414_v23 = vld [vmem:[#allocation4_spill] sm:$0xff] }
 0x3d3   :  { %11545 = vmatprep.subr.mxu1 %v22401_v4  ;;  %11498 = vmatpush3.msra.mxu0 %v22403_v49  ;;  %v10969_v3 = vadd.f32 %v10968_v39, %v10967_v46  ;;  %v22410_v4 = vand.u32 4294901760, %v22409_v12  ;;  %v22411_v49 = vld [vmem:[#allocation54_spill] sm:$0xff]  ;;  %v22415_v46 = vand.u32 4294901760, %v22414_v23  ;;  %v22417_v39 = vld [vmem:[#allocation71_spill] sm:$0xff]  ;;  %v22424_v23 = vand.u32 4294901760, %v22350_v37  ;;  %v22430_v37 = vld [vmem:[#allocation41_spill] sm:$0xff] }
 0x3d4   :  { %11546 = vmatpush3.msra.mxu1 %v22404_v47  ;;  %11499 = vmatprep.subr.mxu0 %v22406_v7  ;;  %v19205_v42 = vadd.f32 %v11019_v50, %v6838_v57  ;;  %v22412_v47 = vld [vmem:[#allocation53_spill] sm:$0xff]  ;;  %v22416_v7 = vld [vmem:[#allocation47_spill] sm:$0xff]  ;;  %v22419_v50 = vld [vmem:[#allocation48_spill] sm:$0xff] }
 0x3d5   :  { %11547 = vmatprep.subr.mxu1 %v22334_v24  ;;  %8638 = vmatprep.mubr.f32.mxu0 %v22407_v60  ;;  %v6868_v36 = vadd.f32 %v10969_v3, %v19101_v62  ;;  %v10970_v41 = vpop.f32.mrf.mxu0  ;;  %v22413_v24 = vand.u32 4294901760, %v18819_v20  ;;  %v22420_v12 = vand.u32 4294901760, %v22419_v50  ;;  %v22422_v20 = vld [vmem:[#allocation64_spill] sm:$0xff]  ;;  %v22431_v50 = vand.u32 4294901760, %v22430_v37 }
 0x3d6   :  { %8792 = vmatprep.mubr.f32.mxu1 %v22408_v51  ;;  %11500 = vmatpush3.msra.mxu0 %v22410_v4  ;;  %v11020_v17 = vpop.f32.mrf.mxu1  ;;  %v22418_v51 = vand.u32 4294901760, %v22417_v39  ;;  %v22421_v4 = vld [vmem:[#allocation12_spill] sm:$0xff]  ;;  %v22426_v39 = vand.u32 4294901760, %v18889_v14 }
 0x3d7   :  { %11548 = vmatpush3.msra.mxu1 %v22411_v49  ;;  %8641 = vmatmul.mubr.f32.gmra.mxu0 %v22412_v47  ;;  %v10971_v57 = vpop.f32.mrf.mxu0  ;;  %v22435_v14 = vld [vmem:[#allocation20_spill] sm:$0xff] }
 0x3d8   :  { %8796 = vmatmul.mubr.f32.gmra.mxu1 %v22413_v24  ;;  %11501 = vmatprep.subr.mxu0 %v22415_v46  ;;  %v10972_v62 = vadd.f32 %v10971_v57, %v10970_v41  ;;  %v11021_v3 = vpop.f32.mrf.mxu1  ;;  %v22423_v24 = vand.u32 4294901760, %v22394_v61  ;;  %v22429_v57 = vld [vmem:[#allocation19_spill] sm:$0xff] }
 0x3d9   :  { %11549 = vmatprep.subr.mxu1 %v22416_v7  ;;  %11502 = vmatpush3.msra.mxu0 %v22418_v51  ;;  %v11022_v49 = vadd.f32 %v11021_v3, %v11020_v17  ;;  %v22427_v51 = vld [vmem:[#allocation5_spill] sm:$0xff]  ;;  %v22434_v3 = vld [vmem:[#allocation58_spill] sm:$0xff] }
 0x3da   :  { %11550 = vmatpush3.msra.mxu1 %v22345_v53  ;;  %11503 = vmatprep.subr.mxu0 %v22420_v12  ;;  %v6883_v46 = vadd.f32 %v10972_v62, %v19120_v35  ;;  %v22425_v53 = vld [vmem:[#allocation66_spill] sm:$0xff]  ;;  %v22428_v17 = vand.u32 4294901760, %v22427_v51  ;;  %v22432_v12 = vld [vmem:[#allocation52_spill] sm:$0xff]  ;;  %v22439_v51 = vand.u32 4294901760, %v22412_v47  ;;  %v22445_v47 = vld [vmem:[#allocation17_spill] sm:$0xff] }
 0x3db   :  { %11551 = vmatprep.subr.mxu1 %v22421_v4  ;;  %8647 = vmatprep.mubr.f32.mxu0 %v22422_v20  ;;  %v19229_v7 = vadd.f32 %v11022_v49, %v6853_v22  ;;  %v10973_v41 = vpop.f32.mrf.mxu0  ;;  %v22436_v49 = vand.u32 4294901760, %v22407_v60 }
 0x3dc   :  { %8803 = vmatprep.mubr.f32.mxu1 %v22423_v24  ;;  %11504 = vmatpush3.msra.mxu0 %v22424_v23  ;;  %v11023_v61 = vpop.f32.mrf.mxu1  ;;  %v22437_v24 = vand.u32 4294901760, %v22361_v15  ;;  %v22442_v15 = vld [vmem:[#allocation51_spill] sm:$0xff] }
 0x3dd   :  { %11552 = vmatpush3.msra.mxu1 %v22351_v30  ;;  %8650 = vmatmul.mubr.f32.gmra.mxu0 %v22425_v53  ;;  %v10974_v35 = vpop.f32.mrf.mxu0  ;;  %v22433_v30 = vand.u32 4294901760, %v22358_v52 }
 0x3de   :  { %8807 = vmatmul.mubr.f32.gmra.mxu1 %v22426_v39  ;;  %11505 = vmatprep.subr.mxu0 %v22428_v17  ;;  %v10975_v22 = vadd.f32 %v10974_v35, %v10973_v41  ;;  %v11024_v62 = vpop.f32.mrf.mxu1  ;;  %v22438_v39 = vld [vmem:[#allocation14_spill] sm:$0xff]  ;;  %v22440_v17 = vand.u32 4294901760, %v22363_v40  ;;  %v22447_v35 = vand.u32 4294901760, %v18539_v59  ;;  %v22451_v59 = vand.u32 4294901760, %v18610_v1 }
 0x3df   :  { %11553 = vmatprep.subr.mxu1 %v22429_v57  ;;  %11506 = vmatpush3.msra.mxu0 %v22431_v50  ;;  %v11025_v4 = vadd.f32 %v11024_v62, %v11023_v61  ;;  %v22441_v61 = vld [vmem:[#allocation31_spill] sm:$0xff]  ;;  %v22443_v57 = vand.u32 4294901760, %v22442_v15  ;;  %v22446_v50 = vand.u32 4294901760, %v22422_v20 }
 0x3e0   :  { %11554 = vmatpush3.msra.mxu1 %v22432_v12  ;;  %11507 = vmatprep.subr.mxu0 %v22433_v30  ;;  %v6898_v23 = vadd.f32 %v10975_v22, %v19133_v0  ;;  %v22450_v22 = vand.u32 4294901760, %v18634_v5 }
 0x3e1   :  { %11555 = vmatprep.subr.mxu1 %v22434_v3  ;;  %8656 = vmatprep.mubr.f32.mxu0 %v22435_v14  ;;  %v19250_v52 = vadd.f32 %v11025_v4, %v6868_v36  ;;  %v10976_v41 = vpop.f32.mrf.mxu0  ;;  %v22454_v3 = vand.u32 4294901760, %v22435_v14  ;;  %v22457_v4 = vand.u32 4294901760, %v18805_v9 }
 0x3e2   :  { %8814 = vmatprep.mubr.f32.mxu1 %v22436_v49  ;;  %11508 = vmatpush3.msra.mxu0 %v22437_v24  ;;  %v11026_v60 = vpop.f32.mrf.mxu1 }
 0x3e3   :  { %11556 = vmatpush3.msra.mxu1 %v22362_v43  ;;  %8659 = vmatmul.mubr.f32.gmra.mxu0 %v22438_v39  ;;  %v10977_v0 = vpop.f32.mrf.mxu0  ;;  %v22444_v43 = vand.u32 4294901760, %v22368_v18 }
 0x3e4   :  { %8818 = vmatmul.mubr.f32.gmra.mxu1 %v22439_v51  ;;  %11509 = vmatprep.subr.mxu0 %v22440_v17  ;;  %v10978_v36 = vadd.f32 %v10977_v0, %v10976_v41  ;;  %v11027_v37 = vpop.f32.mrf.mxu1  ;;  %v22463_v41 = vld [vmem:[#allocation33_spill] sm:$0xff] }
 0x3e5   :  { %11557 = vmatprep.subr.mxu1 %v22441_v61  ;;  %11510 = vmatpush3.msra.mxu0 %v22443_v57  ;;  %v11028_v40 = vadd.f32 %v11027_v37, %v11026_v60  ;;  %v22466_v60 = vld [vmem:[#allocation30_spill] sm:$0xff]  ;;  %v22469_v0 = vld [vmem:[#allocation21_spill] sm:$0xff] }
 0x3e6   :  { %11558 = vmatpush3.msra.mxu1 %v22367_v13  ;;  %11511 = vmatprep.subr.mxu0 %v22444_v43  ;;  %v6913_v12 = vadd.f32 %v10978_v36, %v19148_v27  ;;  %v22448_v13 = vld [vmem:[#allocation63_spill] sm:$0xff]  ;;  %v22471_v37 = vld [vmem:[#allocation2_spill] sm:$0xff] }
 0x3e7   :  { %11559 = vmatprep.subr.mxu1 %v22369_v6  ;;  %8665 = vmatprep.mubr.f32.mxu0 %v22445_v47  ;;  %v19271_v18 = vadd.f32 %v11028_v40, %v6883_v46  ;;  %v10979_v30 = vpop.f32.mrf.mxu0  ;;  %v22449_v6 = vand.u32 4294901760, %v22425_v53  ;;  %v22453_v53 = vld [vmem:[#allocation49_spill] sm:$0xff] }
 0x3e8   :  { %8825 = vmatprep.mubr.f32.mxu1 %v22446_v50  ;;  %11512 = vmatpush3.msra.mxu0 %v22447_v35  ;;  %v11029_v20 = vpop.f32.mrf.mxu1 }
 0x3e9   :  { %11560 = vmatpush3.msra.mxu1 %v22371_v55  ;;  %8668 = vmatmul.mubr.f32.gmra.mxu0 %v22448_v13  ;;  %v10980_v27 = vpop.f32.mrf.mxu0  ;;  %v22452_v55 = vand.u32 4294901760, %v18707_v8 }
 0x3ea   :  { %8829 = vmatmul.mubr.f32.gmra.mxu1 %v22449_v6  ;;  %11513 = vmatprep.subr.mxu0 %v22450_v22  ;;  %v10981_v46 = vadd.f32 %v10980_v27, %v10979_v30  ;;  %v11030_v62 = vpop.f32.mrf.mxu1 }
 0x3eb   :  { %11561 = vmatprep.subr.mxu1 %v22372_v34  ;;  %11514 = vmatpush3.msra.mxu0 %v22451_v59  ;;  %v11031_v5 = vadd.f32 %v11030_v62, %v11029_v20  ;;  %v22455_v34 = vand.u32 4294901760, %v18640_v38  ;;  %v22458_v38 = vand.u32 4294901760, %v18719_v16  ;;  %v22476_v59 = vld [vmem:[#allocation67_spill] sm:$0xff] }
 0x3ec   :  { %11562 = vmatpush3.msra.mxu1 %v22373_v48  ;;  %11515 = vmatprep.subr.mxu0 %v22452_v55  ;;  %v6928_v1 = vadd.f32 %v10981_v46, %v19167_v31  ;;  %v22477_v55 = vld [vmem:[#allocation50_spill] sm:$0xff] }
 0x3ed   :  { %11563 = vmatprep.subr.mxu1 %v22374_v33  ;;  %8674 = vmatprep.mubr.f32.mxu0 %v22453_v53  ;;  %v19292_v8 = vadd.f32 %v11031_v5, %v6898_v23  ;;  %v10982_v48 = vpop.f32.mrf.mxu0  ;;  %v22456_v33 = vand.u32 4294901760, %v22438_v39  ;;  %v22460_v23 = vand.u32 4294901760, %v22445_v47  ;;  %v22461_v39 = vand.u32 4294901760, %v18780_v25  ;;  %v22478_v5 = vld [vmem:[#allocation45_spill] sm:$0xff] }
 0x3ee   :  { %8836 = vmatprep.mubr.f32.mxu1 %v22454_v3  ;;  %11516 = vmatpush3.msra.mxu0 %v22455_v34  ;;  %v11032_v14 = vpop.f32.mrf.mxu1  ;;  %v22467_v25 = vand.u32 4294901760, %v22453_v53  ;;  %v22479_v34 = vld [vmem:[#allocation39_spill] sm:$0xff] }
 0x3ef   :  { %11564 = vmatpush3.msra.mxu1 %v22375_v63  ;;  %8677 = vmatmul.mubr.f32.gmra.mxu0 %v19087_v26  ;;  %v10983_v31 = vpop.f32.mrf.mxu0  ;;  %v22459_v63 = vand.u32 4294901760, %v18839_v29 }
 0x3f0   :  { %8840 = vmatmul.mubr.f32.gmra.mxu1 %v22456_v33  ;;  %11517 = vmatprep.subr.mxu0 %v22457_v4  ;;  %v10984_v49 = vadd.f32 %v10983_v31, %v10982_v48  ;;  %v11033_v24 = vpop.f32.mrf.mxu1 }
 0x3f1   :  { %11565 = vmatprep.subr.mxu1 %v22376_v56  ;;  %11518 = vmatpush3.msra.mxu0 %v22458_v38  ;;  %v11034_v9 = vadd.f32 %v11033_v24, %v11032_v14  ;;  %v22462_v56 = vld [vmem:[#allocation10_spill] sm:$0xff] }
 0x3f2   :  { %11566 = vmatpush3.msra.mxu1 %v22377_v10  ;;  %11519 = vmatprep.subr.mxu0 %v22459_v63  ;;  %v6943_v16 = vadd.f32 %v10984_v49, %v19183_v21  ;;  %v22464_v10 = vld [vmem:[#allocation34_spill] sm:$0xff]  ;;  %v22468_v21 = vld [vmem:[#allocation24_spill] sm:$0xff] }
 0x3f3   :  { %11567 = vmatprep.subr.mxu1 %v22378_v32  ;;  %8847 = vmatprep.mubr.f32.mxu1 %v22460_v23  ;;  %v19313_v29 = vadd.f32 %v11034_v9, %v6913_v12  ;;  %v11073_v51 = vpop.f32.mrf.mxu0  ;;  %v22465_v32 = vand.u32 4294901760, %v22448_v13  ;;  %v22480_v14 = vld [vmem:[#allocation46_spill] sm:$0xff]  ;;  %v22481_v23 = vld [vmem:[#allocation65_spill] sm:$0xff] }
 0x3f4   :  { %11520 = vmatpush3.msra.mxu0 %v22461_v39  ;;  %9028 = vmatprep.mubr.f32.mxu0 %v22462_v56  ;;  %v11035_v17 = vpop.f32.mrf.mxu1 }
 0x3f5   :  { %11568 = vmatpush3.msra.mxu1 %v22463_v41  ;;  %9030 = vmatmul.mubr.f32.vlgmr.msra.gmra.mxu0 %v22464_v10  ;;  %v11074_v61 = vpop.f32.mrf.mxu0 }
 0x3f6   :  { %8851 = vmatmul.mubr.f32.gmra.mxu1 %v22465_v32  ;;  %11569 = vmatprep.subr.mxu1 %v22380_v19  ;;  %v11036_v15 = vpop.f32.mrf.mxu1  ;;  %v11075_v57 = vadd.f32 %v11074_v61, %v11073_v51  ;;  %v22470_v19 = vand.u32 4294901760, %v19087_v26  ;;  %v22472_v26 = vld [vmem:[#allocation55_spill] sm:$0xff] }
 0x3f7   :  { %11570 = vmatpush3.msra.mxu1 %v22466_v60  ;;  %8858 = vmatprep.mubr.f32.mxu1 %v22467_v25  ;;  %v11037_v43 = vadd.f32 %v11036_v15, %v11035_v17 }
 0x3f8   :  { %11571 = vmatprep.subr.mxu1 %v22384_v11  ;;  %9035 = vmatprep.mubr.f32.mxu0 %v22468_v21  ;;  %v7362_v36 = vadd.f32 %v11075_v57, %v19205_v42 }
 0x3f9   :  { %11572 = vmatpush3.msra.mxu1 %v22386_v45  ;;  %9037 = vmatmul.mubr.f32.gmra.mxu0 %v22469_v0  ;;  %v19331_v11 = vadd.f32 %v11037_v43, %v6928_v1  ;;  %v11038_v47 = vpop.f32.mrf.mxu1 }
 0x3fa   :  { %8862 = vmatmul.mubr.f32.gmra.mxu1 %v22470_v19  ;;  %11573 = vmatprep.subr.mxu1 %v22388_v2  ;;  %v11076_v45 = vpop.f32.mrf.mxu0  ;;  %v22473_v2 = vld [vmem:[#allocation18_spill] sm:$0xff] }
 0x3fb   :  { %11574 = vmatpush3.msra.mxu1 %v22390_v28  ;;  %9042 = vmatprep.mubr.f32.mxu0 %v22471_v37  ;;  %v11039_v40 = vpop.f32.mrf.mxu1 }
 0x3fc   :  { %11575 = vmatprep.subr.mxu1 %v22392_v54  ;;  %9181 = vmatprep.mubr.f32.mxu1 %v22462_v56  ;;  %v11040_v28 = vadd.f32 %v11039_v40, %v11038_v47  ;;  %v11077_v42 = vpop.f32.mrf.mxu0  ;;  %v22474_v54 = vld [vmem:[#allocation37_spill] sm:$0xff] }
 0x3fd   :  { %11576 = vmatpush3.msra.mxu1 %v22395_v44  ;;  %9044 = vmatmul.mubr.f32.gmra.mxu0 %v22472_v26  ;;  %v11078_v50 = vadd.f32 %v11077_v42, %v11076_v45  ;;  %v22475_v44 = vld [vmem:[#allocation26_spill] sm:$0xff] }
 0x3fe   :  { %9183 = vmatmul.mubr.f32.vlgmr.msra.gmra.mxu1 %v22464_v10  ;;  %9049 = vmatprep.mubr.f32.mxu0 %v22473_v2  ;;  %v19340_v35 = vadd.f32 %v11040_v28, %v6943_v16 }
 0x3ff   :  { %9188 = vmatprep.mubr.f32.mxu1 %v22468_v21  ;;  %v7371_v12 = vadd.f32 %v11078_v50, %v19229_v7  ;;  %v11129_v13 = vpop.f32.mrf.mxu1 }
 0x400   :  { %v11079_v30 = vpop.f32.mrf.mxu0 }
 0x401   :  { %9051 = vmatmul.mubr.f32.gmra.mxu0 %v22474_v54  ;;  %v11130_v6 = vpop.f32.mrf.mxu1 }
 0x402   :  { %9190 = vmatmul.mubr.f32.gmra.mxu1 %v22469_v0  ;;  %9056 = vmatprep.mubr.f32.mxu0 %v22475_v44  ;;  %v11080_v22 = vpop.f32.mrf.mxu0  ;;  %v11131_v20 = vadd.f32 %v11130_v6, %v11129_v13 }
 0x403   :  { %9195 = vmatprep.mubr.f32.mxu1 %v22471_v37  ;;  %v11081_v27 = vadd.f32 %v11080_v22, %v11079_v30 }
 0x404   :  { %v19350_v46 = vadd.f32 %v11131_v20, %v7362_v36 }
 0x405   :  { %9058 = vmatmul.mubr.f32.gmra.mxu0 %v22476_v59  ;;  %v7380_v7 = vadd.f32 %v11081_v27, %v19250_v52  ;;  %v11082_v62 = vpop.f32.mrf.mxu0 }
 0x406   :  { %9197 = vmatmul.mubr.f32.gmra.mxu1 %v22472_v26  ;;  %9063 = vmatprep.mubr.f32.mxu0 %v22477_v55  ;;  %v11132_v53 = vpop.f32.mrf.mxu1 }
 0x407   :  { %9202 = vmatprep.mubr.f32.mxu1 %v22473_v2  ;;  %v11083_v3 = vpop.f32.mrf.mxu0 }
 0x408   :  { %v11084_v1 = vadd.f32 %v11083_v3, %v11082_v62  ;;  %v11133_v48 = vpop.f32.mrf.mxu1 }
 0x409   :  { %9065 = vmatmul.mubr.f32.gmra.mxu0 %v22478_v5  ;;  %v11134_v33 = vadd.f32 %v11133_v48, %v11132_v53 }
 0x40a   :  { %9204 = vmatmul.mubr.f32.gmra.mxu1 %v22474_v54  ;;  %9070 = vmatprep.mubr.f32.mxu0 %v22479_v34  ;;  %v7389_v4 = vadd.f32 %v11084_v1, %v19271_v18 }
 0x40b   :  { %9209 = vmatprep.mubr.f32.mxu1 %v22475_v44  ;;  %v7544_v38 = vadd.f32 %v11134_v33, %v7371_v12  ;;  %v11085_v52 = vpop.f32.mrf.mxu0 }
 0x40c   :  { %v11135_v31 = vpop.f32.mrf.mxu1 }
 0x40d   :  { %9072 = vmatmul.mubr.f32.gmra.mxu0 %v22480_v14  ;;  %v11086_v63 = vpop.f32.mrf.mxu0 }
 0x40e   :  { %9211 = vmatmul.mubr.f32.gmra.mxu1 %v22476_v59  ;;  %9077 = vmatprep.mubr.f32.mxu0 %v19057_v58  ;;  %v11087_v49 = vadd.f32 %v11086_v63, %v11085_v52  ;;  %v11136_v24 = vpop.f32.mrf.mxu1 }
 0x40f   :  { %9216 = vmatprep.mubr.f32.mxu1 %v22477_v55  ;;  %v11137_v9 = vadd.f32 %v11136_v24, %v11135_v31 }
 0x410   :  { %v7398_v18 = vadd.f32 %v11087_v49, %v19292_v8 }
 0x411   :  { %9079 = vmatmul.mubr.f32.gmra.mxu0 %v22481_v23  ;;  %v7555_v39 = vadd.f32 %v11137_v9, %v7380_v7  ;;  %v11088_v56 = vpop.f32.mrf.mxu0 }
 0x412   :  { %9218 = vmatmul.mubr.f32.gmra.mxu1 %v22478_v5  ;;  %v11138_v16 = vpop.f32.mrf.mxu1 }
 0x413   :  { %9223 = vmatprep.mubr.f32.mxu1 %v22479_v34  ;;  %v11089_v41 = vpop.f32.mrf.mxu0 }
 0x414   :  { %v11090_v10 = vadd.f32 %v11089_v41, %v11088_v56  ;;  %v11139_v51 = vpop.f32.mrf.mxu1 }
 0x415   :  { %v11140_v32 = vadd.f32 %v11139_v51, %v11138_v16 }
 0x416   :  { %9225 = vmatmul.mubr.f32.gmra.mxu1 %v22480_v14  ;;  %v7407_v17 = vadd.f32 %v11090_v10, %v19313_v29 }
 0x417   :  { %9230 = vmatprep.mubr.f32.mxu1 %v19057_v58  ;;  %v7566_v60 = vadd.f32 %v11140_v32, %v7389_v4  ;;  %v11091_v25 = vpop.f32.mrf.mxu0 }
 0x418   :  { %v11141_v8 = vpop.f32.mrf.mxu1 }
 0x419   :  { %v11092_v61 = vpop.f32.mrf.mxu0 }
 0x41a   :  { %9232 = vmatmul.mubr.f32.gmra.mxu1 %v22481_v23  ;;  %v11093_v21 = vadd.f32 %v11092_v61, %v11091_v25  ;;  %v11142_v15 = vpop.f32.mrf.mxu1 }
 0x41b   :  { %v11143_v57 = vadd.f32 %v11142_v15, %v11141_v8 }
 0x41c   :  { %v7416_v0 = vadd.f32 %v11093_v21, %v19331_v11 }
 0x41d   :  { %v7577_v43 = vadd.f32 %v11143_v57, %v7398_v18  ;;  %v11094_v19 = vpop.f32.mrf.mxu0 }
 0x41f   :  { %v11144_v36 = vpop.f32.mrf.mxu1  ;;  %v11095_v37 = vpop.f32.mrf.mxu0 }
 0x420   :  { %v11096_v47 = vadd.f32 %v11095_v37, %v11094_v19 }
 0x421   :  { %v11145_v58 = vpop.f32.mrf.mxu1 }
 0x422   :  { %v11146_v45 = vadd.f32 %v11145_v58, %v11144_v36  ;;  %v7425_v29 = vadd.f32 %v11096_v47, %v19340_v35 }
 0x423   :  { %v11185_v40 = vpop.f32.mrf.mxu0 }
 0x424   :  { %v7588_v26 = vadd.f32 %v11146_v45, %v7407_v17  ;;  %v11147_v2 = vpop.f32.mrf.mxu1 }
 0x425   :  { %v11186_v28 = vpop.f32.mrf.mxu0 }
 0x426   :  { %v11148_v42 = vpop.f32.mrf.mxu1  ;;  %v11187_v50 = vadd.f32 %v11186_v28, %v11185_v40 }
 0x427   :  { %v11149_v54 = vadd.f32 %v11148_v42, %v11147_v2 }
 0x428   :  { %v7778_v12 = vadd.f32 %v11187_v50, %v19350_v46 }
 0x429   :  { %v7599_v13 = vadd.f32 %v11149_v54, %v7416_v0 }
 0x42a   :  { %v11150_v11 = vpop.f32.mrf.mxu1  ;;  %v11188_v44 = vpop.f32.mrf.mxu0 }
 0x42c   :  { %v11151_v30 = vpop.f32.mrf.mxu1  ;;  %v11189_v22 = vpop.f32.mrf.mxu0 }
 0x42d   :  { %v11152_v6 = vadd.f32 %v11151_v30, %v11150_v11  ;;  %v11190_v20 = vadd.f32 %v11189_v22, %v11188_v44 }
 0x42f   :  { %v7610_v59 = vadd.f32 %v11152_v6, %v7425_v29  ;;  %v7785_v27 = vadd.f32 %v11190_v20, %v7544_v38  ;;  %v11241_v55 = vpop.f32.mrf.mxu1 }
 0x430   :  { %v11191_v35 = vpop.f32.mrf.mxu0 }
 0x431   :  { %v11242_v7 = vpop.f32.mrf.mxu1 }
 0x432   :  { %v11192_v62 = vpop.f32.mrf.mxu0  ;;  %v11243_v53 = vadd.f32 %v11242_v7, %v11241_v55 }
 0x433   :  { %v11193_v5 = vadd.f32 %v11192_v62, %v11191_v35 }
 0x434   :  { %v19374_v3 = vadd.f32 %v11243_v53, %v7778_v12 }
 0x435   :  { %v7792_v34 = vadd.f32 %v11193_v5, %v7555_v39  ;;  %v11194_v1 = vpop.f32.mrf.mxu0  ;;  %v11244_v46 = vpop.f32.mrf.mxu1 }
 0x437   :  { %v11195_v48 = vpop.f32.mrf.mxu0  ;;  %v11245_v4 = vpop.f32.mrf.mxu1 }
 0x438   :  { %v11196_v33 = vadd.f32 %v11195_v48, %v11194_v1  ;;  %v11246_v14 = vadd.f32 %v11245_v4, %v11244_v46 }
 0x43a   :  { %v7799_v52 = vadd.f32 %v11196_v33, %v7566_v60  ;;  %v19376_v31 = vadd.f32 %v11246_v14, %v7785_v27 }
 0x43b   :  { %v11247_v38 = vpop.f32.mrf.mxu1 }
 0x43c   :  { %v11197_v63 = vpop.f32.mrf.mxu0 }
 0x43d   :  { %v11248_v23 = vpop.f32.mrf.mxu1 }
 0x43e   :  { %v11198_v49 = vpop.f32.mrf.mxu0  ;;  %v11249_v9 = vadd.f32 %v11248_v23, %v11247_v38 }
 0x43f   :  { %v11199_v24 = vadd.f32 %v11198_v49, %v11197_v63 }
 0x440   :  { %v19378_v56 = vadd.f32 %v11249_v9, %v7792_v34 }
 0x441   :  { %v7806_v18 = vadd.f32 %v11199_v24, %v7577_v43  ;;  %v11200_v16 = vpop.f32.mrf.mxu0  ;;  %v11250_v39 = vpop.f32.mrf.mxu1 }
 0x443   :  { %v11201_v41 = vpop.f32.mrf.mxu0  ;;  %v11251_v51 = vpop.f32.mrf.mxu1 }
 0x444   :  { %v11202_v10 = vadd.f32 %v11201_v41, %v11200_v16  ;;  %v11252_v32 = vadd.f32 %v11251_v51, %v11250_v39 }
 0x446   :  { %v7813_v17 = vadd.f32 %v11202_v10, %v7588_v26  ;;  %v19380_v25 = vadd.f32 %v11252_v32, %v7799_v52 }
 0x447   :  { %v11203_v60 = vpop.f32.mrf.mxu0  ;;  %v11253_v8 = vpop.f32.mrf.mxu1 }
 0x449   :  { %v11204_v61 = vpop.f32.mrf.mxu0  ;;  %v11254_v15 = vpop.f32.mrf.mxu1 }
 0x44a   :  { %v11205_v21 = vadd.f32 %v11204_v61, %v11203_v60  ;;  %v11255_v57 = vadd.f32 %v11254_v15, %v11253_v8 }
 0x44c   :  { %v7820_v0 = vadd.f32 %v11205_v21, %v7599_v13  ;;  %v19382_v19 = vadd.f32 %v11255_v57, %v7806_v18 }
 0x44d   :  { %v11256_v36 = vpop.f32.mrf.mxu1 }
 0x44e   :  { %v11206_v43 = vpop.f32.mrf.mxu0 }
 0x44f   :  { %v11257_v58 = vpop.f32.mrf.mxu1 }
 0x450   :  { %v11207_v37 = vpop.f32.mrf.mxu0  ;;  %v11258_v45 = vadd.f32 %v11257_v58, %v11256_v36 }
 0x451   :  { %v11208_v47 = vadd.f32 %v11207_v37, %v11206_v43 }
 0x452   :  { %v19384_v40 = vadd.f32 %v11258_v45, %v7813_v17 }
 0x453   :  { %v7827_v29 = vadd.f32 %v11208_v47, %v7610_v59  ;;  %v19386_v26 = vpop.f32.mrf.mxu0 }
 0x454   :  { %v11259_v2 = vpop.f32.mrf.mxu1 }
 0x455   :  { %v19388_v42 = vpop.f32.mrf.mxu0 }
 0x456   :  { %v11260_v28 = vpop.f32.mrf.mxu1 }
 0x457   :  { %v11261_v50 = vadd.f32 %v11260_v28, %v11259_v2 }
 0x459   :  { %v19390_v54 = vadd.f32 %v11261_v50, %v7820_v0 }
 0x45a   :  { %v11262_v12 = vpop.f32.mrf.mxu1 }
 0x45b   :  { %22482 = vst [vmem:[#allocation15_spill] sm:$0xff] %v19390_v54 }
 0x45c   :  { %v19392_v13 = vpop.f32.mrf.mxu0  ;;  %v11263_v11 = vpop.f32.mrf.mxu1 }
 0x45d   :  { %v11264_v44 = vadd.f32 %v11263_v11, %v11262_v12 }
 0x45e   :  { %v19394_v30 = vpop.f32.mrf.mxu0 }
 0x45f   :  { %v19396_v6 = vadd.f32 %v11264_v44, %v7827_v29 }
 0x461   :  { %22483 = vst [vmem:[#allocation40_spill] sm:$0xff] %v19396_v6  ;;  %v11353_v22 = vpop.f32.mrf.mxu1 }
 0x462   :  { %v19398_v20 = vpop.f32.mrf.mxu0 }
 0x463   :  { %v11354_v27 = vpop.f32.mrf.mxu1 }
 0x464   :  { %v19400_v59 = vpop.f32.mrf.mxu0 }
 0x467   :  { %v19402_v55 = vpop.f32.mrf.mxu0 }
 0x468   :  { %v19404_v35 = vpop.f32.mrf.mxu1 }
 0x469   :  { %v19406_v7 = vpop.f32.mrf.mxu0 }
 0x46a   :  { %v11357_v62 = vpop.f32.mrf.mxu1 }
 0x46d   :  { %v19408_v53 = vpop.f32.mrf.mxu0 }
 0x46e   :  { %v19410_v5 = vpop.f32.mrf.mxu1 }
 0x46f   :  { %v19412_v34 = vpop.f32.mrf.mxu0 }
 0x470   :  { %v19414_v1 = vpop.f32.mrf.mxu1 }
 0x473   :  { %v19416_v46 = vpop.f32.mrf.mxu0 }
 0x474   :  { %v19418_v48 = vpop.f32.mrf.mxu1 }
 0x475   :  { %v19420_v33 = vpop.f32.mrf.mxu0 }
 0x476   :  { %v19422_v4 = vpop.f32.mrf.mxu1 }
 0x479   :  { %v19424_v14 = vpop.f32.mrf.mxu0 }
 0x47a   :  { %v19426_v52 = vpop.f32.mrf.mxu1 }
 0x47b   :  { %v19428_v63 = vpop.f32.mrf.mxu0 }
 0x47c   :  { %22484 = vst [vmem:[#allocation27_spill] sm:$0xff] %v19428_v63  ;;  %v19430_v38 = vpop.f32.mrf.mxu1  ;;  %v11358_v63 = vadd.f32 %v11357_v62, %v19404_v35 }
 0x47f   :  { %v19432_v49 = vpop.f32.mrf.mxu0 }
 0x480   :  { %22485 = vst [vmem:[#allocation36_spill] sm:$0xff] %v19432_v49  ;;  %v19434_v24 = vpop.f32.mrf.mxu1  ;;  %v11299_v49 = vadd.f32 %v19388_v42, %v19386_v26 }
 0x481   :  { %v19436_v23 = vpop.f32.mrf.mxu0 }
 0x482   :  { %22486 = vst [vmem:[#allocation60_spill] sm:$0xff] %v19436_v23  ;;  %v19438_v9 = vpop.f32.mrf.mxu1 }
 0x485   :  { %v11409_v18 = vpop.f32.mrf.mxu0 }
 0x486   :  { %v19440_v16 = vpop.f32.mrf.mxu1 }
 0x487   :  { %22487 = vst [vmem:[#allocation29_spill] sm:$0xff] %v19440_v16  ;;  %v11410_v41 = vpop.f32.mrf.mxu0 }
 0x488   :  { %v19442_v39 = vpop.f32.mrf.mxu1 }
 0x489   :  { %22488 = vst [vmem:[#allocation62_spill] sm:$0xff] %v19442_v39 }
 0x48b   :  { %v19444_v10 = vpop.f32.mrf.mxu1 }
 0x48c   :  { %22489 = vst [vmem:[#allocation38_spill] sm:$0xff] %v19444_v10  ;;  %v11412_v51 = vpop.f32.mrf.mxu0 }
 0x48d   :  { %v19446_v32 = vpop.f32.mrf.mxu1 }
 0x48e   :  { %22490 = vst [vmem:[#allocation8_spill] sm:$0xff] %v19446_v32  ;;  %v11413_v17 = vpop.f32.mrf.mxu0 }
 0x491   :  { %v11465_v60 = vpop.f32.mrf.mxu1 }
 0x492   :  { %v11415_v8 = vpop.f32.mrf.mxu0 }
 0x493   :  { %v11466_v21 = vpop.f32.mrf.mxu1 }
 0x494   :  { %v11416_v61 = vpop.f32.mrf.mxu0  ;;  %v11467_v26 = vadd.f32 %v11466_v21, %v11465_v60 }
 0x497   :  { %v19448_v15 = vpop.f32.mrf.mxu0 }
 0x498   :  { %v11468_v57 = vpop.f32.mrf.mxu1 }
 0x499   :  { %v19450_v0 = vpop.f32.mrf.mxu0 }
 0x49a   :  { %v11469_v43 = vpop.f32.mrf.mxu1 }
 0x49b   :  { %v11470_v35 = vadd.f32 %v11469_v43, %v11468_v57 }
 0x49d   :  { %v19452_v36 = vpop.f32.mrf.mxu0 }
 0x49e   :  { %v11471_v37 = vpop.f32.mrf.mxu1 }
 0x49f   :  { %v19454_v47 = vpop.f32.mrf.mxu0 }
 0x4a0   :  { %v11472_v58 = vpop.f32.mrf.mxu1 }
 0x4a3   :  { %v19456_v45 = vpop.f32.mrf.mxu0 }
 0x4a4   :  { %22491 = vst [vmem:[#allocation57_spill] sm:$0xff] %v19456_v45  ;;  %v19458_v29 = vpop.f32.mrf.mxu1 }
 0x4a5   :  { %v19460_v2 = vpop.f32.mrf.mxu0 }
 0x4a6   :  { %22492 = vst [vmem:[#allocation70_spill] sm:$0xff] %v19460_v2  ;;  %v19462_v28 = vpop.f32.mrf.mxu1 }
 0x4a9   :  { %v19464_v50 = vpop.f32.mrf.mxu0 }
 0x4aa   :  { %22493 = vst [vmem:[#allocation22_spill] sm:$0xff] %v19464_v50  ;;  %v19466_v12 = vpop.f32.mrf.mxu1  ;;  %v11355_v50 = vadd.f32 %v11354_v27, %v11353_v22  ;;  %v11305_v22 = vadd.f32 %v19400_v59, %v19398_v20  ;;  %v11308_v20 = vadd.f32 %v19406_v7, %v19402_v55  ;;  %v11417_v59 = vadd.f32 %v11416_v61, %v11415_v8 }
 0x4ab   :  { %v19468_v11 = vpop.f32.mrf.mxu0  ;;  %v11311_v55 = vadd.f32 %v19412_v34, %v19408_v53  ;;  %v11476_v53 = vadd.f32 %v19462_v28, %v19458_v29 }
 0x4ac   :  { %22494 = vst [vmem:[#allocation43_spill] sm:$0xff] %v19468_v11  ;;  %v19470_v44 = vpop.f32.mrf.mxu1  ;;  %v8092_v11 = vadd.f32 %v11299_v49, %v19374_v3  ;;  %v11414_v49 = vadd.f32 %v11413_v17, %v11412_v51  ;;  %v8122_v60 = vadd.f32 %v11305_v22, %v19378_v56  ;;  %v8137_v56 = vadd.f32 %v11308_v20, %v19380_v25 }
 0x4af   :  { %v19472_v6 = vpop.f32.mrf.mxu0 }
 0x4b0   :  { %22495 = vst [vmem:[#allocation42_spill] sm:$0xff] %v19472_v6  ;;  %v19474_v32 = vpop.f32.mrf.mxu1  ;;  %v11302_v6 = vadd.f32 %v19394_v30, %v19392_v13  ;;  %v11361_v30 = vadd.f32 %v19414_v1, %v19410_v5  ;;  %v11364_v5 = vadd.f32 %v19422_v4, %v19418_v48 }
 0x4b1   :  { %22496 = vst [vmem:[#allocation68_spill] sm:$0xff] %v19474_v32  ;;  %v19476_v10 = vpop.f32.mrf.mxu0  ;;  %v11411_v32 = vadd.f32 %v11410_v41, %v11409_v18 }
 0x4b2   :  { %22497 = vst [vmem:[#allocation35_spill] sm:$0xff] %v19476_v10  ;;  %v19478_v23 = vpop.f32.mrf.mxu1  ;;  %v8443_v51 = vadd.f32 %v11361_v30, %v8122_v60 }
 0x4b3   :  { %22498 = vst [vmem:[#allocation7_spill] sm:$0xff] %v19478_v23  ;;  %v8429_v23 = vadd.f32 %v11355_v50, %v8092_v11  ;;  %v11423_v11 = vadd.f32 %v19454_v47, %v19452_v36 }
 0x4b4   :  { %v8634_v7 = vadd.f32 %v11417_v59, %v8443_v51  ;;  %v22508_v51 = vld [vmem:[#allocation15_spill] sm:$0xff] }
 0x4b5   :  { %v11521_v54 = vpop.f32.mrf.mxu0  ;;  %v8616_v3 = vadd.f32 %v11411_v32, %v8429_v23 }
 0x4b6   :  { %v19482_v39 = vpop.f32.mrf.mxu1 }
 0x4b7   :  { %22499 = vst [vmem:[#allocation3_spill] sm:$0xff] %v19482_v39  ;;  %v11522_v16 = vpop.f32.mrf.mxu0  ;;  %v8787_v50 = vadd.f32 %v11467_v26, %v8616_v3 }
 0x4b8   :  { %v19484_v2 = vpop.f32.mrf.mxu1  ;;  %v11523_v39 = vadd.f32 %v11522_v16, %v11521_v54 }
 0x4b9   :  { %22500 = vst [vmem:[#allocation13_spill] sm:$0xff] %v19484_v2  ;;  %v11524_v45 = vpop.f32.mrf.mxu0  ;;  %v8107_v2 = vadd.f32 %v11302_v6, %v19376_v31 }
 0x4ba   :  { %v19489_v10 = vpop.f32.mrf.mxu1  ;;  %v9032_v6 = vadd.f32 %v11523_v39, %v8787_v50  ;;  %v11420_v39 = vadd.f32 %v19450_v0, %v19448_v15  ;;  %v8152_v15 = vadd.f32 %v11311_v55, %v19382_v19  ;;  %v11314_v0 = vadd.f32 %v19420_v33, %v19416_v46  ;;  %v22502_v50 = vld [vmem:[#allocation57_spill] sm:$0xff] }
 0x4bb   :  { %v11525_v42 = vpop.f32.mrf.mxu0  ;;  %v8436_v41 = vadd.f32 %v11358_v63, %v8107_v2  ;;  %v11473_v63 = vadd.f32 %v11472_v58, %v11471_v37  ;;  %v11367_v37 = vadd.f32 %v19430_v38, %v19426_v52  ;;  %v8450_v58 = vadd.f32 %v11364_v5, %v8137_v56  ;;  %v22509_v5 = vld [vmem:[#allocation36_spill] sm:$0xff] }
 0x4bc   :  { %v19494_v27 = vpop.f32.mrf.mxu1  ;;  %v11526_v23 = vadd.f32 %v11525_v42, %v11524_v45  ;;  %v11370_v19 = vadd.f32 %v19438_v9, %v19434_v24  ;;  %v11479_v46 = vadd.f32 %v19470_v44, %v19466_v12  ;;  %v8167_v47 = vadd.f32 %v11314_v0, %v19384_v40  ;;  %v22504_v12 = vld [vmem:[#allocation29_spill] sm:$0xff]  ;;  %v22505_v44 = vld [vmem:[#allocation62_spill] sm:$0xff]  ;;  %v22517_v0 = vld [vmem:[#allocation40_spill] sm:$0xff] }
 0x4bd   :  { %v11527_v13 = vpop.f32.mrf.mxu0  ;;  %v8625_v31 = vadd.f32 %v11414_v49, %v8436_v41  ;;  %v8809_v45 = vadd.f32 %v11473_v63, %v8634_v7  ;;  %v8643_v42 = vadd.f32 %v11420_v39, %v8450_v58  ;;  %v8457_v28 = vadd.f32 %v11367_v37, %v8152_v15  ;;  %v22513_v37 = vld [vmem:[#allocation38_spill] sm:$0xff] }
 0x4be   :  { %v11577_v18 = vpop.f32.mrf.mxu1  ;;  %v11373_v59 = vadd.f32 %v22505_v44, %v22504_v12 }
 0x4bf   :  { %v11528_v62 = vpop.f32.mrf.mxu0  ;;  %v8798_v1 = vadd.f32 %v11470_v35, %v8625_v31  ;;  %v8820_v49 = vadd.f32 %v11476_v53, %v8643_v42  ;;  %v22503_v35 = vld [vmem:[#allocation70_spill] sm:$0xff]  ;;  %v22515_v53 = vld [vmem:[#allocation3_spill] sm:$0xff] }
 0x4c0   :  { %v11578_v21 = vpop.f32.mrf.mxu1  ;;  %v11529_v43 = vadd.f32 %v11528_v62, %v11527_v13  ;;  %v22501_v13 = vld [vmem:[#allocation27_spill] sm:$0xff]  ;;  %v11426_v62 = vadd.f32 %v22503_v35, %v22502_v50 }
 0x4c1   :  { %v11579_v54 = vadd.f32 %v11578_v21, %v11577_v18  ;;  %v11530_v16 = vpop.f32.mrf.mxu0  ;;  %v9039_v61 = vadd.f32 %v11526_v23, %v8798_v1  ;;  %v11317_v30 = vadd.f32 %v22501_v13, %v19424_v14  ;;  %v8652_v18 = vadd.f32 %v11423_v11, %v8457_v28  ;;  %v22506_v14 = vld [vmem:[#allocation68_spill] sm:$0xff] }
 0x4c2   :  { %v11580_v32 = vpop.f32.mrf.mxu1  ;;  %v9046_v22 = vadd.f32 %v11529_v43, %v8809_v45  ;;  %v8464_v21 = vadd.f32 %v11370_v19, %v8167_v47  ;;  %v22510_v1 = vld [vmem:[#allocation60_spill] sm:$0xff] }
 0x4c3   :  { %v9185_v17 = vadd.f32 %v11579_v54, %v9032_v6  ;;  %v11531_v57 = vpop.f32.mrf.mxu0  ;;  %v8831_v31 = vadd.f32 %v11479_v46, %v8652_v18  ;;  %v22507_v6 = vld [vmem:[#allocation7_spill] sm:$0xff]  ;;  %v11320_v63 = vadd.f32 %v22510_v1, %v22509_v5 }
 0x4c4   :  { %v11581_v8 = vpop.f32.mrf.mxu1  ;;  %v11532_v52 = vadd.f32 %v11531_v57, %v11530_v16  ;;  %v11482_v23 = vadd.f32 %v22507_v6, %v22506_v14  ;;  %v22512_v57 = vld [vmem:[#allocation43_spill] sm:$0xff]  ;;  %v8661_v7 = vadd.f32 %v11426_v62, %v8464_v21 }
 0x4c5   :  { %9237 = vst [vmem:[%s19571_s2] sm:$0xff] %v9185_v17  ;;  %v11582_v48 = vadd.f32 %v11581_v8, %v11580_v32  ;;  %v11533_v4 = vpop.f32.mrf.mxu0  ;;  %v8182_v32 = vadd.f32 %v11317_v30, %v22508_v51  ;;  %v22511_v17 = vld [vmem:[#allocation22_spill] sm:$0xff]  ;;  %v8197_v11 = vadd.f32 %v11320_v63, %v22517_v0 }
 0x4c6   :  { %v11583_v25 = vpop.f32.mrf.mxu1  ;;  %v9053_v60 = vadd.f32 %v11532_v52, %v8820_v49  ;;  %v11429_v56 = vadd.f32 %v22512_v57, %v22511_v17  ;;  %v8842_v45 = vadd.f32 %v11482_v23, %v8661_v7  ;;  %v22519_v52 = vld [vmem:[#allocation35_spill] sm:$0xff] }
 0x4c7   :  { %v9192_v34 = vadd.f32 %v11582_v48, %v9039_v61  ;;  %v11534_v2 = vpop.f32.mrf.mxu0  ;;  %v8471_v43 = vadd.f32 %v11373_v59, %v8182_v32 }
 0x4c8   :  { %v11584_v26 = vpop.f32.mrf.mxu1  ;;  %v11535_v20 = vadd.f32 %v11534_v2, %v11533_v4 }
 0x4c9   :  { %9238 = vst [vmem:[%s19571_s2 + $0x8] sm:$0xff] %v9192_v34  ;;  %v11585_v38 = vadd.f32 %v11584_v26, %v11583_v25  ;;  %v11536_v29 = vpop.f32.mrf.mxu0  ;;  %v22514_v25 = vld [vmem:[#allocation8_spill] sm:$0xff]  ;;  %v22516_v34 = vld [vmem:[#allocation13_spill] sm:$0xff]  ;;  %v8670_v26 = vadd.f32 %v11429_v56, %v8471_v43 }
 0x4ca   :  { %v11586_v3 = vpop.f32.mrf.mxu1  ;;  %v9060_v8 = vadd.f32 %v11535_v20, %v8831_v31  ;;  %v11376_v58 = vadd.f32 %v22514_v25, %v22513_v37  ;;  %v11485_v2 = vadd.f32 %v22516_v34, %v22515_v53 }
 0x4cb   :  { %v9199_v33 = vadd.f32 %v11585_v38, %v9046_v22  ;;  %v11537_v36 = vpop.f32.mrf.mxu0  ;;  %v22518_v22 = vld [vmem:[#allocation42_spill] sm:$0xff] }
 0x4cc   :  { %v11587_v41 = vpop.f32.mrf.mxu1  ;;  %v11538_v39 = vadd.f32 %v11537_v36, %v11536_v29  ;;  %v11432_v38 = vadd.f32 %v22519_v52, %v22518_v22  ;;  %v8478_v46 = vadd.f32 %v11376_v58, %v8197_v11  ;;  %v11488_v36 = vadd.f32 %v19494_v27, %v19489_v10 }
 0x4cd   :  { %9239 = vst [vmem:[%s19571_s2 + $0x10] sm:$0xff] %v9199_v33  ;;  %v11588_v24 = vadd.f32 %v11587_v41, %v11586_v3  ;;  %v11539_v9 = vpop.f32.mrf.mxu0  ;;  %v8853_v33 = vadd.f32 %v11485_v2, %v8670_v26 }
 0x4ce   :  { %v11589_v40 = vpop.f32.mrf.mxu1  ;;  %v9067_v29 = vadd.f32 %v11538_v39, %v8842_v45  ;;  %v8679_v30 = vadd.f32 %v11432_v38, %v8478_v46 }
 0x4cf   :  { %v9206_v54 = vadd.f32 %v11588_v24, %v9053_v60  ;;  %v11540_v16 = vpop.f32.mrf.mxu0 }
 0x4d0   :  { %v11590_v55 = vpop.f32.mrf.mxu1  ;;  %v11541_v28 = vadd.f32 %v11540_v16, %v11539_v9  ;;  %v8864_v62 = vadd.f32 %v11488_v36, %v8679_v30 }
 0x4d1   :  { %9240 = vst [vmem:[%s19571_s2 + $0x18] sm:$0xff] %v9206_v54  ;;  %v11591_v61 = vadd.f32 %v11590_v55, %v11589_v40  ;;  %v11542_v48 = vpop.f32.mrf.mxu0 }
 0x4d2   :  { %v11592_v4 = vpop.f32.mrf.mxu1  ;;  %v9074_v18 = vadd.f32 %v11541_v28, %v8853_v33 }
 0x4d3   :  { %v9213_v15 = vadd.f32 %v11591_v61, %v9060_v8  ;;  %v11543_v19 = vpop.f32.mrf.mxu0 }
 0x4d4   :  { %v11593_v42 = vpop.f32.mrf.mxu1  ;;  %v11544_v41 = vadd.f32 %v11543_v19, %v11542_v48 }
 0x4d5   :  { %9241 = vst [vmem:[%s19571_s2 + $0x20] sm:$0xff] %v9213_v15  ;;  %v11594_v3 = vadd.f32 %v11593_v42, %v11592_v4 }
 0x4d6   :  { %v11595_v49 = vpop.f32.mrf.mxu1  ;;  %v9081_v24 = vadd.f32 %v11544_v41, %v8864_v62 }
 0x4d7   :  { %v9220_v47 = vadd.f32 %v11594_v3, %v9067_v29 }
 0x4d8   :  { %v11596_v13 = vpop.f32.mrf.mxu1 }
 0x4d9   :  { %9242 = vst [vmem:[%s19571_s2 + $0x28] sm:$0xff] %v9220_v47  ;;  %v11597_v50 = vadd.f32 %v11596_v13, %v11595_v49 }
 0x4da   :  { %v11598_v35 = vpop.f32.mrf.mxu1 }
 0x4db   :  { %v9227_v60 = vadd.f32 %v11597_v50, %v9074_v18 }
 0x4dc   :  { %v11599_v20 = vpop.f32.mrf.mxu1 }
 0x4dd   :  { %9243 = vst [vmem:[%s19571_s2 + $0x30] sm:$0xff] %v9227_v60  ;;  %v11600_v10 = vadd.f32 %v11599_v20, %v11598_v35 }
 0x4df   :  { %v9234_v27 = vadd.f32 %v11600_v10, %v9081_v24 }
 0x4e1   :  { %9244 = vst [vmem:[%s19571_s2 + $0x38] sm:$0xff] %v9234_v27 }

</bundles_post_ra>
